<compile_context>
chip_gen: v7x
topology: tpu7x:2x2x1
jax: 0.10.0
libtpu: 0.0.40
codegen_flags: <defaults>
</compile_context>

<pallas_src>
import functools

import jax
import jax.numpy as jnp
from jax.experimental import pallas as pl
from jax.experimental.pallas import tpu as pltpu


def _round_up(x, m):
    return ((x + m - 1) // m) * m


# ----------------------------------------------------------------------------
# Pallas kernels
# ----------------------------------------------------------------------------
def _matmul_bias_kernel(a_ref, b_ref, bias_ref, o_ref, acc_ref, *, activation):
    """Tiled matmul with K-axis accumulation; bias/activation fused in finalize."""

    @pl.when(pl.program_id(2) == 0)
    def _init():
        acc_ref[...] = jnp.zeros_like(acc_ref)

    acc_ref[...] += jnp.dot(a_ref[...], b_ref[...],
                            preferred_element_type=jnp.float32)

    @pl.when(pl.program_id(2) == pl.num_programs(2) - 1)
    def _finalize():
        y = acc_ref[...] + bias_ref[...]
        if activation == "tanh":
            y = jnp.tanh(y)
        o_ref[...] = y.astype(o_ref.dtype)


def matmul_bias(a, b, bias, activation="none"):
    """a: (M, K), b: (K, N), bias: (1, N) -> (M, N) f32.

    bf16 MXU inputs with f32 accumulation. M/N/K are padded to tile multiples
    (N to >=128 for lane-dense stores), the valid region is sliced on return.
    """
    M, K = a.shape
    Kb, N = b.shape
    assert K == Kb

    tm = min(512, _round_up(M, 8))
    tn = min(256, _round_up(N, 128))
    Kp = _round_up(K, 128)
    tk = next(t for t in (512, 384, 256, 128) if Kp % t == 0)
    Mp = _round_up(M, tm)
    Np = _round_up(N, tn)

    a_p = jnp.pad(a.astype(jnp.bfloat16), ((0, Mp - M), (0, Kp - K)))
    b_p = jnp.pad(b.astype(jnp.bfloat16), ((0, Kp - K), (0, Np - N)))
    bias_p = jnp.pad(bias.astype(jnp.float32), ((0, 0), (0, Np - N)))

    grid = (Mp // tm, Np // tn, Kp // tk)
    kernel = functools.partial(_matmul_bias_kernel, activation=activation)
    out = pl.pallas_call(
        kernel,
        out_shape=jax.ShapeDtypeStruct((Mp, Np), jnp.float32),
        grid=grid,
        in_specs=[
            pl.BlockSpec((tm, tk), lambda i, j, k: (i, k)),
            pl.BlockSpec((tk, tn), lambda i, j, k: (k, j)),
            pl.BlockSpec((1, tn), lambda i, j, k: (0, j)),
        ],
        out_specs=pl.BlockSpec((tm, tn), lambda i, j, k: (i, j)),
        scratch_shapes=[pltpu.VMEM((tm, tn), jnp.float32)],
        compiler_params=pltpu.CompilerParams(
            dimension_semantics=("parallel", "parallel", "arbitrary")),
    )(a_p, b_p, bias_p)

    if Mp != M or Np != N:
        out = out[:M, :N]
    return out


def _instnorm_kernel(x_ref, o_ref, *, relu, eps):
    x = x_ref[...]  # (1, H*W, tc)
    mean = jnp.mean(x, axis=1, keepdims=True)
    var = jnp.mean((x - mean) ** 2, axis=1, keepdims=True)  # biased var (PyTorch)
    y = (x - mean) * jax.lax.rsqrt(var + eps)
    if relu:
        y = jnp.maximum(y, 0.0)
    o_ref[...] = y.astype(o_ref.dtype)


def _instnorm_add_kernel(x_ref, res_ref, o_ref, *, eps):
    x = x_ref[...]  # (1, H*W, tc)
    mean = jnp.mean(x, axis=1, keepdims=True)
    var = jnp.mean((x - mean) ** 2, axis=1, keepdims=True)
    y = (x - mean) * jax.lax.rsqrt(var + eps)
    o_ref[...] = (res_ref[...] + y).astype(o_ref.dtype)


def _channel_tile(C):
    return 128 if C % 128 == 0 else C


def instance_norm(x, relu=False, eps=1e-5):
    """InstanceNorm2d(affine=False) (+ optional ReLU) on NHWC input."""
    N, H, W, C = x.shape
    tc = _channel_tile(C)
    kernel = functools.partial(_instnorm_kernel, relu=relu, eps=eps)
    out = pl.pallas_call(
        kernel,
        out_shape=jax.ShapeDtypeStruct((N, H * W, C), jnp.float32),
        grid=(N, C // tc),
        in_specs=[pl.BlockSpec((1, H * W, tc), lambda n, c: (n, 0, c))],
        out_specs=pl.BlockSpec((1, H * W, tc), lambda n, c: (n, 0, c)),
        compiler_params=pltpu.CompilerParams(
            dimension_semantics=("parallel", "parallel")),
    )(x.reshape(N, H * W, C))
    return out.reshape(N, H, W, C)


def instance_norm_add(x, res, eps=1e-5):
    """residual + InstanceNorm2d(x) fused, NHWC input."""
    N, H, W, C = x.shape
    tc = _channel_tile(C)
    kernel = functools.partial(_instnorm_add_kernel, eps=eps)
    out = pl.pallas_call(
        kernel,
        out_shape=jax.ShapeDtypeStruct((N, H * W, C), jnp.float32),
        grid=(N, C // tc),
        in_specs=[
            pl.BlockSpec((1, H * W, tc), lambda n, c: (n, 0, c)),
            pl.BlockSpec((1, H * W, tc), lambda n, c: (n, 0, c)),
        ],
        out_specs=pl.BlockSpec((1, H * W, tc), lambda n, c: (n, 0, c)),
        compiler_params=pltpu.CompilerParams(
            dimension_semantics=("parallel", "parallel")),
    )(x.reshape(N, H * W, C), res.reshape(N, H * W, C))
    return out.reshape(N, H, W, C)


# ----------------------------------------------------------------------------
# Convolution glue (im2col in plain JAX, matmul in Pallas)
# ----------------------------------------------------------------------------
def _conv2d_core(xp, w, b, stride, activation="none"):
    """xp: pre-padded NHWC input. w: PyTorch Conv2d weight (Cout, Cin, kh, kw)."""
    N, Hp, Wp, Cin = xp.shape
    Cout, _, kh, kw = w.shape
    oh = (Hp - kh) // stride + 1
    ow = (Wp - kw) // stride + 1
    xp = xp.astype(jnp.bfloat16)  # halve im2col HBM bytes; MXU is bf16-native
    cols = []
    for i in range(kh):
        for j in range(kw):
            cols.append(xp[:, i:i + stride * oh:stride, j:j + stride * ow:stride, :])
    patches = jnp.concatenate(cols, axis=-1)               # (N, oh, ow, kh*kw*Cin)
    a = patches.reshape(N * oh * ow, kh * kw * Cin)
    # match patch ordering: index = (i*kw + j)*Cin + c  ->  w[o, c, i, j]
    bmat = jnp.transpose(w, (2, 3, 1, 0)).reshape(kh * kw * Cin, Cout)
    out = matmul_bias(a, bmat, b.reshape(1, Cout), activation)
    return out.reshape(N, oh, ow, Cout)


def conv2d(x, w, b, stride=1, pad=0, pad_mode="zero", activation="none"):
    if pad > 0:
        mode = "reflect" if pad_mode == "reflect" else "constant"
        x = jnp.pad(x, ((0, 0), (pad, pad), (pad, pad), (0, 0)), mode=mode)
    return _conv2d_core(x, w, b, stride, activation)


def conv_transpose2d(x, w_t, b, stride=2, padding=1, output_padding=1):
    """PyTorch ConvTranspose2d(k=3, s=2, p=1, op=1). w_t: (Cin, Cout, kh, kw).

    Sub-pixel phase decomposition: each output parity phase (oy%2, ox%2) is a
    small stride-1 conv on the un-dilated input (no multiplying 75% zeros).
    """
    assert stride == 2 and padding == 1 and output_padding == 1
    N, H, W, Cin = x.shape
    # equivalent forward-conv weight: flip spatially, swap in/out channels
    w_conv = jnp.transpose(jnp.flip(w_t, axis=(2, 3)), (1, 0, 2, 3))  # (Cout, Cin, 3, 3)
    Cout = w_conv.shape[0]
    # one zero row/col at bottom/right covers the out-of-range taps
    xe = jnp.pad(x, ((0, 0), (0, 1), (0, 1), (0, 0)))

    p00 = _conv2d_core(x, w_conv[:, :, 1:2, 1:2], b, 1)                 # (even, even)
    p01 = _conv2d_core(xe[:, :H, :, :], w_conv[:, :, 1:2, 0::2], b, 1)  # (even, odd)
    p10 = _conv2d_core(xe[:, :, :W, :], w_conv[:, :, 0::2, 1:2], b, 1)  # (odd, even)
    p11 = _conv2d_core(xe, w_conv[:, :, 0::2, 0::2], b, 1)              # (odd, odd)

    row0 = jnp.stack([p00, p01], axis=3)   # (N, H, W, 2, Cout)
    row1 = jnp.stack([p10, p11], axis=3)   # (N, H, W, 2, Cout)
    y = jnp.stack([row0, row1], axis=2)    # (N, H, 2, W, 2, Cout)
    return y.reshape(N, 2 * H, 2 * W, Cout)


# ----------------------------------------------------------------------------
# Parameters (deterministic synthetic init) and forward pass
# ----------------------------------------------------------------------------
def _winit(key, shape, scale=0.05):
    return scale * jax.random.normal(key, shape, dtype=jnp.float32)


def init_params(key, input_nc=1, output_nc=1, n_res=9):
    params = {}
    keys = iter(jax.random.split(key, 64))
    params["c0_w"] = _winit(next(keys), (64, input_nc, 7, 7))
    params["c0_b"] = _winit(next(keys), (64,))
    in_f = 64
    for d in range(2):
        out_f = in_f * 2
        params[f"d{d}_w"] = _winit(next(keys), (out_f, in_f, 3, 3))
        params[f"d{d}_b"] = _winit(next(keys), (out_f,))
        in_f = out_f
    for r in range(n_res):
        params[f"r{r}_w1"] = _winit(next(keys), (in_f, in_f, 3, 3))
        params[f"r{r}_b1"] = _winit(next(keys), (in_f,))
        params[f"r{r}_w2"] = _winit(next(keys), (in_f, in_f, 3, 3))
        params[f"r{r}_b2"] = _winit(next(keys), (in_f,))
    for u in range(2):
        out_f = in_f // 2
        params[f"u{u}_w"] = _winit(next(keys), (in_f, out_f, 3, 3))  # ConvT: (Cin, Cout, kh, kw)
        params[f"u{u}_b"] = _winit(next(keys), (out_f,))
        in_f = out_f
    params["o_w"] = _winit(next(keys), (output_nc, 64, 7, 7))
    params["o_b"] = _winit(next(keys), (output_nc,))
    return params


def xralefkdo_forward(params, x_nchw, n_res=9):
    # NCHW (PyTorch) -> NHWC for the kernels
    y = jnp.transpose(x_nchw, (0, 2, 3, 1)).astype(jnp.float32)

    # ReflectionPad2d(3) + Conv2d(in, 64, 7) + IN + ReLU
    y = conv2d(y, params["c0_w"], params["c0_b"], pad=3, pad_mode="reflect")
    y = instance_norm(y, relu=True)

    # 2x downsample: Conv2d(k=3, s=2, p=1) + IN + ReLU
    for d in range(2):
        y = conv2d(y, params[f"d{d}_w"], params[f"d{d}_b"], stride=2, pad=1)
        y = instance_norm(y, relu=True)

    # residual blocks
    for r in range(n_res):
        t = conv2d(y, params[f"r{r}_w1"], params[f"r{r}_b1"], pad=1, pad_mode="reflect")
        t = instance_norm(t, relu=True)
        t = conv2d(t, params[f"r{r}_w2"], params[f"r{r}_b2"], pad=1, pad_mode="reflect")
        y = instance_norm_add(t, y)  # x + IN(conv_block(x))

    # 2x upsample: ConvTranspose2d(k=3, s=2, p=1, op=1) + IN + ReLU
    for u in range(2):
        y = conv_transpose2d(y, params[f"u{u}_w"], params[f"u{u}_b"])
        y = instance_norm(y, relu=True)

    # ReflectionPad2d(3) + Conv2d(64, out, 7) + Tanh (tanh fused in matmul finalize)
    y = conv2d(y, params["o_w"], params["o_b"], pad=3, pad_mode="reflect",
               activation="tanh")

    return jnp.transpose(y, (0, 3, 1, 2))  # back to NCHW


if __name__ == "__main__":
    key = jax.random.PRNGKey(0)
    kx, kp = jax.random.split(key)
    x = jax.random.normal(kx, (2, 1, 16, 16), dtype=jnp.float32)  # NCHW like PyTorch
    params = init_params(kp, input_nc=1, output_nc=1, n_res=9)

    fwd = jax.jit(functools.partial(xralefkdo_forward, n_res=9))
    out = fwd(params, x)
    jax.block_until_ready(out)
    assert out.shape == (2, 1, 16, 16), out.shape
    assert bool(jnp.all(jnp.isfinite(out)))
    print("KERNEL_OK")
</pallas_src>

<mosaic_0001>
module attributes {stable_mosaic.version = 11 : i64} {
  func.func @_instnorm_kernel(%arg0: i32, %arg1: i32, %arg2: memref<1x256x64xf32, #tpu.memory_space<vmem>>, %arg3: memref<1x256x64xf32, #tpu.memory_space<vmem>>) attributes {dimension_semantics = [#tpu.dimension_semantics<parallel>, #tpu.dimension_semantics<parallel>], iteration_bounds = array<i64: 2, 1>, scalar_prefetch = 0 : i64, scratch_operands = 0 : i64, tpu.core_type = #tpu.core_type<tc>, window_params = [{transform_indices = @transform_0, window_bounds = array<i64: 1, 256, 64>}, {transform_indices = @transform_1, window_bounds = array<i64: 1, 256, 64>}]} {
    %c0 = arith.constant 0 : index
    %c0_0 = arith.constant 0 : index
    %c0_1 = arith.constant 0 : index
    %0 = vector.load %arg2[%c0, %c0_0, %c0_1] : memref<1x256x64xf32, #tpu.memory_space<vmem>>, vector<1x256x64xf32>
    %cst = arith.constant dense<0.000000e+00> : vector<1x64xf32>
    %1 = vector.multi_reduction <add>, %0, %cst [1] : vector<1x256x64xf32> to vector<1x64xf32>
    %2 = vector.shape_cast %1 : vector<1x64xf32> to vector<1x1x64xf32>
    %cst_2 = arith.constant 2.560000e+02 : f32
    %3 = vector.broadcast %cst_2 : f32 to vector<1x1x64xf32>
    %4 = arith.divf %2, %3 : vector<1x1x64xf32>
    %5 = vector.broadcast %4 : vector<1x1x64xf32> to vector<1x256x64xf32>
    %6 = arith.subf %0, %5 : vector<1x256x64xf32>
    %7 = arith.mulf %6, %6 : vector<1x256x64xf32>
    %cst_3 = arith.constant dense<0.000000e+00> : vector<1x64xf32>
    %8 = vector.multi_reduction <add>, %7, %cst_3 [1] : vector<1x256x64xf32> to vector<1x64xf32>
    %9 = vector.shape_cast %8 : vector<1x64xf32> to vector<1x1x64xf32>
    %cst_4 = arith.constant 2.560000e+02 : f32
    %10 = vector.broadcast %cst_4 : f32 to vector<1x1x64xf32>
    %11 = arith.divf %9, %10 : vector<1x1x64xf32>
    %12 = vector.broadcast %4 : vector<1x1x64xf32> to vector<1x256x64xf32>
    %13 = arith.subf %0, %12 : vector<1x256x64xf32>
    %cst_5 = arith.constant 9.99999974E-6 : f32
    %14 = vector.broadcast %cst_5 : f32 to vector<1x1x64xf32>
    %15 = arith.addf %11, %14 : vector<1x1x64xf32>
    %16 = math.rsqrt %15 : vector<1x1x64xf32>
    %17 = vector.broadcast %16 : vector<1x1x64xf32> to vector<1x256x64xf32>
    %18 = arith.mulf %13, %17 : vector<1x256x64xf32>
    %cst_6 = arith.constant 0.000000e+00 : f32
    %19 = vector.broadcast %cst_6 : f32 to vector<1x256x64xf32>
    %20 = arith.maximumf %18, %19 : vector<1x256x64xf32>
    %c0_7 = arith.constant 0 : index
    %c0_8 = arith.constant 0 : index
    %c0_9 = arith.constant 0 : index
    %21 = vector.load %arg3[%c0_7, %c0_8, %c0_9] : memref<1x256x64xf32, #tpu.memory_space<vmem>>, vector<1x256x64xf32>
    tpu.vector_store %arg3[%c0_7, %c0_8, %c0_9], %20 {strides = array<i32>} : memref<1x256x64xf32, #tpu.memory_space<vmem>>, vector<1x256x64xf32>,
    return
  }
  func.func @transform_0(%arg0: i32, %arg1: i32) -> (i32, i32, i32) {
    %c0_i32 = arith.constant 0 : i32
    %c0_i32_0 = arith.constant 0 : i32
    return %arg0, %c0_i32, %arg1 : i32, i32, i32
  }
  func.func @transform_1(%arg0: i32, %arg1: i32) -> (i32, i32, i32) {
    %c0_i32 = arith.constant 0 : i32
    %c0_i32_0 = arith.constant 0 : i32
    return %arg0, %c0_i32, %arg1 : i32, i32, i32
  }
}

module attributes {stable_mosaic.version = 11 : i64} {
  func.func @_matmul_bias_kernel(%arg0: i32, %arg1: i32, %arg2: i32, %arg3: memref<512x128xbf16, #tpu.memory_space<vmem>>, %arg4: memref<128x128xbf16, #tpu.memory_space<vmem>>, %arg5: memref<1x128xf32, #tpu.memory_space<vmem>>, %arg6: memref<512x128xf32, #tpu.memory_space<vmem>>, %arg7: memref<512x128xf32, #tpu.memory_space<vmem>>) attributes {dimension_semantics = [#tpu.dimension_semantics<parallel>, #tpu.dimension_semantics<parallel>, #tpu.dimension_semantics<arbitrary>], iteration_bounds = array<i64: 1, 1, 1>, scalar_prefetch = 0 : i64, scratch_operands = 1 : i64, tpu.core_type = #tpu.core_type<tc>, window_params = [{transform_indices = @transform_0, window_bounds = array<i64: 512, 128>}, {transform_indices = @transform_1, window_bounds = array<i64: 128, 128>}, {transform_indices = @transform_2, window_bounds = array<i64: 1, 128>}, {transform_indices = @transform_3, window_bounds = array<i64: 512, 128>}]} {
    %c0_i32 = arith.constant 0 : i32
    %0 = arith.cmpi eq, %arg2, %c0_i32 : i32
    %1 = arith.extui %0 : i1 to i32
    %c0_i32_0 = arith.constant 0 : i32
    %2 = arith.cmpi ne, %1, %c0_i32_0 : i32
    scf.if %2 {
      %cst_10 = arith.constant 0.000000e+00 : f32
      %12 = vector.broadcast %cst_10 : f32 to vector<512x128xf32>
      %c0_11 = arith.constant 0 : index
      %c0_12 = arith.constant 0 : index
      %13 = vector.load %arg7[%c0_11, %c0_12] : memref<512x128xf32, #tpu.memory_space<vmem>>, vector<512x128xf32>
      tpu.vector_store %arg7[%c0_11, %c0_12], %12 {strides = array<i32>} : memref<512x128xf32, #tpu.memory_space<vmem>>, vector<512x128xf32>,
    } else {
    }
    %c0 = arith.constant 0 : index
    %c0_1 = arith.constant 0 : index
    %3 = vector.load %arg7[%c0, %c0_1] : memref<512x128xf32, #tpu.memory_space<vmem>>, vector<512x128xf32>
    %c0_2 = arith.constant 0 : index
    %c0_3 = arith.constant 0 : index
    %4 = vector.load %arg3[%c0_2, %c0_3] : memref<512x128xbf16, #tpu.memory_space<vmem>>, vector<512x128xbf16>
    %c0_4 = arith.constant 0 : index
    %c0_5 = arith.constant 0 : index
    %5 = vector.load %arg4[%c0_4, %c0_5] : memref<128x128xbf16, #tpu.memory_space<vmem>>, vector<128x128xbf16>
    %cst = arith.constant dense<0.000000e+00> : vector<512x128xf32>
    %6 = tpu.matmul %4, %5, %cst {dimension_numbers = #tpu.dot_dimension_numbers<[1], [0], [0], [1], [0, 0, 1, 1], [], []>} : vector<512x128xbf16>, vector<128x128xbf16>, vector<512x128xf32> -> vector<512x128xf32>
    %7 = arith.addf %3, %6 : vector<512x128xf32>
    %c0_6 = arith.constant 0 : index
    %c0_7 = arith.constant 0 : index
    %8 = vector.load %arg7[%c0_6, %c0_7] : memref<512x128xf32, #tpu.memory_space<vmem>>, vector<512x128xf32>
    tpu.vector_store %arg7[%c0_6, %c0_7], %7 {strides = array<i32>} : memref<512x128xf32, #tpu.memory_space<vmem>>, vector<512x128xf32>,
    %c0_i32_8 = arith.constant 0 : i32
    %9 = arith.cmpi eq, %arg2, %c0_i32_8 : i32
    %10 = arith.extui %9 : i1 to i32
    %c0_i32_9 = arith.constant 0 : i32
    %11 = arith.cmpi ne, %10, %c0_i32_9 : i32
    scf.if %11 {
      %c0_10 = arith.constant 0 : index
      %c0_11 = arith.constant 0 : index
      %12 = vector.load %arg7[%c0_10, %c0_11] : memref<512x128xf32, #tpu.memory_space<vmem>>, vector<512x128xf32>
      %c0_12 = arith.constant 0 : index
      %c0_13 = arith.constant 0 : index
      %13 = vector.load %arg5[%c0_12, %c0_13] : memref<1x128xf32, #tpu.memory_space<vmem>>, vector<1x128xf32>
      %14 = vector.broadcast %13 : vector<1x128xf32> to vector<512x128xf32>
      %15 = arith.addf %12, %14 : vector<512x128xf32>
      %c0_14 = arith.constant 0 : index
      %c0_15 = arith.constant 0 : index
      %16 = vector.load %arg6[%c0_14, %c0_15] : memref<512x128xf32, #tpu.memory_space<vmem>>, vector<512x128xf32>
      tpu.vector_store %arg6[%c0_14, %c0_15], %15 {strides = array<i32>} : memref<512x128xf32, #tpu.memory_space<vmem>>, vector<512x128xf32>,
    } else {
    }
    return
  }
  func.func @transform_0(%arg0: i32, %arg1: i32, %arg2: i32) -> (i32, i32) {
    %c0_i32 = arith.constant 0 : i32
    return %arg0, %arg2 : i32, i32
  }
  func.func @transform_1(%arg0: i32, %arg1: i32, %arg2: i32) -> (i32, i32) {
    %c0_i32 = arith.constant 0 : i32
    return %arg2, %arg1 : i32, i32
  }
  func.func @transform_2(%arg0: i32, %arg1: i32, %arg2: i32) -> (i32, i32) {
    %c0_i32 = arith.constant 0 : i32
    %c0_i32_0 = arith.constant 0 : i32
    return %c0_i32, %arg1 : i32, i32
  }
  func.func @transform_3(%arg0: i32, %arg1: i32, %arg2: i32) -> (i32, i32) {
    %c0_i32 = arith.constant 0 : i32
    return %arg0, %arg1 : i32, i32
  }
}

module attributes {stable_mosaic.version = 11 : i64} {
  func.func @_matmul_bias_kernel(%arg0: i32, %arg1: i32, %arg2: i32, %arg3: memref<128x128xbf16, #tpu.memory_space<vmem>>, %arg4: memref<128x128xbf16, #tpu.memory_space<vmem>>, %arg5: memref<1x128xf32, #tpu.memory_space<vmem>>, %arg6: memref<128x128xf32, #tpu.memory_space<vmem>>, %arg7: memref<128x128xf32, #tpu.memory_space<vmem>>) attributes {dimension_semantics = [#tpu.dimension_semantics<parallel>, #tpu.dimension_semantics<parallel>, #tpu.dimension_semantics<arbitrary>], iteration_bounds = array<i64: 1, 1, 5>, scalar_prefetch = 0 : i64, scratch_operands = 1 : i64, tpu.core_type = #tpu.core_type<tc>, window_params = [{transform_indices = @transform_0, window_bounds = array<i64: 128, 128>}, {transform_indices = @transform_1, window_bounds = array<i64: 128, 128>}, {transform_indices = @transform_2, window_bounds = array<i64: 1, 128>}, {transform_indices = @transform_3, window_bounds = array<i64: 128, 128>}]} {
    %c0_i32 = arith.constant 0 : i32
    %0 = arith.cmpi eq, %arg2, %c0_i32 : i32
    %1 = arith.extui %0 : i1 to i32
    %c0_i32_0 = arith.constant 0 : i32
    %2 = arith.cmpi ne, %1, %c0_i32_0 : i32
    scf.if %2 {
      %cst_9 = arith.constant 0.000000e+00 : f32
      %12 = vector.broadcast %cst_9 : f32 to vector<128x128xf32>
      %c0_10 = arith.constant 0 : index
      %c0_11 = arith.constant 0 : index
      %13 = vector.load %arg7[%c0_10, %c0_11] : memref<128x128xf32, #tpu.memory_space<vmem>>, vector<128x128xf32>
      tpu.vector_store %arg7[%c0_10, %c0_11], %12 {strides = array<i32>} : memref<128x128xf32, #tpu.memory_space<vmem>>, vector<128x128xf32>,
    } else {
    }
    %c0 = arith.constant 0 : index
    %c0_1 = arith.constant 0 : index
    %3 = vector.load %arg7[%c0, %c0_1] : memref<128x128xf32, #tpu.memory_space<vmem>>, vector<128x128xf32>
    %c0_2 = arith.constant 0 : index
    %c0_3 = arith.constant 0 : index
    %4 = vector.load %arg3[%c0_2, %c0_3] : memref<128x128xbf16, #tpu.memory_space<vmem>>, vector<128x128xbf16>
    %c0_4 = arith.constant 0 : index
    %c0_5 = arith.constant 0 : index
    %5 = vector.load %arg4[%c0_4, %c0_5] : memref<128x128xbf16, #tpu.memory_space<vmem>>, vector<128x128xbf16>
    %cst = arith.constant dense<0.000000e+00> : vector<128x128xf32>
    %6 = tpu.matmul %4, %5, %cst {dimension_numbers = #tpu.dot_dimension_numbers<[1], [0], [0], [1], [0, 0, 1, 1], [], []>} : vector<128x128xbf16>, vector<128x128xbf16>, vector<128x128xf32> -> vector<128x128xf32>
    %7 = arith.addf %3, %6 : vector<128x128xf32>
    %c0_6 = arith.constant 0 : index
    %c0_7 = arith.constant 0 : index
    %8 = vector.load %arg7[%c0_6, %c0_7] : memref<128x128xf32, #tpu.memory_space<vmem>>, vector<128x128xf32>
    tpu.vector_store %arg7[%c0_6, %c0_7], %7 {strides = array<i32>} : memref<128x128xf32, #tpu.memory_space<vmem>>, vector<128x128xf32>,
    %c4_i32 = arith.constant 4 : i32
    %9 = arith.cmpi eq, %arg2, %c4_i32 : i32
    %10 = arith.extui %9 : i1 to i32
    %c0_i32_8 = arith.constant 0 : i32
    %11 = arith.cmpi ne, %10, %c0_i32_8 : i32
    scf.if %11 {
      %c0_9 = arith.constant 0 : index
      %c0_10 = arith.constant 0 : index
      %12 = vector.load %arg7[%c0_9, %c0_10] : memref<128x128xf32, #tpu.memory_space<vmem>>, vector<128x128xf32>
      %c0_11 = arith.constant 0 : index
      %c0_12 = arith.constant 0 : index
      %13 = vector.load %arg5[%c0_11, %c0_12] : memref<1x128xf32, #tpu.memory_space<vmem>>, vector<1x128xf32>
      %14 = vector.broadcast %13 : vector<1x128xf32> to vector<128x128xf32>
      %15 = arith.addf %12, %14 : vector<128x128xf32>
      %c0_13 = arith.constant 0 : index
      %c0_14 = arith.constant 0 : index
      %16 = vector.load %arg6[%c0_13, %c0_14] : memref<128x128xf32, #tpu.memory_space<vmem>>, vector<128x128xf32>
      tpu.vector_store %arg6[%c0_13, %c0_14], %15 {strides = array<i32>} : memref<128x128xf32, #tpu.memory_space<vmem>>, vector<128x128xf32>,
    } else {
    }
    return
  }
  func.func @transform_0(%arg0: i32, %arg1: i32, %arg2: i32) -> (i32, i32) {
    %c0_i32 = arith.constant 0 : i32
    return %arg0, %arg2 : i32, i32
  }
  func.func @transform_1(%arg0: i32, %arg1: i32, %arg2: i32) -> (i32, i32) {
    %c0_i32 = arith.constant 0 : i32
    return %arg2, %arg1 : i32, i32
  }
  func.func @transform_2(%arg0: i32, %arg1: i32, %arg2: i32) -> (i32, i32) {
    %c0_i32 = arith.constant 0 : i32
    %c0_i32_0 = arith.constant 0 : i32
    return %c0_i32, %arg1 : i32, i32
  }
  func.func @transform_3(%arg0: i32, %arg1: i32, %arg2: i32) -> (i32, i32) {
    %c0_i32 = arith.constant 0 : i32
    return %arg0, %arg1 : i32, i32
  }
}

module attributes {stable_mosaic.version = 11 : i64} {
  func.func @_instnorm_kernel(%arg0: i32, %arg1: i32, %arg2: memref<1x64x128xf32, #tpu.memory_space<vmem>>, %arg3: memref<1x64x128xf32, #tpu.memory_space<vmem>>) attributes {dimension_semantics = [#tpu.dimension_semantics<parallel>, #tpu.dimension_semantics<parallel>], iteration_bounds = array<i64: 2, 1>, scalar_prefetch = 0 : i64, scratch_operands = 0 : i64, tpu.core_type = #tpu.core_type<tc>, window_params = [{transform_indices = @transform_0, window_bounds = array<i64: 1, 64, 128>}, {transform_indices = @transform_1, window_bounds = array<i64: 1, 64, 128>}]} {
    %c0 = arith.constant 0 : index
    %c0_0 = arith.constant 0 : index
    %c0_1 = arith.constant 0 : index
    %0 = vector.load %arg2[%c0, %c0_0, %c0_1] : memref<1x64x128xf32, #tpu.memory_space<vmem>>, vector<1x64x128xf32>
    %cst = arith.constant dense<0.000000e+00> : vector<1x128xf32>
    %1 = vector.multi_reduction <add>, %0, %cst [1] : vector<1x64x128xf32> to vector<1x128xf32>
    %2 = vector.shape_cast %1 : vector<1x128xf32> to vector<1x1x128xf32>
    %cst_2 = arith.constant 6.400000e+01 : f32
    %3 = vector.broadcast %cst_2 : f32 to vector<1x1x128xf32>
    %4 = arith.divf %2, %3 : vector<1x1x128xf32>
    %5 = vector.broadcast %4 : vector<1x1x128xf32> to vector<1x64x128xf32>
    %6 = arith.subf %0, %5 : vector<1x64x128xf32>
    %7 = arith.mulf %6, %6 : vector<1x64x128xf32>
    %cst_3 = arith.constant dense<0.000000e+00> : vector<1x128xf32>
    %8 = vector.multi_reduction <add>, %7, %cst_3 [1] : vector<1x64x128xf32> to vector<1x128xf32>
    %9 = vector.shape_cast %8 : vector<1x128xf32> to vector<1x1x128xf32>
    %cst_4 = arith.constant 6.400000e+01 : f32
    %10 = vector.broadcast %cst_4 : f32 to vector<1x1x128xf32>
    %11 = arith.divf %9, %10 : vector<1x1x128xf32>
    %12 = vector.broadcast %4 : vector<1x1x128xf32> to vector<1x64x128xf32>
    %13 = arith.subf %0, %12 : vector<1x64x128xf32>
    %cst_5 = arith.constant 9.99999974E-6 : f32
    %14 = vector.broadcast %cst_5 : f32 to vector<1x1x128xf32>
    %15 = arith.addf %11, %14 : vector<1x1x128xf32>
    %16 = math.rsqrt %15 : vector<1x1x128xf32>
    %17 = vector.broadcast %16 : vector<1x1x128xf32> to vector<1x64x128xf32>
    %18 = arith.mulf %13, %17 : vector<1x64x128xf32>
    %cst_6 = arith.constant 0.000000e+00 : f32
    %19 = vector.broadcast %cst_6 : f32 to vector<1x64x128xf32>
    %20 = arith.maximumf %18, %19 : vector<1x64x128xf32>
    %c0_7 = arith.constant 0 : index
    %c0_8 = arith.constant 0 : index
    %c0_9 = arith.constant 0 : index
    %21 = vector.load %arg3[%c0_7, %c0_8, %c0_9] : memref<1x64x128xf32, #tpu.memory_space<vmem>>, vector<1x64x128xf32>
    tpu.vector_store %arg3[%c0_7, %c0_8, %c0_9], %20 {strides = array<i32>} : memref<1x64x128xf32, #tpu.memory_space<vmem>>, vector<1x64x128xf32>,
    return
  }
  func.func @transform_0(%arg0: i32, %arg1: i32) -> (i32, i32, i32) {
    %c0_i32 = arith.constant 0 : i32
    %c0_i32_0 = arith.constant 0 : i32
    return %arg0, %c0_i32, %arg1 : i32, i32, i32
  }
  func.func @transform_1(%arg0: i32, %arg1: i32) -> (i32, i32, i32) {
    %c0_i32 = arith.constant 0 : i32
    %c0_i32_0 = arith.constant 0 : i32
    return %arg0, %c0_i32, %arg1 : i32, i32, i32
  }
}

module attributes {stable_mosaic.version = 11 : i64} {
  func.func @_matmul_bias_kernel(%arg0: i32, %arg1: i32, %arg2: i32, %arg3: memref<32x384xbf16, #tpu.memory_space<vmem>>, %arg4: memref<384x256xbf16, #tpu.memory_space<vmem>>, %arg5: memref<1x256xf32, #tpu.memory_space<vmem>>, %arg6: memref<32x256xf32, #tpu.memory_space<vmem>>, %arg7: memref<32x256xf32, #tpu.memory_space<vmem>>) attributes {dimension_semantics = [#tpu.dimension_semantics<parallel>, #tpu.dimension_semantics<parallel>, #tpu.dimension_semantics<arbitrary>], iteration_bounds = array<i64: 1, 1, 3>, scalar_prefetch = 0 : i64, scratch_operands = 1 : i64, tpu.core_type = #tpu.core_type<tc>, window_params = [{transform_indices = @transform_0, window_bounds = array<i64: 32, 384>}, {transform_indices = @transform_1, window_bounds = array<i64: 384, 256>}, {transform_indices = @transform_2, window_bounds = array<i64: 1, 256>}, {transform_indices = @transform_3, window_bounds = array<i64: 32, 256>}]} {
    %c0_i32 = arith.constant 0 : i32
    %0 = arith.cmpi eq, %arg2, %c0_i32 : i32
    %1 = arith.extui %0 : i1 to i32
    %c0_i32_0 = arith.constant 0 : i32
    %2 = arith.cmpi ne, %1, %c0_i32_0 : i32
    scf.if %2 {
      %cst_9 = arith.constant 0.000000e+00 : f32
      %12 = vector.broadcast %cst_9 : f32 to vector<32x256xf32>
      %c0_10 = arith.constant 0 : index
      %c0_11 = arith.constant 0 : index
      %13 = vector.load %arg7[%c0_10, %c0_11] : memref<32x256xf32, #tpu.memory_space<vmem>>, vector<32x256xf32>
      tpu.vector_store %arg7[%c0_10, %c0_11], %12 {strides = array<i32>} : memref<32x256xf32, #tpu.memory_space<vmem>>, vector<32x256xf32>,
    } else {
    }
    %c0 = arith.constant 0 : index
    %c0_1 = arith.constant 0 : index
    %3 = vector.load %arg7[%c0, %c0_1] : memref<32x256xf32, #tpu.memory_space<vmem>>, vector<32x256xf32>
    %c0_2 = arith.constant 0 : index
    %c0_3 = arith.constant 0 : index
    %4 = vector.load %arg3[%c0_2, %c0_3] : memref<32x384xbf16, #tpu.memory_space<vmem>>, vector<32x384xbf16>
    %c0_4 = arith.constant 0 : index
    %c0_5 = arith.constant 0 : index
    %5 = vector.load %arg4[%c0_4, %c0_5] : memref<384x256xbf16, #tpu.memory_space<vmem>>, vector<384x256xbf16>
    %cst = arith.constant dense<0.000000e+00> : vector<32x256xf32>
    %6 = tpu.matmul %4, %5, %cst {dimension_numbers = #tpu.dot_dimension_numbers<[1], [0], [0], [1], [0, 0, 1, 1], [], []>} : vector<32x384xbf16>, vector<384x256xbf16>, vector<32x256xf32> -> vector<32x256xf32>
    %7 = arith.addf %3, %6 : vector<32x256xf32>
    %c0_6 = arith.constant 0 : index
    %c0_7 = arith.constant 0 : index
    %8 = vector.load %arg7[%c0_6, %c0_7] : memref<32x256xf32, #tpu.memory_space<vmem>>, vector<32x256xf32>
    tpu.vector_store %arg7[%c0_6, %c0_7], %7 {strides = array<i32>} : memref<32x256xf32, #tpu.memory_space<vmem>>, vector<32x256xf32>,
    %c2_i32 = arith.constant 2 : i32
    %9 = arith.cmpi eq, %arg2, %c2_i32 : i32
    %10 = arith.extui %9 : i1 to i32
    %c0_i32_8 = arith.constant 0 : i32
    %11 = arith.cmpi ne, %10, %c0_i32_8 : i32
    scf.if %11 {
      %c0_9 = arith.constant 0 : index
      %c0_10 = arith.constant 0 : index
      %12 = vector.load %arg7[%c0_9, %c0_10] : memref<32x256xf32, #tpu.memory_space<vmem>>, vector<32x256xf32>
      %c0_11 = arith.constant 0 : index
      %c0_12 = arith.constant 0 : index
      %13 = vector.load %arg5[%c0_11, %c0_12] : memref<1x256xf32, #tpu.memory_space<vmem>>, vector<1x256xf32>
      %14 = vector.broadcast %13 : vector<1x256xf32> to vector<32x256xf32>
      %15 = arith.addf %12, %14 : vector<32x256xf32>
      %c0_13 = arith.constant 0 : index
      %c0_14 = arith.constant 0 : index
      %16 = vector.load %arg6[%c0_13, %c0_14] : memref<32x256xf32, #tpu.memory_space<vmem>>, vector<32x256xf32>
      tpu.vector_store %arg6[%c0_13, %c0_14], %15 {strides = array<i32>} : memref<32x256xf32, #tpu.memory_space<vmem>>, vector<32x256xf32>,
    } else {
    }
    return
  }
  func.func @transform_0(%arg0: i32, %arg1: i32, %arg2: i32) -> (i32, i32) {
    %c0_i32 = arith.constant 0 : i32
    return %arg0, %arg2 : i32, i32
  }
  func.func @transform_1(%arg0: i32, %arg1: i32, %arg2: i32) -> (i32, i32) {
    %c0_i32 = arith.constant 0 : i32
    return %arg2, %arg1 : i32, i32
  }
  func.func @transform_2(%arg0: i32, %arg1: i32, %arg2: i32) -> (i32, i32) {
    %c0_i32 = arith.constant 0 : i32
    %c0_i32_0 = arith.constant 0 : i32
    return %c0_i32, %arg1 : i32, i32
  }
  func.func @transform_3(%arg0: i32, %arg1: i32, %arg2: i32) -> (i32, i32) {
    %c0_i32 = arith.constant 0 : i32
    return %arg0, %arg1 : i32, i32
  }
}

module attributes {stable_mosaic.version = 11 : i64} {
  func.func @_instnorm_kernel(%arg0: i32, %arg1: i32, %arg2: memref<1x16x128xf32, #tpu.memory_space<vmem>>, %arg3: memref<1x16x128xf32, #tpu.memory_space<vmem>>) attributes {dimension_semantics = [#tpu.dimension_semantics<parallel>, #tpu.dimension_semantics<parallel>], iteration_bounds = array<i64: 2, 2>, scalar_prefetch = 0 : i64, scratch_operands = 0 : i64, tpu.core_type = #tpu.core_type<tc>, window_params = [{transform_indices = @transform_0, window_bounds = array<i64: 1, 16, 128>}, {transform_indices = @transform_1, window_bounds = array<i64: 1, 16, 128>}]} {
    %c0 = arith.constant 0 : index
    %c0_0 = arith.constant 0 : index
    %c0_1 = arith.constant 0 : index
    %0 = vector.load %arg2[%c0, %c0_0, %c0_1] : memref<1x16x128xf32, #tpu.memory_space<vmem>>, vector<1x16x128xf32>
    %cst = arith.constant dense<0.000000e+00> : vector<1x128xf32>
    %1 = vector.multi_reduction <add>, %0, %cst [1] : vector<1x16x128xf32> to vector<1x128xf32>
    %2 = vector.shape_cast %1 : vector<1x128xf32> to vector<1x1x128xf32>
    %cst_2 = arith.constant 1.600000e+01 : f32
    %3 = vector.broadcast %cst_2 : f32 to vector<1x1x128xf32>
    %4 = arith.divf %2, %3 : vector<1x1x128xf32>
    %5 = vector.broadcast %4 : vector<1x1x128xf32> to vector<1x16x128xf32>
    %6 = arith.subf %0, %5 : vector<1x16x128xf32>
    %7 = arith.mulf %6, %6 : vector<1x16x128xf32>
    %cst_3 = arith.constant dense<0.000000e+00> : vector<1x128xf32>
    %8 = vector.multi_reduction <add>, %7, %cst_3 [1] : vector<1x16x128xf32> to vector<1x128xf32>
    %9 = vector.shape_cast %8 : vector<1x128xf32> to vector<1x1x128xf32>
    %cst_4 = arith.constant 1.600000e+01 : f32
    %10 = vector.broadcast %cst_4 : f32 to vector<1x1x128xf32>
    %11 = arith.divf %9, %10 : vector<1x1x128xf32>
    %12 = vector.broadcast %4 : vector<1x1x128xf32> to vector<1x16x128xf32>
    %13 = arith.subf %0, %12 : vector<1x16x128xf32>
    %cst_5 = arith.constant 9.99999974E-6 : f32
    %14 = vector.broadcast %cst_5 : f32 to vector<1x1x128xf32>
    %15 = arith.addf %11, %14 : vector<1x1x128xf32>
    %16 = math.rsqrt %15 : vector<1x1x128xf32>
    %17 = vector.broadcast %16 : vector<1x1x128xf32> to vector<1x16x128xf32>
    %18 = arith.mulf %13, %17 : vector<1x16x128xf32>
    %cst_6 = arith.constant 0.000000e+00 : f32
    %19 = vector.broadcast %cst_6 : f32 to vector<1x16x128xf32>
    %20 = arith.maximumf %18, %19 : vector<1x16x128xf32>
    %c0_7 = arith.constant 0 : index
    %c0_8 = arith.constant 0 : index
    %c0_9 = arith.constant 0 : index
    %21 = vector.load %arg3[%c0_7, %c0_8, %c0_9] : memref<1x16x128xf32, #tpu.memory_space<vmem>>, vector<1x16x128xf32>
    tpu.vector_store %arg3[%c0_7, %c0_8, %c0_9], %20 {strides = array<i32>} : memref<1x16x128xf32, #tpu.memory_space<vmem>>, vector<1x16x128xf32>,
    return
  }
  func.func @transform_0(%arg0: i32, %arg1: i32) -> (i32, i32, i32) {
    %c0_i32 = arith.constant 0 : i32
    %c0_i32_0 = arith.constant 0 : i32
    return %arg0, %c0_i32, %arg1 : i32, i32, i32
  }
  func.func @transform_1(%arg0: i32, %arg1: i32) -> (i32, i32, i32) {
    %c0_i32 = arith.constant 0 : i32
    %c0_i32_0 = arith.constant 0 : i32
    return %arg0, %c0_i32, %arg1 : i32, i32, i32
  }
}

module attributes {stable_mosaic.version = 11 : i64} {
  func.func @_matmul_bias_kernel(%arg0: i32, %arg1: i32, %arg2: i32, %arg3: memref<32x384xbf16, #tpu.memory_space<vmem>>, %arg4: memref<384x256xbf16, #tpu.memory_space<vmem>>, %arg5: memref<1x256xf32, #tpu.memory_space<vmem>>, %arg6: memref<32x256xf32, #tpu.memory_space<vmem>>, %arg7: memref<32x256xf32, #tpu.memory_space<vmem>>) attributes {dimension_semantics = [#tpu.dimension_semantics<parallel>, #tpu.dimension_semantics<parallel>, #tpu.dimension_semantics<arbitrary>], iteration_bounds = array<i64: 1, 1, 6>, scalar_prefetch = 0 : i64, scratch_operands = 1 : i64, tpu.core_type = #tpu.core_type<tc>, window_params = [{transform_indices = @transform_0, window_bounds = array<i64: 32, 384>}, {transform_indices = @transform_1, window_bounds = array<i64: 384, 256>}, {transform_indices = @transform_2, window_bounds = array<i64: 1, 256>}, {transform_indices = @transform_3, window_bounds = array<i64: 32, 256>}]} {
    %c0_i32 = arith.constant 0 : i32
    %0 = arith.cmpi eq, %arg2, %c0_i32 : i32
    %1 = arith.extui %0 : i1 to i32
    %c0_i32_0 = arith.constant 0 : i32
    %2 = arith.cmpi ne, %1, %c0_i32_0 : i32
    scf.if %2 {
      %cst_9 = arith.constant 0.000000e+00 : f32
      %12 = vector.broadcast %cst_9 : f32 to vector<32x256xf32>
      %c0_10 = arith.constant 0 : index
      %c0_11 = arith.constant 0 : index
      %13 = vector.load %arg7[%c0_10, %c0_11] : memref<32x256xf32, #tpu.memory_space<vmem>>, vector<32x256xf32>
      tpu.vector_store %arg7[%c0_10, %c0_11], %12 {strides = array<i32>} : memref<32x256xf32, #tpu.memory_space<vmem>>, vector<32x256xf32>,
    } else {
    }
    %c0 = arith.constant 0 : index
    %c0_1 = arith.constant 0 : index
    %3 = vector.load %arg7[%c0, %c0_1] : memref<32x256xf32, #tpu.memory_space<vmem>>, vector<32x256xf32>
    %c0_2 = arith.constant 0 : index
    %c0_3 = arith.constant 0 : index
    %4 = vector.load %arg3[%c0_2, %c0_3] : memref<32x384xbf16, #tpu.memory_space<vmem>>, vector<32x384xbf16>
    %c0_4 = arith.constant 0 : index
    %c0_5 = arith.constant 0 : index
    %5 = vector.load %arg4[%c0_4, %c0_5] : memref<384x256xbf16, #tpu.memory_space<vmem>>, vector<384x256xbf16>
    %cst = arith.constant dense<0.000000e+00> : vector<32x256xf32>
    %6 = tpu.matmul %4, %5, %cst {dimension_numbers = #tpu.dot_dimension_numbers<[1], [0], [0], [1], [0, 0, 1, 1], [], []>} : vector<32x384xbf16>, vector<384x256xbf16>, vector<32x256xf32> -> vector<32x256xf32>
    %7 = arith.addf %3, %6 : vector<32x256xf32>
    %c0_6 = arith.constant 0 : index
    %c0_7 = arith.constant 0 : index
    %8 = vector.load %arg7[%c0_6, %c0_7] : memref<32x256xf32, #tpu.memory_space<vmem>>, vector<32x256xf32>
    tpu.vector_store %arg7[%c0_6, %c0_7], %7 {strides = array<i32>} : memref<32x256xf32, #tpu.memory_space<vmem>>, vector<32x256xf32>,
    %c5_i32 = arith.constant 5 : i32
    %9 = arith.cmpi eq, %arg2, %c5_i32 : i32
    %10 = arith.extui %9 : i1 to i32
    %c0_i32_8 = arith.constant 0 : i32
    %11 = arith.cmpi ne, %10, %c0_i32_8 : i32
    scf.if %11 {
      %c0_9 = arith.constant 0 : index
      %c0_10 = arith.constant 0 : index
      %12 = vector.load %arg7[%c0_9, %c0_10] : memref<32x256xf32, #tpu.memory_space<vmem>>, vector<32x256xf32>
      %c0_11 = arith.constant 0 : index
      %c0_12 = arith.constant 0 : index
      %13 = vector.load %arg5[%c0_11, %c0_12] : memref<1x256xf32, #tpu.memory_space<vmem>>, vector<1x256xf32>
      %14 = vector.broadcast %13 : vector<1x256xf32> to vector<32x256xf32>
      %15 = arith.addf %12, %14 : vector<32x256xf32>
      %c0_13 = arith.constant 0 : index
      %c0_14 = arith.constant 0 : index
      %16 = vector.load %arg6[%c0_13, %c0_14] : memref<32x256xf32, #tpu.memory_space<vmem>>, vector<32x256xf32>
      tpu.vector_store %arg6[%c0_13, %c0_14], %15 {strides = array<i32>} : memref<32x256xf32, #tpu.memory_space<vmem>>, vector<32x256xf32>,
    } else {
    }
    return
  }
  func.func @transform_0(%arg0: i32, %arg1: i32, %arg2: i32) -> (i32, i32) {
    %c0_i32 = arith.constant 0 : i32
    return %arg0, %arg2 : i32, i32
  }
  func.func @transform_1(%arg0: i32, %arg1: i32, %arg2: i32) -> (i32, i32) {
    %c0_i32 = arith.constant 0 : i32
    return %arg2, %arg1 : i32, i32
  }
  func.func @transform_2(%arg0: i32, %arg1: i32, %arg2: i32) -> (i32, i32) {
    %c0_i32 = arith.constant 0 : i32
    %c0_i32_0 = arith.constant 0 : i32
    return %c0_i32, %arg1 : i32, i32
  }
  func.func @transform_3(%arg0: i32, %arg1: i32, %arg2: i32) -> (i32, i32) {
    %c0_i32 = arith.constant 0 : i32
    return %arg0, %arg1 : i32, i32
  }
}

module attributes {stable_mosaic.version = 11 : i64} {
  func.func @_instnorm_add_kernel(%arg0: i32, %arg1: i32, %arg2: memref<1x16x128xf32, #tpu.memory_space<vmem>>, %arg3: memref<1x16x128xf32, #tpu.memory_space<vmem>>, %arg4: memref<1x16x128xf32, #tpu.memory_space<vmem>>) attributes {dimension_semantics = [#tpu.dimension_semantics<parallel>, #tpu.dimension_semantics<parallel>], iteration_bounds = array<i64: 2, 2>, scalar_prefetch = 0 : i64, scratch_operands = 0 : i64, tpu.core_type = #tpu.core_type<tc>, window_params = [{transform_indices = @transform_0, window_bounds = array<i64: 1, 16, 128>}, {transform_indices = @transform_1, window_bounds = array<i64: 1, 16, 128>}, {transform_indices = @transform_2, window_bounds = array<i64: 1, 16, 128>}]} {
    %c0 = arith.constant 0 : index
    %c0_0 = arith.constant 0 : index
    %c0_1 = arith.constant 0 : index
    %0 = vector.load %arg2[%c0, %c0_0, %c0_1] : memref<1x16x128xf32, #tpu.memory_space<vmem>>, vector<1x16x128xf32>
    %cst = arith.constant dense<0.000000e+00> : vector<1x128xf32>
    %1 = vector.multi_reduction <add>, %0, %cst [1] : vector<1x16x128xf32> to vector<1x128xf32>
    %2 = vector.shape_cast %1 : vector<1x128xf32> to vector<1x1x128xf32>
    %cst_2 = arith.constant 1.600000e+01 : f32
    %3 = vector.broadcast %cst_2 : f32 to vector<1x1x128xf32>
    %4 = arith.divf %2, %3 : vector<1x1x128xf32>
    %5 = vector.broadcast %4 : vector<1x1x128xf32> to vector<1x16x128xf32>
    %6 = arith.subf %0, %5 : vector<1x16x128xf32>
    %7 = arith.mulf %6, %6 : vector<1x16x128xf32>
    %cst_3 = arith.constant dense<0.000000e+00> : vector<1x128xf32>
    %8 = vector.multi_reduction <add>, %7, %cst_3 [1] : vector<1x16x128xf32> to vector<1x128xf32>
    %9 = vector.shape_cast %8 : vector<1x128xf32> to vector<1x1x128xf32>
    %cst_4 = arith.constant 1.600000e+01 : f32
    %10 = vector.broadcast %cst_4 : f32 to vector<1x1x128xf32>
    %11 = arith.divf %9, %10 : vector<1x1x128xf32>
    %12 = vector.broadcast %4 : vector<1x1x128xf32> to vector<1x16x128xf32>
    %13 = arith.subf %0, %12 : vector<1x16x128xf32>
    %cst_5 = arith.constant 9.99999974E-6 : f32
    %14 = vector.broadcast %cst_5 : f32 to vector<1x1x128xf32>
    %15 = arith.addf %11, %14 : vector<1x1x128xf32>
    %16 = math.rsqrt %15 : vector<1x1x128xf32>
    %17 = vector.broadcast %16 : vector<1x1x128xf32> to vector<1x16x128xf32>
    %18 = arith.mulf %13, %17 : vector<1x16x128xf32>
    %c0_6 = arith.constant 0 : index
    %c0_7 = arith.constant 0 : index
    %c0_8 = arith.constant 0 : index
    %19 = vector.load %arg3[%c0_6, %c0_7, %c0_8] : memref<1x16x128xf32, #tpu.memory_space<vmem>>, vector<1x16x128xf32>
    %20 = arith.addf %19, %18 : vector<1x16x128xf32>
    %c0_9 = arith.constant 0 : index
    %c0_10 = arith.constant 0 : index
    %c0_11 = arith.constant 0 : index
    %21 = vector.load %arg4[%c0_9, %c0_10, %c0_11] : memref<1x16x128xf32, #tpu.memory_space<vmem>>, vector<1x16x128xf32>
    tpu.vector_store %arg4[%c0_9, %c0_10, %c0_11], %20 {strides = array<i32>} : memref<1x16x128xf32, #tpu.memory_space<vmem>>, vector<1x16x128xf32>,
    return
  }
  func.func @transform_0(%arg0: i32, %arg1: i32) -> (i32, i32, i32) {
    %c0_i32 = arith.constant 0 : i32
    %c0_i32_0 = arith.constant 0 : i32
    return %arg0, %c0_i32, %arg1 : i32, i32, i32
  }
  func.func @transform_1(%arg0: i32, %arg1: i32) -> (i32, i32, i32) {
    %c0_i32 = arith.constant 0 : i32
    %c0_i32_0 = arith.constant 0 : i32
    return %arg0, %c0_i32, %arg1 : i32, i32, i32
  }
  func.func @transform_2(%arg0: i32, %arg1: i32) -> (i32, i32, i32) {
    %c0_i32 = arith.constant 0 : i32
    %c0_i32_0 = arith.constant 0 : i32
    return %arg0, %c0_i32, %arg1 : i32, i32, i32
  }
}

module attributes {stable_mosaic.version = 11 : i64} {
  func.func @_matmul_bias_kernel(%arg0: i32, %arg1: i32, %arg2: i32, %arg3: memref<32x512xbf16, #tpu.memory_space<vmem>>, %arg4: memref<512x128xbf16, #tpu.memory_space<vmem>>, %arg5: memref<1x128xf32, #tpu.memory_space<vmem>>, %arg6: memref<32x128xf32, #tpu.memory_space<vmem>>, %arg7: memref<32x128xf32, #tpu.memory_space<vmem>>) attributes {dimension_semantics = [#tpu.dimension_semantics<parallel>, #tpu.dimension_semantics<parallel>, #tpu.dimension_semantics<arbitrary>], iteration_bounds = array<i64: 1, 1, 2>, scalar_prefetch = 0 : i64, scratch_operands = 1 : i64, tpu.core_type = #tpu.core_type<tc>, window_params = [{transform_indices = @transform_0, window_bounds = array<i64: 32, 512>}, {transform_indices = @transform_1, window_bounds = array<i64: 512, 128>}, {transform_indices = @transform_2, window_bounds = array<i64: 1, 128>}, {transform_indices = @transform_3, window_bounds = array<i64: 32, 128>}]} {
    %c0_i32 = arith.constant 0 : i32
    %0 = arith.cmpi eq, %arg2, %c0_i32 : i32
    %1 = arith.extui %0 : i1 to i32
    %c0_i32_0 = arith.constant 0 : i32
    %2 = arith.cmpi ne, %1, %c0_i32_0 : i32
    scf.if %2 {
      %cst_9 = arith.constant 0.000000e+00 : f32
      %12 = vector.broadcast %cst_9 : f32 to vector<32x128xf32>
      %c0_10 = arith.constant 0 : index
      %c0_11 = arith.constant 0 : index
      %13 = vector.load %arg7[%c0_10, %c0_11] : memref<32x128xf32, #tpu.memory_space<vmem>>, vector<32x128xf32>
      tpu.vector_store %arg7[%c0_10, %c0_11], %12 {strides = array<i32>} : memref<32x128xf32, #tpu.memory_space<vmem>>, vector<32x128xf32>,
    } else {
    }
    %c0 = arith.constant 0 : index
    %c0_1 = arith.constant 0 : index
    %3 = vector.load %arg7[%c0, %c0_1] : memref<32x128xf32, #tpu.memory_space<vmem>>, vector<32x128xf32>
    %c0_2 = arith.constant 0 : index
    %c0_3 = arith.constant 0 : index
    %4 = vector.load %arg3[%c0_2, %c0_3] : memref<32x512xbf16, #tpu.memory_space<vmem>>, vector<32x512xbf16>
    %c0_4 = arith.constant 0 : index
    %c0_5 = arith.constant 0 : index
    %5 = vector.load %arg4[%c0_4, %c0_5] : memref<512x128xbf16, #tpu.memory_space<vmem>>, vector<512x128xbf16>
    %cst = arith.constant dense<0.000000e+00> : vector<32x128xf32>
    %6 = tpu.matmul %4, %5, %cst {dimension_numbers = #tpu.dot_dimension_numbers<[1], [0], [0], [1], [0, 0, 1, 1], [], []>} : vector<32x512xbf16>, vector<512x128xbf16>, vector<32x128xf32> -> vector<32x128xf32>
    %7 = arith.addf %3, %6 : vector<32x128xf32>
    %c0_6 = arith.constant 0 : index
    %c0_7 = arith.constant 0 : index
    %8 = vector.load %arg7[%c0_6, %c0_7] : memref<32x128xf32, #tpu.memory_space<vmem>>, vector<32x128xf32>
    tpu.vector_store %arg7[%c0_6, %c0_7], %7 {strides = array<i32>} : memref<32x128xf32, #tpu.memory_space<vmem>>, vector<32x128xf32>,
    %c1_i32 = arith.constant 1 : i32
    %9 = arith.cmpi eq, %arg2, %c1_i32 : i32
    %10 = arith.extui %9 : i1 to i32
    %c0_i32_8 = arith.constant 0 : i32
    %11 = arith.cmpi ne, %10, %c0_i32_8 : i32
    scf.if %11 {
      %c0_9 = arith.constant 0 : index
      %c0_10 = arith.constant 0 : index
      %12 = vector.load %arg7[%c0_9, %c0_10] : memref<32x128xf32, #tpu.memory_space<vmem>>, vector<32x128xf32>
      %c0_11 = arith.constant 0 : index
      %c0_12 = arith.constant 0 : index
      %13 = vector.load %arg5[%c0_11, %c0_12] : memref<1x128xf32, #tpu.memory_space<vmem>>, vector<1x128xf32>
      %14 = vector.broadcast %13 : vector<1x128xf32> to vector<32x128xf32>
      %15 = arith.addf %12, %14 : vector<32x128xf32>
      %c0_13 = arith.constant 0 : index
      %c0_14 = arith.constant 0 : index
      %16 = vector.load %arg6[%c0_13, %c0_14] : memref<32x128xf32, #tpu.memory_space<vmem>>, vector<32x128xf32>
      tpu.vector_store %arg6[%c0_13, %c0_14], %15 {strides = array<i32>} : memref<32x128xf32, #tpu.memory_space<vmem>>, vector<32x128xf32>,
    } else {
    }
    return
  }
  func.func @transform_0(%arg0: i32, %arg1: i32, %arg2: i32) -> (i32, i32) {
    %c0_i32 = arith.constant 0 : i32
    return %arg0, %arg2 : i32, i32
  }
  func.func @transform_1(%arg0: i32, %arg1: i32, %arg2: i32) -> (i32, i32) {
    %c0_i32 = arith.constant 0 : i32
    return %arg2, %arg1 : i32, i32
  }
  func.func @transform_2(%arg0: i32, %arg1: i32, %arg2: i32) -> (i32, i32) {
    %c0_i32 = arith.constant 0 : i32
    %c0_i32_0 = arith.constant 0 : i32
    return %c0_i32, %arg1 : i32, i32
  }
  func.func @transform_3(%arg0: i32, %arg1: i32, %arg2: i32) -> (i32, i32) {
    %c0_i32 = arith.constant 0 : i32
    return %arg0, %arg1 : i32, i32
  }
}

module attributes {stable_mosaic.version = 11 : i64} {
  func.func @_matmul_bias_kernel(%arg0: i32, %arg1: i32, %arg2: i32, %arg3: memref<32x512xbf16, #tpu.memory_space<vmem>>, %arg4: memref<512x128xbf16, #tpu.memory_space<vmem>>, %arg5: memref<1x128xf32, #tpu.memory_space<vmem>>, %arg6: memref<32x128xf32, #tpu.memory_space<vmem>>, %arg7: memref<32x128xf32, #tpu.memory_space<vmem>>) attributes {dimension_semantics = [#tpu.dimension_semantics<parallel>, #tpu.dimension_semantics<parallel>, #tpu.dimension_semantics<arbitrary>], iteration_bounds = array<i64: 1, 1, 1>, scalar_prefetch = 0 : i64, scratch_operands = 1 : i64, tpu.core_type = #tpu.core_type<tc>, window_params = [{transform_indices = @transform_0, window_bounds = array<i64: 32, 512>}, {transform_indices = @transform_1, window_bounds = array<i64: 512, 128>}, {transform_indices = @transform_2, window_bounds = array<i64: 1, 128>}, {transform_indices = @transform_3, window_bounds = array<i64: 32, 128>}]} {
    %c0_i32 = arith.constant 0 : i32
    %0 = arith.cmpi eq, %arg2, %c0_i32 : i32
    %1 = arith.extui %0 : i1 to i32
    %c0_i32_0 = arith.constant 0 : i32
    %2 = arith.cmpi ne, %1, %c0_i32_0 : i32
    scf.if %2 {
      %cst_10 = arith.constant 0.000000e+00 : f32
      %12 = vector.broadcast %cst_10 : f32 to vector<32x128xf32>
      %c0_11 = arith.constant 0 : index
      %c0_12 = arith.constant 0 : index
      %13 = vector.load %arg7[%c0_11, %c0_12] : memref<32x128xf32, #tpu.memory_space<vmem>>, vector<32x128xf32>
      tpu.vector_store %arg7[%c0_11, %c0_12], %12 {strides = array<i32>} : memref<32x128xf32, #tpu.memory_space<vmem>>, vector<32x128xf32>,
    } else {
    }
    %c0 = arith.constant 0 : index
    %c0_1 = arith.constant 0 : index
    %3 = vector.load %arg7[%c0, %c0_1] : memref<32x128xf32, #tpu.memory_space<vmem>>, vector<32x128xf32>
    %c0_2 = arith.constant 0 : index
    %c0_3 = arith.constant 0 : index
    %4 = vector.load %arg3[%c0_2, %c0_3] : memref<32x512xbf16, #tpu.memory_space<vmem>>, vector<32x512xbf16>
    %c0_4 = arith.constant 0 : index
    %c0_5 = arith.constant 0 : index
    %5 = vector.load %arg4[%c0_4, %c0_5] : memref<512x128xbf16, #tpu.memory_space<vmem>>, vector<512x128xbf16>
    %cst = arith.constant dense<0.000000e+00> : vector<32x128xf32>
    %6 = tpu.matmul %4, %5, %cst {dimension_numbers = #tpu.dot_dimension_numbers<[1], [0], [0], [1], [0, 0, 1, 1], [], []>} : vector<32x512xbf16>, vector<512x128xbf16>, vector<32x128xf32> -> vector<32x128xf32>
    %7 = arith.addf %3, %6 : vector<32x128xf32>
    %c0_6 = arith.constant 0 : index
    %c0_7 = arith.constant 0 : index
    %8 = vector.load %arg7[%c0_6, %c0_7] : memref<32x128xf32, #tpu.memory_space<vmem>>, vector<32x128xf32>
    tpu.vector_store %arg7[%c0_6, %c0_7], %7 {strides = array<i32>} : memref<32x128xf32, #tpu.memory_space<vmem>>, vector<32x128xf32>,
    %c0_i32_8 = arith.constant 0 : i32
    %9 = arith.cmpi eq, %arg2, %c0_i32_8 : i32
    %10 = arith.extui %9 : i1 to i32
    %c0_i32_9 = arith.constant 0 : i32
    %11 = arith.cmpi ne, %10, %c0_i32_9 : i32
    scf.if %11 {
      %c0_10 = arith.constant 0 : index
      %c0_11 = arith.constant 0 : index
      %12 = vector.load %arg7[%c0_10, %c0_11] : memref<32x128xf32, #tpu.memory_space<vmem>>, vector<32x128xf32>
      %c0_12 = arith.constant 0 : index
      %c0_13 = arith.constant 0 : index
      %13 = vector.load %arg5[%c0_12, %c0_13] : memref<1x128xf32, #tpu.memory_space<vmem>>, vector<1x128xf32>
      %14 = vector.broadcast %13 : vector<1x128xf32> to vector<32x128xf32>
      %15 = arith.addf %12, %14 : vector<32x128xf32>
      %c0_14 = arith.constant 0 : index
      %c0_15 = arith.constant 0 : index
      %16 = vector.load %arg6[%c0_14, %c0_15] : memref<32x128xf32, #tpu.memory_space<vmem>>, vector<32x128xf32>
      tpu.vector_store %arg6[%c0_14, %c0_15], %15 {strides = array<i32>} : memref<32x128xf32, #tpu.memory_space<vmem>>, vector<32x128xf32>,
    } else {
    }
    return
  }
  func.func @transform_0(%arg0: i32, %arg1: i32, %arg2: i32) -> (i32, i32) {
    %c0_i32 = arith.constant 0 : i32
    return %arg0, %arg2 : i32, i32
  }
  func.func @transform_1(%arg0: i32, %arg1: i32, %arg2: i32) -> (i32, i32) {
    %c0_i32 = arith.constant 0 : i32
    return %arg2, %arg1 : i32, i32
  }
  func.func @transform_2(%arg0: i32, %arg1: i32, %arg2: i32) -> (i32, i32) {
    %c0_i32 = arith.constant 0 : i32
    %c0_i32_0 = arith.constant 0 : i32
    return %c0_i32, %arg1 : i32, i32
  }
  func.func @transform_3(%arg0: i32, %arg1: i32, %arg2: i32) -> (i32, i32) {
    %c0_i32 = arith.constant 0 : i32
    return %arg0, %arg1 : i32, i32
  }
}

module attributes {stable_mosaic.version = 11 : i64} {
  func.func @_matmul_bias_kernel(%arg0: i32, %arg1: i32, %arg2: i32, %arg3: memref<32x256xbf16, #tpu.memory_space<vmem>>, %arg4: memref<256x128xbf16, #tpu.memory_space<vmem>>, %arg5: memref<1x128xf32, #tpu.memory_space<vmem>>, %arg6: memref<32x128xf32, #tpu.memory_space<vmem>>, %arg7: memref<32x128xf32, #tpu.memory_space<vmem>>) attributes {dimension_semantics = [#tpu.dimension_semantics<parallel>, #tpu.dimension_semantics<parallel>, #tpu.dimension_semantics<arbitrary>], iteration_bounds = array<i64: 1, 1, 1>, scalar_prefetch = 0 : i64, scratch_operands = 1 : i64, tpu.core_type = #tpu.core_type<tc>, window_params = [{transform_indices = @transform_0, window_bounds = array<i64: 32, 256>}, {transform_indices = @transform_1, window_bounds = array<i64: 256, 128>}, {transform_indices = @transform_2, window_bounds = array<i64: 1, 128>}, {transform_indices = @transform_3, window_bounds = array<i64: 32, 128>}]} {
    %c0_i32 = arith.constant 0 : i32
    %0 = arith.cmpi eq, %arg2, %c0_i32 : i32
    %1 = arith.extui %0 : i1 to i32
    %c0_i32_0 = arith.constant 0 : i32
    %2 = arith.cmpi ne, %1, %c0_i32_0 : i32
    scf.if %2 {
      %cst_10 = arith.constant 0.000000e+00 : f32
      %12 = vector.broadcast %cst_10 : f32 to vector<32x128xf32>
      %c0_11 = arith.constant 0 : index
      %c0_12 = arith.constant 0 : index
      %13 = vector.load %arg7[%c0_11, %c0_12] : memref<32x128xf32, #tpu.memory_space<vmem>>, vector<32x128xf32>
      tpu.vector_store %arg7[%c0_11, %c0_12], %12 {strides = array<i32>} : memref<32x128xf32, #tpu.memory_space<vmem>>, vector<32x128xf32>,
    } else {
    }
    %c0 = arith.constant 0 : index
    %c0_1 = arith.constant 0 : index
    %3 = vector.load %arg7[%c0, %c0_1] : memref<32x128xf32, #tpu.memory_space<vmem>>, vector<32x128xf32>
    %c0_2 = arith.constant 0 : index
    %c0_3 = arith.constant 0 : index
    %4 = vector.load %arg3[%c0_2, %c0_3] : memref<32x256xbf16, #tpu.memory_space<vmem>>, vector<32x256xbf16>
    %c0_4 = arith.constant 0 : index
    %c0_5 = arith.constant 0 : index
    %5 = vector.load %arg4[%c0_4, %c0_5] : memref<256x128xbf16, #tpu.memory_space<vmem>>, vector<256x128xbf16>
    %cst = arith.constant dense<0.000000e+00> : vector<32x128xf32>
    %6 = tpu.matmul %4, %5, %cst {dimension_numbers = #tpu.dot_dimension_numbers<[1], [0], [0], [1], [0, 0, 1, 1], [], []>} : vector<32x256xbf16>, vector<256x128xbf16>, vector<32x128xf32> -> vector<32x128xf32>
    %7 = arith.addf %3, %6 : vector<32x128xf32>
    %c0_6 = arith.constant 0 : index
    %c0_7 = arith.constant 0 : index
    %8 = vector.load %arg7[%c0_6, %c0_7] : memref<32x128xf32, #tpu.memory_space<vmem>>, vector<32x128xf32>
    tpu.vector_store %arg7[%c0_6, %c0_7], %7 {strides = array<i32>} : memref<32x128xf32, #tpu.memory_space<vmem>>, vector<32x128xf32>,
    %c0_i32_8 = arith.constant 0 : i32
    %9 = arith.cmpi eq, %arg2, %c0_i32_8 : i32
    %10 = arith.extui %9 : i1 to i32
    %c0_i32_9 = arith.constant 0 : i32
    %11 = arith.cmpi ne, %10, %c0_i32_9 : i32
    scf.if %11 {
      %c0_10 = arith.constant 0 : index
      %c0_11 = arith.constant 0 : index
      %12 = vector.load %arg7[%c0_10, %c0_11] : memref<32x128xf32, #tpu.memory_space<vmem>>, vector<32x128xf32>
      %c0_12 = arith.constant 0 : index
      %c0_13 = arith.constant 0 : index
      %13 = vector.load %arg5[%c0_12, %c0_13] : memref<1x128xf32, #tpu.memory_space<vmem>>, vector<1x128xf32>
      %14 = vector.broadcast %13 : vector<1x128xf32> to vector<32x128xf32>
      %15 = arith.addf %12, %14 : vector<32x128xf32>
      %c0_14 = arith.constant 0 : index
      %c0_15 = arith.constant 0 : index
      %16 = vector.load %arg6[%c0_14, %c0_15] : memref<32x128xf32, #tpu.memory_space<vmem>>, vector<32x128xf32>
      tpu.vector_store %arg6[%c0_14, %c0_15], %15 {strides = array<i32>} : memref<32x128xf32, #tpu.memory_space<vmem>>, vector<32x128xf32>,
    } else {
    }
    return
  }
  func.func @transform_0(%arg0: i32, %arg1: i32, %arg2: i32) -> (i32, i32) {
    %c0_i32 = arith.constant 0 : i32
    return %arg0, %arg2 : i32, i32
  }
  func.func @transform_1(%arg0: i32, %arg1: i32, %arg2: i32) -> (i32, i32) {
    %c0_i32 = arith.constant 0 : i32
    return %arg2, %arg1 : i32, i32
  }
  func.func @transform_2(%arg0: i32, %arg1: i32, %arg2: i32) -> (i32, i32) {
    %c0_i32 = arith.constant 0 : i32
    %c0_i32_0 = arith.constant 0 : i32
    return %c0_i32, %arg1 : i32, i32
  }
  func.func @transform_3(%arg0: i32, %arg1: i32, %arg2: i32) -> (i32, i32) {
    %c0_i32 = arith.constant 0 : i32
    return %arg0, %arg1 : i32, i32
  }
}

module attributes {stable_mosaic.version = 11 : i64} {
  func.func @_matmul_bias_kernel(%arg0: i32, %arg1: i32, %arg2: i32, %arg3: memref<128x256xbf16, #tpu.memory_space<vmem>>, %arg4: memref<256x128xbf16, #tpu.memory_space<vmem>>, %arg5: memref<1x128xf32, #tpu.memory_space<vmem>>, %arg6: memref<128x128xf32, #tpu.memory_space<vmem>>, %arg7: memref<128x128xf32, #tpu.memory_space<vmem>>) attributes {dimension_semantics = [#tpu.dimension_semantics<parallel>, #tpu.dimension_semantics<parallel>, #tpu.dimension_semantics<arbitrary>], iteration_bounds = array<i64: 1, 1, 1>, scalar_prefetch = 0 : i64, scratch_operands = 1 : i64, tpu.core_type = #tpu.core_type<tc>, window_params = [{transform_indices = @transform_0, window_bounds = array<i64: 128, 256>}, {transform_indices = @transform_1, window_bounds = array<i64: 256, 128>}, {transform_indices = @transform_2, window_bounds = array<i64: 1, 128>}, {transform_indices = @transform_3, window_bounds = array<i64: 128, 128>}]} {
    %c0_i32 = arith.constant 0 : i32
    %0 = arith.cmpi eq, %arg2, %c0_i32 : i32
    %1 = arith.extui %0 : i1 to i32
    %c0_i32_0 = arith.constant 0 : i32
    %2 = arith.cmpi ne, %1, %c0_i32_0 : i32
    scf.if %2 {
      %cst_10 = arith.constant 0.000000e+00 : f32
      %12 = vector.broadcast %cst_10 : f32 to vector<128x128xf32>
      %c0_11 = arith.constant 0 : index
      %c0_12 = arith.constant 0 : index
      %13 = vector.load %arg7[%c0_11, %c0_12] : memref<128x128xf32, #tpu.memory_space<vmem>>, vector<128x128xf32>
      tpu.vector_store %arg7[%c0_11, %c0_12], %12 {strides = array<i32>} : memref<128x128xf32, #tpu.memory_space<vmem>>, vector<128x128xf32>,
    } else {
    }
    %c0 = arith.constant 0 : index
    %c0_1 = arith.constant 0 : index
    %3 = vector.load %arg7[%c0, %c0_1] : memref<128x128xf32, #tpu.memory_space<vmem>>, vector<128x128xf32>
    %c0_2 = arith.constant 0 : index
    %c0_3 = arith.constant 0 : index
    %4 = vector.load %arg3[%c0_2, %c0_3] : memref<128x256xbf16, #tpu.memory_space<vmem>>, vector<128x256xbf16>
    %c0_4 = arith.constant 0 : index
    %c0_5 = arith.constant 0 : index
    %5 = vector.load %arg4[%c0_4, %c0_5] : memref<256x128xbf16, #tpu.memory_space<vmem>>, vector<256x128xbf16>
    %cst = arith.constant dense<0.000000e+00> : vector<128x128xf32>
    %6 = tpu.matmul %4, %5, %cst {dimension_numbers = #tpu.dot_dimension_numbers<[1], [0], [0], [1], [0, 0, 1, 1], [], []>} : vector<128x256xbf16>, vector<256x128xbf16>, vector<128x128xf32> -> vector<128x128xf32>
    %7 = arith.addf %3, %6 : vector<128x128xf32>
    %c0_6 = arith.constant 0 : index
    %c0_7 = arith.constant 0 : index
    %8 = vector.load %arg7[%c0_6, %c0_7] : memref<128x128xf32, #tpu.memory_space<vmem>>, vector<128x128xf32>
    tpu.vector_store %arg7[%c0_6, %c0_7], %7 {strides = array<i32>} : memref<128x128xf32, #tpu.memory_space<vmem>>, vector<128x128xf32>,
    %c0_i32_8 = arith.constant 0 : i32
    %9 = arith.cmpi eq, %arg2, %c0_i32_8 : i32
    %10 = arith.extui %9 : i1 to i32
    %c0_i32_9 = arith.constant 0 : i32
    %11 = arith.cmpi ne, %10, %c0_i32_9 : i32
    scf.if %11 {
      %c0_10 = arith.constant 0 : index
      %c0_11 = arith.constant 0 : index
      %12 = vector.load %arg7[%c0_10, %c0_11] : memref<128x128xf32, #tpu.memory_space<vmem>>, vector<128x128xf32>
      %c0_12 = arith.constant 0 : index
      %c0_13 = arith.constant 0 : index
      %13 = vector.load %arg5[%c0_12, %c0_13] : memref<1x128xf32, #tpu.memory_space<vmem>>, vector<1x128xf32>
      %14 = vector.broadcast %13 : vector<1x128xf32> to vector<128x128xf32>
      %15 = arith.addf %12, %14 : vector<128x128xf32>
      %c0_14 = arith.constant 0 : index
      %c0_15 = arith.constant 0 : index
      %16 = vector.load %arg6[%c0_14, %c0_15] : memref<128x128xf32, #tpu.memory_space<vmem>>, vector<128x128xf32>
      tpu.vector_store %arg6[%c0_14, %c0_15], %15 {strides = array<i32>} : memref<128x128xf32, #tpu.memory_space<vmem>>, vector<128x128xf32>,
    } else {
    }
    return
  }
  func.func @transform_0(%arg0: i32, %arg1: i32, %arg2: i32) -> (i32, i32) {
    %c0_i32 = arith.constant 0 : i32
    return %arg0, %arg2 : i32, i32
  }
  func.func @transform_1(%arg0: i32, %arg1: i32, %arg2: i32) -> (i32, i32) {
    %c0_i32 = arith.constant 0 : i32
    return %arg2, %arg1 : i32, i32
  }
  func.func @transform_2(%arg0: i32, %arg1: i32, %arg2: i32) -> (i32, i32) {
    %c0_i32 = arith.constant 0 : i32
    %c0_i32_0 = arith.constant 0 : i32
    return %c0_i32, %arg1 : i32, i32
  }
  func.func @transform_3(%arg0: i32, %arg1: i32, %arg2: i32) -> (i32, i32) {
    %c0_i32 = arith.constant 0 : i32
    return %arg0, %arg1 : i32, i32
  }
}

module attributes {stable_mosaic.version = 11 : i64} {
  func.func @_matmul_bias_kernel(%arg0: i32, %arg1: i32, %arg2: i32, %arg3: memref<128x128xbf16, #tpu.memory_space<vmem>>, %arg4: memref<128x128xbf16, #tpu.memory_space<vmem>>, %arg5: memref<1x128xf32, #tpu.memory_space<vmem>>, %arg6: memref<128x128xf32, #tpu.memory_space<vmem>>, %arg7: memref<128x128xf32, #tpu.memory_space<vmem>>) attributes {dimension_semantics = [#tpu.dimension_semantics<parallel>, #tpu.dimension_semantics<parallel>, #tpu.dimension_semantics<arbitrary>], iteration_bounds = array<i64: 1, 1, 1>, scalar_prefetch = 0 : i64, scratch_operands = 1 : i64, tpu.core_type = #tpu.core_type<tc>, window_params = [{transform_indices = @transform_0, window_bounds = array<i64: 128, 128>}, {transform_indices = @transform_1, window_bounds = array<i64: 128, 128>}, {transform_indices = @transform_2, window_bounds = array<i64: 1, 128>}, {transform_indices = @transform_3, window_bounds = array<i64: 128, 128>}]} {
    %c0_i32 = arith.constant 0 : i32
    %0 = arith.cmpi eq, %arg2, %c0_i32 : i32
    %1 = arith.extui %0 : i1 to i32
    %c0_i32_0 = arith.constant 0 : i32
    %2 = arith.cmpi ne, %1, %c0_i32_0 : i32
    scf.if %2 {
      %cst_10 = arith.constant 0.000000e+00 : f32
      %12 = vector.broadcast %cst_10 : f32 to vector<128x128xf32>
      %c0_11 = arith.constant 0 : index
      %c0_12 = arith.constant 0 : index
      %13 = vector.load %arg7[%c0_11, %c0_12] : memref<128x128xf32, #tpu.memory_space<vmem>>, vector<128x128xf32>
      tpu.vector_store %arg7[%c0_11, %c0_12], %12 {strides = array<i32>} : memref<128x128xf32, #tpu.memory_space<vmem>>, vector<128x128xf32>,
    } else {
    }
    %c0 = arith.constant 0 : index
    %c0_1 = arith.constant 0 : index
    %3 = vector.load %arg7[%c0, %c0_1] : memref<128x128xf32, #tpu.memory_space<vmem>>, vector<128x128xf32>
    %c0_2 = arith.constant 0 : index
    %c0_3 = arith.constant 0 : index
    %4 = vector.load %arg3[%c0_2, %c0_3] : memref<128x128xbf16, #tpu.memory_space<vmem>>, vector<128x128xbf16>
    %c0_4 = arith.constant 0 : index
    %c0_5 = arith.constant 0 : index
    %5 = vector.load %arg4[%c0_4, %c0_5] : memref<128x128xbf16, #tpu.memory_space<vmem>>, vector<128x128xbf16>
    %cst = arith.constant dense<0.000000e+00> : vector<128x128xf32>
    %6 = tpu.matmul %4, %5, %cst {dimension_numbers = #tpu.dot_dimension_numbers<[1], [0], [0], [1], [0, 0, 1, 1], [], []>} : vector<128x128xbf16>, vector<128x128xbf16>, vector<128x128xf32> -> vector<128x128xf32>
    %7 = arith.addf %3, %6 : vector<128x128xf32>
    %c0_6 = arith.constant 0 : index
    %c0_7 = arith.constant 0 : index
    %8 = vector.load %arg7[%c0_6, %c0_7] : memref<128x128xf32, #tpu.memory_space<vmem>>, vector<128x128xf32>
    tpu.vector_store %arg7[%c0_6, %c0_7], %7 {strides = array<i32>} : memref<128x128xf32, #tpu.memory_space<vmem>>, vector<128x128xf32>,
    %c0_i32_8 = arith.constant 0 : i32
    %9 = arith.cmpi eq, %arg2, %c0_i32_8 : i32
    %10 = arith.extui %9 : i1 to i32
    %c0_i32_9 = arith.constant 0 : i32
    %11 = arith.cmpi ne, %10, %c0_i32_9 : i32
    scf.if %11 {
      %c0_10 = arith.constant 0 : index
      %c0_11 = arith.constant 0 : index
      %12 = vector.load %arg7[%c0_10, %c0_11] : memref<128x128xf32, #tpu.memory_space<vmem>>, vector<128x128xf32>
      %c0_12 = arith.constant 0 : index
      %c0_13 = arith.constant 0 : index
      %13 = vector.load %arg5[%c0_12, %c0_13] : memref<1x128xf32, #tpu.memory_space<vmem>>, vector<1x128xf32>
      %14 = vector.broadcast %13 : vector<1x128xf32> to vector<128x128xf32>
      %15 = arith.addf %12, %14 : vector<128x128xf32>
      %c0_14 = arith.constant 0 : index
      %c0_15 = arith.constant 0 : index
      %16 = vector.load %arg6[%c0_14, %c0_15] : memref<128x128xf32, #tpu.memory_space<vmem>>, vector<128x128xf32>
      tpu.vector_store %arg6[%c0_14, %c0_15], %15 {strides = array<i32>} : memref<128x128xf32, #tpu.memory_space<vmem>>, vector<128x128xf32>,
    } else {
    }
    return
  }
  func.func @transform_0(%arg0: i32, %arg1: i32, %arg2: i32) -> (i32, i32) {
    %c0_i32 = arith.constant 0 : i32
    return %arg0, %arg2 : i32, i32
  }
  func.func @transform_1(%arg0: i32, %arg1: i32, %arg2: i32) -> (i32, i32) {
    %c0_i32 = arith.constant 0 : i32
    return %arg2, %arg1 : i32, i32
  }
  func.func @transform_2(%arg0: i32, %arg1: i32, %arg2: i32) -> (i32, i32) {
    %c0_i32 = arith.constant 0 : i32
    %c0_i32_0 = arith.constant 0 : i32
    return %c0_i32, %arg1 : i32, i32
  }
  func.func @transform_3(%arg0: i32, %arg1: i32, %arg2: i32) -> (i32, i32) {
    %c0_i32 = arith.constant 0 : i32
    return %arg0, %arg1 : i32, i32
  }
}

module attributes {stable_mosaic.version = 11 : i64} {
  func.func @_matmul_bias_kernel(%arg0: i32, %arg1: i32, %arg2: i32, %arg3: memref<128x512xbf16, #tpu.memory_space<vmem>>, %arg4: memref<512x128xbf16, #tpu.memory_space<vmem>>, %arg5: memref<1x128xf32, #tpu.memory_space<vmem>>, %arg6: memref<128x128xf32, #tpu.memory_space<vmem>>, %arg7: memref<128x128xf32, #tpu.memory_space<vmem>>) attributes {dimension_semantics = [#tpu.dimension_semantics<parallel>, #tpu.dimension_semantics<parallel>, #tpu.dimension_semantics<arbitrary>], iteration_bounds = array<i64: 1, 1, 1>, scalar_prefetch = 0 : i64, scratch_operands = 1 : i64, tpu.core_type = #tpu.core_type<tc>, window_params = [{transform_indices = @transform_0, window_bounds = array<i64: 128, 512>}, {transform_indices = @transform_1, window_bounds = array<i64: 512, 128>}, {transform_indices = @transform_2, window_bounds = array<i64: 1, 128>}, {transform_indices = @transform_3, window_bounds = array<i64: 128, 128>}]} {
    %c0_i32 = arith.constant 0 : i32
    %0 = arith.cmpi eq, %arg2, %c0_i32 : i32
    %1 = arith.extui %0 : i1 to i32
    %c0_i32_0 = arith.constant 0 : i32
    %2 = arith.cmpi ne, %1, %c0_i32_0 : i32
    scf.if %2 {
      %cst_10 = arith.constant 0.000000e+00 : f32
      %12 = vector.broadcast %cst_10 : f32 to vector<128x128xf32>
      %c0_11 = arith.constant 0 : index
      %c0_12 = arith.constant 0 : index
      %13 = vector.load %arg7[%c0_11, %c0_12] : memref<128x128xf32, #tpu.memory_space<vmem>>, vector<128x128xf32>
      tpu.vector_store %arg7[%c0_11, %c0_12], %12 {strides = array<i32>} : memref<128x128xf32, #tpu.memory_space<vmem>>, vector<128x128xf32>,
    } else {
    }
    %c0 = arith.constant 0 : index
    %c0_1 = arith.constant 0 : index
    %3 = vector.load %arg7[%c0, %c0_1] : memref<128x128xf32, #tpu.memory_space<vmem>>, vector<128x128xf32>
    %c0_2 = arith.constant 0 : index
    %c0_3 = arith.constant 0 : index
    %4 = vector.load %arg3[%c0_2, %c0_3] : memref<128x512xbf16, #tpu.memory_space<vmem>>, vector<128x512xbf16>
    %c0_4 = arith.constant 0 : index
    %c0_5 = arith.constant 0 : index
    %5 = vector.load %arg4[%c0_4, %c0_5] : memref<512x128xbf16, #tpu.memory_space<vmem>>, vector<512x128xbf16>
    %cst = arith.constant dense<0.000000e+00> : vector<128x128xf32>
    %6 = tpu.matmul %4, %5, %cst {dimension_numbers = #tpu.dot_dimension_numbers<[1], [0], [0], [1], [0, 0, 1, 1], [], []>} : vector<128x512xbf16>, vector<512x128xbf16>, vector<128x128xf32> -> vector<128x128xf32>
    %7 = arith.addf %3, %6 : vector<128x128xf32>
    %c0_6 = arith.constant 0 : index
    %c0_7 = arith.constant 0 : index
    %8 = vector.load %arg7[%c0_6, %c0_7] : memref<128x128xf32, #tpu.memory_space<vmem>>, vector<128x128xf32>
    tpu.vector_store %arg7[%c0_6, %c0_7], %7 {strides = array<i32>} : memref<128x128xf32, #tpu.memory_space<vmem>>, vector<128x128xf32>,
    %c0_i32_8 = arith.constant 0 : i32
    %9 = arith.cmpi eq, %arg2, %c0_i32_8 : i32
    %10 = arith.extui %9 : i1 to i32
    %c0_i32_9 = arith.constant 0 : i32
    %11 = arith.cmpi ne, %10, %c0_i32_9 : i32
    scf.if %11 {
      %c0_10 = arith.constant 0 : index
      %c0_11 = arith.constant 0 : index
      %12 = vector.load %arg7[%c0_10, %c0_11] : memref<128x128xf32, #tpu.memory_space<vmem>>, vector<128x128xf32>
      %c0_12 = arith.constant 0 : index
      %c0_13 = arith.constant 0 : index
      %13 = vector.load %arg5[%c0_12, %c0_13] : memref<1x128xf32, #tpu.memory_space<vmem>>, vector<1x128xf32>
      %14 = vector.broadcast %13 : vector<1x128xf32> to vector<128x128xf32>
      %15 = arith.addf %12, %14 : vector<128x128xf32>
      %c0_14 = arith.constant 0 : index
      %c0_15 = arith.constant 0 : index
      %16 = vector.load %arg6[%c0_14, %c0_15] : memref<128x128xf32, #tpu.memory_space<vmem>>, vector<128x128xf32>
      tpu.vector_store %arg6[%c0_14, %c0_15], %15 {strides = array<i32>} : memref<128x128xf32, #tpu.memory_space<vmem>>, vector<128x128xf32>,
    } else {
    }
    return
  }
  func.func @transform_0(%arg0: i32, %arg1: i32, %arg2: i32) -> (i32, i32) {
    %c0_i32 = arith.constant 0 : i32
    return %arg0, %arg2 : i32, i32
  }
  func.func @transform_1(%arg0: i32, %arg1: i32, %arg2: i32) -> (i32, i32) {
    %c0_i32 = arith.constant 0 : i32
    return %arg2, %arg1 : i32, i32
  }
  func.func @transform_2(%arg0: i32, %arg1: i32, %arg2: i32) -> (i32, i32) {
    %c0_i32 = arith.constant 0 : i32
    %c0_i32_0 = arith.constant 0 : i32
    return %c0_i32, %arg1 : i32, i32
  }
  func.func @transform_3(%arg0: i32, %arg1: i32, %arg2: i32) -> (i32, i32) {
    %c0_i32 = arith.constant 0 : i32
    return %arg0, %arg1 : i32, i32
  }
}

module attributes {stable_mosaic.version = 11 : i64} {
  func.func @_matmul_bias_kernel(%arg0: i32, %arg1: i32, %arg2: i32, %arg3: memref<512x128xbf16, #tpu.memory_space<vmem>>, %arg4: memref<128x128xbf16, #tpu.memory_space<vmem>>, %arg5: memref<1x128xf32, #tpu.memory_space<vmem>>, %arg6: memref<512x128xf32, #tpu.memory_space<vmem>>, %arg7: memref<512x128xf32, #tpu.memory_space<vmem>>) attributes {dimension_semantics = [#tpu.dimension_semantics<parallel>, #tpu.dimension_semantics<parallel>, #tpu.dimension_semantics<arbitrary>], iteration_bounds = array<i64: 1, 1, 25>, scalar_prefetch = 0 : i64, scratch_operands = 1 : i64, tpu.core_type = #tpu.core_type<tc>, window_params = [{transform_indices = @transform_0, window_bounds = array<i64: 512, 128>}, {transform_indices = @transform_1, window_bounds = array<i64: 128, 128>}, {transform_indices = @transform_2, window_bounds = array<i64: 1, 128>}, {transform_indices = @transform_3, window_bounds = array<i64: 512, 128>}]} {
    %c0_i32 = arith.constant 0 : i32
    %0 = arith.cmpi eq, %arg2, %c0_i32 : i32
    %1 = arith.extui %0 : i1 to i32
    %c0_i32_0 = arith.constant 0 : i32
    %2 = arith.cmpi ne, %1, %c0_i32_0 : i32
    scf.if %2 {
      %cst_9 = arith.constant 0.000000e+00 : f32
      %12 = vector.broadcast %cst_9 : f32 to vector<512x128xf32>
      %c0_10 = arith.constant 0 : index
      %c0_11 = arith.constant 0 : index
      %13 = vector.load %arg7[%c0_10, %c0_11] : memref<512x128xf32, #tpu.memory_space<vmem>>, vector<512x128xf32>
      tpu.vector_store %arg7[%c0_10, %c0_11], %12 {strides = array<i32>} : memref<512x128xf32, #tpu.memory_space<vmem>>, vector<512x128xf32>,
    } else {
    }
    %c0 = arith.constant 0 : index
    %c0_1 = arith.constant 0 : index
    %3 = vector.load %arg7[%c0, %c0_1] : memref<512x128xf32, #tpu.memory_space<vmem>>, vector<512x128xf32>
    %c0_2 = arith.constant 0 : index
    %c0_3 = arith.constant 0 : index
    %4 = vector.load %arg3[%c0_2, %c0_3] : memref<512x128xbf16, #tpu.memory_space<vmem>>, vector<512x128xbf16>
    %c0_4 = arith.constant 0 : index
    %c0_5 = arith.constant 0 : index
    %5 = vector.load %arg4[%c0_4, %c0_5] : memref<128x128xbf16, #tpu.memory_space<vmem>>, vector<128x128xbf16>
    %cst = arith.constant dense<0.000000e+00> : vector<512x128xf32>
    %6 = tpu.matmul %4, %5, %cst {dimension_numbers = #tpu.dot_dimension_numbers<[1], [0], [0], [1], [0, 0, 1, 1], [], []>} : vector<512x128xbf16>, vector<128x128xbf16>, vector<512x128xf32> -> vector<512x128xf32>
    %7 = arith.addf %3, %6 : vector<512x128xf32>
    %c0_6 = arith.constant 0 : index
    %c0_7 = arith.constant 0 : index
    %8 = vector.load %arg7[%c0_6, %c0_7] : memref<512x128xf32, #tpu.memory_space<vmem>>, vector<512x128xf32>
    tpu.vector_store %arg7[%c0_6, %c0_7], %7 {strides = array<i32>} : memref<512x128xf32, #tpu.memory_space<vmem>>, vector<512x128xf32>,
    %c24_i32 = arith.constant 24 : i32
    %9 = arith.cmpi eq, %arg2, %c24_i32 : i32
    %10 = arith.extui %9 : i1 to i32
    %c0_i32_8 = arith.constant 0 : i32
    %11 = arith.cmpi ne, %10, %c0_i32_8 : i32
    scf.if %11 {
      %c0_9 = arith.constant 0 : index
      %c0_10 = arith.constant 0 : index
      %12 = vector.load %arg7[%c0_9, %c0_10] : memref<512x128xf32, #tpu.memory_space<vmem>>, vector<512x128xf32>
      %c0_11 = arith.constant 0 : index
      %c0_12 = arith.constant 0 : index
      %13 = vector.load %arg5[%c0_11, %c0_12] : memref<1x128xf32, #tpu.memory_space<vmem>>, vector<1x128xf32>
      %14 = vector.broadcast %13 : vector<1x128xf32> to vector<512x128xf32>
      %15 = arith.addf %12, %14 : vector<512x128xf32>
      %16 = math.tanh %15 : vector<512x128xf32>
      %c0_13 = arith.constant 0 : index
      %c0_14 = arith.constant 0 : index
      %17 = vector.load %arg6[%c0_13, %c0_14] : memref<512x128xf32, #tpu.memory_space<vmem>>, vector<512x128xf32>
      tpu.vector_store %arg6[%c0_13, %c0_14], %16 {strides = array<i32>} : memref<512x128xf32, #tpu.memory_space<vmem>>, vector<512x128xf32>,
    } else {
    }
    return
  }
  func.func @transform_0(%arg0: i32, %arg1: i32, %arg2: i32) -> (i32, i32) {
    %c0_i32 = arith.constant 0 : i32
    return %arg0, %arg2 : i32, i32
  }
  func.func @transform_1(%arg0: i32, %arg1: i32, %arg2: i32) -> (i32, i32) {
    %c0_i32 = arith.constant 0 : i32
    return %arg2, %arg1 : i32, i32
  }
  func.func @transform_2(%arg0: i32, %arg1: i32, %arg2: i32) -> (i32, i32) {
    %c0_i32 = arith.constant 0 : i32
    %c0_i32_0 = arith.constant 0 : i32
    return %c0_i32, %arg1 : i32, i32
  }
  func.func @transform_3(%arg0: i32, %arg1: i32, %arg2: i32) -> (i32, i32) {
    %c0_i32 = arith.constant 0 : i32
    return %arg0, %arg1 : i32, i32
  }
}

</mosaic_0001>

<bundles_post_ra>
// kernel: xralefkdo_forward.54
= control target key start
LH: loop header
LB: loop body
LE: loop exit
PB: predicated region body
PF: predicated region fallthrough
CT: control target
= control target key end

     0   :  { %s640_s6 = smov 0   ;;  %s642_s7 = smov 0   ;;  %s1200_s0 = inlined_call_operand.vmem [shape: f32[2,256,64], index: 0, kind: input, shape index: {}]   ;;  %s1201_s1 = inlined_call_operand.vmem [shape: f32[2,256,64], index: 1, kind: output, shape index: {}]  }
   0x1   :  { %s644_s8 = smov 0  }
   0x2 LB: > { %s23_s9 = sadd.s32 1, %s624_s7  ;;  %p571_p0 = scmp.ge.s32.totalorder %s628_s8, 1  ;;  %s628_s8 = sphi %s644_s8, %s11_s8   ;;  %s624_s7 = sphi %s642_s7, %s1203_s7   ;;  %s620_s6 = sphi %s640_s6, %s1202_s6  }
   0x3   : > { %p25_p1 = scmp.ge.s32.totalorder %s23_s9, 2  ;;  %p106_p2 = scmp.lt.s32.totalorder %s628_s8, 3 }
   0x5   : > { %s1205_s9 = smov (%p25_p1, %s23_s9), 0  ;;  %p107_p3 = pnand %p571_p0, %p106_p2 }
   0x6   : > { %p132_p4 = scmp.lt.s32.totalorder (!%p107_p3), %s620_s6, 1  ;;  %vm180_vm0 = vcmask (!%p107_p3), 523264  }
   0x7   : > { %110 = sbr.rel (%p107_p3) target bundleno = 210 (0xd2), region = 24 }
   0xe   : > { %s1207_s6 = smov (!%p132_p4, %s620_s6), 1 }
   0xf   : > { %s578_s10 = sshll.u32 %s1207_s6, 8 }
  0x10   : > { %s666_s13 = scalar_lea.vmem %s1200_s0, %s578_s10  ;;  %s1069_s16 = scalar_lea.vmem %s1201_s1, %s578_s10 }
  0x11   : > { %v669_v0 = vld [vmem:[%s666_s13] sm:$0xff]  ;;  %v672_v1 = vld [vmem:[%s666_s13 + $0x8] sm:$0xff]  ;;  %v675_v2 = vld [vmem:[%s666_s13 + $0x10] sm:$0xff] }
  0x12   : > { %v678_v3 = vld [vmem:[%s666_s13 + $0x18] sm:$0xff]  ;;  %v181_v4 = vsel %vm180_vm0, %v669_v0, 0.0  ;;  %v182_v5 = vsel %vm180_vm0, %v672_v1, 0.0  ;;  %v184_v6 = vsel %vm180_vm0, %v675_v2, 0.0  ;;  %v687_v7 = vld [vmem:[%s666_s13 + $0x20] sm:$0xff]  ;;  %v692_v10 = vld [vmem:[%s666_s13 + $0x28] sm:$0xff] }
  0x13   : > { %v183_v8 = vadd.f32 %v182_v5, %v181_v4  ;;  %v186_v9 = vsel %vm180_vm0, %v678_v3, 0.0  ;;  %v188_v12 = vsel %vm180_vm0, %v687_v7, 0.0  ;;  %v697_v13 = vld [vmem:[%s666_s13 + $0x30] sm:$0xff]  ;;  %v190_v15 = vsel %vm180_vm0, %v692_v10, 0.0  ;;  %v702_v16 = vld [vmem:[%s666_s13 + $0x38] sm:$0xff]  ;;  %v707_v19 = vld [vmem:[%s666_s13 + $0x40] sm:$0xff] }
  0x14   : > { %v192_v18 = vsel %vm180_vm0, %v697_v13, 0.0  ;;  %v194_v21 = vsel %vm180_vm0, %v702_v16, 0.0  ;;  %v712_v22 = vld [vmem:[%s666_s13 + $0x48] sm:$0xff]  ;;  %v196_v24 = vsel %vm180_vm0, %v707_v19, 0.0  ;;  %v717_v25 = vld [vmem:[%s666_s13 + $0x50] sm:$0xff]  ;;  %v722_v28 = vld [vmem:[%s666_s13 + $0x58] sm:$0xff] }
  0x15   : > { %v185_v11 = vadd.f32 %v184_v6, %v183_v8  ;;  %v198_v27 = vsel %vm180_vm0, %v712_v22, 0.0  ;;  %v200_v30 = vsel %vm180_vm0, %v717_v25, 0.0  ;;  %v727_v31 = vld [vmem:[%s666_s13 + $0x60] sm:$0xff]  ;;  %v202_v33 = vsel %vm180_vm0, %v722_v28, 0.0  ;;  %v732_v34 = vld [vmem:[%s666_s13 + $0x68] sm:$0xff]  ;;  %v737_v37 = vld [vmem:[%s666_s13 + $0x70] sm:$0xff] }
  0x16   : > { %v204_v36 = vsel %vm180_vm0, %v727_v31, 0.0  ;;  %v206_v39 = vsel %vm180_vm0, %v732_v34, 0.0  ;;  %v742_v40 = vld [vmem:[%s666_s13 + $0x78] sm:$0xff]  ;;  %v208_v42 = vsel %vm180_vm0, %v737_v37, 0.0  ;;  %v747_v43 = vld [vmem:[%s666_s13 + $0x80] sm:$0xff]  ;;  %v752_v46 = vld [vmem:[%s666_s13 + $0x88] sm:$0xff] }
  0x17   : > { %v187_v14 = vadd.f32 %v186_v9, %v185_v11  ;;  %v210_v45 = vsel %vm180_vm0, %v742_v40, 0.0  ;;  %v212_v48 = vsel %vm180_vm0, %v747_v43, 0.0  ;;  %v757_v49 = vld [vmem:[%s666_s13 + $0x90] sm:$0xff]  ;;  %v214_v51 = vsel %vm180_vm0, %v752_v46, 0.0  ;;  %v762_v52 = vld [vmem:[%s666_s13 + $0x98] sm:$0xff]  ;;  %v767_v55 = vld [vmem:[%s666_s13 + $0xa0] sm:$0xff] }
  0x18   : > { %v216_v54 = vsel %vm180_vm0, %v757_v49, 0.0  ;;  %v218_v57 = vsel %vm180_vm0, %v762_v52, 0.0  ;;  %v772_v58 = vld [vmem:[%s666_s13 + $0xa8] sm:$0xff]  ;;  %v220_v60 = vsel %vm180_vm0, %v767_v55, 0.0  ;;  %v777_v61 = vld [vmem:[%s666_s13 + $0xb0] sm:$0xff]  ;;  %v782_v4 = vld [vmem:[%s666_s13 + $0xb8] sm:$0xff] }
  0x19   : > { %v189_v17 = vadd.f32 %v188_v12, %v187_v14  ;;  %v222_v63 = vsel %vm180_vm0, %v772_v58, 0.0  ;;  %v224_v6 = vsel %vm180_vm0, %v777_v61, 0.0  ;;  %v787_v8 = vld [vmem:[%s666_s13 + $0xc0] sm:$0xff]  ;;  %v226_v11 = vsel %vm180_vm0, %v782_v4, 0.0  ;;  %v792_v12 = vld [vmem:[%s666_s13 + $0xc8] sm:$0xff] }
  0x1b   : > { %v191_v20 = vadd.f32 %v190_v15, %v189_v17  ;;  %v228_v15 = vsel %vm180_vm0, %v787_v8, 0.0  ;;  %v797_v17 = vld [vmem:[%s666_s13 + $0xd0] sm:$0xff] }
  0x1d   : > { %v193_v23 = vadd.f32 %v192_v18, %v191_v20  ;;  %v230_v20 = vsel %vm180_vm0, %v792_v12, 0.0 }
  0x1f   : > { %v195_v26 = vadd.f32 %v194_v21, %v193_v23  ;;  %v802_v21 = vld [vmem:[%s666_s13 + $0xd8] sm:$0xff] }
  0x21   : > { %v197_v29 = vadd.f32 %v196_v24, %v195_v26  ;;  %v232_v24 = vsel %vm180_vm0, %v797_v17, 0.0  ;;  %v807_v26 = vld [vmem:[%s666_s13 + $0xe0] sm:$0xff] }
  0x23   : > { %v199_v32 = vadd.f32 %v198_v27, %v197_v29  ;;  %v234_v29 = vsel %vm180_vm0, %v802_v21, 0.0 }
  0x25   : > { %v201_v35 = vadd.f32 %v200_v30, %v199_v32  ;;  %v812_v30 = vld [vmem:[%s666_s13 + $0xe8] sm:$0xff] }
  0x27   : > { %v203_v38 = vadd.f32 %v202_v33, %v201_v35  ;;  %v236_v33 = vsel %vm180_vm0, %v807_v26, 0.0  ;;  %v817_v35 = vld [vmem:[%s666_s13 + $0xf0] sm:$0xff] }
  0x29   : > { %v205_v41 = vadd.f32 %v204_v36, %v203_v38  ;;  %v238_v38 = vsel %vm180_vm0, %v812_v30, 0.0 }
  0x2b   : > { %v207_v44 = vadd.f32 %v206_v39, %v205_v41  ;;  %v822_v39 = vld [vmem:[%s666_s13 + $0xf8] sm:$0xff] }
  0x2d   : > { %v209_v47 = vadd.f32 %v208_v42, %v207_v44  ;;  %v240_v42 = vsel %vm180_vm0, %v817_v35, 0.0 }
  0x2f   : > { %v211_v50 = vadd.f32 %v210_v45, %v209_v47  ;;  %v242_v45 = vsel %vm180_vm0, %v822_v39, 0.0 }
  0x31   : > { %v213_v53 = vadd.f32 %v212_v48, %v211_v50 }
  0x33   : > { %v215_v56 = vadd.f32 %v214_v51, %v213_v53 }
  0x35   : > { %v217_v59 = vadd.f32 %v216_v54, %v215_v56 }
  0x37   : > { %v219_v62 = vadd.f32 %v218_v57, %v217_v59 }
  0x39   : > { %v221_v5 = vadd.f32 %v220_v60, %v219_v62 }
  0x3b   : > { %v223_v9 = vadd.f32 %v222_v63, %v221_v5 }
  0x3d   : > { %v225_v14 = vadd.f32 %v224_v6, %v223_v9 }
  0x3f   : > { %v227_v18 = vadd.f32 %v226_v11, %v225_v14 }
  0x41   : > { %v229_v23 = vadd.f32 %v228_v15, %v227_v18 }
  0x43   : > { %v231_v27 = vadd.f32 %v230_v20, %v229_v23 }
  0x45   : > { %v233_v32 = vadd.f32 %v232_v24, %v231_v27 }
  0x47   : > { %v235_v36 = vadd.f32 %v234_v29, %v233_v32 }
  0x49   : > { %v237_v41 = vadd.f32 %v236_v33, %v235_v36 }
  0x4b   : > { %v239_v44 = vadd.f32 %v238_v38, %v237_v41 }
  0x4d   : > { %v241_v47 = vadd.f32 %v240_v42, %v239_v44 }
  0x4f   : > { %v243_v48 = vadd.f32 %v242_v45, %v241_v47 }
  0x51   : > { %v244_v50 = vrot.slane %v243_v48, 4 }
  0x53   : > { %v245_v51 = vadd.f32 %v244_v50, %v243_v48 }
  0x55   : > { %v246_v53 = vrot.slane %v245_v51, 2 }
  0x57   : > { %v247_v54 = vadd.f32 %v246_v53, %v245_v51 }
  0x59   : > { %v248_v56 = vrot.slane %v247_v54, 1 }
  0x5b   : > { %v249_v57 = vadd.f32 %v248_v56, %v247_v54 }
  0x5d   : > { %v828_v59 = vmul.f32 0.00390625, %v249_v57 }
  0x5f   : > { %v832_v60 = vsub.f32 %v669_v0, %v828_v59  ;;  %v836_v62 = vsub.f32 %v672_v1, %v828_v59  ;;  %v840_v63 = vsub.f32 %v675_v2, %v828_v59  ;;  %v844_v5 = vsub.f32 %v678_v3, %v828_v59 }
  0x60   : > { %v848_v6 = vsub.f32 %v687_v7, %v828_v59  ;;  %v858_v2 = vsub.f32 %v692_v10, %v828_v59  ;;  %v864_v7 = vsub.f32 %v697_v13, %v828_v59  ;;  %v873_v10 = vsub.f32 %v702_v16, %v828_v59 }
  0x61   : > { %v284_v0 = vmul.f32 %v832_v60, %v832_v60  ;;  %v285_v9 = vmul.f32 %v836_v62, %v836_v62  ;;  %v286_v1 = vmul.f32 %v840_v63, %v840_v63  ;;  %v287_v3 = vmul.f32 %v844_v5, %v844_v5 }
  0x62   : > { %v288_v11 = vmul.f32 %v848_v6, %v848_v6  ;;  %v289_v23 = vmul.f32 %v858_v2, %v858_v2  ;;  %v880_v27 = vsub.f32 %v707_v19, %v828_v59  ;;  %v290_v29 = vmul.f32 %v864_v7, %v864_v7 }
  0x63   : > { %v316_v14 = vsel %vm180_vm0, %v284_v0, 0.0  ;;  %v317_v15 = vsel %vm180_vm0, %v285_v9, 0.0  ;;  %v319_v18 = vsel %vm180_vm0, %v286_v1, 0.0  ;;  %v321_v13 = vsel %vm180_vm0, %v287_v3, 0.0 }
  0x64   : > { %v318_v20 = vadd.f32 %v317_v15, %v316_v14  ;;  %v323_v32 = vsel %vm180_vm0, %v288_v11, 0.0  ;;  %v887_v16 = vsub.f32 %v712_v22, %v828_v59  ;;  %v291_v36 = vmul.f32 %v873_v10, %v873_v10 }
  0x65   : > { %v325_v38 = vsel %vm180_vm0, %v289_v23, 0.0  ;;  %v894_v19 = vsub.f32 %v717_v25, %v828_v59  ;;  %v292_v42 = vmul.f32 %v880_v27, %v880_v27  ;;  %v327_v44 = vsel %vm180_vm0, %v290_v29, 0.0 }
  0x66   : > { %v320_v24 = vadd.f32 %v319_v18, %v318_v20  ;;  %v901_v22 = vsub.f32 %v722_v28, %v828_v59  ;;  %v293_v47 = vmul.f32 %v887_v16, %v887_v16  ;;  %v329_v48 = vsel %vm180_vm0, %v291_v36, 0.0 }
  0x67   : > { %v908_v25 = vsub.f32 %v727_v31, %v828_v59  ;;  %v294_v51 = vmul.f32 %v894_v19, %v894_v19  ;;  %v331_v53 = vsel %vm180_vm0, %v292_v42, 0.0  ;;  %v915_v28 = vsub.f32 %v732_v34, %v828_v59 }
  0x68   : > { %v322_v33 = vadd.f32 %v321_v13, %v320_v24  ;;  %v295_v56 = vmul.f32 %v901_v22, %v901_v22  ;;  %v333_v57 = vsel %vm180_vm0, %v293_v47, 0.0  ;;  %v922_v31 = vsub.f32 %v737_v37, %v828_v59 }
  0x69   : > { %v296_v9 = vmul.f32 %v908_v25, %v908_v25  ;;  %v335_v1 = vsel %vm180_vm0, %v294_v51, 0.0  ;;  %v929_v34 = vsub.f32 %v742_v40, %v828_v59  ;;  %v297_v11 = vmul.f32 %v915_v28, %v915_v28 }
  0x6a   : > { %v324_v41 = vadd.f32 %v323_v32, %v322_v33  ;;  %v337_v14 = vsel %vm180_vm0, %v295_v56, 0.0  ;;  %v936_v37 = vsub.f32 %v747_v43, %v828_v59  ;;  %v298_v18 = vmul.f32 %v922_v31, %v922_v31 }
  0x6b   : > { %v339_v20 = vsel %vm180_vm0, %v296_v9, 0.0  ;;  %v943_v40 = vsub.f32 %v752_v46, %v828_v59  ;;  %v299_v13 = vmul.f32 %v929_v34, %v929_v34  ;;  %v341_v24 = vsel %vm180_vm0, %v297_v11, 0.0 }
  0x6c   : > { %v326_v45 = vadd.f32 %v325_v38, %v324_v41  ;;  %v950_v43 = vsub.f32 %v757_v49, %v828_v59  ;;  %v300_v32 = vmul.f32 %v936_v37, %v936_v37  ;;  %v343_v33 = vsel %vm180_vm0, %v298_v18, 0.0 }
  0x6d   : > { %v957_v46 = vsub.f32 %v762_v52, %v828_v59  ;;  %v301_v38 = vmul.f32 %v943_v40, %v943_v40  ;;  %v345_v41 = vsel %vm180_vm0, %v299_v13, 0.0  ;;  %v964_v49 = vsub.f32 %v767_v55, %v828_v59 }
  0x6e   : > { %v328_v50 = vadd.f32 %v327_v44, %v326_v45  ;;  %v302_v44 = vmul.f32 %v950_v43, %v950_v43  ;;  %v347_v45 = vsel %vm180_vm0, %v300_v32, 0.0  ;;  %v971_v52 = vsub.f32 %v772_v58, %v828_v59 }
  0x6f   : > { %v978_v55 = vsub.f32 %v777_v61, %v828_v59  ;;  %v985_v58 = vsub.f32 %v782_v4, %v828_v59  ;;  %v992_v61 = vsub.f32 %v787_v8, %v828_v59  ;;  %v999_v4 = vsub.f32 %v792_v12, %v828_v59 }
  0x70   : > { %v330_v54 = vadd.f32 %v329_v48, %v328_v50  ;;  %v303_v48 = vmul.f32 %v957_v46, %v957_v46  ;;  %v349_v50 = vsel %vm180_vm0, %v301_v38, 0.0  ;;  %v1006_v8 = vsub.f32 %v797_v17, %v828_v59 }
  0x71   : > { %v1013_v12 = vsub.f32 %v802_v21, %v828_v59  ;;  %v1020_v17 = vsub.f32 %v807_v26, %v828_v59  ;;  %v1027_v21 = vsub.f32 %v812_v30, %v828_v59  ;;  %v1034_v26 = vsub.f32 %v817_v35, %v828_v59 }
  0x72   : > { %v332_v0 = vadd.f32 %v331_v53, %v330_v54  ;;  %v304_v53 = vmul.f32 %v964_v49, %v964_v49  ;;  %v351_v54 = vsel %vm180_vm0, %v302_v44, 0.0  ;;  %v1041_v30 = vsub.f32 %v822_v39, %v828_v59 }
  0x73   : > { %v314_v35 = vmul.f32 %v1034_v26, %v1034_v26 }
  0x74   : > { %v334_v3 = vadd.f32 %v333_v57, %v332_v0  ;;  %v305_v57 = vmul.f32 %v971_v52, %v971_v52  ;;  %v353_v0 = vsel %vm180_vm0, %v303_v48, 0.0 }
  0x75   : > { %v375_v39 = vsel %vm180_vm0, %v314_v35, 0.0 }
  0x76   : > { %v336_v15 = vadd.f32 %v335_v1, %v334_v3  ;;  %v306_v1 = vmul.f32 %v978_v55, %v978_v55  ;;  %v355_v3 = vsel %vm180_vm0, %v304_v53, 0.0 }
  0x78   : > { %v338_v23 = vadd.f32 %v337_v14, %v336_v15  ;;  %v307_v14 = vmul.f32 %v985_v58, %v985_v58  ;;  %v357_v15 = vsel %vm180_vm0, %v305_v57, 0.0  ;;  %v315_v57 = vmul.f32 %v1041_v30, %v1041_v30 }
  0x7a   : > { %v340_v29 = vadd.f32 %v339_v20, %v338_v23  ;;  %v308_v20 = vmul.f32 %v992_v61, %v992_v61  ;;  %v359_v23 = vsel %vm180_vm0, %v306_v1, 0.0  ;;  %v377_v1 = vsel %vm180_vm0, %v315_v57, 0.0 }
  0x7c   : > { %v342_v36 = vadd.f32 %v341_v24, %v340_v29  ;;  %v309_v24 = vmul.f32 %v999_v4, %v999_v4  ;;  %v361_v29 = vsel %vm180_vm0, %v307_v14, 0.0 }
  0x7e   : > { %v344_v42 = vadd.f32 %v343_v33, %v342_v36  ;;  %v310_v33 = vmul.f32 %v1006_v8, %v1006_v8  ;;  %v363_v36 = vsel %vm180_vm0, %v308_v20, 0.0 }
  0x80   : > { %v346_v47 = vadd.f32 %v345_v41, %v344_v42  ;;  %v311_v41 = vmul.f32 %v1013_v12, %v1013_v12  ;;  %v365_v42 = vsel %vm180_vm0, %v309_v24, 0.0 }
  0x82   : > { %v348_v51 = vadd.f32 %v347_v45, %v346_v47  ;;  %v312_v45 = vmul.f32 %v1020_v17, %v1020_v17  ;;  %v367_v47 = vsel %vm180_vm0, %v310_v33, 0.0 }
  0x84   : > { %v350_v56 = vadd.f32 %v349_v50, %v348_v51  ;;  %v313_v50 = vmul.f32 %v1027_v21, %v1027_v21  ;;  %v369_v51 = vsel %vm180_vm0, %v311_v41, 0.0 }
  0x86   : > { %v352_v9 = vadd.f32 %v351_v54, %v350_v56  ;;  %v371_v54 = vsel %vm180_vm0, %v312_v45, 0.0 }
  0x88   : > { %v354_v11 = vadd.f32 %v353_v0, %v352_v9  ;;  %v373_v0 = vsel %vm180_vm0, %v313_v50, 0.0 }
  0x8a   : > { %v356_v18 = vadd.f32 %v355_v3, %v354_v11 }
  0x8c   : > { %v358_v13 = vadd.f32 %v357_v15, %v356_v18 }
  0x8e   : > { %v360_v32 = vadd.f32 %v359_v23, %v358_v13 }
  0x90   : > { %v362_v38 = vadd.f32 %v361_v29, %v360_v32 }
  0x92   : > { %v364_v44 = vadd.f32 %v363_v36, %v362_v38 }
  0x94   : > { %v366_v48 = vadd.f32 %v365_v42, %v364_v44 }
  0x96   : > { %v368_v53 = vadd.f32 %v367_v47, %v366_v48 }
  0x98   : > { %v370_v56 = vadd.f32 %v369_v51, %v368_v53 }
  0x9a   : > { %v372_v9 = vadd.f32 %v371_v54, %v370_v56 }
  0x9c   : > { %v374_v59 = vadd.f32 %v373_v0, %v372_v9 }
  0x9e   : > { %v376_v3 = vadd.f32 %v375_v39, %v374_v59 }
  0xa0   : > { %v378_v11 = vadd.f32 %v377_v1, %v376_v3 }
  0xa2   : > { %v379_v14 = vrot.slane %v378_v11, 4 }
  0xa4   : > { %v380_v15 = vadd.f32 %v379_v14, %v378_v11 }
  0xa6   : > { %v381_v18 = vrot.slane %v380_v15, 2 }
  0xa8   : > { %v382_v20 = vadd.f32 %v381_v18, %v380_v15 }
  0xaa   : > { %v383_v23 = vrot.slane %v382_v20, 1 }
  0xac   : > { %v384_v13 = vadd.f32 %v383_v23, %v382_v20 }
  0xae   : > { %v385_v24 = vmul.f32 0.00390625, %v384_v13 }
  0xb0   : > { %v386_v29 = vadd.f32 1e-05, %v385_v24 }
  0xb2   : > { %604 = vrsqrt.f32 %v386_v29 }
  0xbc   : > { %v1054_v32 = vpop.eup %604 }
  0xbd   : > { %v388_v33 = vmul.f32 %v1054_v32, %v832_v60  ;;  %v389_v36 = vmul.f32 %v1054_v32, %v836_v62  ;;  %v390_v38 = vmul.f32 %v1054_v32, %v840_v63  ;;  %v391_v41 = vmul.f32 %v1054_v32, %v844_v5 }
  0xbe   : > { %v392_v60 = vmul.f32 %v1054_v32, %v848_v6  ;;  %v393_v62 = vmul.f32 %v1054_v32, %v858_v2  ;;  %v394_v63 = vmul.f32 %v1054_v32, %v864_v7  ;;  %v395_v5 = vmul.f32 %v1054_v32, %v873_v10 }
  0xbf   : > { %v420_v42 = vmax.f32 %v388_v33, 0.0  ;;  %v421_v44 = vmax.f32 %v389_v36, 0.0  ;;  %v422_v45 = vmax.f32 %v390_v38, 0.0  ;;  %v423_v47 = vmax.f32 %v391_v41, 0.0 }
  0xc0   : > { %v424_v48 = vmax.f32 %v392_v60, 0.0  ;;  %v425_v50 = vmax.f32 %v393_v62, 0.0  ;;  %v426_v6 = vmax.f32 %v394_v63, 0.0  ;;  %v427_v51 = vmax.f32 %v395_v5, 0.0 }
  0xc1   : > { %452 = vst.msk [vmem:[%s1069_s16] sm:$0xff] %vm180_vm0, %v420_v42  ;;  %453 = vst.msk [vmem:[%s1069_s16 + $0x8] sm:$0xff] %vm180_vm0, %v421_v44  ;;  %v396_v2 = vmul.f32 %v1054_v32, %v880_v27  ;;  %v397_v7 = vmul.f32 %v1054_v32, %v887_v16  ;;  %v398_v10 = vmul.f32 %v1054_v32, %v894_v19 }
  0xc2   : > { %454 = vst.msk [vmem:[%s1069_s16 + $0x10] sm:$0xff] %vm180_vm0, %v422_v45  ;;  %455 = vst.msk [vmem:[%s1069_s16 + $0x18] sm:$0xff] %vm180_vm0, %v423_v47  ;;  %v399_v53 = vmul.f32 %v1054_v32, %v901_v22  ;;  %v400_v27 = vmul.f32 %v1054_v32, %v908_v25  ;;  %v401_v16 = vmul.f32 %v1054_v32, %v915_v28 }
  0xc3   : > { %456 = vst.msk [vmem:[%s1069_s16 + $0x20] sm:$0xff] %vm180_vm0, %v424_v48  ;;  %457 = vst.msk [vmem:[%s1069_s16 + $0x28] sm:$0xff] %vm180_vm0, %v425_v50  ;;  %v402_v19 = vmul.f32 %v1054_v32, %v922_v31  ;;  %v403_v22 = vmul.f32 %v1054_v32, %v929_v34  ;;  %v428_v35 = vmax.f32 %v396_v2, 0.0  ;;  %v429_v54 = vmax.f32 %v397_v7, 0.0 }
  0xc4   : > { %458 = vst.msk [vmem:[%s1069_s16 + $0x30] sm:$0xff] %vm180_vm0, %v426_v6  ;;  %459 = vst.msk [vmem:[%s1069_s16 + $0x38] sm:$0xff] %vm180_vm0, %v427_v51  ;;  %v430_v56 = vmax.f32 %v398_v10, 0.0  ;;  %v431_v57 = vmax.f32 %v399_v53, 0.0  ;;  %v432_v0 = vmax.f32 %v400_v27, 0.0  ;;  %v433_v9 = vmax.f32 %v401_v16, 0.0 }
  0xc5   : > { %v434_v25 = vmax.f32 %v402_v19, 0.0  ;;  %v435_v39 = vmax.f32 %v403_v22, 0.0  ;;  %460 = vst.msk [vmem:[%s1069_s16 + $0x40] sm:$0xff] %vm180_vm0, %v428_v35  ;;  %461 = vst.msk [vmem:[%s1069_s16 + $0x48] sm:$0xff] %vm180_vm0, %v429_v54  ;;  %v404_v28 = vmul.f32 %v1054_v32, %v936_v37  ;;  %v405_v31 = vmul.f32 %v1054_v32, %v943_v40 }
  0xc6   : > { %462 = vst.msk [vmem:[%s1069_s16 + $0x50] sm:$0xff] %vm180_vm0, %v430_v56  ;;  %463 = vst.msk [vmem:[%s1069_s16 + $0x58] sm:$0xff] %vm180_vm0, %v431_v57  ;;  %v406_v34 = vmul.f32 %v1054_v32, %v950_v43  ;;  %v407_v59 = vmul.f32 %v1054_v32, %v957_v46  ;;  %v408_v37 = vmul.f32 %v1054_v32, %v964_v49 }
  0xc7   : > { %464 = vst.msk [vmem:[%s1069_s16 + $0x60] sm:$0xff] %vm180_vm0, %v432_v0  ;;  %465 = vst.msk [vmem:[%s1069_s16 + $0x68] sm:$0xff] %vm180_vm0, %v433_v9  ;;  %v409_v40 = vmul.f32 %v1054_v32, %v971_v52  ;;  %v410_v43 = vmul.f32 %v1054_v32, %v978_v55  ;;  %v411_v46 = vmul.f32 %v1054_v32, %v985_v58  ;;  %v436_v1 = vmax.f32 %v404_v28, 0.0 }
  0xc8   : > { %466 = vst.msk [vmem:[%s1069_s16 + $0x70] sm:$0xff] %vm180_vm0, %v434_v25  ;;  %467 = vst.msk [vmem:[%s1069_s16 + $0x78] sm:$0xff] %vm180_vm0, %v435_v39  ;;  %v437_v3 = vmax.f32 %v405_v31, 0.0  ;;  %v438_v11 = vmax.f32 %v406_v34, 0.0  ;;  %v439_v14 = vmax.f32 %v407_v59, 0.0  ;;  %v440_v15 = vmax.f32 %v408_v37, 0.0 }
  0xc9   : > { %v441_v18 = vmax.f32 %v409_v40, 0.0  ;;  %v442_v49 = vmax.f32 %v410_v43, 0.0  ;;  %v443_v20 = vmax.f32 %v411_v46, 0.0  ;;  %468 = vst.msk [vmem:[%s1069_s16 + $0x80] sm:$0xff] %vm180_vm0, %v436_v1  ;;  %v412_v52 = vmul.f32 %v1054_v32, %v992_v61 }
  0xca   : > { %469 = vst.msk [vmem:[%s1069_s16 + $0x88] sm:$0xff] %vm180_vm0, %v437_v3  ;;  %470 = vst.msk [vmem:[%s1069_s16 + $0x90] sm:$0xff] %vm180_vm0, %v438_v11  ;;  %v413_v55 = vmul.f32 %v1054_v32, %v999_v4  ;;  %v414_v58 = vmul.f32 %v1054_v32, %v1006_v8  ;;  %v415_v23 = vmul.f32 %v1054_v32, %v1013_v12 }
  0xcb   : > { %471 = vst.msk [vmem:[%s1069_s16 + $0x98] sm:$0xff] %vm180_vm0, %v439_v14  ;;  %472 = vst.msk [vmem:[%s1069_s16 + $0xa0] sm:$0xff] %vm180_vm0, %v440_v15  ;;  %v416_v61 = vmul.f32 %v1054_v32, %v1020_v17  ;;  %v417_v4 = vmul.f32 %v1054_v32, %v1027_v21  ;;  %v418_v8 = vmul.f32 %v1054_v32, %v1034_v26  ;;  %v444_v13 = vmax.f32 %v412_v52, 0.0 }
  0xcc   : > { %473 = vst.msk [vmem:[%s1069_s16 + $0xa8] sm:$0xff] %vm180_vm0, %v441_v18  ;;  %474 = vst.msk [vmem:[%s1069_s16 + $0xb0] sm:$0xff] %vm180_vm0, %v442_v49  ;;  %v419_v12 = vmul.f32 %v1054_v32, %v1041_v30  ;;  %v445_v24 = vmax.f32 %v413_v55, 0.0  ;;  %v446_v29 = vmax.f32 %v414_v58, 0.0  ;;  %v447_v33 = vmax.f32 %v415_v23, 0.0 }
  0xcd   : > { %475 = vst.msk [vmem:[%s1069_s16 + $0xb8] sm:$0xff] %vm180_vm0, %v443_v20  ;;  %v448_v36 = vmax.f32 %v416_v61, 0.0  ;;  %v449_v38 = vmax.f32 %v417_v4, 0.0  ;;  %v450_v17 = vmax.f32 %v418_v8, 0.0  ;;  %476 = vst.msk [vmem:[%s1069_s16 + $0xc0] sm:$0xff] %vm180_vm0, %v444_v13 }
  0xce   : > { %v451_v41 = vmax.f32 %v419_v12, 0.0  ;;  %477 = vst.msk [vmem:[%s1069_s16 + $0xc8] sm:$0xff] %vm180_vm0, %v445_v24  ;;  %478 = vst.msk [vmem:[%s1069_s16 + $0xd0] sm:$0xff] %vm180_vm0, %v446_v29 }
  0xcf   : > { %479 = vst.msk [vmem:[%s1069_s16 + $0xd8] sm:$0xff] %vm180_vm0, %v447_v33  ;;  %480 = vst.msk [vmem:[%s1069_s16 + $0xe0] sm:$0xff] %vm180_vm0, %v448_v36 }
  0xd0   : > { %481 = vst.msk [vmem:[%s1069_s16 + $0xe8] sm:$0xff] %vm180_vm0, %v449_v38  ;;  %482 = vst.msk [vmem:[%s1069_s16 + $0xf0] sm:$0xff] %vm180_vm0, %v450_v17 }
  0xd1   : > { %483 = vst.msk [vmem:[%s1069_s16 + $0xf8] sm:$0xff] %vm180_vm0, %v451_v41 }
  0xd2 PF: > { %s11_s8 = sadd.s32 1, %s628_s8   ;;  %s1202_s6 = smov %s624_s7 }
  0xd3   : > { %p8_p5 = scmp.ge.s32.totalorder %s11_s8, 4   ;;  %s1203_s7 = smov %s1205_s9 }
  0xd5   :  { %10 = sbr.rel (!%p8_p5) target bundleno = 2 (0x2), region = 54 }

// kernel: xralefkdo_forward.53
= control target key start
LH: loop header
LB: loop body
LE: loop exit
PB: predicated region body
PF: predicated region fallthrough
CT: control target
= control target key end

     0   :  { %s1708_s1 = inlined_call_operand.vmem [shape: bf16[128,128], index: 1, kind: input, shape index: {}]   ;;  %s1709_s0 = inlined_call_operand.vmem [shape: bf16[512,128], index: 0, kind: input, shape index: {}]   ;;  %s1710_s2 = inlined_call_operand.vmem [shape: f32[1,128], index: 2, kind: input, shape index: {}]   ;;  %s1711_s3 = inlined_call_operand.vmem [shape: f32[512,128], index: 3, kind: output, shape index: {}]  }
   0x1   :  { %v1267_v0 = vld [vmem:[%s1708_s1] sm:$0xff]   ;;  %v1268_v1 = vld [vmem:[%s1708_s1 + $0x8] sm:$0xff]   ;;  %v1269_v2 = vld [vmem:[%s1708_s1 + $0x10] sm:$0xff]  }
   0x2   :  { %1171 = vmatprep.subr.bf16.mxu0 %v1267_v0  ;;  %1251 = vmatprep.subr.bf16.mxu1 %v1267_v0  ;;  %v1270_v3 = vld [vmem:[%s1708_s1 + $0x18] sm:$0xff]   ;;  %v1275_v4 = vld [vmem:[%s1709_s0] sm:$0xff]   ;;  %v1272_v7 = vld [vmem:[%s1708_s1 + $0x28] sm:$0xff]  }
   0x3   :  { %1172 = vmatpush3.bf16.msra.mxu0 %v1267_v0  ;;  %1259 = vmatpush3.bf16.msra.mxu1 %v1267_v0  ;;  %v1276_v5 = vld [vmem:[%s1709_s0 + $0x80] sm:$0xff]   ;;  %v1273_v8 = vld [vmem:[%s1708_s1 + $0x30] sm:$0xff]   ;;  %v1274_v9 = vld [vmem:[%s1708_s1 + $0x38] sm:$0xff]  }
   0x4   :  { %1173 = vmatprep.subr.bf16.mxu0 %v1268_v1  ;;  %1252 = vmatprep.subr.bf16.mxu1 %v1268_v1  ;;  %v1271_v6 = vld [vmem:[%s1708_s1 + $0x20] sm:$0xff]   ;;  %v1277_v10 = vld [vmem:[%s1709_s0 + $0x8] sm:$0xff]   ;;  %v1279_v12 = vld [vmem:[%s1709_s0 + $0x10] sm:$0xff]  }
   0x5   :  { %1187 = vmatprep.mubr.bf16.mxu0 %v1275_v4  ;;  %1219 = vmatprep.mubr.bf16.mxu1 %v1276_v5  ;;  %v1278_v11 = vld [vmem:[%s1709_s0 + $0x88] sm:$0xff]   ;;  %v1280_v13 = vld [vmem:[%s1709_s0 + $0x90] sm:$0xff]   ;;  %v1281_v14 = vld [vmem:[%s1709_s0 + $0x18] sm:$0xff]  }
   0x6   :  { %v1282_v15 = vld [vmem:[%s1709_s0 + $0x98] sm:$0xff]   ;;  %v1283_v16 = vld [vmem:[%s1709_s0 + $0x20] sm:$0xff]   ;;  %v1285_v18 = vld [vmem:[%s1709_s0 + $0x28] sm:$0xff]  }
   0x7   :  { %1174 = vmatpush3.bf16.msra.mxu0 %v1268_v1  ;;  %1260 = vmatpush3.bf16.msra.mxu1 %v1268_v1  ;;  %v1284_v17 = vld [vmem:[%s1709_s0 + $0xa0] sm:$0xff]   ;;  %v1286_v19 = vld [vmem:[%s1709_s0 + $0xa8] sm:$0xff]   ;;  %v1287_v20 = vld [vmem:[%s1709_s0 + $0x30] sm:$0xff]  }
   0x8   :  { %1175 = vmatprep.subr.bf16.mxu0 %v1269_v2  ;;  %1253 = vmatprep.subr.bf16.mxu1 %v1269_v2  ;;  %v1288_v21 = vld [vmem:[%s1709_s0 + $0xb0] sm:$0xff]   ;;  %v1289_v22 = vld [vmem:[%s1709_s0 + $0x38] sm:$0xff]   ;;  %v1291_v24 = vld [vmem:[%s1709_s0 + $0x40] sm:$0xff]  }
   0x9   :  { %v1290_v23 = vld [vmem:[%s1709_s0 + $0xb8] sm:$0xff]   ;;  %v1292_v25 = vld [vmem:[%s1709_s0 + $0xc0] sm:$0xff]   ;;  %v1293_v26 = vld [vmem:[%s1709_s0 + $0x48] sm:$0xff]  }
   0xa   :  { %v1294_v27 = vld [vmem:[%s1709_s0 + $0xc8] sm:$0xff]   ;;  %v1295_v28 = vld [vmem:[%s1709_s0 + $0x50] sm:$0xff]   ;;  %v1297_v30 = vld [vmem:[%s1709_s0 + $0x58] sm:$0xff]  }
   0xb   :  { %1176 = vmatpush3.bf16.msra.mxu0 %v1269_v2  ;;  %1261 = vmatpush3.bf16.msra.mxu1 %v1269_v2  ;;  %v1296_v29 = vld [vmem:[%s1709_s0 + $0xd0] sm:$0xff]   ;;  %v1298_v31 = vld [vmem:[%s1709_s0 + $0xd8] sm:$0xff]   ;;  %v1299_v32 = vld [vmem:[%s1709_s0 + $0x60] sm:$0xff]  }
   0xc   :  { %1177 = vmatprep.subr.bf16.mxu0 %v1270_v3  ;;  %1254 = vmatprep.subr.bf16.mxu1 %v1270_v3  ;;  %v1300_v33 = vld [vmem:[%s1709_s0 + $0xe0] sm:$0xff]   ;;  %v1301_v34 = vld [vmem:[%s1709_s0 + $0x68] sm:$0xff]   ;;  %v1303_v36 = vld [vmem:[%s1709_s0 + $0x70] sm:$0xff]  }
   0xd   :  { %v1302_v35 = vld [vmem:[%s1709_s0 + $0xe8] sm:$0xff]   ;;  %v1304_v37 = vld [vmem:[%s1709_s0 + $0xf0] sm:$0xff]   ;;  %v1305_v38 = vld [vmem:[%s1709_s0 + $0x78] sm:$0xff]  }
   0xe   :  { %v1306_v39 = vld [vmem:[%s1709_s0 + $0xf8] sm:$0xff]   ;;  %v1450_v40 = vld [vmem:[%s1710_s2] ss:$0 sm:$0xff] }
   0xf   :  { %1178 = vmatpush3.bf16.msra.mxu0 %v1270_v3  ;;  %1262 = vmatpush3.bf16.msra.mxu1 %v1270_v3 }
  0x10   :  { %1179 = vmatprep.subr.bf16.mxu0 %v1271_v6  ;;  %1255 = vmatprep.subr.bf16.mxu1 %v1271_v6 }
  0x13   :  { %1180 = vmatpush3.bf16.msra.mxu0 %v1271_v6  ;;  %1263 = vmatpush3.bf16.msra.mxu1 %v1271_v6 }
  0x14   :  { %1181 = vmatprep.subr.bf16.mxu0 %v1272_v7  ;;  %1256 = vmatprep.subr.bf16.mxu1 %v1272_v7 }
  0x17   :  { %1182 = vmatpush3.bf16.msra.mxu0 %v1272_v7  ;;  %1264 = vmatpush3.bf16.msra.mxu1 %v1272_v7 }
  0x18   :  { %1183 = vmatprep.subr.bf16.mxu0 %v1273_v8  ;;  %1257 = vmatprep.subr.bf16.mxu1 %v1273_v8 }
  0x1b   :  { %1184 = vmatpush3.bf16.msra.mxu0 %v1273_v8  ;;  %1265 = vmatpush3.bf16.msra.mxu1 %v1273_v8 }
  0x1c   :  { %1185 = vmatprep.subr.bf16.mxu0 %v1274_v9  ;;  %1258 = vmatprep.subr.bf16.mxu1 %v1274_v9 }
  0x1f   :  { %1186 = vmatpush3.bf16.msra.mxu0 %v1274_v9  ;;  %1266 = vmatpush3.bf16.msra.mxu1 %v1274_v9 }
  0x22   :  { %1188 = vmatmul.mubr.bf16.vlgmr.msra.gmra.mrb[0].mxu0 %v1277_v10  ;;  %1220 = vmatmul.mubr.bf16.vlgmr.msra.gmra.mrb[0].mxu1 %v1278_v11 }
  0x23   :  { %1191 = vmatprep.mubr.bf16.mxu0 %v1279_v12  ;;  %1223 = vmatprep.mubr.bf16.mxu1 %v1280_v13 }
  0x2a   :  { %1192 = vmatmul.mubr.bf16.gmra.mrb[4].mxu0 %v1281_v14  ;;  %1224 = vmatmul.mubr.bf16.gmra.mrb[4].mxu1 %v1282_v15 }
  0x2b   :  { %1195 = vmatprep.mubr.bf16.mxu0 %v1283_v16  ;;  %1227 = vmatprep.mubr.bf16.mxu1 %v1284_v17 }
  0x32   :  { %1196 = vmatmul.mubr.bf16.gmra.mrb[8].mxu0 %v1285_v18  ;;  %1228 = vmatmul.mubr.bf16.gmra.mrb[8].mxu1 %v1286_v19 }
  0x33   :  { %1199 = vmatprep.mubr.bf16.mxu0 %v1287_v20  ;;  %1231 = vmatprep.mubr.bf16.mxu1 %v1288_v21 }
  0x3a   :  { %1200 = vmatmul.mubr.bf16.gmra.mrb[12].mxu0 %v1289_v22  ;;  %1232 = vmatmul.mubr.bf16.gmra.mrb[12].mxu1 %v1290_v23 }
  0x3b   :  { %1203 = vmatprep.mubr.bf16.mxu0 %v1291_v24  ;;  %1235 = vmatprep.mubr.bf16.mxu1 %v1292_v25 }
  0x42   :  { %1204 = vmatmul.mubr.bf16.gmra.mrb[16].mxu0 %v1293_v26  ;;  %1236 = vmatmul.mubr.bf16.gmra.mrb[16].mxu1 %v1294_v27 }
  0x43   :  { %1207 = vmatprep.mubr.bf16.mxu0 %v1295_v28  ;;  %1239 = vmatprep.mubr.bf16.mxu1 %v1296_v29 }
  0x4a   :  { %1208 = vmatmul.mubr.bf16.gmra.mrb[20].mxu0 %v1297_v30  ;;  %1240 = vmatmul.mubr.bf16.gmra.mrb[20].mxu1 %v1298_v31 }
  0x4b   :  { %1211 = vmatprep.mubr.bf16.mxu0 %v1299_v32  ;;  %1243 = vmatprep.mubr.bf16.mxu1 %v1300_v33 }
  0x52   :  { %1212 = vmatmul.mubr.bf16.gmra.mrb[24].mxu0 %v1301_v34  ;;  %1244 = vmatmul.mubr.bf16.gmra.mrb[24].mxu1 %v1302_v35 }
  0x53   :  { %1215 = vmatprep.mubr.bf16.mxu0 %v1303_v36  ;;  %1247 = vmatprep.mubr.bf16.mxu1 %v1304_v37 }
  0x5a   :  { %1216 = vmatmul.mubr.bf16.gmra.mrb[28].mxu0 %v1305_v38  ;;  %1248 = vmatmul.mubr.bf16.gmra.mrb[28].mxu1 %v1306_v39 }
  0xf5   :  { %v1189_v41 = vpop.f32.mrb[0].mxu0  ;;  %v1221_v42 = vpop.f32.mrb[0].mxu1 }
  0xf6   :  { %v960_v43 = vadd.f32 %v1189_v41, %v1450_v40  ;;  %v992_v44 = vadd.f32 %v1221_v42, %v1450_v40  ;;  %v501_v45 = vpop.f32.mrb[1].mxu0  ;;  %v629_v46 = vpop.f32.mrb[1].mxu1 }
  0xf7   :  { %v958_v47 = vadd.f32 %v1450_v40, %v501_v45  ;;  %v990_v48 = vadd.f32 %v1450_v40, %v629_v46  ;;  %v1190_v49 = vpop.f32.mrb[2].mxu0  ;;  %v1222_v50 = vpop.f32.mrb[2].mxu1 }
  0xf8   :  { %1024 = vst [vmem:[%s1711_s3 + $0x10] sm:$0xff] %v960_v43  ;;  %1056 = vst [vmem:[%s1711_s3 + $0x110] sm:$0xff] %v992_v44  ;;  %v961_v51 = vadd.f32 %v1190_v49, %v1450_v40  ;;  %v993_v52 = vadd.f32 %v1222_v50, %v1450_v40  ;;  %v504_v53 = vpop.f32.mrb[3].mxu0  ;;  %v632_v54 = vpop.f32.mrb[3].mxu1 }
  0xf9   :  { %1022 = vst [vmem:[%s1711_s3] sm:$0xff] %v958_v47  ;;  %1054 = vst [vmem:[%s1711_s3 + $0x100] sm:$0xff] %v990_v48  ;;  %v959_v55 = vadd.f32 %v1450_v40, %v504_v53  ;;  %v991_v56 = vadd.f32 %v1450_v40, %v632_v54 }
  0xfa   :  { %1025 = vst [vmem:[%s1711_s3 + $0x18] sm:$0xff] %v961_v51  ;;  %1057 = vst [vmem:[%s1711_s3 + $0x118] sm:$0xff] %v993_v52 }
  0xfb   :  { %1023 = vst [vmem:[%s1711_s3 + $0x8] sm:$0xff] %v959_v55  ;;  %1055 = vst [vmem:[%s1711_s3 + $0x108] sm:$0xff] %v991_v56 }
  0xfd   :  { %v1193_v57 = vpop.f32.mrb[4].mxu0  ;;  %v1225_v58 = vpop.f32.mrb[4].mxu1 }
  0xfe   :  { %v964_v59 = vadd.f32 %v1193_v57, %v1450_v40  ;;  %v996_v60 = vadd.f32 %v1225_v58, %v1450_v40  ;;  %v517_v61 = vpop.f32.mrb[5].mxu0  ;;  %v645_v62 = vpop.f32.mrb[5].mxu1 }
  0xff   :  { %v962_v63 = vadd.f32 %v1450_v40, %v517_v61  ;;  %v994_v0 = vadd.f32 %v1450_v40, %v645_v62  ;;  %v1194_v1 = vpop.f32.mrb[6].mxu0  ;;  %v1226_v2 = vpop.f32.mrb[6].mxu1 }
 0x100   :  { %1028 = vst [vmem:[%s1711_s3 + $0x30] sm:$0xff] %v964_v59  ;;  %1060 = vst [vmem:[%s1711_s3 + $0x130] sm:$0xff] %v996_v60  ;;  %v965_v3 = vadd.f32 %v1194_v1, %v1450_v40  ;;  %v997_v4 = vadd.f32 %v1226_v2, %v1450_v40  ;;  %v520_v5 = vpop.f32.mrb[7].mxu0  ;;  %v648_v6 = vpop.f32.mrb[7].mxu1 }
 0x101   :  { %1026 = vst [vmem:[%s1711_s3 + $0x20] sm:$0xff] %v962_v63  ;;  %1058 = vst [vmem:[%s1711_s3 + $0x120] sm:$0xff] %v994_v0  ;;  %v963_v7 = vadd.f32 %v1450_v40, %v520_v5  ;;  %v995_v8 = vadd.f32 %v1450_v40, %v648_v6 }
 0x102   :  { %1029 = vst [vmem:[%s1711_s3 + $0x38] sm:$0xff] %v965_v3  ;;  %1061 = vst [vmem:[%s1711_s3 + $0x138] sm:$0xff] %v997_v4 }
 0x103   :  { %1027 = vst [vmem:[%s1711_s3 + $0x28] sm:$0xff] %v963_v7  ;;  %1059 = vst [vmem:[%s1711_s3 + $0x128] sm:$0xff] %v995_v8 }
 0x105   :  { %v1197_v9 = vpop.f32.mrb[8].mxu0  ;;  %v1229_v10 = vpop.f32.mrb[8].mxu1 }
 0x106   :  { %v968_v11 = vadd.f32 %v1197_v9, %v1450_v40  ;;  %v1000_v12 = vadd.f32 %v1229_v10, %v1450_v40  ;;  %v533_v13 = vpop.f32.mrb[9].mxu0  ;;  %v661_v14 = vpop.f32.mrb[9].mxu1 }
 0x107   :  { %v966_v15 = vadd.f32 %v1450_v40, %v533_v13  ;;  %v998_v16 = vadd.f32 %v1450_v40, %v661_v14  ;;  %v1198_v17 = vpop.f32.mrb[10].mxu0  ;;  %v1230_v18 = vpop.f32.mrb[10].mxu1 }
 0x108   :  { %1032 = vst [vmem:[%s1711_s3 + $0x50] sm:$0xff] %v968_v11  ;;  %1064 = vst [vmem:[%s1711_s3 + $0x150] sm:$0xff] %v1000_v12  ;;  %v969_v19 = vadd.f32 %v1198_v17, %v1450_v40  ;;  %v1001_v20 = vadd.f32 %v1230_v18, %v1450_v40  ;;  %v536_v21 = vpop.f32.mrb[11].mxu0  ;;  %v664_v22 = vpop.f32.mrb[11].mxu1 }
 0x109   :  { %1030 = vst [vmem:[%s1711_s3 + $0x40] sm:$0xff] %v966_v15  ;;  %1062 = vst [vmem:[%s1711_s3 + $0x140] sm:$0xff] %v998_v16  ;;  %v967_v23 = vadd.f32 %v1450_v40, %v536_v21  ;;  %v999_v24 = vadd.f32 %v1450_v40, %v664_v22 }
 0x10a   :  { %1033 = vst [vmem:[%s1711_s3 + $0x58] sm:$0xff] %v969_v19  ;;  %1065 = vst [vmem:[%s1711_s3 + $0x158] sm:$0xff] %v1001_v20 }
 0x10b   :  { %1031 = vst [vmem:[%s1711_s3 + $0x48] sm:$0xff] %v967_v23  ;;  %1063 = vst [vmem:[%s1711_s3 + $0x148] sm:$0xff] %v999_v24 }
 0x10d   :  { %v1201_v25 = vpop.f32.mrb[12].mxu0  ;;  %v1233_v26 = vpop.f32.mrb[12].mxu1 }
 0x10e   :  { %v972_v27 = vadd.f32 %v1201_v25, %v1450_v40  ;;  %v1004_v28 = vadd.f32 %v1233_v26, %v1450_v40  ;;  %v549_v29 = vpop.f32.mrb[13].mxu0  ;;  %v677_v30 = vpop.f32.mrb[13].mxu1 }
 0x10f   :  { %v970_v31 = vadd.f32 %v1450_v40, %v549_v29  ;;  %v1002_v32 = vadd.f32 %v1450_v40, %v677_v30  ;;  %v1202_v33 = vpop.f32.mrb[14].mxu0  ;;  %v1234_v34 = vpop.f32.mrb[14].mxu1 }
 0x110   :  { %1036 = vst [vmem:[%s1711_s3 + $0x70] sm:$0xff] %v972_v27  ;;  %1068 = vst [vmem:[%s1711_s3 + $0x170] sm:$0xff] %v1004_v28  ;;  %v973_v35 = vadd.f32 %v1202_v33, %v1450_v40  ;;  %v1005_v36 = vadd.f32 %v1234_v34, %v1450_v40  ;;  %v552_v37 = vpop.f32.mrb[15].mxu0  ;;  %v680_v38 = vpop.f32.mrb[15].mxu1 }
 0x111   :  { %1034 = vst [vmem:[%s1711_s3 + $0x60] sm:$0xff] %v970_v31  ;;  %1066 = vst [vmem:[%s1711_s3 + $0x160] sm:$0xff] %v1002_v32  ;;  %v971_v39 = vadd.f32 %v1450_v40, %v552_v37  ;;  %v1003_v41 = vadd.f32 %v1450_v40, %v680_v38 }
 0x112   :  { %1037 = vst [vmem:[%s1711_s3 + $0x78] sm:$0xff] %v973_v35  ;;  %1069 = vst [vmem:[%s1711_s3 + $0x178] sm:$0xff] %v1005_v36 }
 0x113   :  { %1035 = vst [vmem:[%s1711_s3 + $0x68] sm:$0xff] %v971_v39  ;;  %1067 = vst [vmem:[%s1711_s3 + $0x168] sm:$0xff] %v1003_v41 }
 0x115   :  { %v1205_v42 = vpop.f32.mrb[16].mxu0  ;;  %v1237_v43 = vpop.f32.mrb[16].mxu1 }
 0x116   :  { %v976_v44 = vadd.f32 %v1205_v42, %v1450_v40  ;;  %v1008_v45 = vadd.f32 %v1237_v43, %v1450_v40  ;;  %v565_v46 = vpop.f32.mrb[17].mxu0  ;;  %v693_v47 = vpop.f32.mrb[17].mxu1 }
 0x117   :  { %v974_v48 = vadd.f32 %v1450_v40, %v565_v46  ;;  %v1006_v49 = vadd.f32 %v1450_v40, %v693_v47  ;;  %v1206_v50 = vpop.f32.mrb[18].mxu0  ;;  %v1238_v51 = vpop.f32.mrb[18].mxu1 }
 0x118   :  { %1040 = vst [vmem:[%s1711_s3 + $0x90] sm:$0xff] %v976_v44  ;;  %1072 = vst [vmem:[%s1711_s3 + $0x190] sm:$0xff] %v1008_v45  ;;  %v977_v52 = vadd.f32 %v1206_v50, %v1450_v40  ;;  %v1009_v53 = vadd.f32 %v1238_v51, %v1450_v40  ;;  %v568_v54 = vpop.f32.mrb[19].mxu0  ;;  %v696_v55 = vpop.f32.mrb[19].mxu1 }
 0x119   :  { %1038 = vst [vmem:[%s1711_s3 + $0x80] sm:$0xff] %v974_v48  ;;  %1070 = vst [vmem:[%s1711_s3 + $0x180] sm:$0xff] %v1006_v49  ;;  %v975_v56 = vadd.f32 %v1450_v40, %v568_v54  ;;  %v1007_v57 = vadd.f32 %v1450_v40, %v696_v55 }
 0x11a   :  { %1041 = vst [vmem:[%s1711_s3 + $0x98] sm:$0xff] %v977_v52  ;;  %1073 = vst [vmem:[%s1711_s3 + $0x198] sm:$0xff] %v1009_v53 }
 0x11b   :  { %1039 = vst [vmem:[%s1711_s3 + $0x88] sm:$0xff] %v975_v56  ;;  %1071 = vst [vmem:[%s1711_s3 + $0x188] sm:$0xff] %v1007_v57 }
 0x11d   :  { %v1209_v58 = vpop.f32.mrb[20].mxu0  ;;  %v1241_v59 = vpop.f32.mrb[20].mxu1 }
 0x11e   :  { %v980_v60 = vadd.f32 %v1209_v58, %v1450_v40  ;;  %v1012_v61 = vadd.f32 %v1241_v59, %v1450_v40  ;;  %v581_v62 = vpop.f32.mrb[21].mxu0  ;;  %v709_v63 = vpop.f32.mrb[21].mxu1 }
 0x11f   :  { %v978_v0 = vadd.f32 %v1450_v40, %v581_v62  ;;  %v1010_v1 = vadd.f32 %v1450_v40, %v709_v63  ;;  %v1210_v2 = vpop.f32.mrb[22].mxu0  ;;  %v1242_v3 = vpop.f32.mrb[22].mxu1 }
 0x120   :  { %1044 = vst [vmem:[%s1711_s3 + $0xb0] sm:$0xff] %v980_v60  ;;  %1076 = vst [vmem:[%s1711_s3 + $0x1b0] sm:$0xff] %v1012_v61  ;;  %v981_v4 = vadd.f32 %v1210_v2, %v1450_v40  ;;  %v1013_v5 = vadd.f32 %v1242_v3, %v1450_v40  ;;  %v584_v6 = vpop.f32.mrb[23].mxu0  ;;  %v712_v7 = vpop.f32.mrb[23].mxu1 }
 0x121   :  { %1042 = vst [vmem:[%s1711_s3 + $0xa0] sm:$0xff] %v978_v0  ;;  %1074 = vst [vmem:[%s1711_s3 + $0x1a0] sm:$0xff] %v1010_v1  ;;  %v979_v8 = vadd.f32 %v1450_v40, %v584_v6  ;;  %v1011_v9 = vadd.f32 %v1450_v40, %v712_v7 }
 0x122   :  { %1045 = vst [vmem:[%s1711_s3 + $0xb8] sm:$0xff] %v981_v4  ;;  %1077 = vst [vmem:[%s1711_s3 + $0x1b8] sm:$0xff] %v1013_v5 }
 0x123   :  { %1043 = vst [vmem:[%s1711_s3 + $0xa8] sm:$0xff] %v979_v8  ;;  %1075 = vst [vmem:[%s1711_s3 + $0x1a8] sm:$0xff] %v1011_v9 }
 0x125   :  { %v1213_v10 = vpop.f32.mrb[24].mxu0  ;;  %v1245_v11 = vpop.f32.mrb[24].mxu1 }
 0x126   :  { %v984_v12 = vadd.f32 %v1213_v10, %v1450_v40  ;;  %v1016_v13 = vadd.f32 %v1245_v11, %v1450_v40  ;;  %v597_v14 = vpop.f32.mrb[25].mxu0  ;;  %v725_v15 = vpop.f32.mrb[25].mxu1 }
 0x127   :  { %v982_v16 = vadd.f32 %v1450_v40, %v597_v14  ;;  %v1014_v17 = vadd.f32 %v1450_v40, %v725_v15  ;;  %v1214_v18 = vpop.f32.mrb[26].mxu0  ;;  %v1246_v19 = vpop.f32.mrb[26].mxu1 }
 0x128   :  { %1048 = vst [vmem:[%s1711_s3 + $0xd0] sm:$0xff] %v984_v12  ;;  %1080 = vst [vmem:[%s1711_s3 + $0x1d0] sm:$0xff] %v1016_v13  ;;  %v985_v20 = vadd.f32 %v1214_v18, %v1450_v40  ;;  %v1017_v21 = vadd.f32 %v1246_v19, %v1450_v40  ;;  %v600_v22 = vpop.f32.mrb[27].mxu0  ;;  %v728_v23 = vpop.f32.mrb[27].mxu1 }
 0x129   :  { %1046 = vst [vmem:[%s1711_s3 + $0xc0] sm:$0xff] %v982_v16  ;;  %1078 = vst [vmem:[%s1711_s3 + $0x1c0] sm:$0xff] %v1014_v17  ;;  %v983_v24 = vadd.f32 %v1450_v40, %v600_v22  ;;  %v1015_v25 = vadd.f32 %v1450_v40, %v728_v23 }
 0x12a   :  { %1049 = vst [vmem:[%s1711_s3 + $0xd8] sm:$0xff] %v985_v20  ;;  %1081 = vst [vmem:[%s1711_s3 + $0x1d8] sm:$0xff] %v1017_v21 }
 0x12b   :  { %1047 = vst [vmem:[%s1711_s3 + $0xc8] sm:$0xff] %v983_v24  ;;  %1079 = vst [vmem:[%s1711_s3 + $0x1c8] sm:$0xff] %v1015_v25 }
 0x12d   :  { %v1217_v26 = vpop.f32.mrb[28].mxu0  ;;  %v1249_v27 = vpop.f32.mrb[28].mxu1 }
 0x12e   :  { %v988_v28 = vadd.f32 %v1217_v26, %v1450_v40  ;;  %v1020_v29 = vadd.f32 %v1249_v27, %v1450_v40  ;;  %v613_v30 = vpop.f32.mrb[29].mxu0  ;;  %v741_v31 = vpop.f32.mrb[29].mxu1 }
 0x12f   :  { %v986_v32 = vadd.f32 %v1450_v40, %v613_v30  ;;  %v1018_v33 = vadd.f32 %v1450_v40, %v741_v31  ;;  %v1218_v34 = vpop.f32.mrb[30].mxu0  ;;  %v1250_v35 = vpop.f32.mrb[30].mxu1 }
 0x130   :  { %1052 = vst [vmem:[%s1711_s3 + $0xf0] sm:$0xff] %v988_v28  ;;  %1084 = vst [vmem:[%s1711_s3 + $0x1f0] sm:$0xff] %v1020_v29  ;;  %v989_v36 = vadd.f32 %v1218_v34, %v1450_v40  ;;  %v1021_v37 = vadd.f32 %v1250_v35, %v1450_v40  ;;  %v616_v38 = vpop.f32.mrb[31].mxu0  ;;  %v744_v39 = vpop.f32.mrb[31].mxu1 }
 0x131   :  { %1050 = vst [vmem:[%s1711_s3 + $0xe0] sm:$0xff] %v986_v32  ;;  %1082 = vst [vmem:[%s1711_s3 + $0x1e0] sm:$0xff] %v1018_v33  ;;  %v987_v41 = vadd.f32 %v1450_v40, %v616_v38  ;;  %v1019_v42 = vadd.f32 %v1450_v40, %v744_v39 }
 0x132   :  { %1053 = vst [vmem:[%s1711_s3 + $0xf8] sm:$0xff] %v989_v36  ;;  %1085 = vst [vmem:[%s1711_s3 + $0x1f8] sm:$0xff] %v1021_v37 }
 0x133   :  { %1051 = vst [vmem:[%s1711_s3 + $0xe8] sm:$0xff] %v987_v41  ;;  %1083 = vst [vmem:[%s1711_s3 + $0x1e8] sm:$0xff] %v1019_v42 }

// kernel: xralefkdo_forward.55
= control target key start
LH: loop header
LB: loop body
LE: loop exit
PB: predicated region body
PF: predicated region fallthrough
CT: control target
= control target key end

     0   :  { %s1031_s12 = smov 0   ;;  %s1033_s13 = smov 0   ;;  %s1187_s0 = inlined_call_operand.vmem [shape: bf16[128,640], index: 0, kind: input, shape index: {}]   ;;  %s1188_s1 = inlined_call_operand.vmem [shape: bf16[640,128], index: 1, kind: input, shape index: {}]   ;;  %s1189_s2 = inlined_call_operand.vmem [shape: f32[1,128], index: 2, kind: input, shape index: {}]   ;;  %s1190_s3 = inlined_call_operand.vmem [shape: f32[128,128], index: 3, kind: output, shape index: {}]  }
   0x1   :  { %s1035_s14 = smov 0   ;;  %s1037_s15 = smov 0  }
   0x2   :  { %s1039_s16 = smov 0  }
   0x3 LB: > { %s25_s17 = sadd.s32 1, %s1004_s15  ;;  %p48_p1 = scmp.ne.s32.totalorder %s996_s13, %s992_s12  ;;  %s1008_s16 = sphi %s1039_s16, %s13_s16   ;;  %s1004_s15 = sphi %s1037_s15, %s1194_s15   ;;  %s1000_s14 = sphi %s1035_s14, %s1193_s14   ;;  %s996_s13 = sphi %s1033_s13, %s1192_s13   ;;  %s992_s12 = sphi %s1031_s12, %s1191_s12  }
   0x4   : > { %p26_p0 = scmp.ge.s32.totalorder %s25_s17, 5  ;;  %p49_p2 = scmp.eq.s32.totalorder %s1008_s16, 0 }
   0x5   : > { %s41_s19 = sadd.s32 1, %s996_s13  ;;  %p819_p5 = scmp.ge.s32.totalorder %s1008_s16, 5 }
   0x6   : > { %s1196_s17 = smov (%p26_p0, %s25_s17), 0  ;;  %p50_p3 = por %p49_p2, %p48_p1 }
   0x7   : > { %s37_s18 = ssub.s32 %s1004_s15, %s1196_s17  ;;  %162 = sbr.rel (%p819_p5) target bundleno = 28 (0x1c), region = 20 }
   0x8   : > { %p39_p4 = scmp.eq.s32.totalorder %s37_s18, 0 }
   0xa   : > { %s1066_s20 = scalar_select %p39_p4, %s996_s13, %s41_s19  }
   0xe   : > { %165 = sbr.rel (!%p50_p3) target bundleno = 28 (0x1c), region = 24  ;;  %s167_s21 = sand.u32 (%p50_p3), 1, %s996_s13  }
   0xf   : > { %s821_s22 = sshll.u32 (%p50_p3), %s1004_s15, 2  ;;  %s820_s23 = sshll.u32 (%p50_p3), %s167_s21, 6 }
  0x10   : > { %s1074_s26 = scalar_lea.vmem (%p50_p3), %s1187_s0, %s821_s22  ;;  %s169_s27 = scalar_lea.vmem (%p50_p3), [#allocation3], %s820_s23 }
  0x11   : > { %v190_v0 = vld [vmem:[%s1074_s26] sm:$0xf] (%p50_p3)  ;;  %v192_v1 = vld [vmem:[%s1074_s26 + $0x14] sm:$0xf] (%p50_p3)  ;;  %v194_v2 = vld [vmem:[%s1074_s26 + $0x28] sm:$0xf] (%p50_p3) }
  0x12   : > { %191 = vst [vmem:[%s169_s27] sm:$0xf] (%p50_p3), %v190_v0  ;;  %193 = vst [vmem:[%s169_s27 + $0x4] sm:$0xf] (%p50_p3), %v192_v1  ;;  %v196_v3 = vld [vmem:[%s1074_s26 + $0x3c] sm:$0xf] (%p50_p3) }
  0x13   : > { %v198_v4 = vld [vmem:[%s1074_s26 + $0x50] sm:$0xf] (%p50_p3)  ;;  %195 = vst [vmem:[%s169_s27 + $0x8] sm:$0xf] (%p50_p3), %v194_v2  ;;  %197 = vst [vmem:[%s169_s27 + $0xc] sm:$0xf] (%p50_p3), %v196_v3 }
  0x14   : > { %199 = vst [vmem:[%s169_s27 + $0x10] sm:$0xf] (%p50_p3), %v198_v4  ;;  %v200_v5 = vld [vmem:[%s1074_s26 + $0x64] sm:$0xf] (%p50_p3)  ;;  %v202_v6 = vld [vmem:[%s1074_s26 + $0x78] sm:$0xf] (%p50_p3) }
  0x15   : > { %v204_v7 = vld [vmem:[%s1074_s26 + $0x8c] sm:$0xf]  ;;  %201 = vst [vmem:[%s169_s27 + $0x14] sm:$0xf] %v200_v5  ;;  %203 = vst [vmem:[%s169_s27 + $0x18] sm:$0xf] %v202_v6 }
  0x16   : > { %205 = vst [vmem:[%s169_s27 + $0x1c] sm:$0xf] %v204_v7  ;;  %v206_v8 = vld [vmem:[%s1074_s26 + $0xa0] sm:$0xf]  ;;  %v208_v9 = vld [vmem:[%s1074_s26 + $0xb4] sm:$0xf] }
  0x17   : > { %v210_v10 = vld [vmem:[%s1074_s26 + $0xc8] sm:$0xf]  ;;  %207 = vst [vmem:[%s169_s27 + $0x20] sm:$0xf] %v206_v8  ;;  %209 = vst [vmem:[%s169_s27 + $0x24] sm:$0xf] %v208_v9 }
  0x18   : > { %211 = vst [vmem:[%s169_s27 + $0x28] sm:$0xf] %v210_v10  ;;  %v212_v11 = vld [vmem:[%s1074_s26 + $0xdc] sm:$0xf]  ;;  %v214_v12 = vld [vmem:[%s1074_s26 + $0xf0] sm:$0xf] }
  0x19   : > { %v216_v13 = vld [vmem:[%s1074_s26 + $0x104] sm:$0xf]  ;;  %213 = vst [vmem:[%s169_s27 + $0x2c] sm:$0xf] %v212_v11  ;;  %215 = vst [vmem:[%s169_s27 + $0x30] sm:$0xf] %v214_v12 }
  0x1a   : > { %217 = vst [vmem:[%s169_s27 + $0x34] sm:$0xf] %v216_v13  ;;  %v218_v14 = vld [vmem:[%s1074_s26 + $0x118] sm:$0xf]  ;;  %v220_v15 = vld [vmem:[%s1074_s26 + $0x12c] sm:$0xf] }
  0x1b   : > { %219 = vst [vmem:[%s169_s27 + $0x38] sm:$0xf] %v218_v14  ;;  %221 = vst [vmem:[%s169_s27 + $0x3c] sm:$0xf] %v220_v15 }
  0x1c PF: > { %p822_p6 = scmp.ge.s32.totalorder %s1008_s16, 1  ;;  %p287_p7 = scmp.lt.s32.totalorder %s1008_s16, 6 }
  0x1e   : > { %p288_p8 = pnand %p822_p6, %p287_p7 }
  0x1f   : > { %s294_s28 = sand.u32 (!%p288_p8), 1, %s992_s12   ;;  %s824_s29 = sshll.u32 (!%p288_p8), %s1000_s14, 4 }
  0x20   : > { %291 = sbr.rel (%p288_p8) target bundleno = 319 (0x13f), region = 69  ;;  %s823_s30 = sshll.u32 (!%p288_p8), %s294_s28, 6 }
  0x21   : > { %p333_p9 = scmp.lt.s32.totalorder (!%p288_p8), %s824_s29, 79  ;;  %s1101_s8 = scalar_lea.vmem (!%p288_p8), [#allocation3], %s823_s30 }
  0x22   : > { %p826_p10 = scmp.ne.s32.totalorder (!%p288_p8), %s1000_s14, 0 }
  0x27   : > { %s1198_s29 = smov (!%p333_p9, %s824_s29), 79  ;;  %357 = sbr.rel (%p826_p10) target bundleno = 49 (0x31), region = 77 }
  0x28   : > { %s825_s4 = sshll.u32 %s1198_s29, 2  ;;  %v1010_v16 = vmov (!%p826_p10), 0.0  }
  0x29   : > { %s1099_s7 = scalar_lea.vmem %s1188_s1, %s825_s4  ;;  %358 = vst [vmem:[#allocation2] sm:$0xff] (!%p826_p10), %v1010_v16  ;;  %359 = vst [vmem:[#allocation2 + $0x8] sm:$0xff] (!%p826_p10), %v1010_v16 }
  0x2a   : > { %360 = vst [vmem:[#allocation2 + $0x10] sm:$0xff] (!%p826_p10), %v1010_v16  ;;  %361 = vst [vmem:[#allocation2 + $0x18] sm:$0xff] (!%p826_p10), %v1010_v16 }
  0x2b   : > { %362 = vst [vmem:[#allocation2 + $0x20] sm:$0xff] (!%p826_p10), %v1010_v16  ;;  %363 = vst [vmem:[#allocation2 + $0x28] sm:$0xff] (!%p826_p10), %v1010_v16 }
  0x2c   : > { %364 = vst [vmem:[#allocation2 + $0x30] sm:$0xff] (!%p826_p10), %v1010_v16  ;;  %365 = vst [vmem:[#allocation2 + $0x38] sm:$0xff] (!%p826_p10), %v1010_v16 }
  0x2d   : > { %366 = vst [vmem:[#allocation2 + $0x40] sm:$0xff] (!%p826_p10), %v1010_v16  ;;  %367 = vst [vmem:[#allocation2 + $0x48] sm:$0xff] (!%p826_p10), %v1010_v16 }
  0x2e   : > { %368 = vst [vmem:[#allocation2 + $0x50] sm:$0xff] %v1010_v16  ;;  %369 = vst [vmem:[#allocation2 + $0x58] sm:$0xff] %v1010_v16 }
  0x2f   : > { %370 = vst [vmem:[#allocation2 + $0x60] sm:$0xff] %v1010_v16  ;;  %371 = vst [vmem:[#allocation2 + $0x68] sm:$0xff] %v1010_v16 }
  0x30   : > { %372 = vst [vmem:[#allocation2 + $0x70] sm:$0xff] %v1010_v16  ;;  %373 = vst [vmem:[#allocation2 + $0x78] sm:$0xff] %v1010_v16 }
  0x31 PF: > { %v954_v17 = vld [vmem:[%s1099_s7] sm:$0xff]   ;;  %v955_v18 = vld [vmem:[%s1099_s7 + $0x8] sm:$0xff]   ;;  %v956_v19 = vld [vmem:[%s1099_s7 + $0x10] sm:$0xff]   ;;  %p843_p11 = scmp.ne.s32.totalorder %s1000_s14, 4 }
  0x32   : > { %865 = vmatprep.subr.bf16.mxu0 %v954_v17  ;;  %897 = vmatprep.subr.bf16.mxu1 %v954_v17  ;;  %v957_v20 = vld [vmem:[%s1099_s7 + $0x18] sm:$0xff]   ;;  %v962_v21 = vld [vmem:[%s1101_s8] sm:$0xff]   ;;  %v959_v24 = vld [vmem:[%s1099_s7 + $0x28] sm:$0xff]  }
  0x33   : > { %866 = vmatpush3.bf16.msra.mxu0 %v954_v17  ;;  %905 = vmatpush3.bf16.msra.mxu1 %v954_v17  ;;  %v963_v22 = vld [vmem:[%s1101_s8 + $0x20] sm:$0xff]   ;;  %v960_v25 = vld [vmem:[%s1099_s7 + $0x30] sm:$0xff]   ;;  %v961_v26 = vld [vmem:[%s1099_s7 + $0x38] sm:$0xff]  }
  0x34   : > { %867 = vmatprep.subr.bf16.mxu0 %v955_v18  ;;  %898 = vmatprep.subr.bf16.mxu1 %v955_v18  ;;  %v958_v23 = vld [vmem:[%s1099_s7 + $0x20] sm:$0xff]   ;;  %v964_v27 = vld [vmem:[%s1101_s8 + $0x8] sm:$0xff]   ;;  %v966_v29 = vld [vmem:[%s1101_s8 + $0x10] sm:$0xff]  }
  0x35   : > { %881 = vmatprep.mubr.bf16.mxu0 %v962_v21  ;;  %889 = vmatprep.mubr.bf16.mxu1 %v963_v22  ;;  %v965_v28 = vld [vmem:[%s1101_s8 + $0x28] sm:$0xff]   ;;  %v967_v30 = vld [vmem:[%s1101_s8 + $0x30] sm:$0xff]   ;;  %v968_v31 = vld [vmem:[%s1101_s8 + $0x18] sm:$0xff]  }
  0x36   : > { %v969_v32 = vld [vmem:[%s1101_s8 + $0x38] sm:$0xff]   ;;  %v376_v33 = vld [vmem:[#allocation2 + $0x10] sm:$0xff]  ;;  %v374_v35 = vld [vmem:[#allocation2] sm:$0xff] }
  0x37   : > { %868 = vmatpush3.bf16.msra.mxu0 %v955_v18  ;;  %906 = vmatpush3.bf16.msra.mxu1 %v955_v18  ;;  %v384_v34 = vld [vmem:[#allocation2 + $0x50] sm:$0xff]  ;;  %v382_v36 = vld [vmem:[#allocation2 + $0x40] sm:$0xff]  ;;  %v377_v39 = vld [vmem:[#allocation2 + $0x18] sm:$0xff] }
  0x38   : > { %869 = vmatprep.subr.bf16.mxu0 %v956_v19  ;;  %899 = vmatprep.subr.bf16.mxu1 %v956_v19  ;;  %v385_v40 = vld [vmem:[#allocation2 + $0x58] sm:$0xff]  ;;  %v375_v45 = vld [vmem:[#allocation2 + $0x8] sm:$0xff]  ;;  %v380_v57 = vld [vmem:[#allocation2 + $0x30] sm:$0xff] }
  0x39   : > { %v383_v46 = vld [vmem:[#allocation2 + $0x48] sm:$0xff]  ;;  %v388_v58 = vld [vmem:[#allocation2 + $0x70] sm:$0xff]  ;;  %v378_v59 = vld [vmem:[#allocation2 + $0x20] sm:$0xff] }
  0x3a   : > { %v386_v60 = vld [vmem:[#allocation2 + $0x60] sm:$0xff]  ;;  %v381_v63 = vld [vmem:[#allocation2 + $0x38] sm:$0xff]  ;;  %v379_v5 = vld [vmem:[#allocation2 + $0x28] sm:$0xff] }
  0x3b   : > { %870 = vmatpush3.bf16.msra.mxu0 %v956_v19  ;;  %907 = vmatpush3.bf16.msra.mxu1 %v956_v19  ;;  %v389_v0 = vld [vmem:[#allocation2 + $0x78] sm:$0xff]  ;;  %v387_v6 = vld [vmem:[#allocation2 + $0x68] sm:$0xff]  ;;  %v844_v18 = vld [vmem:[%s1189_s2] ss:$0 sm:$0xff] (!%p843_p11) }
  0x3c   : > { %871 = vmatprep.subr.bf16.mxu0 %v957_v20  ;;  %900 = vmatprep.subr.bf16.mxu1 %v957_v20 }
  0x3f   : > { %872 = vmatpush3.bf16.msra.mxu0 %v957_v20  ;;  %908 = vmatpush3.bf16.msra.mxu1 %v957_v20 }
  0x40   : > { %873 = vmatprep.subr.bf16.mxu0 %v958_v23  ;;  %901 = vmatprep.subr.bf16.mxu1 %v958_v23 }
  0x43   : > { %874 = vmatpush3.bf16.msra.mxu0 %v958_v23  ;;  %909 = vmatpush3.bf16.msra.mxu1 %v958_v23 }
  0x44   : > { %875 = vmatprep.subr.bf16.mxu0 %v959_v24  ;;  %902 = vmatprep.subr.bf16.mxu1 %v959_v24 }
  0x47   : > { %876 = vmatpush3.bf16.msra.mxu0 %v959_v24  ;;  %910 = vmatpush3.bf16.msra.mxu1 %v959_v24 }
  0x48   : > { %877 = vmatprep.subr.bf16.mxu0 %v960_v25  ;;  %903 = vmatprep.subr.bf16.mxu1 %v960_v25 }
  0x4b   : > { %878 = vmatpush3.bf16.msra.mxu0 %v960_v25  ;;  %911 = vmatpush3.bf16.msra.mxu1 %v960_v25 }
  0x4c   : > { %879 = vmatprep.subr.bf16.mxu0 %v961_v26  ;;  %904 = vmatprep.subr.bf16.mxu1 %v961_v26 }
  0x4f   : > { %880 = vmatpush3.bf16.msra.mxu0 %v961_v26  ;;  %912 = vmatpush3.bf16.msra.mxu1 %v961_v26 }
  0x52   : > { %882 = vmatmul.mubr.bf16.vlgmr.msra.gmra.mrb[0].mxu0 %v964_v27  ;;  %890 = vmatmul.mubr.bf16.vlgmr.msra.gmra.mrb[0].mxu1 %v965_v28 }
  0x53   : > { %885 = vmatprep.mubr.bf16.mxu0 %v966_v29  ;;  %893 = vmatprep.mubr.bf16.mxu1 %v967_v30 }
  0x5a   : > { %886 = vmatmul.mubr.bf16.gmra.mrb[4].mxu0 %v968_v31  ;;  %894 = vmatmul.mubr.bf16.gmra.mrb[4].mxu1 %v969_v32 }
 0x125   : > { %v883_v37 = vpop.f32.mrb[0].mxu0  ;;  %v891_v38 = vpop.f32.mrb[0].mxu1 }
 0x126   : > { %v617_v41 = vadd.f32 %v883_v37, %v376_v33  ;;  %v625_v42 = vadd.f32 %v891_v38, %v384_v34  ;;  %v552_v43 = vpop.f32.mrb[1].mxu0  ;;  %v584_v44 = vpop.f32.mrb[1].mxu1 }
 0x127   : > { %v615_v47 = vadd.f32 %v552_v43, %v374_v35  ;;  %v623_v48 = vadd.f32 %v584_v44, %v382_v36  ;;  %v884_v49 = vpop.f32.mrb[2].mxu0  ;;  %v892_v50 = vpop.f32.mrb[2].mxu1 }
 0x128   : > { %633 = vst [vmem:[#allocation2 + $0x10] sm:$0xff] %v617_v41  ;;  %641 = vst [vmem:[#allocation2 + $0x50] sm:$0xff] %v625_v42  ;;  %v618_v51 = vadd.f32 %v884_v49, %v377_v39  ;;  %v626_v52 = vadd.f32 %v892_v50, %v385_v40  ;;  %v555_v53 = vpop.f32.mrb[3].mxu0  ;;  %v587_v54 = vpop.f32.mrb[3].mxu1 }
 0x129   : > { %631 = vst [vmem:[#allocation2] sm:$0xff] %v615_v47  ;;  %639 = vst [vmem:[#allocation2 + $0x40] sm:$0xff] %v623_v48  ;;  %v616_v55 = vadd.f32 %v555_v53, %v375_v45  ;;  %v624_v56 = vadd.f32 %v587_v54, %v383_v46 }
 0x12a   : > { %634 = vst [vmem:[#allocation2 + $0x18] sm:$0xff] %v618_v51  ;;  %642 = vst [vmem:[#allocation2 + $0x58] sm:$0xff] %v626_v52 }
 0x12b   : > { %632 = vst [vmem:[#allocation2 + $0x8] sm:$0xff] %v616_v55  ;;  %640 = vst [vmem:[#allocation2 + $0x48] sm:$0xff] %v624_v56 }
 0x12d   : > { %v887_v61 = vpop.f32.mrb[4].mxu0  ;;  %v895_v62 = vpop.f32.mrb[4].mxu1  ;;  %650 = sbr.rel (%p843_p11) target bundleno = 319 (0x13f), region = 81 }
 0x12e   : > { %v621_v1 = vadd.f32 %v887_v61, %v380_v57  ;;  %v629_v2 = vadd.f32 %v895_v62, %v388_v58  ;;  %v568_v3 = vpop.f32.mrb[5].mxu0  ;;  %v600_v4 = vpop.f32.mrb[5].mxu1 }
 0x12f   : > { %v619_v7 = vadd.f32 %v568_v3, %v378_v59  ;;  %v627_v8 = vadd.f32 %v600_v4, %v386_v60  ;;  %v888_v9 = vpop.f32.mrb[6].mxu0  ;;  %v896_v10 = vpop.f32.mrb[6].mxu1  ;;  %v653_v22 = vld [vmem:[#allocation2 + $0x10] sm:$0xff] (!%p843_p11) }
 0x130   : > { %637 = vst [vmem:[#allocation2 + $0x30] sm:$0xff] %v621_v1  ;;  %645 = vst [vmem:[#allocation2 + $0x70] sm:$0xff] %v629_v2  ;;  %v622_v11 = vadd.f32 %v888_v9, %v381_v63  ;;  %v630_v12 = vadd.f32 %v896_v10, %v389_v0  ;;  %v571_v13 = vpop.f32.mrb[7].mxu0  ;;  %v603_v14 = vpop.f32.mrb[7].mxu1  ;;  %v651_v17 = vld [vmem:[#allocation2] sm:$0xff] (!%p843_p11)  ;;  %v676_v25 = vadd.f32 (!%p843_p11), %v844_v18, %v653_v22  ;;  %v661_v36 = vld [vmem:[#allocation2 + $0x50] sm:$0xff] (!%p843_p11) }
 0x131   : > { %635 = vst [vmem:[#allocation2 + $0x20] sm:$0xff] %v619_v7  ;;  %643 = vst [vmem:[#allocation2 + $0x60] sm:$0xff] %v627_v8  ;;  %v620_v15 = vadd.f32 %v571_v13, %v379_v5  ;;  %v628_v16 = vadd.f32 %v603_v14, %v387_v6  ;;  %v674_v20 = vadd.f32 (!%p843_p11), %v844_v18, %v651_v17  ;;  %v654_v23 = vld [vmem:[#allocation2 + $0x18] sm:$0xff] (!%p843_p11)  ;;  %v659_v34 = vld [vmem:[#allocation2 + $0x40] sm:$0xff] (!%p843_p11) }
 0x132   : > { %638 = vst [vmem:[#allocation2 + $0x38] sm:$0xff] %v622_v11  ;;  %646 = vst [vmem:[#allocation2 + $0x78] sm:$0xff] %v630_v12  ;;  %v652_v19 = vld [vmem:[#allocation2 + $0x8] sm:$0xff] (!%p843_p11)  ;;  %v677_v26 = vadd.f32 (!%p843_p11), %v844_v18, %v654_v23  ;;  %v682_v37 = vadd.f32 (!%p843_p11), %v844_v18, %v659_v34  ;;  %v684_v39 = vadd.f32 (!%p843_p11), %v844_v18, %v661_v36  ;;  %v662_v40 = vld [vmem:[#allocation2 + $0x58] sm:$0xff] (!%p843_p11) }
 0x133   : > { %636 = vst [vmem:[#allocation2 + $0x28] sm:$0xff] %v620_v15  ;;  %644 = vst [vmem:[#allocation2 + $0x68] sm:$0xff] %v628_v16  ;;  %v675_v21 = vadd.f32 (!%p843_p11), %v844_v18, %v652_v19  ;;  %v660_v35 = vld [vmem:[#allocation2 + $0x48] sm:$0xff] (!%p843_p11)  ;;  %v685_v43 = vadd.f32 (!%p843_p11), %v844_v18, %v662_v40 }
 0x134   : > { %690 = vst [vmem:[%s1190_s3] sm:$0xff] %v674_v20  ;;  %692 = vst [vmem:[%s1190_s3 + $0x10] sm:$0xff] %v676_v25  ;;  %v683_v38 = vadd.f32 %v844_v18, %v660_v35 }
 0x135   : > { %691 = vst [vmem:[%s1190_s3 + $0x8] sm:$0xff] %v675_v21  ;;  %693 = vst [vmem:[%s1190_s3 + $0x18] sm:$0xff] %v677_v26 }
 0x136   : > { %698 = vst [vmem:[%s1190_s3 + $0x40] sm:$0xff] %v682_v37  ;;  %699 = vst [vmem:[%s1190_s3 + $0x48] sm:$0xff] %v683_v38 }
 0x137   : > { %v657_v29 = vld [vmem:[#allocation2 + $0x30] sm:$0xff]  ;;  %700 = vst [vmem:[%s1190_s3 + $0x50] sm:$0xff] %v684_v39  ;;  %701 = vst [vmem:[%s1190_s3 + $0x58] sm:$0xff] %v685_v43 }
 0x138   : > { %v655_v24 = vld [vmem:[#allocation2 + $0x20] sm:$0xff]  ;;  %v680_v32 = vadd.f32 %v844_v18, %v657_v29  ;;  %v665_v46 = vld [vmem:[#allocation2 + $0x70] sm:$0xff] }
 0x139   : > { %v678_v27 = vadd.f32 %v844_v18, %v655_v24  ;;  %v658_v30 = vld [vmem:[#allocation2 + $0x38] sm:$0xff]  ;;  %v663_v41 = vld [vmem:[#allocation2 + $0x60] sm:$0xff]  ;;  %v688_v48 = vadd.f32 %v844_v18, %v665_v46 }
 0x13a   : > { %v656_v28 = vld [vmem:[#allocation2 + $0x28] sm:$0xff]  ;;  %v681_v33 = vadd.f32 %v844_v18, %v658_v30  ;;  %696 = vst [vmem:[%s1190_s3 + $0x30] sm:$0xff] %v680_v32  ;;  %v686_v44 = vadd.f32 %v844_v18, %v663_v41  ;;  %v666_v47 = vld [vmem:[#allocation2 + $0x78] sm:$0xff] }
 0x13b   : > { %v679_v31 = vadd.f32 %v844_v18, %v656_v28  ;;  %694 = vst [vmem:[%s1190_s3 + $0x20] sm:$0xff] %v678_v27  ;;  %v664_v42 = vld [vmem:[#allocation2 + $0x68] sm:$0xff]  ;;  %v689_v49 = vadd.f32 %v844_v18, %v666_v47  ;;  %704 = vst [vmem:[%s1190_s3 + $0x70] sm:$0xff] %v688_v48 }
 0x13c   : > { %697 = vst [vmem:[%s1190_s3 + $0x38] sm:$0xff] %v681_v33  ;;  %v687_v45 = vadd.f32 %v844_v18, %v664_v42  ;;  %702 = vst [vmem:[%s1190_s3 + $0x60] sm:$0xff] %v686_v44 }
 0x13d   : > { %695 = vst [vmem:[%s1190_s3 + $0x28] sm:$0xff] %v679_v31  ;;  %705 = vst [vmem:[%s1190_s3 + $0x78] sm:$0xff] %v689_v49 }
 0x13e   : > { %703 = vst [vmem:[%s1190_s3 + $0x68] sm:$0xff] %v687_v45 }
 0x13f PF: > { %s13_s16 = sadd.s32 1, %s1008_s16   ;;  %s1191_s12 = smov %s996_s13 }
 0x140   : > { %p10_p12 = scmp.ge.s32.totalorder %s13_s16, 7   ;;  %s1192_s13 = smov %s1066_s20 }
 0x141   : > { %s1193_s14 = smov %s1004_s15  ;;  %s1194_s15 = smov %s1196_s17 }
 0x142   :  { %12 = sbr.rel (!%p10_p12) target bundleno = 3 (0x3), region = 122 }

// kernel: xralefkdo_forward.56
= control target key start
LH: loop header
LB: loop body
LE: loop exit
PB: predicated region body
PF: predicated region fallthrough
CT: control target
= control target key end

     0   :  { %s383_s6 = smov 0   ;;  %s385_s7 = smov 0   ;;  %s423_s0 = inlined_call_operand.vmem [shape: f32[2,64,128], index: 0, kind: input, shape index: {}]   ;;  %s424_s1 = inlined_call_operand.vmem [shape: f32[2,64,128], index: 1, kind: output, shape index: {}]  }
   0x1   :  { %s387_s8 = smov 0  }
   0x2 LB: > { %s23_s9 = sadd.s32 1, %s367_s7  ;;  %p314_p0 = scmp.ge.s32.totalorder %s371_s8, 1  ;;  %s371_s8 = sphi %s387_s8, %s11_s8   ;;  %s367_s7 = sphi %s385_s7, %s426_s7   ;;  %s363_s6 = sphi %s383_s6, %s425_s6  }
   0x3   : > { %p25_p1 = scmp.ge.s32.totalorder %s23_s9, 2  ;;  %p106_p2 = scmp.lt.s32.totalorder %s371_s8, 3 }
   0x5   : > { %s428_s9 = smov (%p25_p1, %s23_s9), 0  ;;  %p107_p3 = pnand %p314_p0, %p106_p2 }
   0x6   : > { %p132_p4 = scmp.lt.s32.totalorder (!%p107_p3), %s363_s6, 1 }
   0x7   : > { %110 = sbr.rel (%p107_p3) target bundleno = 99 (0x63), region = 24 }
   0xe   : > { %s430_s6 = smov (!%p132_p4, %s363_s6), 1 }
   0xf   : > { %s321_s10 = sshll.u32 %s430_s6, 6 }
  0x10   : > { %s139_s13 = scalar_lea.vmem %s423_s0, %s321_s10  ;;  %s147_s16 = scalar_lea.vmem %s424_s1, %s321_s10 }
  0x11   : > { %v148_v0 = vld [vmem:[%s139_s13] sm:$0xff]  ;;  %v149_v1 = vld [vmem:[%s139_s13 + $0x8] sm:$0xff]  ;;  %v150_v2 = vld [vmem:[%s139_s13 + $0x10] sm:$0xff] }
  0x12   : > { %v156_v3 = vadd.f32 %v149_v1, %v148_v0  ;;  %v151_v4 = vld [vmem:[%s139_s13 + $0x18] sm:$0xff]  ;;  %v152_v6 = vld [vmem:[%s139_s13 + $0x20] sm:$0xff]  ;;  %v153_v8 = vld [vmem:[%s139_s13 + $0x28] sm:$0xff] }
  0x13   : > { %v154_v10 = vld [vmem:[%s139_s13 + $0x30] sm:$0xff]  ;;  %v155_v12 = vld [vmem:[%s139_s13 + $0x38] sm:$0xff] }
  0x14   : > { %v157_v5 = vadd.f32 %v156_v3, %v150_v2 }
  0x16   : > { %v158_v7 = vadd.f32 %v157_v5, %v151_v4 }
  0x18   : > { %v159_v9 = vadd.f32 %v158_v7, %v152_v6 }
  0x1a   : > { %v160_v11 = vadd.f32 %v159_v9, %v153_v8 }
  0x1c   : > { %v161_v13 = vadd.f32 %v160_v11, %v154_v10 }
  0x1e   : > { %v162_v14 = vadd.f32 %v161_v13, %v155_v12 }
  0x20   : > { %v163_v15 = vrot.slane %v162_v14, 4 }
  0x22   : > { %v164_v16 = vadd.f32 %v163_v15, %v162_v14 }
  0x24   : > { %v165_v17 = vrot.slane %v164_v16, 2 }
  0x26   : > { %v166_v18 = vadd.f32 %v165_v17, %v164_v16 }
  0x28   : > { %v167_v19 = vrot.slane %v166_v18, 1 }
  0x2a   : > { %v168_v20 = vadd.f32 %v167_v19, %v166_v18 }
  0x2c   : > { %v170_v21 = vmul.f32 0.015625, %v168_v20 }
  0x2e   : > { %v171_v22 = vsub.f32 %v148_v0, %v170_v21  ;;  %v172_v23 = vsub.f32 %v149_v1, %v170_v21  ;;  %v173_v24 = vsub.f32 %v150_v2, %v170_v21  ;;  %v174_v25 = vsub.f32 %v151_v4, %v170_v21 }
  0x2f   : > { %v175_v26 = vsub.f32 %v152_v6, %v170_v21  ;;  %v176_v30 = vsub.f32 %v153_v8, %v170_v21  ;;  %v177_v33 = vsub.f32 %v154_v10, %v170_v21  ;;  %v178_v36 = vsub.f32 %v155_v12, %v170_v21 }
  0x30   : > { %v179_v27 = vmul.f32 %v171_v22, %v171_v22  ;;  %v180_v28 = vmul.f32 %v172_v23, %v172_v23  ;;  %v181_v29 = vmul.f32 %v173_v24, %v173_v24  ;;  %v182_v31 = vmul.f32 %v174_v25, %v174_v25 }
  0x31   : > { %v183_v34 = vmul.f32 %v175_v26, %v175_v26  ;;  %v184_v37 = vmul.f32 %v176_v30, %v176_v30  ;;  %v185_v39 = vmul.f32 %v177_v33, %v177_v33  ;;  %v186_v41 = vmul.f32 %v178_v36, %v178_v36 }
  0x32   : > { %v187_v32 = vadd.f32 %v180_v28, %v179_v27 }
  0x34   : > { %v188_v35 = vadd.f32 %v187_v32, %v181_v29 }
  0x36   : > { %v189_v38 = vadd.f32 %v188_v35, %v182_v31 }
  0x38   : > { %v190_v40 = vadd.f32 %v189_v38, %v183_v34 }
  0x3a   : > { %v191_v42 = vadd.f32 %v190_v40, %v184_v37 }
  0x3c   : > { %v192_v43 = vadd.f32 %v191_v42, %v185_v39 }
  0x3e   : > { %v193_v44 = vadd.f32 %v192_v43, %v186_v41 }
  0x40   : > { %v194_v45 = vrot.slane %v193_v44, 4 }
  0x42   : > { %v195_v46 = vadd.f32 %v194_v45, %v193_v44 }
  0x44   : > { %v196_v47 = vrot.slane %v195_v46, 2 }
  0x46   : > { %v197_v48 = vadd.f32 %v196_v47, %v195_v46 }
  0x48   : > { %v198_v49 = vrot.slane %v197_v48, 1 }
  0x4a   : > { %v199_v50 = vadd.f32 %v198_v49, %v197_v48 }
  0x4c   : > { %v200_v51 = vmul.f32 0.015625, %v199_v50 }
  0x4e   : > { %v201_v52 = vadd.f32 1e-05, %v200_v51 }
  0x50   : > { %347 = vrsqrt.f32 %v201_v52 }
  0x5a   : > { %v348_v53 = vpop.eup %347 }
  0x5b   : > { %v203_v54 = vmul.f32 %v348_v53, %v171_v22  ;;  %v204_v55 = vmul.f32 %v348_v53, %v172_v23  ;;  %v205_v56 = vmul.f32 %v348_v53, %v173_v24  ;;  %v206_v57 = vmul.f32 %v348_v53, %v174_v25 }
  0x5c   : > { %v207_v58 = vmul.f32 %v348_v53, %v175_v26  ;;  %v208_v59 = vmul.f32 %v348_v53, %v176_v30  ;;  %v209_v60 = vmul.f32 %v348_v53, %v177_v33  ;;  %v210_v61 = vmul.f32 %v348_v53, %v178_v36 }
  0x5d   : > { %v211_v62 = vmax.f32 %v203_v54, 0.0  ;;  %v212_v63 = vmax.f32 %v204_v55, 0.0  ;;  %v213_v0 = vmax.f32 %v205_v56, 0.0  ;;  %v214_v1 = vmax.f32 %v206_v57, 0.0 }
  0x5e   : > { %v215_v2 = vmax.f32 %v207_v58, 0.0  ;;  %v216_v3 = vmax.f32 %v208_v59, 0.0  ;;  %v217_v4 = vmax.f32 %v209_v60, 0.0  ;;  %v218_v5 = vmax.f32 %v210_v61, 0.0 }
  0x5f   : > { %219 = vst [vmem:[%s147_s16] sm:$0xff] %v211_v62  ;;  %220 = vst [vmem:[%s147_s16 + $0x8] sm:$0xff] %v212_v63 }
  0x60   : > { %221 = vst [vmem:[%s147_s16 + $0x10] sm:$0xff] %v213_v0  ;;  %222 = vst [vmem:[%s147_s16 + $0x18] sm:$0xff] %v214_v1 }
  0x61   : > { %223 = vst [vmem:[%s147_s16 + $0x20] sm:$0xff] %v215_v2  ;;  %224 = vst [vmem:[%s147_s16 + $0x28] sm:$0xff] %v216_v3 }
  0x62   : > { %225 = vst [vmem:[%s147_s16 + $0x30] sm:$0xff] %v217_v4  ;;  %226 = vst [vmem:[%s147_s16 + $0x38] sm:$0xff] %v218_v5 }
  0x63 PF: > { %s11_s8 = sadd.s32 1, %s371_s8   ;;  %s425_s6 = smov %s367_s7 }
  0x64   : > { %p8_p5 = scmp.ge.s32.totalorder %s11_s8, 4   ;;  %s426_s7 = smov %s428_s9 }
  0x66   :  { %10 = sbr.rel (!%p8_p5) target bundleno = 2 (0x2), region = 54 }

// kernel: xralefkdo_forward.58
= control target key start
LH: loop header
LB: loop body
LE: loop exit
PB: predicated region body
PF: predicated region fallthrough
CT: control target
= control target key end

     0   :  { %s456_s6 = smov 0   ;;  %s458_s7 = smov 0   ;;  %s556_s0 = inlined_call_operand.vmem [shape: f32[2,16,256], index: 0, kind: input, shape index: {}]   ;;  %s557_s1 = inlined_call_operand.vmem [shape: f32[2,16,256], index: 1, kind: output, shape index: {}]  }
   0x1   :  { %s460_s8 = smov 0   ;;  %s462_s9 = smov 0  }
   0x2   :  { %s464_s10 = smov 0   ;;  %s466_s11 = smov 0  }
   0x3   :  { %s468_s12 = smov 0  }
   0x4 LB: > { %s20_s13 = sadd.s32 1, %s436_s10  ;;  %s23_s14 = sadd.s32 1, %s440_s11  ;;  %s444_s12 = sphi %s468_s12, %s11_s12   ;;  %s440_s11 = sphi %s466_s11, %s564_s11   ;;  %s436_s10 = sphi %s464_s10, %s563_s10   ;;  %s432_s9 = sphi %s462_s9, %s562_s9   ;;  %s428_s8 = sphi %s460_s8, %s561_s8   ;;  %s424_s7 = sphi %s458_s7, %s560_s7   ;;  %s420_s6 = sphi %s456_s6, %s559_s6  }
   0x5   : > { %p21_p0 = scmp.ge.s32.totalorder %s20_s13, 2  ;;  %s317_s15 = sadd.s32 4294967295, %s444_s12  }
   0x6   : > { %p39_p1 = scmp.ne.s32.totalorder %s424_s7, %s420_s6  ;;  %p40_p2 = scmp.eq.s32.totalorder %s444_s12, 0 }
   0x7   : > { %s566_s13 = smov (%p21_p0, %s20_s13), 0  ;;  %s568_s14 = smov (!%p21_p0, %s23_s14), %s440_s11 }
   0x8   : > { %p25_p3 = scmp.ge.s32.totalorder %s568_s14, 2  ;;  %p71_p4 = scmp.eq.s32.totalorder %s317_s15, 3 }
   0x9   : > { %s28_s16 = ssub.s32 %s436_s10, %s566_s13  ;;  %p41_p5 = por %p40_p2, %p39_p1 }
   0xa   : > { %s570_s14 = smov (%p25_p3, %s568_s14), 0  ;;  %p504_p6 = por %p71_p4, %p39_p1 }
   0xb   : > { %s27_s18 = ssub.s32 %s440_s11, %s570_s14  ;;  %s32_s20 = sadd.s32 1, %s424_s7 }
   0xc   : > { %s29_s19 = sor.u32 %s28_s16, %s27_s18  ;;  %p320_p8 = scmp.ge.s32.totalorder %s444_s12, 4 }
   0xd   : > { %p30_p7 = scmp.eq.s32.totalorder %s29_s19, 0 }
   0xe   : > { %93 = sbr.rel (%p320_p8) target bundleno = 28 (0x1c), region = 16 }
   0xf   : > { %s512_s21 = scalar_select %p30_p7, %s424_s7, %s32_s20  }
  0x15   : > { %96 = sbr.rel (!%p41_p5) target bundleno = 28 (0x1c), region = 20  ;;  %s98_s22 = sand.u32 (%p41_p5), 1, %s424_s7  }
  0x16   : > { %s322_s23 = sshll.u32 (%p41_p5), %s440_s11, 2  ;;  %s321_s24 = sshll.u32 (%p41_p5), %s98_s22, 4 }
  0x17   : > { %s102_s25 = sadd.s32 (%p41_p5), %s436_s10, %s322_s23  ;;  %s100_s30 = scalar_lea.vmem (%p41_p5), [#allocation2], %s321_s24 }
  0x18   : > { %s323_s26 = sshll.u32 (%p41_p5), %s102_s25, 3 }
  0x19   : > { %s104_s29 = scalar_lea.vmem (%p41_p5), %s556_s0, %s323_s26 }
  0x1a   : > { %v134_v0 = vld [vmem:[%s104_s29] sm:$0xff] (%p41_p5)  ;;  %v136_v1 = vld [vmem:[%s104_s29 + $0x10] sm:$0xff] (%p41_p5) }
  0x1b   : > { %135 = vst [vmem:[%s100_s30] sm:$0xff] (%p41_p5), %v134_v0  ;;  %137 = vst [vmem:[%s100_s30 + $0x8] sm:$0xff] (%p41_p5), %v136_v1 }
  0x1c PF: > { %p324_p9 = scmp.ge.s32.totalorder %s444_s12, 1  ;;  %p142_p10 = scmp.lt.s32.totalorder %s444_s12, 5 }
  0x1e   : > { %p143_p11 = pnand %p324_p9, %p142_p10 }
  0x1f   : > { %s149_s2 = sand.u32 (!%p143_p11), 1, %s420_s6  }
  0x20   : > { %146 = sbr.rel (%p143_p11) target bundleno = 97 (0x61), region = 58  ;;  %s524_s3 = sshll.u32 (!%p143_p11), %s149_s2, 4 }
  0x21   : > { %s151_s4 = scalar_lea.vmem (!%p143_p11), [#allocation2], %s524_s3  ;;  %s166_s5 = scalar_lea.vmem (!%p143_p11), [#allocation3], %s524_s3 }
  0x22   : > { %v167_v2 = vld [vmem:[%s151_s4] sm:$0xff] (!%p143_p11)  ;;  %v168_v3 = vld [vmem:[%s151_s4 + $0x8] sm:$0xff] (!%p143_p11) }
  0x23   : > { %v169_v4 = vadd.f32 (!%p143_p11), %v168_v3, %v167_v2 }
  0x25   : > { %v170_v5 = vrot.slane (!%p143_p11), %v169_v4, 4 }
  0x27   : > { %v171_v6 = vadd.f32 %v170_v5, %v169_v4  ;;  %s328_s6 = sshll.u32 (%p504_p6), %s432_s9, 2 }
  0x28   : > { %s206_s15 = sadd.s32 (%p504_p6), %s428_s8, %s328_s6 }
  0x29   : > { %v172_v7 = vrot.slane %v171_v6, 2  ;;  %s329_s16 = sshll.u32 (%p504_p6), %s206_s15, 3 }
  0x2a   : > { %s208_s20 = scalar_lea.vmem (%p504_p6), %s557_s1, %s329_s16 }
  0x2b   : > { %v173_v8 = vadd.f32 %v172_v7, %v171_v6 }
  0x2d   : > { %v174_v9 = vrot.slane %v173_v8, 1 }
  0x2f   : > { %v175_v10 = vadd.f32 %v174_v9, %v173_v8 }
  0x31   : > { %v177_v11 = vmul.f32 0.0625, %v175_v10 }
  0x33   : > { %v178_v12 = vsub.f32 %v167_v2, %v177_v11  ;;  %v179_v13 = vsub.f32 %v168_v3, %v177_v11 }
  0x35   : > { %v180_v14 = vmul.f32 %v178_v12, %v178_v12  ;;  %v181_v15 = vmul.f32 %v179_v13, %v179_v13 }
  0x37   : > { %v182_v16 = vadd.f32 %v181_v15, %v180_v14 }
  0x39   : > { %v183_v17 = vrot.slane %v182_v16, 4 }
  0x3b   : > { %v184_v18 = vadd.f32 %v183_v17, %v182_v16 }
  0x3d   : > { %v185_v19 = vrot.slane %v184_v18, 2 }
  0x3f   : > { %v186_v20 = vadd.f32 %v185_v19, %v184_v18 }
  0x41   : > { %v187_v21 = vrot.slane %v186_v20, 1 }
  0x43   : > { %v188_v22 = vadd.f32 %v187_v21, %v186_v20 }
  0x45   : > { %v189_v23 = vmul.f32 0.0625, %v188_v22 }
  0x47   : > { %v190_v24 = vadd.f32 1e-05, %v189_v23 }
  0x49   : > { %388 = vrsqrt.f32 %v190_v24 }
  0x52   : > { %204 = sbr.rel (!%p504_p6) target bundleno = 97 (0x61), region = 66 }
  0x53   : > { %v389_v25 = vpop.eup %388 }
  0x54   : > { %v192_v26 = vmul.f32 %v389_v25, %v178_v12  ;;  %v193_v27 = vmul.f32 %v389_v25, %v179_v13 }
  0x56   : > { %v194_v28 = vmax.f32 %v192_v26, 0.0  ;;  %v195_v29 = vmax.f32 %v193_v27, 0.0 }
  0x58   : > { %196 = vst [vmem:[%s166_s5] sm:$0xff] %v194_v28  ;;  %197 = vst [vmem:[%s166_s5 + $0x8] sm:$0xff] %v195_v29 }
  0x5f   : > { %v238_v30 = vld [vmem:[%s166_s5] sm:$0xff]  ;;  %v240_v31 = vld [vmem:[%s166_s5 + $0x8] sm:$0xff] }
  0x60   : > { %239 = vst [vmem:[%s208_s20] sm:$0xff] %v238_v30  ;;  %241 = vst [vmem:[%s208_s20 + $0x10] sm:$0xff] %v240_v31 }
  0x61 PF: > { %s11_s12 = sadd.s32 1, %s444_s12   ;;  %s559_s6 = smov %s424_s7 }
  0x62   : > { %p8_p12 = scmp.ge.s32.totalorder %s11_s12, 6   ;;  %s560_s7 = smov %s512_s21 }
  0x63   : > { %s561_s8 = smov %s436_s10  ;;  %s562_s9 = smov %s440_s11 }
  0x64   : > { %s563_s10 = smov %s566_s13  ;;  %s564_s11 = smov %s570_s14 }
  0x65   :  { %10 = sbr.rel (!%p8_p12) target bundleno = 4 (0x4), region = 135 }

// kernel: xralefkdo_forward.57
= control target key start
LH: loop header
LB: loop body
LE: loop exit
PB: predicated region body
PF: predicated region fallthrough
CT: control target
= control target key end

     0   :  { %s1224_s12 = smov 0   ;;  %s1226_s13 = smov 0   ;;  %s1378_s0 = inlined_call_operand.vmem [shape: bf16[32,1152], index: 0, kind: input, shape index: {}]   ;;  %s1379_s1 = inlined_call_operand.vmem [shape: bf16[1152,256], index: 1, kind: input, shape index: {}]   ;;  %s1380_s2 = inlined_call_operand.vmem [shape: f32[1,256], index: 2, kind: input, shape index: {}]   ;;  %s1381_s3 = inlined_call_operand.vmem [shape: f32[32,256], index: 3, kind: output, shape index: {}]  }
   0x1   :  { %s1228_s14 = smov 0   ;;  %s1230_s15 = smov 0  }
   0x2   :  { %s1232_s16 = smov 0  }
   0x3 LB: > { %s25_s17 = sadd.s32 1, %s1196_s15  ;;  %p48_p1 = scmp.ne.s32.totalorder %s1188_s13, %s1184_s12  ;;  %s1200_s16 = sphi %s1232_s16, %s13_s16   ;;  %s1196_s15 = sphi %s1230_s15, %s1385_s15   ;;  %s1192_s14 = sphi %s1228_s14, %s1384_s14   ;;  %s1188_s13 = sphi %s1226_s13, %s1383_s13   ;;  %s1184_s12 = sphi %s1224_s12, %s1382_s12  }
   0x4   : > { %p26_p0 = scmp.ge.s32.totalorder %s25_s17, 3  ;;  %p49_p2 = scmp.eq.s32.totalorder %s1200_s16, 0 }
   0x5   : > { %s41_s19 = sadd.s32 1, %s1188_s13  ;;  %p955_p5 = scmp.ge.s32.totalorder %s1200_s16, 3 }
   0x6   : > { %s1387_s17 = smov (%p26_p0, %s25_s17), 0  ;;  %p50_p3 = por %p49_p2, %p48_p1 }
   0x7   : > { %s37_s18 = ssub.s32 %s1196_s15, %s1387_s17  ;;  %164 = sbr.rel (%p955_p5) target bundleno = 23 (0x17), region = 20 }
   0x8   : > { %p39_p4 = scmp.eq.s32.totalorder %s37_s18, 0 }
   0xa   : > { %s1259_s20 = scalar_select %p39_p4, %s1188_s13, %s41_s19  }
   0xe   : > { %167 = sbr.rel (!%p50_p3) target bundleno = 23 (0x17), region = 24  ;;  %s169_s21 = sand.u32 (%p50_p3), 1, %s1188_s13  }
   0xf   : > { %s1028_s22 = smul.u32 (%p50_p3), 12, %s1196_s15 }
  0x10   : > { %s1038_s23 = smul.u32 (%p50_p3), 48, %s169_s21 }
  0x11   : > { %s177_s26 = scalar_lea.vmem (%p50_p3), %s1378_s0, %s1028_s22 }
  0x12   : > { %v192_v0 = vld [vmem:[%s177_s26] sm:$0xff] (%p50_p3)  ;;  %v196_v2 = vld [vmem:[%s177_s26 + $0x48] sm:$0xff] (%p50_p3)  ;;  %s171_s27 = scalar_lea.vmem (%p50_p3), [#allocation3], %s1038_s23  ;;  %v961_v6 = vld [vmem:[%s177_s26 + $0x50] sm:$0xf] (%p50_p3) }
  0x13   : > { %v194_v1 = vld [vmem:[%s177_s26 + $0x24] sm:$0xff] (%p50_p3)  ;;  %193 = vst [vmem:[%s171_s27] sm:$0xff] (%p50_p3), %v192_v0  ;;  %197 = vst [vmem:[%s171_s27 + $0x18] sm:$0xff] (%p50_p3), %v196_v2  ;;  %v198_v3 = vld [vmem:[%s177_s26 + $0x6c] sm:$0xff] (%p50_p3) }
  0x14   : > { %195 = vst [vmem:[%s171_s27 + $0xc] sm:$0xff] (%p50_p3), %v194_v1  ;;  %v957_v4 = vld [vmem:[%s177_s26 + $0x8] sm:$0xf] (%p50_p3)  ;;  %v959_v5 = vld [vmem:[%s177_s26 + $0x2c] sm:$0xf] (%p50_p3)  ;;  %199 = vst [vmem:[%s171_s27 + $0x24] sm:$0xff] (%p50_p3), %v198_v3 }
  0x15   : > { %958 = vst [vmem:[%s171_s27 + $0x8] sm:$0xf] %v957_v4  ;;  %960 = vst [vmem:[%s171_s27 + $0x14] sm:$0xf] %v959_v5  ;;  %v963_v7 = vld [vmem:[%s177_s26 + $0x74] sm:$0xf] }
  0x16   : > { %962 = vst [vmem:[%s171_s27 + $0x20] sm:$0xf] %v961_v6  ;;  %964 = vst [vmem:[%s171_s27 + $0x2c] sm:$0xf] %v963_v7 }
  0x17 PF: > { %p965_p6 = scmp.ge.s32.totalorder %s1200_s16, 1  ;;  %p234_p7 = scmp.lt.s32.totalorder %s1200_s16, 4 }
  0x19   : > { %p235_p8 = pnand %p965_p6, %p234_p7 }
  0x1a   : > { %s241_s28 = sand.u32 (!%p235_p8), 1, %s1184_s12   ;;  %s285_s29 = smul.u32 (!%p235_p8), 48, %s1192_s14 }
  0x1b   : > { %238 = sbr.rel (%p235_p8) target bundleno = 344 (0x158), region = 54  ;;  %p968_p10 = scmp.ne.s32.totalorder (!%p235_p8), %s1192_s14, 0 }
  0x1c   : > { %s1039_s30 = smul.u32 (!%p235_p8), 48, %s241_s28  ;;  %p287_p9 = scmp.lt.s32.totalorder (!%p235_p8), %s285_s29, 143 }
  0x1e   : > { %s1276_s8 = scalar_lea.vmem (!%p235_p8), [#allocation3], %s1039_s30 }
  0x22   : > { %s1389_s29 = smov (!%p287_p9, %s285_s29), 143  ;;  %318 = sbr.rel (%p968_p10) target bundleno = 41 (0x29), region = 62 }
  0x23   : > { %s1029_s4 = sshll.u32 %s1389_s29, 3  ;;  %v1202_v8 = vmov (!%p968_p10), 0.0  }
  0x24   : > { %s1274_s7 = scalar_lea.vmem %s1379_s1, %s1029_s4  ;;  %319 = vst [vmem:[#allocation2] sm:$0xff] (!%p968_p10), %v1202_v8  ;;  %320 = vst [vmem:[#allocation2 + $0x8] sm:$0xff] (!%p968_p10), %v1202_v8 }
  0x25   : > { %321 = vst [vmem:[#allocation2 + $0x10] sm:$0xff] (!%p968_p10), %v1202_v8  ;;  %322 = vst [vmem:[#allocation2 + $0x18] sm:$0xff] (!%p968_p10), %v1202_v8 }
  0x26   : > { %323 = vst [vmem:[#allocation2 + $0x20] sm:$0xff] (!%p968_p10), %v1202_v8  ;;  %324 = vst [vmem:[#allocation2 + $0x28] sm:$0xff] (!%p968_p10), %v1202_v8 }
  0x27   : > { %325 = vst [vmem:[#allocation2 + $0x30] sm:$0xff] (!%p968_p10), %v1202_v8  ;;  %326 = vst [vmem:[#allocation2 + $0x38] sm:$0xff] (!%p968_p10), %v1202_v8 }
  0x29 PF: > { %v1082_v9 = vld [vmem:[%s1274_s7 + $0x4] ss:$8 sps:$4 sm:$0xff]   ;;  %v1084_v10 = vld [vmem:[%s1274_s7] ss:$8 sps:$4 sm:$0xff]   ;;  %v1203_v11 = vmov 0   ;;  %p1023_p11 = scmp.ne.s32.totalorder %s1192_s14, 2 }
  0x2a   : > { %748 = vmatprep.mubr.bf16.mxu0 %v1203_v11  ;;  %663 = vmatprep.subr.bf16.mxu1 %v1082_v9  ;;  %v1085_v12 = vld [vmem:[%s1274_s7 + $0x14] ss:$8 sps:$4 sm:$0xff]   ;;  %v1087_v13 = vld [vmem:[%s1274_s7 + $0x10] ss:$8 sps:$4 sm:$0xff]   ;;  %v1088_v14 = vld [vmem:[%s1274_s7 + $0x24] ss:$8 sps:$4 sm:$0xff]  }
  0x2b   : > { %664 = vmatpush1.bf16.msra.mxu1 %v1084_v10  ;;  %v1090_v15 = vld [vmem:[%s1274_s7 + $0x20] ss:$8 sps:$4 sm:$0xff]   ;;  %v1091_v16 = vld [vmem:[%s1274_s7 + $0x34] ss:$8 sps:$4 sm:$0xff]   ;;  %v1093_v17 = vld [vmem:[%s1274_s7 + $0x30] ss:$8 sps:$4 sm:$0xff]  }
  0x2c   : > { %665 = vmatprep.subr.bf16.mxu1 %v1085_v12  ;;  %v1106_v18 = vld [vmem:[%s1274_s7 + $0x104] ss:$8 sps:$4 sm:$0xff]   ;;  %v1108_v19 = vld [vmem:[%s1274_s7 + $0x100] ss:$8 sps:$4 sm:$0xff]   ;;  %v1112_v21 = vld [vmem:[%s1274_s7 + $0x114] ss:$8 sps:$4 sm:$0xff]  }
  0x2d   : > { %v1094_v20 = vld [vmem:[%s1274_s7 + $0x44] ss:$8 sps:$4 sm:$0xff]   ;;  %716 = vmatprep.subr.bf16.mxu0 %v1106_v18  ;;  %v1114_v22 = vld [vmem:[%s1274_s7 + $0x110] ss:$8 sps:$4 sm:$0xff]   ;;  %v1096_v23 = vld [vmem:[%s1274_s7 + $0x40] ss:$8 sps:$4 sm:$0xff]  }
  0x2e   : > { %717 = vmatpush1.bf16.msra.mxu0 %v1108_v19  ;;  %v1097_v24 = vld [vmem:[%s1274_s7 + $0x54] ss:$8 sps:$4 sm:$0xff]   ;;  %v1118_v25 = vld [vmem:[%s1274_s7 + $0x124] ss:$8 sps:$4 sm:$0xff]   ;;  %v1120_v26 = vld [vmem:[%s1274_s7 + $0x120] ss:$8 sps:$4 sm:$0xff]  }
  0x2f   : > { %666 = vmatpush1.bf16.msra.mxu1 %v1087_v13  ;;  %718 = vmatprep.subr.bf16.mxu0 %v1112_v21  ;;  %v1099_v27 = vld [vmem:[%s1274_s7 + $0x50] ss:$8 sps:$4 sm:$0xff]   ;;  %v1124_v28 = vld [vmem:[%s1274_s7 + $0x134] ss:$8 sps:$4 sm:$0xff]   ;;  %v1100_v29 = vld [vmem:[%s1274_s7 + $0x64] ss:$8 sps:$4 sm:$0xff]  }
  0x30   : > { %667 = vmatprep.subr.bf16.mxu1 %v1088_v14  ;;  %v1126_v30 = vld [vmem:[%s1274_s7 + $0x130] ss:$8 sps:$4 sm:$0xff]   ;;  %v1102_v31 = vld [vmem:[%s1274_s7 + $0x60] ss:$8 sps:$4 sm:$0xff]   ;;  %v1130_v32 = vld [vmem:[%s1274_s7 + $0x144] ss:$8 sps:$4 sm:$0xff]  }
  0x31   : > { %v1103_v33 = vld [vmem:[%s1274_s7 + $0x74] ss:$8 sps:$4 sm:$0xff]   ;;  %v1132_v34 = vld [vmem:[%s1274_s7 + $0x140] ss:$8 sps:$4 sm:$0xff]   ;;  %v1105_v35 = vld [vmem:[%s1274_s7 + $0x70] ss:$8 sps:$4 sm:$0xff]  }
  0x32   : > { %719 = vmatpush1.bf16.msra.mxu0 %v1114_v22  ;;  %v1136_v36 = vld [vmem:[%s1274_s7 + $0x154] ss:$8 sps:$4 sm:$0xff]   ;;  %v1109_v37 = vld [vmem:[%s1274_s7 + $0x84] ss:$8 sps:$4 sm:$0xff]   ;;  %v1138_v38 = vld [vmem:[%s1274_s7 + $0x150] ss:$8 sps:$4 sm:$0xff]  }
  0x33   : > { %668 = vmatpush1.bf16.msra.mxu1 %v1090_v15  ;;  %720 = vmatprep.subr.bf16.mxu0 %v1118_v25  ;;  %v1111_v39 = vld [vmem:[%s1274_s7 + $0x80] ss:$8 sps:$4 sm:$0xff]   ;;  %v1142_v40 = vld [vmem:[%s1274_s7 + $0x164] ss:$8 sps:$4 sm:$0xff]   ;;  %v1115_v41 = vld [vmem:[%s1274_s7 + $0x94] ss:$8 sps:$4 sm:$0xff]  }
  0x34   : > { %669 = vmatprep.subr.bf16.mxu1 %v1091_v16  ;;  %v1117_v42 = vld [vmem:[%s1274_s7 + $0x90] ss:$8 sps:$4 sm:$0xff]   ;;  %v1144_v43 = vld [vmem:[%s1274_s7 + $0x160] ss:$8 sps:$4 sm:$0xff]   ;;  %v1148_v45 = vld [vmem:[%s1274_s7 + $0x174] ss:$8 sps:$4 sm:$0xff]  }
  0x35   : > { %v1157_v44 = vld [vmem:[%s1276_s8 + $0x4] ss:$12 sps:$4 sm:$0xff]   ;;  %v1154_v50 = vld [vmem:[%s1276_s8 + $0x8] ss:$12 sps:$4 sm:$0xff]   ;;  %v1158_v55 = vld [vmem:[%s1276_s8 + $0x20] ss:$12 sps:$4 sm:$0xff]  }
  0x36   : > { %721 = vmatpush1.bf16.msra.mxu0 %v1120_v26  ;;  %v1121_v46 = vld [vmem:[%s1274_s7 + $0xa4] ss:$8 sps:$4 sm:$0xff]   ;;  %695 = vmatprep.mubr.bf16.mxu1 %v1157_v44  ;;  %v1150_v47 = vld [vmem:[%s1274_s7 + $0x170] ss:$8 sps:$4 sm:$0xff]   ;;  %v1123_v48 = vld [vmem:[%s1274_s7 + $0xa0] ss:$8 sps:$4 sm:$0xff]  }
  0x37   : > { %670 = vmatpush1.bf16.msra.mxu1 %v1093_v17  ;;  %722 = vmatprep.subr.bf16.mxu0 %v1124_v28  ;;  %v1127_v49 = vld [vmem:[%s1274_s7 + $0xb4] ss:$8 sps:$4 sm:$0xff]   ;;  %v1129_v51 = vld [vmem:[%s1274_s7 + $0xb0] ss:$8 sps:$4 sm:$0xff]   ;;  %v1133_v52 = vld [vmem:[%s1274_s7 + $0xc4] ss:$8 sps:$4 sm:$0xff]  }
  0x38   : > { %671 = vmatprep.subr.bf16.mxu1 %v1094_v20  ;;  %v1135_v53 = vld [vmem:[%s1274_s7 + $0xc0] ss:$8 sps:$4 sm:$0xff]   ;;  %v1139_v54 = vld [vmem:[%s1274_s7 + $0xd4] ss:$8 sps:$4 sm:$0xff]   ;;  %v1141_v56 = vld [vmem:[%s1274_s7 + $0xd0] ss:$8 sps:$4 sm:$0xff]  }
  0x39   : > { %v1145_v57 = vld [vmem:[%s1274_s7 + $0xe4] ss:$8 sps:$4 sm:$0xff]   ;;  %v1147_v58 = vld [vmem:[%s1274_s7 + $0xe0] ss:$8 sps:$4 sm:$0xff]   ;;  %v1151_v59 = vld [vmem:[%s1274_s7 + $0xf4] ss:$8 sps:$4 sm:$0xff]  }
  0x3a   : > { %723 = vmatpush1.bf16.msra.mxu0 %v1126_v30  ;;  %v1153_v60 = vld [vmem:[%s1274_s7 + $0xf0] ss:$8 sps:$4 sm:$0xff]   ;;  %v327_v8 = vld [vmem:[#allocation2] sm:$0xff] }
  0x3b   : > { %672 = vmatpush1.bf16.msra.mxu1 %v1096_v23  ;;  %724 = vmatprep.subr.bf16.mxu0 %v1130_v32  ;;  %v1155_v61 = vld [vmem:[%s1276_s8] ss:$12 sps:$4 sm:$0xff]   ;;  %v1159_v62 = vld [vmem:[%s1276_s8 + $0x1c] ss:$12 sps:$4 sm:$0xff]   ;;  %v1161_v63 = vld [vmem:[%s1276_s8 + $0x18] ss:$12 sps:$4 sm:$0xff]  }
  0x3c   : > { %673 = vmatprep.subr.bf16.mxu1 %v1097_v24  ;;  %v329_v14 = vld [vmem:[#allocation2 + $0x10] sm:$0xff]  ;;  %v330_v18 = vld [vmem:[#allocation2 + $0x18] sm:$0xff]  ;;  %v331_v24 = vld [vmem:[#allocation2 + $0x20] sm:$0xff] }
  0x3d   : > { %v333_v30 = vld [vmem:[#allocation2 + $0x30] sm:$0xff] }
  0x3e   : > { %725 = vmatpush1.bf16.msra.mxu0 %v1132_v34  ;;  %v334_v34 = vld [vmem:[#allocation2 + $0x38] sm:$0xff] }
  0x3f   : > { %674 = vmatpush1.bf16.msra.mxu1 %v1099_v27  ;;  %726 = vmatprep.subr.bf16.mxu0 %v1136_v36  ;;  %v332_v27 = vld [vmem:[#allocation2 + $0x28] sm:$0xff] }
  0x40   : > { %675 = vmatprep.subr.bf16.mxu1 %v1100_v29 }
  0x42   : > { %727 = vmatpush1.bf16.msra.mxu0 %v1138_v38 }
  0x43   : > { %676 = vmatpush1.bf16.msra.mxu1 %v1102_v31  ;;  %728 = vmatprep.subr.bf16.mxu0 %v1142_v40  ;;  %v799_v40 = vlaneseq (!%p1023_p11) }
  0x44   : > { %677 = vmatprep.subr.bf16.mxu1 %v1103_v33 }
  0x46   : > { %729 = vmatpush1.bf16.msra.mxu0 %v1144_v43 }
  0x47   : > { %678 = vmatpush1.bf16.msra.mxu1 %v1105_v35  ;;  %730 = vmatprep.subr.bf16.mxu0 %v1148_v45 }
  0x48   : > { %679 = vmatprep.subr.bf16.mxu1 %v1109_v37 }
  0x4a   : > { %731 = vmatpush1.bf16.msra.mxu0 %v1150_v47 }
  0x4b   : > { %680 = vmatpush1.bf16.msra.mxu1 %v1111_v39 }
  0x4c   : > { %681 = vmatprep.subr.bf16.mxu1 %v1115_v41  ;;  %v800_v41 = vshrl.u32 (!%p1023_p11), %v799_v40, 7 }
  0x4d   : > { %749 = vmatmul.mubr.bf16.vlgmr.msra.gmra.mrb[0].mxu0 %v1154_v50 }
  0x4e   : > { %758 = vmatprep.mubr.bf16.mxu0 %v1203_v11  ;;  %v328_v11 = vld [vmem:[#allocation2 + $0x8] sm:$0xff]  ;;  %v801_v44 = vsub.s32 (!%p1023_p11), 0, %v800_v41 }
  0x4f   : > { %682 = vmatpush1.bf16.msra.mxu1 %v1117_v42  ;;  %v797_v42 = vld [vmem:[%s1380_s2] sm:$0x3] (!%p1023_p11) }
  0x50   : > { %683 = vmatprep.subr.bf16.mxu1 %v1121_v46  ;;  %v805_v46 = vsub.s32 (!%p1023_p11), 1, %v800_v41  ;;  %v802_v50 = vrot.slane (!%p1023_p11), %v797_v42, %v801_v44 }
  0x53   : > { %684 = vmatpush1.bf16.msra.mxu1 %v1123_v48 }
  0x54   : > { %685 = vmatprep.subr.bf16.mxu1 %v1127_v49 }
  0x55   : > { %759 = vmatmul.mubr.bf16.gmra.mrb[4].mxu0 %v1158_v55 }
  0x57   : > { %686 = vmatpush1.bf16.msra.mxu1 %v1129_v51  ;;  %v806_v51 = vrot.slane (!%p1023_p11), %v797_v42, %v805_v46 }
  0x58   : > { %687 = vmatprep.subr.bf16.mxu1 %v1133_v52 }
  0x5b   : > { %688 = vmatpush1.bf16.msra.mxu1 %v1135_v53 }
  0x5c   : > { %689 = vmatprep.subr.bf16.mxu1 %v1139_v54 }
  0x5f   : > { %690 = vmatpush1.bf16.msra.mxu1 %v1141_v56 }
  0x60   : > { %691 = vmatprep.subr.bf16.mxu1 %v1145_v57 }
  0x63   : > { %692 = vmatpush1.bf16.msra.mxu1 %v1147_v58 }
  0x64   : > { %693 = vmatprep.subr.bf16.mxu1 %v1151_v59 }
  0x67   : > { %694 = vmatpush1.bf16.msra.mxu1 %v1153_v60 }
  0x6a   : > { %696 = vmatmul.mubr.bf16.vlgmr.msra.gmra.mrb[0].mxu1 %v1155_v61 }
  0x6b   : > { %705 = vmatprep.mubr.bf16.mxu1 %v1159_v62 }
  0x72   : > { %706 = vmatmul.mubr.bf16.gmra.mrb[4].mxu1 %v1161_v63 }
 0x120   : > { %v750_v0 = vpop.f32.mrb[0].mxu0 }
 0x121   : > { %v752_v1 = vpop.f32.mrb[1].mxu0 }
 0x122   : > { %v754_v2 = vpop.f32.mrb[2].mxu0 }
 0x123   : > { %v756_v3 = vpop.f32.mrb[3].mxu0 }
 0x128   : > { %v760_v4 = vpop.f32.mrb[4].mxu0 }
 0x129   : > { %v762_v5 = vpop.f32.mrb[5].mxu0 }
 0x12a   : > { %v764_v6 = vpop.f32.mrb[6].mxu0 }
 0x12b   : > { %v766_v7 = vpop.f32.mrb[7].mxu0 }
 0x13d   : > { %v697_v9 = vpop.f32.mrb[0].mxu1 }
 0x13e   : > { %v751_v10 = vadd.f32 %v750_v0, %v697_v9  ;;  %v699_v12 = vpop.f32.mrb[1].mxu1 }
 0x13f   : > { %v753_v13 = vadd.f32 %v752_v1, %v699_v12  ;;  %v701_v15 = vpop.f32.mrb[2].mxu1 }
 0x140   : > { %v769_v16 = vadd.f32 %v751_v10, %v327_v8  ;;  %v755_v17 = vadd.f32 %v754_v2, %v701_v15  ;;  %v703_v19 = vpop.f32.mrb[3].mxu1 }
 0x141   : > { %v770_v20 = vadd.f32 %v753_v13, %v328_v11  ;;  %v757_v21 = vadd.f32 %v756_v3, %v703_v19 }
 0x142   : > { %777 = vst [vmem:[#allocation2] sm:$0xff] %v769_v16  ;;  %v771_v22 = vadd.f32 %v755_v17, %v329_v14 }
 0x143   : > { %778 = vst [vmem:[#allocation2 + $0x8] sm:$0xff] %v770_v20  ;;  %v772_v23 = vadd.f32 %v757_v21, %v330_v18 }
 0x144   : > { %779 = vst [vmem:[#allocation2 + $0x10] sm:$0xff] %v771_v22 }
 0x145   : > { %780 = vst [vmem:[#allocation2 + $0x18] sm:$0xff] %v772_v23  ;;  %v707_v25 = vpop.f32.mrb[4].mxu1 }
 0x146   : > { %v761_v26 = vadd.f32 %v760_v4, %v707_v25  ;;  %v709_v28 = vpop.f32.mrb[5].mxu1 }
 0x147   : > { %v763_v29 = vadd.f32 %v762_v5, %v709_v28  ;;  %v711_v31 = vpop.f32.mrb[6].mxu1  ;;  %788 = sbr.rel (%p1023_p11) target bundleno = 344 (0x158), region = 66 }
 0x148   : > { %v773_v32 = vadd.f32 %v761_v26, %v331_v24  ;;  %v765_v33 = vadd.f32 %v764_v6, %v711_v31  ;;  %v713_v35 = vpop.f32.mrb[7].mxu1 }
 0x149   : > { %v774_v36 = vadd.f32 %v763_v29, %v332_v27  ;;  %v767_v37 = vadd.f32 %v766_v7, %v713_v35  ;;  %v789_v43 = vld [vmem:[#allocation2] sm:$0xff] (!%p1023_p11) }
 0x14a   : > { %781 = vst [vmem:[#allocation2 + $0x20] sm:$0xff] %v773_v32  ;;  %v775_v38 = vadd.f32 %v765_v33, %v333_v30  ;;  %v790_v45 = vld [vmem:[#allocation2 + $0x8] sm:$0xff] (!%p1023_p11)  ;;  %v809_v55 = vadd.f32 (!%p1023_p11), %v802_v50, %v789_v43 }
 0x14b   : > { %782 = vst [vmem:[#allocation2 + $0x28] sm:$0xff] %v774_v36  ;;  %v776_v39 = vadd.f32 %v767_v37, %v334_v34  ;;  %v791_v47 = vld [vmem:[#allocation2 + $0x10] sm:$0xff] (!%p1023_p11)  ;;  %v810_v56 = vadd.f32 (!%p1023_p11), %v806_v51, %v790_v45 }
 0x14c   : > { %783 = vst [vmem:[#allocation2 + $0x30] sm:$0xff] %v775_v38  ;;  %v792_v48 = vld [vmem:[#allocation2 + $0x18] sm:$0xff] (!%p1023_p11)  ;;  %v811_v57 = vadd.f32 (!%p1023_p11), %v802_v50, %v791_v47  ;;  %817 = vst [vmem:[%s1381_s3] sm:$0xff] (!%p1023_p11), %v809_v55 }
 0x14d   : > { %784 = vst [vmem:[#allocation2 + $0x38] sm:$0xff] %v776_v39  ;;  %v812_v58 = vadd.f32 (!%p1023_p11), %v806_v51, %v792_v48  ;;  %818 = vst [vmem:[%s1381_s3 + $0x8] sm:$0xff] (!%p1023_p11), %v810_v56 }
 0x14e   : > { %819 = vst [vmem:[%s1381_s3 + $0x10] sm:$0xff] %v811_v57 }
 0x14f   : > { %820 = vst [vmem:[%s1381_s3 + $0x18] sm:$0xff] %v812_v58 }
 0x151   : > { %v793_v49 = vld [vmem:[#allocation2 + $0x20] sm:$0xff] }
 0x152   : > { %v794_v52 = vld [vmem:[#allocation2 + $0x28] sm:$0xff]  ;;  %v813_v59 = vadd.f32 %v802_v50, %v793_v49 }
 0x153   : > { %v795_v53 = vld [vmem:[#allocation2 + $0x30] sm:$0xff]  ;;  %v814_v60 = vadd.f32 %v806_v51, %v794_v52 }
 0x154   : > { %v796_v54 = vld [vmem:[#allocation2 + $0x38] sm:$0xff]  ;;  %v815_v61 = vadd.f32 %v802_v50, %v795_v53  ;;  %821 = vst [vmem:[%s1381_s3 + $0x20] sm:$0xff] %v813_v59 }
 0x155   : > { %v816_v62 = vadd.f32 %v806_v51, %v796_v54  ;;  %822 = vst [vmem:[%s1381_s3 + $0x28] sm:$0xff] %v814_v60 }
 0x156   : > { %823 = vst [vmem:[%s1381_s3 + $0x30] sm:$0xff] %v815_v61 }
 0x157   : > { %824 = vst [vmem:[%s1381_s3 + $0x38] sm:$0xff] %v816_v62 }
 0x158 PF: > { %s13_s16 = sadd.s32 1, %s1200_s16   ;;  %s1382_s12 = smov %s1188_s13 }
 0x159   : > { %p10_p12 = scmp.ge.s32.totalorder %s13_s16, 5   ;;  %s1383_s13 = smov %s1259_s20 }
 0x15a   : > { %s1384_s14 = smov %s1196_s15  ;;  %s1385_s15 = smov %s1387_s17 }
 0x15b   :  { %12 = sbr.rel (!%p10_p12) target bundleno = 3 (0x3), region = 113 }

// kernel: xralefkdo_forward.59
= control target key start
LH: loop header
LB: loop body
LE: loop exit
PB: predicated region body
PF: predicated region fallthrough
CT: control target
= control target key end

     0   :  { %s1224_s12 = smov 0   ;;  %s1226_s13 = smov 0   ;;  %s1378_s0 = inlined_call_operand.vmem [shape: bf16[32,2304], index: 0, kind: input, shape index: {}]   ;;  %s1379_s1 = inlined_call_operand.vmem [shape: bf16[2304,256], index: 1, kind: input, shape index: {}]   ;;  %s1380_s2 = inlined_call_operand.vmem [shape: f32[1,256], index: 2, kind: input, shape index: {}]   ;;  %s1381_s3 = inlined_call_operand.vmem [shape: f32[32,256], index: 3, kind: output, shape index: {}]  }
   0x1   :  { %s1228_s14 = smov 0   ;;  %s1230_s15 = smov 0  }
   0x2   :  { %s1232_s16 = smov 0  }
   0x3 LB: > { %s25_s17 = sadd.s32 1, %s1196_s15  ;;  %p48_p1 = scmp.ne.s32.totalorder %s1188_s13, %s1184_s12  ;;  %s1200_s16 = sphi %s1232_s16, %s13_s16   ;;  %s1196_s15 = sphi %s1230_s15, %s1385_s15   ;;  %s1192_s14 = sphi %s1228_s14, %s1384_s14   ;;  %s1188_s13 = sphi %s1226_s13, %s1383_s13   ;;  %s1184_s12 = sphi %s1224_s12, %s1382_s12  }
   0x4   : > { %p26_p0 = scmp.ge.s32.totalorder %s25_s17, 6  ;;  %p49_p2 = scmp.eq.s32.totalorder %s1200_s16, 0 }
   0x5   : > { %s41_s19 = sadd.s32 1, %s1188_s13  ;;  %p955_p5 = scmp.ge.s32.totalorder %s1200_s16, 6 }
   0x6   : > { %s1387_s17 = smov (%p26_p0, %s25_s17), 0  ;;  %p50_p3 = por %p49_p2, %p48_p1 }
   0x7   : > { %s37_s18 = ssub.s32 %s1196_s15, %s1387_s17  ;;  %164 = sbr.rel (%p955_p5) target bundleno = 23 (0x17), region = 20 }
   0x8   : > { %p39_p4 = scmp.eq.s32.totalorder %s37_s18, 0 }
   0xa   : > { %s1259_s20 = scalar_select %p39_p4, %s1188_s13, %s41_s19  }
   0xe   : > { %167 = sbr.rel (!%p50_p3) target bundleno = 23 (0x17), region = 24  ;;  %s169_s21 = sand.u32 (%p50_p3), 1, %s1188_s13  }
   0xf   : > { %s1028_s22 = smul.u32 (%p50_p3), 12, %s1196_s15 }
  0x10   : > { %s1038_s23 = smul.u32 (%p50_p3), 48, %s169_s21 }
  0x11   : > { %s177_s26 = scalar_lea.vmem (%p50_p3), %s1378_s0, %s1028_s22 }
  0x12   : > { %v192_v0 = vld [vmem:[%s177_s26] sm:$0xff] (%p50_p3)  ;;  %v194_v1 = vld [vmem:[%s177_s26 + $0x48] sm:$0xff] (%p50_p3)  ;;  %v196_v2 = vld [vmem:[%s177_s26 + $0x90] sm:$0xff] (%p50_p3)  ;;  %s171_s27 = scalar_lea.vmem (%p50_p3), [#allocation3], %s1038_s23 }
  0x13   : > { %193 = vst [vmem:[%s171_s27] sm:$0xff] (%p50_p3), %v192_v0  ;;  %195 = vst [vmem:[%s171_s27 + $0xc] sm:$0xff] (%p50_p3), %v194_v1  ;;  %v198_v3 = vld [vmem:[%s177_s26 + $0xd8] sm:$0xff] (%p50_p3)  ;;  %v957_v4 = vld [vmem:[%s177_s26 + $0x8] sm:$0xf] (%p50_p3) }
  0x14   : > { %197 = vst [vmem:[%s171_s27 + $0x18] sm:$0xff] (%p50_p3), %v196_v2  ;;  %v959_v5 = vld [vmem:[%s177_s26 + $0x50] sm:$0xf] (%p50_p3)  ;;  %199 = vst [vmem:[%s171_s27 + $0x24] sm:$0xff] (%p50_p3), %v198_v3  ;;  %v961_v6 = vld [vmem:[%s177_s26 + $0x98] sm:$0xf] (%p50_p3) }
  0x15   : > { %958 = vst [vmem:[%s171_s27 + $0x8] sm:$0xf] %v957_v4  ;;  %960 = vst [vmem:[%s171_s27 + $0x14] sm:$0xf] %v959_v5  ;;  %v963_v7 = vld [vmem:[%s177_s26 + $0xe0] sm:$0xf] }
  0x16   : > { %962 = vst [vmem:[%s171_s27 + $0x20] sm:$0xf] %v961_v6  ;;  %964 = vst [vmem:[%s171_s27 + $0x2c] sm:$0xf] %v963_v7 }
  0x17 PF: > { %p965_p6 = scmp.ge.s32.totalorder %s1200_s16, 1  ;;  %p234_p7 = scmp.lt.s32.totalorder %s1200_s16, 7 }
  0x19   : > { %p235_p8 = pnand %p965_p6, %p234_p7 }
  0x1a   : > { %s241_s28 = sand.u32 (!%p235_p8), 1, %s1184_s12   ;;  %s285_s29 = smul.u32 (!%p235_p8), 48, %s1192_s14 }
  0x1b   : > { %238 = sbr.rel (%p235_p8) target bundleno = 344 (0x158), region = 54  ;;  %p968_p10 = scmp.ne.s32.totalorder (!%p235_p8), %s1192_s14, 0 }
  0x1c   : > { %s1039_s30 = smul.u32 (!%p235_p8), 48, %s241_s28  ;;  %p287_p9 = scmp.lt.s32.totalorder (!%p235_p8), %s285_s29, 287 }
  0x1e   : > { %s1276_s8 = scalar_lea.vmem (!%p235_p8), [#allocation3], %s1039_s30 }
  0x22   : > { %s1389_s29 = smov (!%p287_p9, %s285_s29), 287  ;;  %318 = sbr.rel (%p968_p10) target bundleno = 41 (0x29), region = 62 }
  0x23   : > { %s1029_s4 = sshll.u32 %s1389_s29, 3  ;;  %v1202_v8 = vmov (!%p968_p10), 0.0  }
  0x24   : > { %s1274_s7 = scalar_lea.vmem %s1379_s1, %s1029_s4  ;;  %319 = vst [vmem:[#allocation2] sm:$0xff] (!%p968_p10), %v1202_v8  ;;  %320 = vst [vmem:[#allocation2 + $0x8] sm:$0xff] (!%p968_p10), %v1202_v8 }
  0x25   : > { %321 = vst [vmem:[#allocation2 + $0x10] sm:$0xff] (!%p968_p10), %v1202_v8  ;;  %322 = vst [vmem:[#allocation2 + $0x18] sm:$0xff] (!%p968_p10), %v1202_v8 }
  0x26   : > { %323 = vst [vmem:[#allocation2 + $0x20] sm:$0xff] (!%p968_p10), %v1202_v8  ;;  %324 = vst [vmem:[#allocation2 + $0x28] sm:$0xff] (!%p968_p10), %v1202_v8 }
  0x27   : > { %325 = vst [vmem:[#allocation2 + $0x30] sm:$0xff] (!%p968_p10), %v1202_v8  ;;  %326 = vst [vmem:[#allocation2 + $0x38] sm:$0xff] (!%p968_p10), %v1202_v8 }
  0x29 PF: > { %v1082_v9 = vld [vmem:[%s1274_s7 + $0x4] ss:$8 sps:$4 sm:$0xff]   ;;  %v1084_v10 = vld [vmem:[%s1274_s7] ss:$8 sps:$4 sm:$0xff]   ;;  %v1203_v11 = vmov 0   ;;  %p1023_p11 = scmp.ne.s32.totalorder %s1192_s14, 5 }
  0x2a   : > { %748 = vmatprep.mubr.bf16.mxu0 %v1203_v11  ;;  %663 = vmatprep.subr.bf16.mxu1 %v1082_v9  ;;  %v1085_v12 = vld [vmem:[%s1274_s7 + $0x14] ss:$8 sps:$4 sm:$0xff]   ;;  %v1087_v13 = vld [vmem:[%s1274_s7 + $0x10] ss:$8 sps:$4 sm:$0xff]   ;;  %v1088_v14 = vld [vmem:[%s1274_s7 + $0x24] ss:$8 sps:$4 sm:$0xff]  }
  0x2b   : > { %664 = vmatpush1.bf16.msra.mxu1 %v1084_v10  ;;  %v1090_v15 = vld [vmem:[%s1274_s7 + $0x20] ss:$8 sps:$4 sm:$0xff]   ;;  %v1091_v16 = vld [vmem:[%s1274_s7 + $0x34] ss:$8 sps:$4 sm:$0xff]   ;;  %v1093_v17 = vld [vmem:[%s1274_s7 + $0x30] ss:$8 sps:$4 sm:$0xff]  }
  0x2c   : > { %665 = vmatprep.subr.bf16.mxu1 %v1085_v12  ;;  %v1106_v18 = vld [vmem:[%s1274_s7 + $0x104] ss:$8 sps:$4 sm:$0xff]   ;;  %v1108_v19 = vld [vmem:[%s1274_s7 + $0x100] ss:$8 sps:$4 sm:$0xff]   ;;  %v1112_v21 = vld [vmem:[%s1274_s7 + $0x114] ss:$8 sps:$4 sm:$0xff]  }
  0x2d   : > { %v1094_v20 = vld [vmem:[%s1274_s7 + $0x44] ss:$8 sps:$4 sm:$0xff]   ;;  %716 = vmatprep.subr.bf16.mxu0 %v1106_v18  ;;  %v1114_v22 = vld [vmem:[%s1274_s7 + $0x110] ss:$8 sps:$4 sm:$0xff]   ;;  %v1096_v23 = vld [vmem:[%s1274_s7 + $0x40] ss:$8 sps:$4 sm:$0xff]  }
  0x2e   : > { %717 = vmatpush1.bf16.msra.mxu0 %v1108_v19  ;;  %v1097_v24 = vld [vmem:[%s1274_s7 + $0x54] ss:$8 sps:$4 sm:$0xff]   ;;  %v1118_v25 = vld [vmem:[%s1274_s7 + $0x124] ss:$8 sps:$4 sm:$0xff]   ;;  %v1120_v26 = vld [vmem:[%s1274_s7 + $0x120] ss:$8 sps:$4 sm:$0xff]  }
  0x2f   : > { %666 = vmatpush1.bf16.msra.mxu1 %v1087_v13  ;;  %718 = vmatprep.subr.bf16.mxu0 %v1112_v21  ;;  %v1099_v27 = vld [vmem:[%s1274_s7 + $0x50] ss:$8 sps:$4 sm:$0xff]   ;;  %v1124_v28 = vld [vmem:[%s1274_s7 + $0x134] ss:$8 sps:$4 sm:$0xff]   ;;  %v1100_v29 = vld [vmem:[%s1274_s7 + $0x64] ss:$8 sps:$4 sm:$0xff]  }
  0x30   : > { %667 = vmatprep.subr.bf16.mxu1 %v1088_v14  ;;  %v1126_v30 = vld [vmem:[%s1274_s7 + $0x130] ss:$8 sps:$4 sm:$0xff]   ;;  %v1102_v31 = vld [vmem:[%s1274_s7 + $0x60] ss:$8 sps:$4 sm:$0xff]   ;;  %v1130_v32 = vld [vmem:[%s1274_s7 + $0x144] ss:$8 sps:$4 sm:$0xff]  }
  0x31   : > { %v1103_v33 = vld [vmem:[%s1274_s7 + $0x74] ss:$8 sps:$4 sm:$0xff]   ;;  %v1132_v34 = vld [vmem:[%s1274_s7 + $0x140] ss:$8 sps:$4 sm:$0xff]   ;;  %v1105_v35 = vld [vmem:[%s1274_s7 + $0x70] ss:$8 sps:$4 sm:$0xff]  }
  0x32   : > { %719 = vmatpush1.bf16.msra.mxu0 %v1114_v22  ;;  %v1136_v36 = vld [vmem:[%s1274_s7 + $0x154] ss:$8 sps:$4 sm:$0xff]   ;;  %v1109_v37 = vld [vmem:[%s1274_s7 + $0x84] ss:$8 sps:$4 sm:$0xff]   ;;  %v1138_v38 = vld [vmem:[%s1274_s7 + $0x150] ss:$8 sps:$4 sm:$0xff]  }
  0x33   : > { %668 = vmatpush1.bf16.msra.mxu1 %v1090_v15  ;;  %720 = vmatprep.subr.bf16.mxu0 %v1118_v25  ;;  %v1111_v39 = vld [vmem:[%s1274_s7 + $0x80] ss:$8 sps:$4 sm:$0xff]   ;;  %v1142_v40 = vld [vmem:[%s1274_s7 + $0x164] ss:$8 sps:$4 sm:$0xff]   ;;  %v1115_v41 = vld [vmem:[%s1274_s7 + $0x94] ss:$8 sps:$4 sm:$0xff]  }
  0x34   : > { %669 = vmatprep.subr.bf16.mxu1 %v1091_v16  ;;  %v1117_v42 = vld [vmem:[%s1274_s7 + $0x90] ss:$8 sps:$4 sm:$0xff]   ;;  %v1144_v43 = vld [vmem:[%s1274_s7 + $0x160] ss:$8 sps:$4 sm:$0xff]   ;;  %v1148_v45 = vld [vmem:[%s1274_s7 + $0x174] ss:$8 sps:$4 sm:$0xff]  }
  0x35   : > { %v1157_v44 = vld [vmem:[%s1276_s8 + $0x4] ss:$12 sps:$4 sm:$0xff]   ;;  %v1154_v50 = vld [vmem:[%s1276_s8 + $0x8] ss:$12 sps:$4 sm:$0xff]   ;;  %v1158_v55 = vld [vmem:[%s1276_s8 + $0x20] ss:$12 sps:$4 sm:$0xff]  }
  0x36   : > { %721 = vmatpush1.bf16.msra.mxu0 %v1120_v26  ;;  %v1121_v46 = vld [vmem:[%s1274_s7 + $0xa4] ss:$8 sps:$4 sm:$0xff]   ;;  %695 = vmatprep.mubr.bf16.mxu1 %v1157_v44  ;;  %v1150_v47 = vld [vmem:[%s1274_s7 + $0x170] ss:$8 sps:$4 sm:$0xff]   ;;  %v1123_v48 = vld [vmem:[%s1274_s7 + $0xa0] ss:$8 sps:$4 sm:$0xff]  }
  0x37   : > { %670 = vmatpush1.bf16.msra.mxu1 %v1093_v17  ;;  %722 = vmatprep.subr.bf16.mxu0 %v1124_v28  ;;  %v1127_v49 = vld [vmem:[%s1274_s7 + $0xb4] ss:$8 sps:$4 sm:$0xff]   ;;  %v1129_v51 = vld [vmem:[%s1274_s7 + $0xb0] ss:$8 sps:$4 sm:$0xff]   ;;  %v1133_v52 = vld [vmem:[%s1274_s7 + $0xc4] ss:$8 sps:$4 sm:$0xff]  }
  0x38   : > { %671 = vmatprep.subr.bf16.mxu1 %v1094_v20  ;;  %v1135_v53 = vld [vmem:[%s1274_s7 + $0xc0] ss:$8 sps:$4 sm:$0xff]   ;;  %v1139_v54 = vld [vmem:[%s1274_s7 + $0xd4] ss:$8 sps:$4 sm:$0xff]   ;;  %v1141_v56 = vld [vmem:[%s1274_s7 + $0xd0] ss:$8 sps:$4 sm:$0xff]  }
  0x39   : > { %v1145_v57 = vld [vmem:[%s1274_s7 + $0xe4] ss:$8 sps:$4 sm:$0xff]   ;;  %v1147_v58 = vld [vmem:[%s1274_s7 + $0xe0] ss:$8 sps:$4 sm:$0xff]   ;;  %v1151_v59 = vld [vmem:[%s1274_s7 + $0xf4] ss:$8 sps:$4 sm:$0xff]  }
  0x3a   : > { %723 = vmatpush1.bf16.msra.mxu0 %v1126_v30  ;;  %v1153_v60 = vld [vmem:[%s1274_s7 + $0xf0] ss:$8 sps:$4 sm:$0xff]   ;;  %v327_v8 = vld [vmem:[#allocation2] sm:$0xff] }
  0x3b   : > { %672 = vmatpush1.bf16.msra.mxu1 %v1096_v23  ;;  %724 = vmatprep.subr.bf16.mxu0 %v1130_v32  ;;  %v1155_v61 = vld [vmem:[%s1276_s8] ss:$12 sps:$4 sm:$0xff]   ;;  %v1159_v62 = vld [vmem:[%s1276_s8 + $0x1c] ss:$12 sps:$4 sm:$0xff]   ;;  %v1161_v63 = vld [vmem:[%s1276_s8 + $0x18] ss:$12 sps:$4 sm:$0xff]  }
  0x3c   : > { %673 = vmatprep.subr.bf16.mxu1 %v1097_v24  ;;  %v329_v14 = vld [vmem:[#allocation2 + $0x10] sm:$0xff]  ;;  %v330_v18 = vld [vmem:[#allocation2 + $0x18] sm:$0xff]  ;;  %v331_v24 = vld [vmem:[#allocation2 + $0x20] sm:$0xff] }
  0x3d   : > { %v333_v30 = vld [vmem:[#allocation2 + $0x30] sm:$0xff] }
  0x3e   : > { %725 = vmatpush1.bf16.msra.mxu0 %v1132_v34  ;;  %v334_v34 = vld [vmem:[#allocation2 + $0x38] sm:$0xff] }
  0x3f   : > { %674 = vmatpush1.bf16.msra.mxu1 %v1099_v27  ;;  %726 = vmatprep.subr.bf16.mxu0 %v1136_v36  ;;  %v332_v27 = vld [vmem:[#allocation2 + $0x28] sm:$0xff] }
  0x40   : > { %675 = vmatprep.subr.bf16.mxu1 %v1100_v29 }
  0x42   : > { %727 = vmatpush1.bf16.msra.mxu0 %v1138_v38 }
  0x43   : > { %676 = vmatpush1.bf16.msra.mxu1 %v1102_v31  ;;  %728 = vmatprep.subr.bf16.mxu0 %v1142_v40  ;;  %v799_v40 = vlaneseq (!%p1023_p11) }
  0x44   : > { %677 = vmatprep.subr.bf16.mxu1 %v1103_v33 }
  0x46   : > { %729 = vmatpush1.bf16.msra.mxu0 %v1144_v43 }
  0x47   : > { %678 = vmatpush1.bf16.msra.mxu1 %v1105_v35  ;;  %730 = vmatprep.subr.bf16.mxu0 %v1148_v45 }
  0x48   : > { %679 = vmatprep.subr.bf16.mxu1 %v1109_v37 }
  0x4a   : > { %731 = vmatpush1.bf16.msra.mxu0 %v1150_v47 }
  0x4b   : > { %680 = vmatpush1.bf16.msra.mxu1 %v1111_v39 }
  0x4c   : > { %681 = vmatprep.subr.bf16.mxu1 %v1115_v41  ;;  %v800_v41 = vshrl.u32 (!%p1023_p11), %v799_v40, 7 }
  0x4d   : > { %749 = vmatmul.mubr.bf16.vlgmr.msra.gmra.mrb[0].mxu0 %v1154_v50 }
  0x4e   : > { %758 = vmatprep.mubr.bf16.mxu0 %v1203_v11  ;;  %v328_v11 = vld [vmem:[#allocation2 + $0x8] sm:$0xff]  ;;  %v801_v44 = vsub.s32 (!%p1023_p11), 0, %v800_v41 }
  0x4f   : > { %682 = vmatpush1.bf16.msra.mxu1 %v1117_v42  ;;  %v797_v42 = vld [vmem:[%s1380_s2] sm:$0x3] (!%p1023_p11) }
  0x50   : > { %683 = vmatprep.subr.bf16.mxu1 %v1121_v46  ;;  %v805_v46 = vsub.s32 (!%p1023_p11), 1, %v800_v41  ;;  %v802_v50 = vrot.slane (!%p1023_p11), %v797_v42, %v801_v44 }
  0x53   : > { %684 = vmatpush1.bf16.msra.mxu1 %v1123_v48 }
  0x54   : > { %685 = vmatprep.subr.bf16.mxu1 %v1127_v49 }
  0x55   : > { %759 = vmatmul.mubr.bf16.gmra.mrb[4].mxu0 %v1158_v55 }
  0x57   : > { %686 = vmatpush1.bf16.msra.mxu1 %v1129_v51  ;;  %v806_v51 = vrot.slane (!%p1023_p11), %v797_v42, %v805_v46 }
  0x58   : > { %687 = vmatprep.subr.bf16.mxu1 %v1133_v52 }
  0x5b   : > { %688 = vmatpush1.bf16.msra.mxu1 %v1135_v53 }
  0x5c   : > { %689 = vmatprep.subr.bf16.mxu1 %v1139_v54 }
  0x5f   : > { %690 = vmatpush1.bf16.msra.mxu1 %v1141_v56 }
  0x60   : > { %691 = vmatprep.subr.bf16.mxu1 %v1145_v57 }
  0x63   : > { %692 = vmatpush1.bf16.msra.mxu1 %v1147_v58 }
  0x64   : > { %693 = vmatprep.subr.bf16.mxu1 %v1151_v59 }
  0x67   : > { %694 = vmatpush1.bf16.msra.mxu1 %v1153_v60 }
  0x6a   : > { %696 = vmatmul.mubr.bf16.vlgmr.msra.gmra.mrb[0].mxu1 %v1155_v61 }
  0x6b   : > { %705 = vmatprep.mubr.bf16.mxu1 %v1159_v62 }
  0x72   : > { %706 = vmatmul.mubr.bf16.gmra.mrb[4].mxu1 %v1161_v63 }
 0x120   : > { %v750_v0 = vpop.f32.mrb[0].mxu0 }
 0x121   : > { %v752_v1 = vpop.f32.mrb[1].mxu0 }
 0x122   : > { %v754_v2 = vpop.f32.mrb[2].mxu0 }
 0x123   : > { %v756_v3 = vpop.f32.mrb[3].mxu0 }
 0x128   : > { %v760_v4 = vpop.f32.mrb[4].mxu0 }
 0x129   : > { %v762_v5 = vpop.f32.mrb[5].mxu0 }
 0x12a   : > { %v764_v6 = vpop.f32.mrb[6].mxu0 }
 0x12b   : > { %v766_v7 = vpop.f32.mrb[7].mxu0 }
 0x13d   : > { %v697_v9 = vpop.f32.mrb[0].mxu1 }
 0x13e   : > { %v751_v10 = vadd.f32 %v750_v0, %v697_v9  ;;  %v699_v12 = vpop.f32.mrb[1].mxu1 }
 0x13f   : > { %v753_v13 = vadd.f32 %v752_v1, %v699_v12  ;;  %v701_v15 = vpop.f32.mrb[2].mxu1 }
 0x140   : > { %v769_v16 = vadd.f32 %v751_v10, %v327_v8  ;;  %v755_v17 = vadd.f32 %v754_v2, %v701_v15  ;;  %v703_v19 = vpop.f32.mrb[3].mxu1 }
 0x141   : > { %v770_v20 = vadd.f32 %v753_v13, %v328_v11  ;;  %v757_v21 = vadd.f32 %v756_v3, %v703_v19 }
 0x142   : > { %777 = vst [vmem:[#allocation2] sm:$0xff] %v769_v16  ;;  %v771_v22 = vadd.f32 %v755_v17, %v329_v14 }
 0x143   : > { %778 = vst [vmem:[#allocation2 + $0x8] sm:$0xff] %v770_v20  ;;  %v772_v23 = vadd.f32 %v757_v21, %v330_v18 }
 0x144   : > { %779 = vst [vmem:[#allocation2 + $0x10] sm:$0xff] %v771_v22 }
 0x145   : > { %780 = vst [vmem:[#allocation2 + $0x18] sm:$0xff] %v772_v23  ;;  %v707_v25 = vpop.f32.mrb[4].mxu1 }
 0x146   : > { %v761_v26 = vadd.f32 %v760_v4, %v707_v25  ;;  %v709_v28 = vpop.f32.mrb[5].mxu1 }
 0x147   : > { %v763_v29 = vadd.f32 %v762_v5, %v709_v28  ;;  %v711_v31 = vpop.f32.mrb[6].mxu1  ;;  %788 = sbr.rel (%p1023_p11) target bundleno = 344 (0x158), region = 66 }
 0x148   : > { %v773_v32 = vadd.f32 %v761_v26, %v331_v24  ;;  %v765_v33 = vadd.f32 %v764_v6, %v711_v31  ;;  %v713_v35 = vpop.f32.mrb[7].mxu1 }
 0x149   : > { %v774_v36 = vadd.f32 %v763_v29, %v332_v27  ;;  %v767_v37 = vadd.f32 %v766_v7, %v713_v35  ;;  %v789_v43 = vld [vmem:[#allocation2] sm:$0xff] (!%p1023_p11) }
 0x14a   : > { %781 = vst [vmem:[#allocation2 + $0x20] sm:$0xff] %v773_v32  ;;  %v775_v38 = vadd.f32 %v765_v33, %v333_v30  ;;  %v790_v45 = vld [vmem:[#allocation2 + $0x8] sm:$0xff] (!%p1023_p11)  ;;  %v809_v55 = vadd.f32 (!%p1023_p11), %v802_v50, %v789_v43 }
 0x14b   : > { %782 = vst [vmem:[#allocation2 + $0x28] sm:$0xff] %v774_v36  ;;  %v776_v39 = vadd.f32 %v767_v37, %v334_v34  ;;  %v791_v47 = vld [vmem:[#allocation2 + $0x10] sm:$0xff] (!%p1023_p11)  ;;  %v810_v56 = vadd.f32 (!%p1023_p11), %v806_v51, %v790_v45 }
 0x14c   : > { %783 = vst [vmem:[#allocation2 + $0x30] sm:$0xff] %v775_v38  ;;  %v792_v48 = vld [vmem:[#allocation2 + $0x18] sm:$0xff] (!%p1023_p11)  ;;  %v811_v57 = vadd.f32 (!%p1023_p11), %v802_v50, %v791_v47  ;;  %817 = vst [vmem:[%s1381_s3] sm:$0xff] (!%p1023_p11), %v809_v55 }
 0x14d   : > { %784 = vst [vmem:[#allocation2 + $0x38] sm:$0xff] %v776_v39  ;;  %v812_v58 = vadd.f32 (!%p1023_p11), %v806_v51, %v792_v48  ;;  %818 = vst [vmem:[%s1381_s3 + $0x8] sm:$0xff] (!%p1023_p11), %v810_v56 }
 0x14e   : > { %819 = vst [vmem:[%s1381_s3 + $0x10] sm:$0xff] %v811_v57 }
 0x14f   : > { %820 = vst [vmem:[%s1381_s3 + $0x18] sm:$0xff] %v812_v58 }
 0x151   : > { %v793_v49 = vld [vmem:[#allocation2 + $0x20] sm:$0xff] }
 0x152   : > { %v794_v52 = vld [vmem:[#allocation2 + $0x28] sm:$0xff]  ;;  %v813_v59 = vadd.f32 %v802_v50, %v793_v49 }
 0x153   : > { %v795_v53 = vld [vmem:[#allocation2 + $0x30] sm:$0xff]  ;;  %v814_v60 = vadd.f32 %v806_v51, %v794_v52 }
 0x154   : > { %v796_v54 = vld [vmem:[#allocation2 + $0x38] sm:$0xff]  ;;  %v815_v61 = vadd.f32 %v802_v50, %v795_v53  ;;  %821 = vst [vmem:[%s1381_s3 + $0x20] sm:$0xff] %v813_v59 }
 0x155   : > { %v816_v62 = vadd.f32 %v806_v51, %v796_v54  ;;  %822 = vst [vmem:[%s1381_s3 + $0x28] sm:$0xff] %v814_v60 }
 0x156   : > { %823 = vst [vmem:[%s1381_s3 + $0x30] sm:$0xff] %v815_v61 }
 0x157   : > { %824 = vst [vmem:[%s1381_s3 + $0x38] sm:$0xff] %v816_v62 }
 0x158 PF: > { %s13_s16 = sadd.s32 1, %s1200_s16   ;;  %s1382_s12 = smov %s1188_s13 }
 0x159   : > { %p10_p12 = scmp.ge.s32.totalorder %s13_s16, 8   ;;  %s1383_s13 = smov %s1259_s20 }
 0x15a   : > { %s1384_s14 = smov %s1196_s15  ;;  %s1385_s15 = smov %s1387_s17 }
 0x15b   :  { %12 = sbr.rel (!%p10_p12) target bundleno = 3 (0x3), region = 113 }

// kernel: xralefkdo_forward.62
= control target key start
LH: loop header
LB: loop body
LE: loop exit
PB: predicated region body
PF: predicated region fallthrough
CT: control target
= control target key end

     0   :  { %s576_s9 = smov 0   ;;  %s578_s10 = smov 0   ;;  %s691_s0 = inlined_call_operand.vmem [shape: f32[2,16,256], index: 0, kind: input, shape index: {}]   ;;  %s692_s1 = inlined_call_operand.vmem [shape: f32[2,16,256], index: 1, kind: input, shape index: {}]   ;;  %s693_s2 = inlined_call_operand.vmem [shape: f32[2,16,256], index: 2, kind: output, shape index: {}]  }
   0x1   :  { %s580_s11 = smov 0   ;;  %s582_s12 = smov 0  }
   0x2   :  { %s584_s13 = smov 0   ;;  %s586_s14 = smov 0  }
   0x3   :  { %s588_s15 = smov 0  }
   0x4 LB: > { %s21_s16 = sadd.s32 1, %s551_s13  ;;  %s24_s17 = sadd.s32 1, %s555_s14  ;;  %s559_s15 = sphi %s588_s15, %s12_s15   ;;  %s555_s14 = sphi %s586_s14, %s701_s14   ;;  %s551_s13 = sphi %s584_s13, %s700_s13   ;;  %s547_s12 = sphi %s582_s12, %s699_s12   ;;  %s543_s11 = sphi %s580_s11, %s698_s11   ;;  %s539_s10 = sphi %s578_s10, %s697_s10   ;;  %s535_s9 = sphi %s576_s9, %s696_s9  }
   0x5   : > { %p22_p0 = scmp.ge.s32.totalorder %s21_s16, 2  ;;  %s428_s18 = sadd.s32 4294967295, %s559_s15  }
   0x6   : > { %p40_p1 = scmp.ne.s32.totalorder %s539_s10, %s535_s9  ;;  %p41_p2 = scmp.eq.s32.totalorder %s559_s15, 0 }
   0x7   : > { %s703_s16 = smov (%p22_p0, %s21_s16), 0  ;;  %s705_s17 = smov (!%p22_p0, %s24_s17), %s555_s14 }
   0x8   : > { %p26_p3 = scmp.ge.s32.totalorder %s705_s17, 2  ;;  %p100_p4 = scmp.eq.s32.totalorder %s428_s18, 3 }
   0x9   : > { %s29_s19 = ssub.s32 %s551_s13, %s703_s16  ;;  %p622_p5 = por %p41_p2, %p40_p1 }
   0xa   : > { %s707_s17 = smov (%p26_p3, %s705_s17), 0  ;;  %p628_p6 = por %p100_p4, %p40_p1 }
   0xb   : > { %s28_s22 = ssub.s32 %s555_s14, %s707_s17  ;;  %s33_s24 = sadd.s32 1, %s539_s10 }
   0xc   : > { %s30_s23 = sor.u32 %s29_s19, %s28_s22  ;;  %p431_p8 = scmp.ge.s32.totalorder %s559_s15, 4 }
   0xd   : > { %p31_p7 = scmp.eq.s32.totalorder %s30_s23, 0 }
   0xe   : > { %122 = sbr.rel (%p431_p8) target bundleno = 35 (0x23), region = 16 }
   0xf   : > { %s636_s25 = scalar_select %p31_p7, %s539_s10, %s33_s24  }
  0x15   : > { %125 = sbr.rel (!%p622_p5) target bundleno = 28 (0x1c), region = 20  ;;  %s127_s26 = sand.u32 (%p622_p5), 1, %s539_s10  }
  0x16   : > { %s433_s27 = sshll.u32 (%p622_p5), %s555_s14, 2  ;;  %s432_s28 = sshll.u32 (%p622_p5), %s127_s26, 4 }
  0x17   : > { %s131_s29 = sadd.s32 (%p622_p5), %s551_s13, %s433_s27  ;;  %s129_s6 = scalar_lea.vmem (%p622_p5), [#allocation2], %s432_s28 }
  0x18   : > { %s434_s30 = sshll.u32 (%p622_p5), %s131_s29, 3 }
  0x19   : > { %s133_s5 = scalar_lea.vmem (%p622_p5), %s691_s0, %s434_s30 }
  0x1a   : > { %v163_v0 = vld [vmem:[%s133_s5] sm:$0xff] (%p622_p5)  ;;  %v165_v1 = vld [vmem:[%s133_s5 + $0x10] sm:$0xff] (%p622_p5) }
  0x1b   : > { %164 = vst [vmem:[%s129_s6] sm:$0xff] (%p622_p5), %v163_v0  ;;  %166 = vst [vmem:[%s129_s6 + $0x8] sm:$0xff] (%p622_p5), %v165_v1 }
  0x1c PF: > { %172 = sbr.rel (!%p622_p5) target bundleno = 35 (0x23), region = 58  ;;  %s174_s7 = sand.u32 (%p622_p5), 1, %s539_s10  }
  0x1d   : > { %s436_s8 = sshll.u32 (%p622_p5), %s555_s14, 2  ;;  %s435_s18 = sshll.u32 (%p622_p5), %s174_s7, 4 }
  0x1e   : > { %s178_s19 = sadd.s32 (%p622_p5), %s551_s13, %s436_s8  ;;  %s176_s27 = scalar_lea.vmem (%p622_p5), [#allocation3], %s435_s18 }
  0x1f   : > { %s437_s22 = sshll.u32 (%p622_p5), %s178_s19, 3 }
  0x20   : > { %s180_s26 = scalar_lea.vmem (%p622_p5), %s692_s1, %s437_s22 }
  0x21   : > { %v210_v2 = vld [vmem:[%s180_s26] sm:$0xff] (%p622_p5)  ;;  %v212_v3 = vld [vmem:[%s180_s26 + $0x10] sm:$0xff] (%p622_p5) }
  0x22   : > { %211 = vst [vmem:[%s176_s27] sm:$0xff] (%p622_p5), %v210_v2  ;;  %213 = vst [vmem:[%s176_s27 + $0x8] sm:$0xff] (%p622_p5), %v212_v3 }
  0x23 PF: > { %p438_p9 = scmp.ge.s32.totalorder %s559_s15, 1  ;;  %p218_p10 = scmp.lt.s32.totalorder %s559_s15, 5 }
  0x25   : > { %p219_p11 = pnand %p438_p9, %p218_p10 }
  0x26   : > { %s225_s20 = sand.u32 (!%p219_p11), 1, %s535_s9  }
  0x27   : > { %222 = sbr.rel (%p219_p11) target bundleno = 104 (0x68), region = 96  ;;  %s658_s28 = sshll.u32 (!%p219_p11), %s225_s20, 4 }
  0x28   : > { %s227_s29 = scalar_lea.vmem (!%p219_p11), [#allocation2], %s658_s28  ;;  %s234_s9 = scalar_lea.vmem (!%p219_p11), [#allocation3], %s658_s28 }
  0x29   : > { %v256_v4 = vld [vmem:[%s227_s29] sm:$0xff] (!%p219_p11)  ;;  %v257_v5 = vld [vmem:[%s227_s29 + $0x8] sm:$0xff] (!%p219_p11)  ;;  %s255_s30 = scalar_lea.vmem (!%p219_p11), [#allocation4], %s658_s28 }
  0x2a   : > { %v258_v6 = vadd.f32 (!%p219_p11), %v257_v5, %v256_v4  ;;  %v283_v28 = vld [vmem:[%s234_s9] sm:$0xff] (!%p219_p11)  ;;  %v284_v29 = vld [vmem:[%s234_s9 + $0x8] sm:$0xff] (!%p219_p11) }
  0x2c   : > { %v259_v7 = vrot.slane (!%p219_p11), %v258_v6, 4 }
  0x2e   : > { %v260_v8 = vadd.f32 %v259_v7, %v258_v6  ;;  %s443_s3 = sshll.u32 (%p628_p6), %s547_s12, 2 }
  0x2f   : > { %s297_s4 = sadd.s32 (%p628_p6), %s543_s11, %s443_s3 }
  0x30   : > { %v261_v9 = vrot.slane %v260_v8, 2  ;;  %s444_s5 = sshll.u32 (%p628_p6), %s297_s4, 3 }
  0x31   : > { %s299_s8 = scalar_lea.vmem (%p628_p6), %s693_s2, %s444_s5 }
  0x32   : > { %v262_v10 = vadd.f32 %v261_v9, %v260_v8 }
  0x34   : > { %v263_v11 = vrot.slane %v262_v10, 1 }
  0x36   : > { %v264_v12 = vadd.f32 %v263_v11, %v262_v10 }
  0x38   : > { %v266_v13 = vmul.f32 0.0625, %v264_v12 }
  0x3a   : > { %v267_v14 = vsub.f32 %v256_v4, %v266_v13  ;;  %v268_v15 = vsub.f32 %v257_v5, %v266_v13 }
  0x3c   : > { %v269_v16 = vmul.f32 %v267_v14, %v267_v14  ;;  %v270_v17 = vmul.f32 %v268_v15, %v268_v15 }
  0x3e   : > { %v271_v18 = vadd.f32 %v270_v17, %v269_v16 }
  0x40   : > { %v272_v19 = vrot.slane %v271_v18, 4 }
  0x42   : > { %v273_v20 = vadd.f32 %v272_v19, %v271_v18 }
  0x44   : > { %v274_v21 = vrot.slane %v273_v20, 2 }
  0x46   : > { %v275_v22 = vadd.f32 %v274_v21, %v273_v20 }
  0x48   : > { %v276_v23 = vrot.slane %v275_v22, 1 }
  0x4a   : > { %v277_v24 = vadd.f32 %v276_v23, %v275_v22 }
  0x4c   : > { %v278_v25 = vmul.f32 0.0625, %v277_v24 }
  0x4e   : > { %v279_v26 = vadd.f32 1e-05, %v278_v25 }
  0x50   : > { %503 = vrsqrt.f32 %v279_v26 }
  0x59   : > { %295 = sbr.rel (!%p628_p6) target bundleno = 104 (0x68), region = 108 }
  0x5a   : > { %v504_v27 = vpop.eup %503 }
  0x5b   : > { %v281_v30 = vmul.f32 %v504_v27, %v267_v14  ;;  %v282_v31 = vmul.f32 %v504_v27, %v268_v15 }
  0x5d   : > { %v285_v32 = vadd.f32 %v283_v28, %v281_v30  ;;  %v286_v33 = vadd.f32 %v284_v29, %v282_v31 }
  0x5f   : > { %287 = vst [vmem:[%s255_s30] sm:$0xff] %v285_v32  ;;  %288 = vst [vmem:[%s255_s30 + $0x8] sm:$0xff] %v286_v33 }
  0x66   : > { %v329_v34 = vld [vmem:[%s255_s30] sm:$0xff]  ;;  %v331_v35 = vld [vmem:[%s255_s30 + $0x8] sm:$0xff] }
  0x67   : > { %330 = vst [vmem:[%s299_s8] sm:$0xff] %v329_v34  ;;  %332 = vst [vmem:[%s299_s8 + $0x10] sm:$0xff] %v331_v35 }
  0x68 PF: > { %s12_s15 = sadd.s32 1, %s559_s15   ;;  %s696_s9 = smov %s539_s10 }
  0x69   : > { %p9_p12 = scmp.ge.s32.totalorder %s12_s15, 6   ;;  %s697_s10 = smov %s636_s25 }
  0x6a   : > { %s698_s11 = smov %s551_s13  ;;  %s699_s12 = smov %s555_s14 }
  0x6b   : > { %s700_s13 = smov %s703_s16  ;;  %s701_s14 = smov %s707_s17 }
  0x6c   :  { %11 = sbr.rel (!%p9_p12) target bundleno = 4 (0x4), region = 185 }

// kernel: xralefkdo_forward.98
= control target key start
LH: loop header
LB: loop body
LE: loop exit
PB: predicated region body
PF: predicated region fallthrough
CT: control target
= control target key end

     0   :  { %s1105_s12 = smov 0   ;;  %s1107_s13 = smov 0   ;;  %s1231_s0 = inlined_call_operand.vmem [shape: bf16[32,1024], index: 0, kind: input, shape index: {}]   ;;  %s1232_s1 = inlined_call_operand.vmem [shape: bf16[1024,128], index: 1, kind: input, shape index: {}]   ;;  %s1233_s2 = inlined_call_operand.vmem [shape: f32[1,128], index: 2, kind: input, shape index: {}]   ;;  %s1234_s3 = inlined_call_operand.vmem [shape: f32[32,128], index: 3, kind: output, shape index: {}]  }
   0x1   :  { %s1109_s14 = smov 0   ;;  %s1111_s15 = smov 0  }
   0x2   :  { %s1113_s16 = smov 0  }
   0x3 LB: > { %s25_s17 = sadd.s32 1, %s1078_s15  ;;  %p48_p1 = scmp.ne.s32.totalorder %s1070_s13, %s1066_s12  ;;  %s1082_s16 = sphi %s1113_s16, %s13_s16   ;;  %s1078_s15 = sphi %s1111_s15, %s1238_s15   ;;  %s1074_s14 = sphi %s1109_s14, %s1237_s14   ;;  %s1070_s13 = sphi %s1107_s13, %s1236_s13   ;;  %s1066_s12 = sphi %s1105_s12, %s1235_s12  }
   0x4   : > { %p26_p0 = scmp.ge.s32.totalorder %s25_s17, 2  ;;  %p49_p2 = scmp.eq.s32.totalorder %s1082_s16, 0 }
   0x5   : > { %s41_s19 = sadd.s32 1, %s1070_s13  ;;  %p847_p5 = scmp.ge.s32.totalorder %s1082_s16, 2 }
   0x6   : > { %s1240_s17 = smov (%p26_p0, %s25_s17), 0  ;;  %p50_p3 = por %p49_p2, %p48_p1 }
   0x7   : > { %s37_s18 = ssub.s32 %s1078_s15, %s1240_s17  ;;  %162 = sbr.rel (%p847_p5) target bundleno = 22 (0x16), region = 20 }
   0x8   : > { %p39_p4 = scmp.eq.s32.totalorder %s37_s18, 0 }
   0xa   : > { %s1140_s20 = scalar_select %p39_p4, %s1070_s13, %s41_s19  }
   0xe   : > { %165 = sbr.rel (!%p50_p3) target bundleno = 22 (0x16), region = 24  ;;  %s167_s21 = sand.u32 (%p50_p3), 1, %s1070_s13  }
   0xf   : > { %s902_s22 = sshll.u32 (%p50_p3), %s1078_s15, 4  ;;  %s848_s23 = sshll.u32 (%p50_p3), %s167_s21, 6 }
  0x10   : > { %s175_s26 = scalar_lea.vmem (%p50_p3), %s1231_s0, %s902_s22  ;;  %s169_s27 = scalar_lea.vmem (%p50_p3), [#allocation3], %s848_s23 }
  0x11   : > { %v188_v0 = vld [vmem:[%s175_s26] sm:$0xff] (%p50_p3)  ;;  %v190_v1 = vld [vmem:[%s175_s26 + $0x8] sm:$0xff] (%p50_p3) }
  0x12   : > { %v192_v2 = vld [vmem:[%s175_s26 + $0x20] sm:$0xff] (%p50_p3)  ;;  %189 = vst [vmem:[%s169_s27] sm:$0xff] (%p50_p3), %v188_v0  ;;  %191 = vst [vmem:[%s169_s27 + $0x8] sm:$0xff] (%p50_p3), %v190_v1  ;;  %v194_v3 = vld [vmem:[%s175_s26 + $0x28] sm:$0xff] (%p50_p3) }
  0x13   : > { %193 = vst [vmem:[%s169_s27 + $0x10] sm:$0xff] (%p50_p3), %v192_v2  ;;  %v196_v4 = vld [vmem:[%s175_s26 + $0x40] sm:$0xff] (%p50_p3)  ;;  %v198_v5 = vld [vmem:[%s175_s26 + $0x48] sm:$0xff] (%p50_p3)  ;;  %195 = vst [vmem:[%s169_s27 + $0x18] sm:$0xff] (%p50_p3), %v194_v3 }
  0x14   : > { %197 = vst [vmem:[%s169_s27 + $0x20] sm:$0xff] (%p50_p3), %v196_v4  ;;  %199 = vst [vmem:[%s169_s27 + $0x28] sm:$0xff] (%p50_p3), %v198_v5  ;;  %v200_v6 = vld [vmem:[%s175_s26 + $0x60] sm:$0xff] (%p50_p3)  ;;  %v202_v7 = vld [vmem:[%s175_s26 + $0x68] sm:$0xff] (%p50_p3) }
  0x15   : > { %201 = vst [vmem:[%s169_s27 + $0x30] sm:$0xff] %v200_v6  ;;  %203 = vst [vmem:[%s169_s27 + $0x38] sm:$0xff] %v202_v7 }
  0x16 PF: > { %p851_p6 = scmp.ge.s32.totalorder %s1082_s16, 1  ;;  %p220_p7 = scmp.lt.s32.totalorder %s1082_s16, 3 }
  0x18   : > { %p221_p8 = pnand %p851_p6, %p220_p7 }
  0x19   : > { %s227_s28 = sand.u32 (!%p221_p8), 1, %s1066_s12   ;;  %s853_s29 = sshll.u32 (!%p221_p8), %s1074_s14, 6 }
  0x1a   : > { %224 = sbr.rel (%p221_p8) target bundleno = 315 (0x13b), region = 51  ;;  %s852_s30 = sshll.u32 (!%p221_p8), %s227_s28, 6 }
  0x1b   : > { %p267_p9 = scmp.lt.s32.totalorder (!%p221_p8), %s853_s29, 127  ;;  %s1157_s8 = scalar_lea.vmem (!%p221_p8), [#allocation3], %s852_s30 }
  0x1c   : > { %p855_p10 = scmp.ne.s32.totalorder (!%p221_p8), %s1074_s14, 0 }
  0x21   : > { %s1242_s29 = smov (!%p267_p9, %s853_s29), 127  ;;  %291 = sbr.rel (%p855_p10) target bundleno = 40 (0x28), region = 59 }
  0x22   : > { %s854_s4 = sshll.u32 %s1242_s29, 2  ;;  %v1084_v8 = vmov (!%p855_p10), 0.0  }
  0x23   : > { %s1155_s7 = scalar_lea.vmem %s1232_s1, %s854_s4  ;;  %292 = vst [vmem:[#allocation2] sm:$0xff] (!%p855_p10), %v1084_v8  ;;  %293 = vst [vmem:[#allocation2 + $0x8] sm:$0xff] (!%p855_p10), %v1084_v8 }
  0x24   : > { %294 = vst [vmem:[#allocation2 + $0x10] sm:$0xff] (!%p855_p10), %v1084_v8  ;;  %295 = vst [vmem:[#allocation2 + $0x18] sm:$0xff] (!%p855_p10), %v1084_v8 }
  0x28 PF: > { %v1000_v9 = vld [vmem:[%s1155_s7 + $0x40] sm:$0xff]   ;;  %v1004_v13 = vld [vmem:[%s1155_s7 + $0x48] sm:$0xff]   ;;  %v1008_v17 = vld [vmem:[%s1155_s7 + $0x50] sm:$0xff]   ;;  %p896_p11 = scmp.ne.s32.totalorder %s1074_s14, 1 }
  0x29   : > { %v1001_v10 = vld [vmem:[%s1155_s7 + $0xc0] sm:$0xff]   ;;  %903 = vmatprep.subr.bf16.mxu0 %v1000_v9  ;;  %v1005_v14 = vld [vmem:[%s1155_s7 + $0xc8] sm:$0xff]   ;;  %v1009_v18 = vld [vmem:[%s1155_s7 + $0xd0] sm:$0xff]  }
  0x2a   : > { %v1002_v11 = vld [vmem:[%s1155_s7] sm:$0xff]   ;;  %931 = vmatprep.subr.bf16.mxu1 %v1001_v10  ;;  %v1006_v15 = vld [vmem:[%s1155_s7 + $0x8] sm:$0xff]   ;;  %v1010_v19 = vld [vmem:[%s1155_s7 + $0x10] sm:$0xff]  }
  0x2b   : > { %v1003_v12 = vld [vmem:[%s1155_s7 + $0x80] sm:$0xff]   ;;  %904 = vmatpush3.bf16.msra.mxu0 %v1002_v11  ;;  %v1007_v16 = vld [vmem:[%s1155_s7 + $0x88] sm:$0xff]   ;;  %v1011_v20 = vld [vmem:[%s1155_s7 + $0x90] sm:$0xff]  }
  0x2c   : > { %932 = vmatpush3.bf16.msra.mxu1 %v1003_v12  ;;  %905 = vmatprep.subr.bf16.mxu0 %v1004_v13  ;;  %v1012_v21 = vld [vmem:[%s1155_s7 + $0x58] sm:$0xff]   ;;  %v1016_v25 = vld [vmem:[%s1155_s7 + $0x60] sm:$0xff]   ;;  %v1020_v29 = vld [vmem:[%s1155_s7 + $0x68] sm:$0xff]  }
  0x2d   : > { %933 = vmatprep.subr.bf16.mxu1 %v1005_v14  ;;  %v1013_v22 = vld [vmem:[%s1155_s7 + $0xd8] sm:$0xff]   ;;  %v1017_v26 = vld [vmem:[%s1155_s7 + $0xe0] sm:$0xff]   ;;  %v1021_v30 = vld [vmem:[%s1155_s7 + $0xe8] sm:$0xff]  }
  0x2e   : > { %v1014_v23 = vld [vmem:[%s1155_s7 + $0x18] sm:$0xff]   ;;  %v1018_v27 = vld [vmem:[%s1155_s7 + $0x20] sm:$0xff]   ;;  %v1022_v31 = vld [vmem:[%s1155_s7 + $0x28] sm:$0xff]  }
  0x2f   : > { %906 = vmatpush3.bf16.msra.mxu0 %v1006_v15  ;;  %v1015_v24 = vld [vmem:[%s1155_s7 + $0x98] sm:$0xff]   ;;  %v1019_v28 = vld [vmem:[%s1155_s7 + $0xa0] sm:$0xff]   ;;  %v1023_v32 = vld [vmem:[%s1155_s7 + $0xa8] sm:$0xff]  }
  0x30   : > { %934 = vmatpush3.bf16.msra.mxu1 %v1007_v16  ;;  %907 = vmatprep.subr.bf16.mxu0 %v1008_v17  ;;  %v1024_v33 = vld [vmem:[%s1155_s7 + $0x70] sm:$0xff]   ;;  %v1028_v37 = vld [vmem:[%s1155_s7 + $0x78] sm:$0xff]   ;;  %v296_v58 = vld [vmem:[#allocation2] sm:$0xff] }
  0x31   : > { %935 = vmatprep.subr.bf16.mxu1 %v1009_v18  ;;  %v1025_v34 = vld [vmem:[%s1155_s7 + $0xf0] sm:$0xff]   ;;  %v1029_v38 = vld [vmem:[%s1155_s7 + $0xf8] sm:$0xff]   ;;  %v297_v63 = vld [vmem:[#allocation2 + $0x8] sm:$0xff] }
  0x32   : > { %v1026_v35 = vld [vmem:[%s1155_s7 + $0x30] sm:$0xff]   ;;  %v1030_v39 = vld [vmem:[%s1155_s7 + $0x38] sm:$0xff]  }
  0x33   : > { %908 = vmatpush3.bf16.msra.mxu0 %v1010_v19  ;;  %v1027_v36 = vld [vmem:[%s1155_s7 + $0xb0] sm:$0xff]   ;;  %v1031_v40 = vld [vmem:[%s1155_s7 + $0xb8] sm:$0xff]  }
  0x34   : > { %936 = vmatpush3.bf16.msra.mxu1 %v1011_v20  ;;  %909 = vmatprep.subr.bf16.mxu0 %v1012_v21  ;;  %v1032_v41 = vld [vmem:[%s1157_s8] ss:$16 sps:$4 sm:$0xff]   ;;  %v1034_v42 = vld [vmem:[%s1157_s8 + $0x4] ss:$16 sps:$4 sm:$0xff]   ;;  %v1035_v43 = vld [vmem:[%s1157_s8 + $0x8] ss:$16 sps:$4 sm:$0xff]  }
  0x35   : > { %937 = vmatprep.subr.bf16.mxu1 %v1013_v22  ;;  %v1037_v44 = vld [vmem:[%s1157_s8 + $0xc] ss:$16 sps:$4 sm:$0xff]   ;;  %636 = vmatprep.mubr.bf16.mxu0 %v1034_v42  ;;  %v1038_v45 = vld [vmem:[%s1157_s8 + $0x24] ss:$16 sps:$4 sm:$0xff]   ;;  %v1042_v47 = vld [vmem:[%s1157_s8 + $0x20] ss:$16 sps:$4 sm:$0xff]  }
  0x36   : > { %685 = vmatprep.mubr.bf16.mxu1 %v1037_v44  ;;  %v1040_v46 = vld [vmem:[%s1157_s8 + $0x2c] ss:$16 sps:$4 sm:$0xff]   ;;  %v1043_v48 = vld [vmem:[%s1157_s8 + $0x28] ss:$16 sps:$4 sm:$0xff]   ;;  %v298_v12 = vld [vmem:[#allocation2 + $0x10] sm:$0xff] }
  0x37   : > { %910 = vmatpush3.bf16.msra.mxu0 %v1014_v23  ;;  %v299_v17 = vld [vmem:[#allocation2 + $0x18] sm:$0xff]  ;;  %v897_v22 = vld [vmem:[%s1233_s2] ss:$0 sm:$0xff] (!%p896_p11) }
  0x38   : > { %938 = vmatpush3.bf16.msra.mxu1 %v1015_v24  ;;  %911 = vmatprep.subr.bf16.mxu0 %v1016_v25 }
  0x39   : > { %939 = vmatprep.subr.bf16.mxu1 %v1017_v26 }
  0x3b   : > { %912 = vmatpush3.bf16.msra.mxu0 %v1018_v27 }
  0x3c   : > { %940 = vmatpush3.bf16.msra.mxu1 %v1019_v28  ;;  %913 = vmatprep.subr.bf16.mxu0 %v1020_v29 }
  0x3d   : > { %941 = vmatprep.subr.bf16.mxu1 %v1021_v30 }
  0x3f   : > { %914 = vmatpush3.bf16.msra.mxu0 %v1022_v31 }
  0x40   : > { %942 = vmatpush3.bf16.msra.mxu1 %v1023_v32  ;;  %915 = vmatprep.subr.bf16.mxu0 %v1024_v33 }
  0x41   : > { %943 = vmatprep.subr.bf16.mxu1 %v1025_v34 }
  0x43   : > { %916 = vmatpush3.bf16.msra.mxu0 %v1026_v35 }
  0x44   : > { %944 = vmatpush3.bf16.msra.mxu1 %v1027_v36  ;;  %917 = vmatprep.subr.bf16.mxu0 %v1028_v37 }
  0x45   : > { %945 = vmatprep.subr.bf16.mxu1 %v1029_v38 }
  0x47   : > { %918 = vmatpush3.bf16.msra.mxu0 %v1030_v39 }
  0x48   : > { %946 = vmatpush3.bf16.msra.mxu1 %v1031_v40 }
  0x4a   : > { %637 = vmatmul.mubr.bf16.vlgmr.msra.gmra.mrb[0].mxu0 %v1032_v41 }
  0x4b   : > { %686 = vmatmul.mubr.bf16.vlgmr.msra.gmra.mrb[0].mxu1 %v1035_v43  ;;  %644 = vmatprep.mubr.bf16.mxu0 %v1038_v45 }
  0x4c   : > { %693 = vmatprep.mubr.bf16.mxu1 %v1040_v46 }
  0x52   : > { %645 = vmatmul.mubr.bf16.gmra.mrb[4].mxu0 %v1042_v47 }
  0x53   : > { %694 = vmatmul.mubr.bf16.gmra.mrb[4].mxu1 %v1043_v48 }
 0x11d   : > { %v919_v49 = vpop.f32.mrb[0].mxu0 }
 0x11e   : > { %v947_v50 = vpop.f32.mrb[0].mxu1  ;;  %v920_v51 = vpop.f32.mrb[1].mxu0 }
 0x11f   : > { %v921_v52 = vadd.f32 %v920_v51, %v919_v49  ;;  %v948_v53 = vpop.f32.mrb[1].mxu1  ;;  %v922_v54 = vpop.f32.mrb[2].mxu0 }
 0x120   : > { %v949_v55 = vadd.f32 %v948_v53, %v947_v50  ;;  %v950_v56 = vpop.f32.mrb[2].mxu1  ;;  %v923_v57 = vpop.f32.mrb[3].mxu0 }
 0x121   : > { %v924_v59 = vadd.f32 %v923_v57, %v922_v54  ;;  %v951_v60 = vpop.f32.mrb[3].mxu1 }
 0x122   : > { %v688_v61 = vadd.f32 %v949_v55, %v921_v52  ;;  %v952_v62 = vadd.f32 %v951_v60, %v950_v56 }
 0x124   : > { %v702_v0 = vadd.f32 %v688_v61, %v296_v58  ;;  %v691_v1 = vadd.f32 %v952_v62, %v924_v59 }
 0x125   : > { %v925_v2 = vpop.f32.mrb[4].mxu0 }
 0x126   : > { %706 = vst [vmem:[#allocation2] sm:$0xff] %v702_v0  ;;  %v703_v3 = vadd.f32 %v691_v1, %v297_v63  ;;  %v953_v4 = vpop.f32.mrb[4].mxu1  ;;  %v926_v5 = vpop.f32.mrb[5].mxu0 }
 0x127   : > { %v927_v6 = vadd.f32 %v926_v5, %v925_v2  ;;  %v954_v7 = vpop.f32.mrb[5].mxu1  ;;  %v928_v8 = vpop.f32.mrb[6].mxu0 }
 0x128   : > { %707 = vst [vmem:[#allocation2 + $0x8] sm:$0xff] %v703_v3  ;;  %v955_v9 = vadd.f32 %v954_v7, %v953_v4  ;;  %v956_v10 = vpop.f32.mrb[6].mxu1  ;;  %v929_v11 = vpop.f32.mrb[7].mxu0 }
 0x129   : > { %v930_v13 = vadd.f32 %v929_v11, %v928_v8  ;;  %v957_v14 = vpop.f32.mrb[7].mxu1 }
 0x12a   : > { %v696_v15 = vadd.f32 %v955_v9, %v927_v6  ;;  %v958_v16 = vadd.f32 %v957_v14, %v956_v10  ;;  %713 = sbr.rel (%p896_p11) target bundleno = 315 (0x13b), region = 63 }
 0x12c   : > { %v704_v18 = vadd.f32 %v696_v15, %v298_v12  ;;  %v699_v19 = vadd.f32 %v958_v16, %v930_v13 }
 0x12d   : > { %v714_v21 = vld [vmem:[#allocation2] sm:$0xff] (!%p896_p11) }
 0x12e   : > { %708 = vst [vmem:[#allocation2 + $0x10] sm:$0xff] %v704_v18  ;;  %v705_v20 = vadd.f32 %v699_v19, %v299_v17  ;;  %v725_v24 = vadd.f32 (!%p896_p11), %v897_v22, %v714_v21 }
 0x12f   : > { %v715_v23 = vld [vmem:[#allocation2 + $0x8] sm:$0xff] (!%p896_p11) }
 0x130   : > { %709 = vst [vmem:[#allocation2 + $0x18] sm:$0xff] %v705_v20  ;;  %v726_v25 = vadd.f32 (!%p896_p11), %v897_v22, %v715_v23  ;;  %729 = vst [vmem:[%s1234_s3] sm:$0xff] (!%p896_p11), %v725_v24 }
 0x132   : > { %730 = vst [vmem:[%s1234_s3 + $0x8] sm:$0xff] %v726_v25 }
 0x135   : > { %v716_v26 = vld [vmem:[#allocation2 + $0x10] sm:$0xff] }
 0x136   : > { %v727_v28 = vadd.f32 %v897_v22, %v716_v26 }
 0x137   : > { %v717_v27 = vld [vmem:[#allocation2 + $0x18] sm:$0xff] }
 0x138   : > { %v728_v29 = vadd.f32 %v897_v22, %v717_v27  ;;  %731 = vst [vmem:[%s1234_s3 + $0x10] sm:$0xff] %v727_v28 }
 0x13a   : > { %732 = vst [vmem:[%s1234_s3 + $0x18] sm:$0xff] %v728_v29 }
 0x13b PF: > { %s13_s16 = sadd.s32 1, %s1082_s16   ;;  %s1235_s12 = smov %s1070_s13 }
 0x13c   : > { %p10_p12 = scmp.ge.s32.totalorder %s13_s16, 4   ;;  %s1236_s13 = smov %s1140_s20 }
 0x13d   : > { %s1237_s14 = smov %s1078_s15  ;;  %s1238_s15 = smov %s1240_s17 }
 0x13e   :  { %12 = sbr.rel (!%p10_p12) target bundleno = 3 (0x3), region = 104 }

// kernel: xralefkdo_forward.97
= control target key start
LH: loop header
LB: loop body
LE: loop exit
PB: predicated region body
PF: predicated region fallthrough
CT: control target
= control target key end

     0   :  { %s759_s1 = inlined_call_operand.vmem [shape: bf16[512,128], index: 1, kind: input, shape index: {}]   ;;  %s760_s0 = inlined_call_operand.vmem [shape: bf16[32,512], index: 0, kind: input, shape index: {}]   ;;  %s761_s2 = inlined_call_operand.vmem [shape: f32[1,128], index: 2, kind: input, shape index: {}]   ;;  %s762_s3 = inlined_call_operand.vmem [shape: f32[32,128], index: 3, kind: output, shape index: {}]  }
   0x1   :  { %v560_v0 = vld [vmem:[%s759_s1 + $0x40] sm:$0xff]   ;;  %v564_v4 = vld [vmem:[%s759_s1 + $0x48] sm:$0xff]   ;;  %v568_v8 = vld [vmem:[%s759_s1 + $0x50] sm:$0xff]  }
   0x2   :  { %v561_v1 = vld [vmem:[%s759_s1 + $0xc0] sm:$0xff]   ;;  %504 = vmatprep.subr.bf16.mxu0 %v560_v0  ;;  %v565_v5 = vld [vmem:[%s759_s1 + $0xc8] sm:$0xff]   ;;  %v569_v9 = vld [vmem:[%s759_s1 + $0xd0] sm:$0xff]  }
   0x3   :  { %v562_v2 = vld [vmem:[%s759_s1] sm:$0xff]   ;;  %532 = vmatprep.subr.bf16.mxu1 %v561_v1  ;;  %v566_v6 = vld [vmem:[%s759_s1 + $0x8] sm:$0xff]   ;;  %v570_v10 = vld [vmem:[%s759_s1 + $0x10] sm:$0xff]  }
   0x4   :  { %v563_v3 = vld [vmem:[%s759_s1 + $0x80] sm:$0xff]   ;;  %505 = vmatpush3.bf16.msra.mxu0 %v562_v2  ;;  %v567_v7 = vld [vmem:[%s759_s1 + $0x88] sm:$0xff]   ;;  %v571_v11 = vld [vmem:[%s759_s1 + $0x90] sm:$0xff]  }
   0x5   :  { %533 = vmatpush3.bf16.msra.mxu1 %v563_v3  ;;  %506 = vmatprep.subr.bf16.mxu0 %v564_v4  ;;  %v572_v12 = vld [vmem:[%s759_s1 + $0x58] sm:$0xff]   ;;  %v576_v16 = vld [vmem:[%s759_s1 + $0x60] sm:$0xff]   ;;  %v580_v20 = vld [vmem:[%s759_s1 + $0x68] sm:$0xff]  }
   0x6   :  { %534 = vmatprep.subr.bf16.mxu1 %v565_v5  ;;  %v573_v13 = vld [vmem:[%s759_s1 + $0xd8] sm:$0xff]   ;;  %v577_v17 = vld [vmem:[%s759_s1 + $0xe0] sm:$0xff]   ;;  %v581_v21 = vld [vmem:[%s759_s1 + $0xe8] sm:$0xff]  }
   0x7   :  { %v574_v14 = vld [vmem:[%s759_s1 + $0x18] sm:$0xff]   ;;  %v578_v18 = vld [vmem:[%s759_s1 + $0x20] sm:$0xff]   ;;  %v582_v22 = vld [vmem:[%s759_s1 + $0x28] sm:$0xff]  }
   0x8   :  { %507 = vmatpush3.bf16.msra.mxu0 %v566_v6  ;;  %v575_v15 = vld [vmem:[%s759_s1 + $0x98] sm:$0xff]   ;;  %v579_v19 = vld [vmem:[%s759_s1 + $0xa0] sm:$0xff]   ;;  %v583_v23 = vld [vmem:[%s759_s1 + $0xa8] sm:$0xff]  }
   0x9   :  { %535 = vmatpush3.bf16.msra.mxu1 %v567_v7  ;;  %508 = vmatprep.subr.bf16.mxu0 %v568_v8  ;;  %v584_v24 = vld [vmem:[%s759_s1 + $0x70] sm:$0xff]   ;;  %v588_v28 = vld [vmem:[%s759_s1 + $0x78] sm:$0xff]   ;;  %v503_v49 = vld [vmem:[%s761_s2] ss:$0 sm:$0xff] }
   0xa   :  { %536 = vmatprep.subr.bf16.mxu1 %v569_v9  ;;  %v585_v25 = vld [vmem:[%s759_s1 + $0xf0] sm:$0xff]   ;;  %v589_v29 = vld [vmem:[%s759_s1 + $0xf8] sm:$0xff]  }
   0xb   :  { %v586_v26 = vld [vmem:[%s759_s1 + $0x30] sm:$0xff]   ;;  %v590_v30 = vld [vmem:[%s759_s1 + $0x38] sm:$0xff]  }
   0xc   :  { %509 = vmatpush3.bf16.msra.mxu0 %v570_v10  ;;  %v587_v27 = vld [vmem:[%s759_s1 + $0xb0] sm:$0xff]   ;;  %v591_v31 = vld [vmem:[%s759_s1 + $0xb8] sm:$0xff]  }
   0xd   :  { %537 = vmatpush3.bf16.msra.mxu1 %v571_v11  ;;  %510 = vmatprep.subr.bf16.mxu0 %v572_v12  ;;  %v592_v32 = vld [vmem:[%s760_s0] ss:$16 sps:$4 sm:$0xff]   ;;  %v594_v33 = vld [vmem:[%s760_s0 + $0x4] ss:$16 sps:$4 sm:$0xff]   ;;  %v595_v34 = vld [vmem:[%s760_s0 + $0x8] ss:$16 sps:$4 sm:$0xff]  }
   0xe   :  { %538 = vmatprep.subr.bf16.mxu1 %v573_v13  ;;  %v597_v35 = vld [vmem:[%s760_s0 + $0xc] ss:$16 sps:$4 sm:$0xff]   ;;  %363 = vmatprep.mubr.bf16.mxu0 %v594_v33  ;;  %v598_v36 = vld [vmem:[%s760_s0 + $0x24] ss:$16 sps:$4 sm:$0xff]   ;;  %v602_v38 = vld [vmem:[%s760_s0 + $0x20] ss:$16 sps:$4 sm:$0xff]  }
   0xf   :  { %412 = vmatprep.mubr.bf16.mxu1 %v597_v35  ;;  %v600_v37 = vld [vmem:[%s760_s0 + $0x2c] ss:$16 sps:$4 sm:$0xff]   ;;  %v603_v39 = vld [vmem:[%s760_s0 + $0x28] ss:$16 sps:$4 sm:$0xff]  }
  0x10   :  { %511 = vmatpush3.bf16.msra.mxu0 %v574_v14 }
  0x11   :  { %539 = vmatpush3.bf16.msra.mxu1 %v575_v15  ;;  %512 = vmatprep.subr.bf16.mxu0 %v576_v16 }
  0x12   :  { %540 = vmatprep.subr.bf16.mxu1 %v577_v17 }
  0x14   :  { %513 = vmatpush3.bf16.msra.mxu0 %v578_v18 }
  0x15   :  { %541 = vmatpush3.bf16.msra.mxu1 %v579_v19  ;;  %514 = vmatprep.subr.bf16.mxu0 %v580_v20 }
  0x16   :  { %542 = vmatprep.subr.bf16.mxu1 %v581_v21 }
  0x18   :  { %515 = vmatpush3.bf16.msra.mxu0 %v582_v22 }
  0x19   :  { %543 = vmatpush3.bf16.msra.mxu1 %v583_v23  ;;  %516 = vmatprep.subr.bf16.mxu0 %v584_v24 }
  0x1a   :  { %544 = vmatprep.subr.bf16.mxu1 %v585_v25 }
  0x1c   :  { %517 = vmatpush3.bf16.msra.mxu0 %v586_v26 }
  0x1d   :  { %545 = vmatpush3.bf16.msra.mxu1 %v587_v27  ;;  %518 = vmatprep.subr.bf16.mxu0 %v588_v28 }
  0x1e   :  { %546 = vmatprep.subr.bf16.mxu1 %v589_v29 }
  0x20   :  { %519 = vmatpush3.bf16.msra.mxu0 %v590_v30 }
  0x21   :  { %547 = vmatpush3.bf16.msra.mxu1 %v591_v31 }
  0x23   :  { %364 = vmatmul.mubr.bf16.vlgmr.msra.gmra.mrb[0].mxu0 %v592_v32 }
  0x24   :  { %413 = vmatmul.mubr.bf16.vlgmr.msra.gmra.mrb[0].mxu1 %v595_v34  ;;  %371 = vmatprep.mubr.bf16.mxu0 %v598_v36 }
  0x25   :  { %420 = vmatprep.mubr.bf16.mxu1 %v600_v37 }
  0x2b   :  { %372 = vmatmul.mubr.bf16.gmra.mrb[4].mxu0 %v602_v38 }
  0x2c   :  { %421 = vmatmul.mubr.bf16.gmra.mrb[4].mxu1 %v603_v39 }
  0xf6   :  { %v520_v40 = vpop.f32.mrb[0].mxu0 }
  0xf7   :  { %v548_v41 = vpop.f32.mrb[0].mxu1  ;;  %v521_v42 = vpop.f32.mrb[1].mxu0 }
  0xf8   :  { %v522_v43 = vadd.f32 %v521_v42, %v520_v40  ;;  %v549_v44 = vpop.f32.mrb[1].mxu1  ;;  %v523_v45 = vpop.f32.mrb[2].mxu0 }
  0xf9   :  { %v550_v46 = vadd.f32 %v549_v44, %v548_v41  ;;  %v551_v47 = vpop.f32.mrb[2].mxu1  ;;  %v524_v48 = vpop.f32.mrb[3].mxu0 }
  0xfa   :  { %v525_v50 = vadd.f32 %v524_v48, %v523_v45  ;;  %v552_v51 = vpop.f32.mrb[3].mxu1 }
  0xfb   :  { %v415_v52 = vadd.f32 %v550_v46, %v522_v43  ;;  %v553_v53 = vadd.f32 %v552_v51, %v551_v47 }
  0xfd   :  { %v451_v54 = vadd.f32 %v503_v49, %v415_v52  ;;  %v418_v55 = vadd.f32 %v553_v53, %v525_v50 }
  0xfe   :  { %v526_v56 = vpop.f32.mrb[4].mxu0 }
  0xff   :  { %455 = vst [vmem:[%s762_s3] sm:$0xff] %v451_v54  ;;  %v452_v57 = vadd.f32 %v503_v49, %v418_v55  ;;  %v554_v58 = vpop.f32.mrb[4].mxu1  ;;  %v527_v59 = vpop.f32.mrb[5].mxu0 }
 0x100   :  { %v528_v60 = vadd.f32 %v527_v59, %v526_v56  ;;  %v555_v61 = vpop.f32.mrb[5].mxu1  ;;  %v529_v62 = vpop.f32.mrb[6].mxu0 }
 0x101   :  { %456 = vst [vmem:[%s762_s3 + $0x8] sm:$0xff] %v452_v57  ;;  %v556_v63 = vadd.f32 %v555_v61, %v554_v58  ;;  %v557_v0 = vpop.f32.mrb[6].mxu1  ;;  %v530_v1 = vpop.f32.mrb[7].mxu0 }
 0x102   :  { %v531_v2 = vadd.f32 %v530_v1, %v529_v62  ;;  %v558_v3 = vpop.f32.mrb[7].mxu1 }
 0x103   :  { %v423_v4 = vadd.f32 %v556_v63, %v528_v60  ;;  %v559_v5 = vadd.f32 %v558_v3, %v557_v0 }
 0x105   :  { %v453_v6 = vadd.f32 %v503_v49, %v423_v4  ;;  %v426_v7 = vadd.f32 %v559_v5, %v531_v2 }
 0x107   :  { %457 = vst [vmem:[%s762_s3 + $0x10] sm:$0xff] %v453_v6  ;;  %v454_v8 = vadd.f32 %v503_v49, %v426_v7 }
 0x109   :  { %458 = vst [vmem:[%s762_s3 + $0x18] sm:$0xff] %v454_v8 }

// kernel: xralefkdo_forward.95
= control target key start
LH: loop header
LB: loop body
LE: loop exit
PB: predicated region body
PF: predicated region fallthrough
CT: control target
= control target key end

     0   :  { %s444_s1 = inlined_call_operand.vmem [shape: bf16[256,128], index: 1, kind: input, shape index: {}]   ;;  %s445_s0 = inlined_call_operand.vmem [shape: bf16[32,256], index: 0, kind: input, shape index: {}]   ;;  %s446_s2 = inlined_call_operand.vmem [shape: f32[1,128], index: 2, kind: input, shape index: {}]   ;;  %s447_s3 = inlined_call_operand.vmem [shape: f32[32,128], index: 3, kind: output, shape index: {}]  }
   0x1   :  { %v327_v0 = vld [vmem:[%s444_s1 + $0x40] sm:$0xff]   ;;  %v329_v2 = vld [vmem:[%s444_s1 + $0x48] sm:$0xff]   ;;  %v331_v4 = vld [vmem:[%s444_s1 + $0x50] sm:$0xff]  }
   0x2   :  { %v328_v1 = vld [vmem:[%s444_s1] sm:$0xff]   ;;  %283 = vmatprep.subr.bf16.mxu0 %v327_v0  ;;  %311 = vmatprep.subr.bf16.mxu1 %v327_v0  ;;  %v330_v3 = vld [vmem:[%s444_s1 + $0x8] sm:$0xff]   ;;  %v332_v5 = vld [vmem:[%s444_s1 + $0x10] sm:$0xff]  }
   0x3   :  { %284 = vmatpush3.bf16.msra.mxu0 %v328_v1  ;;  %319 = vmatpush3.bf16.msra.mxu1 %v328_v1  ;;  %v333_v6 = vld [vmem:[%s444_s1 + $0x58] sm:$0xff]   ;;  %v335_v8 = vld [vmem:[%s444_s1 + $0x60] sm:$0xff]   ;;  %v337_v10 = vld [vmem:[%s444_s1 + $0x68] sm:$0xff]  }
   0x4   :  { %285 = vmatprep.subr.bf16.mxu0 %v329_v2  ;;  %312 = vmatprep.subr.bf16.mxu1 %v329_v2  ;;  %v334_v7 = vld [vmem:[%s444_s1 + $0x18] sm:$0xff]   ;;  %v336_v9 = vld [vmem:[%s444_s1 + $0x20] sm:$0xff]   ;;  %v338_v13 = vld [vmem:[%s444_s1 + $0x28] sm:$0xff]  }
   0x5   :  { %v345_v11 = vld [vmem:[%s445_s0 + $0x4] ss:$8 sps:$4 sm:$0xff]   ;;  %v348_v12 = vld [vmem:[%s445_s0 + $0x14] ss:$8 sps:$4 sm:$0xff]   ;;  %v343_v18 = vld [vmem:[%s445_s0] ss:$8 sps:$4 sm:$0xff]  }
   0x6   :  { %v339_v14 = vld [vmem:[%s444_s1 + $0x70] sm:$0xff]   ;;  %211 = vmatprep.mubr.bf16.mxu0 %v345_v11  ;;  %219 = vmatprep.mubr.bf16.mxu1 %v348_v12  ;;  %v341_v16 = vld [vmem:[%s444_s1 + $0x78] sm:$0xff]   ;;  %v282_v23 = vld [vmem:[%s446_s2] ss:$0 sm:$0xff] }
   0x7   :  { %286 = vmatpush3.bf16.msra.mxu0 %v330_v3  ;;  %320 = vmatpush3.bf16.msra.mxu1 %v330_v3  ;;  %v340_v15 = vld [vmem:[%s444_s1 + $0x30] sm:$0xff]   ;;  %v342_v17 = vld [vmem:[%s444_s1 + $0x38] sm:$0xff]  }
   0x8   :  { %287 = vmatprep.subr.bf16.mxu0 %v331_v4  ;;  %313 = vmatprep.subr.bf16.mxu1 %v331_v4  ;;  %v346_v19 = vld [vmem:[%s445_s0 + $0x10] ss:$8 sps:$4 sm:$0xff]  }
   0xb   :  { %288 = vmatpush3.bf16.msra.mxu0 %v332_v5  ;;  %321 = vmatpush3.bf16.msra.mxu1 %v332_v5 }
   0xc   :  { %289 = vmatprep.subr.bf16.mxu0 %v333_v6  ;;  %314 = vmatprep.subr.bf16.mxu1 %v333_v6 }
   0xf   :  { %290 = vmatpush3.bf16.msra.mxu0 %v334_v7  ;;  %322 = vmatpush3.bf16.msra.mxu1 %v334_v7 }
  0x10   :  { %291 = vmatprep.subr.bf16.mxu0 %v335_v8  ;;  %315 = vmatprep.subr.bf16.mxu1 %v335_v8 }
  0x13   :  { %292 = vmatpush3.bf16.msra.mxu0 %v336_v9  ;;  %323 = vmatpush3.bf16.msra.mxu1 %v336_v9 }
  0x14   :  { %293 = vmatprep.subr.bf16.mxu0 %v337_v10  ;;  %316 = vmatprep.subr.bf16.mxu1 %v337_v10 }
  0x17   :  { %294 = vmatpush3.bf16.msra.mxu0 %v338_v13  ;;  %324 = vmatpush3.bf16.msra.mxu1 %v338_v13 }
  0x18   :  { %295 = vmatprep.subr.bf16.mxu0 %v339_v14  ;;  %317 = vmatprep.subr.bf16.mxu1 %v339_v14 }
  0x1b   :  { %296 = vmatpush3.bf16.msra.mxu0 %v340_v15  ;;  %325 = vmatpush3.bf16.msra.mxu1 %v340_v15 }
  0x1c   :  { %297 = vmatprep.subr.bf16.mxu0 %v341_v16  ;;  %318 = vmatprep.subr.bf16.mxu1 %v341_v16 }
  0x1f   :  { %298 = vmatpush3.bf16.msra.mxu0 %v342_v17  ;;  %326 = vmatpush3.bf16.msra.mxu1 %v342_v17 }
  0x22   :  { %212 = vmatmul.mubr.bf16.vlgmr.msra.gmra.mrb[0].mxu0 %v343_v18  ;;  %220 = vmatmul.mubr.bf16.vlgmr.msra.gmra.mrb[0].mxu1 %v346_v19 }
  0xf5   :  { %v299_v20 = vpop.f32.mrb[0].mxu0  ;;  %v305_v21 = vpop.f32.mrb[0].mxu1 }
  0xf6   :  { %v300_v22 = vpop.f32.mrb[1].mxu0  ;;  %v306_v24 = vpop.f32.mrb[1].mxu1 }
  0xf7   :  { %v301_v25 = vadd.f32 %v300_v22, %v299_v20  ;;  %v307_v26 = vadd.f32 %v306_v24, %v305_v21  ;;  %v302_v27 = vpop.f32.mrb[2].mxu0  ;;  %v308_v28 = vpop.f32.mrb[2].mxu1 }
  0xf8   :  { %v303_v29 = vpop.f32.mrb[3].mxu0  ;;  %v309_v30 = vpop.f32.mrb[3].mxu1 }
  0xf9   :  { %v250_v31 = vadd.f32 %v301_v25, %v282_v23  ;;  %v252_v32 = vadd.f32 %v307_v26, %v282_v23  ;;  %v304_v33 = vadd.f32 %v303_v29, %v302_v27  ;;  %v310_v34 = vadd.f32 %v309_v30, %v308_v28 }
  0xfb   :  { %254 = vst [vmem:[%s447_s3] sm:$0xff] %v250_v31  ;;  %256 = vst [vmem:[%s447_s3 + $0x10] sm:$0xff] %v252_v32  ;;  %v251_v35 = vadd.f32 %v304_v33, %v282_v23  ;;  %v253_v36 = vadd.f32 %v310_v34, %v282_v23 }
  0xfd   :  { %255 = vst [vmem:[%s447_s3 + $0x8] sm:$0xff] %v251_v35  ;;  %257 = vst [vmem:[%s447_s3 + $0x18] sm:$0xff] %v253_v36 }

// kernel: xralefkdo_forward.101
= control target key start
LH: loop header
LB: loop body
LE: loop exit
PB: predicated region body
PF: predicated region fallthrough
CT: control target
= control target key end

     0   :  { %s804_s1 = inlined_call_operand.vmem [shape: bf16[256,128], index: 1, kind: input, shape index: {}]   ;;  %s805_s0 = inlined_call_operand.vmem [shape: bf16[128,256], index: 0, kind: input, shape index: {}]   ;;  %s806_s2 = inlined_call_operand.vmem [shape: f32[1,128], index: 2, kind: input, shape index: {}]   ;;  %s807_s3 = inlined_call_operand.vmem [shape: f32[128,128], index: 3, kind: output, shape index: {}]  }
   0x1   :  { %v579_v0 = vld [vmem:[%s804_s1 + $0x40] sm:$0xff]   ;;  %v581_v2 = vld [vmem:[%s804_s1 + $0x48] sm:$0xff]   ;;  %v583_v4 = vld [vmem:[%s804_s1 + $0x50] sm:$0xff]  }
   0x2   :  { %v580_v1 = vld [vmem:[%s804_s1] sm:$0xff]   ;;  %499 = vmatprep.subr.bf16.mxu0 %v579_v0  ;;  %563 = vmatprep.subr.bf16.mxu1 %v579_v0  ;;  %v582_v3 = vld [vmem:[%s804_s1 + $0x8] sm:$0xff]   ;;  %v584_v5 = vld [vmem:[%s804_s1 + $0x10] sm:$0xff]  }
   0x3   :  { %500 = vmatpush3.bf16.msra.mxu0 %v580_v1  ;;  %571 = vmatpush3.bf16.msra.mxu1 %v580_v1  ;;  %v585_v6 = vld [vmem:[%s804_s1 + $0x58] sm:$0xff]   ;;  %v587_v8 = vld [vmem:[%s804_s1 + $0x60] sm:$0xff]   ;;  %v589_v10 = vld [vmem:[%s804_s1 + $0x68] sm:$0xff]  }
   0x4   :  { %501 = vmatprep.subr.bf16.mxu0 %v581_v2  ;;  %564 = vmatprep.subr.bf16.mxu1 %v581_v2  ;;  %v586_v7 = vld [vmem:[%s804_s1 + $0x18] sm:$0xff]   ;;  %v588_v9 = vld [vmem:[%s804_s1 + $0x20] sm:$0xff]   ;;  %v590_v13 = vld [vmem:[%s804_s1 + $0x28] sm:$0xff]  }
   0x5   :  { %v597_v11 = vld [vmem:[%s805_s0 + $0x4] ss:$8 sps:$4 sm:$0xff]   ;;  %v591_v14 = vld [vmem:[%s804_s1 + $0x70] sm:$0xff]   ;;  %v593_v16 = vld [vmem:[%s804_s1 + $0x78] sm:$0xff]  }
   0x6   :  { %v600_v12 = vld [vmem:[%s805_s0 + $0x44] ss:$8 sps:$4 sm:$0xff]   ;;  %307 = vmatprep.mubr.bf16.mxu0 %v597_v11  ;;  %v592_v15 = vld [vmem:[%s804_s1 + $0x30] sm:$0xff]   ;;  %v594_v17 = vld [vmem:[%s804_s1 + $0x38] sm:$0xff]  }
   0x7   :  { %502 = vmatpush3.bf16.msra.mxu0 %v582_v3  ;;  %572 = vmatpush3.bf16.msra.mxu1 %v582_v3  ;;  %v595_v18 = vld [vmem:[%s805_s0] ss:$8 sps:$4 sm:$0xff]   ;;  %v601_v20 = vld [vmem:[%s805_s0 + $0x14] ss:$8 sps:$4 sm:$0xff]   ;;  %v605_v22 = vld [vmem:[%s805_s0 + $0x10] ss:$8 sps:$4 sm:$0xff]  }
   0x8   :  { %503 = vmatprep.subr.bf16.mxu0 %v583_v4  ;;  %565 = vmatprep.subr.bf16.mxu1 %v583_v4  ;;  %v598_v19 = vld [vmem:[%s805_s0 + $0x40] ss:$8 sps:$4 sm:$0xff]   ;;  %v603_v21 = vld [vmem:[%s805_s0 + $0x54] ss:$8 sps:$4 sm:$0xff]   ;;  %v606_v23 = vld [vmem:[%s805_s0 + $0x50] ss:$8 sps:$4 sm:$0xff]  }
   0x9   :  { %339 = vmatprep.mubr.bf16.mxu1 %v600_v12  ;;  %v607_v24 = vld [vmem:[%s805_s0 + $0x24] ss:$8 sps:$4 sm:$0xff]   ;;  %v611_v26 = vld [vmem:[%s805_s0 + $0x20] ss:$8 sps:$4 sm:$0xff]   ;;  %v613_v28 = vld [vmem:[%s805_s0 + $0x34] ss:$8 sps:$4 sm:$0xff]  }
   0xa   :  { %v609_v25 = vld [vmem:[%s805_s0 + $0x64] ss:$8 sps:$4 sm:$0xff]   ;;  %v612_v27 = vld [vmem:[%s805_s0 + $0x60] ss:$8 sps:$4 sm:$0xff]   ;;  %v615_v29 = vld [vmem:[%s805_s0 + $0x74] ss:$8 sps:$4 sm:$0xff]  }
   0xb   :  { %504 = vmatpush3.bf16.msra.mxu0 %v584_v5  ;;  %573 = vmatpush3.bf16.msra.mxu1 %v584_v5  ;;  %v617_v30 = vld [vmem:[%s805_s0 + $0x30] ss:$8 sps:$4 sm:$0xff]   ;;  %v738_v35 = vld [vmem:[%s806_s2] ss:$0 sm:$0xff] }
   0xc   :  { %505 = vmatprep.subr.bf16.mxu0 %v585_v6  ;;  %566 = vmatprep.subr.bf16.mxu1 %v585_v6  ;;  %v618_v31 = vld [vmem:[%s805_s0 + $0x70] ss:$8 sps:$4 sm:$0xff]  }
   0xf   :  { %506 = vmatpush3.bf16.msra.mxu0 %v586_v7  ;;  %574 = vmatpush3.bf16.msra.mxu1 %v586_v7 }
  0x10   :  { %507 = vmatprep.subr.bf16.mxu0 %v587_v8  ;;  %567 = vmatprep.subr.bf16.mxu1 %v587_v8 }
  0x13   :  { %508 = vmatpush3.bf16.msra.mxu0 %v588_v9  ;;  %575 = vmatpush3.bf16.msra.mxu1 %v588_v9 }
  0x14   :  { %509 = vmatprep.subr.bf16.mxu0 %v589_v10  ;;  %568 = vmatprep.subr.bf16.mxu1 %v589_v10 }
  0x17   :  { %510 = vmatpush3.bf16.msra.mxu0 %v590_v13  ;;  %576 = vmatpush3.bf16.msra.mxu1 %v590_v13 }
  0x18   :  { %511 = vmatprep.subr.bf16.mxu0 %v591_v14  ;;  %569 = vmatprep.subr.bf16.mxu1 %v591_v14 }
  0x1b   :  { %512 = vmatpush3.bf16.msra.mxu0 %v592_v15  ;;  %577 = vmatpush3.bf16.msra.mxu1 %v592_v15 }
  0x1c   :  { %513 = vmatprep.subr.bf16.mxu0 %v593_v16  ;;  %570 = vmatprep.subr.bf16.mxu1 %v593_v16 }
  0x1f   :  { %514 = vmatpush3.bf16.msra.mxu0 %v594_v17  ;;  %578 = vmatpush3.bf16.msra.mxu1 %v594_v17 }
  0x22   :  { %308 = vmatmul.mubr.bf16.vlgmr.msra.gmra.mrb[0].mxu0 %v595_v18  ;;  %340 = vmatmul.mubr.bf16.vlgmr.msra.gmra.mrb[0].mxu1 %v598_v19 }
  0x23   :  { %315 = vmatprep.mubr.bf16.mxu0 %v601_v20  ;;  %347 = vmatprep.mubr.bf16.mxu1 %v603_v21 }
  0x2a   :  { %316 = vmatmul.mubr.bf16.gmra.mrb[4].mxu0 %v605_v22  ;;  %348 = vmatmul.mubr.bf16.gmra.mrb[4].mxu1 %v606_v23 }
  0x2b   :  { %323 = vmatprep.mubr.bf16.mxu0 %v607_v24  ;;  %355 = vmatprep.mubr.bf16.mxu1 %v609_v25 }
  0x32   :  { %324 = vmatmul.mubr.bf16.gmra.mrb[8].mxu0 %v611_v26  ;;  %356 = vmatmul.mubr.bf16.gmra.mrb[8].mxu1 %v612_v27 }
  0x33   :  { %331 = vmatprep.mubr.bf16.mxu0 %v613_v28  ;;  %363 = vmatprep.mubr.bf16.mxu1 %v615_v29 }
  0x3a   :  { %332 = vmatmul.mubr.bf16.gmra.mrb[12].mxu0 %v617_v30  ;;  %364 = vmatmul.mubr.bf16.gmra.mrb[12].mxu1 %v618_v31 }
  0xf5   :  { %v515_v32 = vpop.f32.mrb[0].mxu0  ;;  %v539_v33 = vpop.f32.mrb[0].mxu1 }
  0xf6   :  { %v516_v34 = vpop.f32.mrb[1].mxu0  ;;  %v540_v36 = vpop.f32.mrb[1].mxu1 }
  0xf7   :  { %v517_v37 = vadd.f32 %v516_v34, %v515_v32  ;;  %v541_v38 = vadd.f32 %v540_v36, %v539_v33  ;;  %v518_v39 = vpop.f32.mrb[2].mxu0  ;;  %v542_v40 = vpop.f32.mrb[2].mxu1 }
  0xf8   :  { %v519_v41 = vpop.f32.mrb[3].mxu0  ;;  %v543_v42 = vpop.f32.mrb[3].mxu1 }
  0xf9   :  { %v430_v43 = vadd.f32 %v517_v37, %v738_v35  ;;  %v438_v44 = vadd.f32 %v541_v38, %v738_v35  ;;  %v520_v45 = vadd.f32 %v519_v41, %v518_v39  ;;  %v544_v46 = vadd.f32 %v543_v42, %v542_v40 }
  0xfb   :  { %446 = vst [vmem:[%s807_s3] sm:$0xff] %v430_v43  ;;  %454 = vst [vmem:[%s807_s3 + $0x40] sm:$0xff] %v438_v44  ;;  %v431_v47 = vadd.f32 %v520_v45, %v738_v35  ;;  %v439_v48 = vadd.f32 %v544_v46, %v738_v35 }
  0xfd   :  { %447 = vst [vmem:[%s807_s3 + $0x8] sm:$0xff] %v431_v47  ;;  %455 = vst [vmem:[%s807_s3 + $0x48] sm:$0xff] %v439_v48  ;;  %v521_v49 = vpop.f32.mrb[4].mxu0  ;;  %v545_v50 = vpop.f32.mrb[4].mxu1 }
  0xfe   :  { %v522_v51 = vpop.f32.mrb[5].mxu0  ;;  %v546_v52 = vpop.f32.mrb[5].mxu1 }
  0xff   :  { %v523_v53 = vadd.f32 %v522_v51, %v521_v49  ;;  %v547_v54 = vadd.f32 %v546_v52, %v545_v50  ;;  %v524_v55 = vpop.f32.mrb[6].mxu0  ;;  %v548_v56 = vpop.f32.mrb[6].mxu1 }
 0x100   :  { %v525_v57 = vpop.f32.mrb[7].mxu0  ;;  %v549_v58 = vpop.f32.mrb[7].mxu1 }
 0x101   :  { %v432_v59 = vadd.f32 %v523_v53, %v738_v35  ;;  %v440_v60 = vadd.f32 %v547_v54, %v738_v35  ;;  %v526_v61 = vadd.f32 %v525_v57, %v524_v55  ;;  %v550_v62 = vadd.f32 %v549_v58, %v548_v56 }
 0x103   :  { %448 = vst [vmem:[%s807_s3 + $0x10] sm:$0xff] %v432_v59  ;;  %456 = vst [vmem:[%s807_s3 + $0x50] sm:$0xff] %v440_v60  ;;  %v433_v63 = vadd.f32 %v526_v61, %v738_v35  ;;  %v441_v0 = vadd.f32 %v550_v62, %v738_v35 }
 0x105   :  { %449 = vst [vmem:[%s807_s3 + $0x18] sm:$0xff] %v433_v63  ;;  %457 = vst [vmem:[%s807_s3 + $0x58] sm:$0xff] %v441_v0  ;;  %v527_v1 = vpop.f32.mrb[8].mxu0  ;;  %v551_v2 = vpop.f32.mrb[8].mxu1 }
 0x106   :  { %v528_v3 = vpop.f32.mrb[9].mxu0  ;;  %v552_v4 = vpop.f32.mrb[9].mxu1 }
 0x107   :  { %v529_v5 = vadd.f32 %v528_v3, %v527_v1  ;;  %v553_v6 = vadd.f32 %v552_v4, %v551_v2  ;;  %v530_v7 = vpop.f32.mrb[10].mxu0  ;;  %v554_v8 = vpop.f32.mrb[10].mxu1 }
 0x108   :  { %v531_v9 = vpop.f32.mrb[11].mxu0  ;;  %v555_v10 = vpop.f32.mrb[11].mxu1 }
 0x109   :  { %v434_v11 = vadd.f32 %v529_v5, %v738_v35  ;;  %v442_v12 = vadd.f32 %v553_v6, %v738_v35  ;;  %v532_v13 = vadd.f32 %v531_v9, %v530_v7  ;;  %v556_v14 = vadd.f32 %v555_v10, %v554_v8 }
 0x10b   :  { %450 = vst [vmem:[%s807_s3 + $0x20] sm:$0xff] %v434_v11  ;;  %458 = vst [vmem:[%s807_s3 + $0x60] sm:$0xff] %v442_v12  ;;  %v435_v15 = vadd.f32 %v532_v13, %v738_v35  ;;  %v443_v16 = vadd.f32 %v556_v14, %v738_v35 }
 0x10d   :  { %451 = vst [vmem:[%s807_s3 + $0x28] sm:$0xff] %v435_v15  ;;  %459 = vst [vmem:[%s807_s3 + $0x68] sm:$0xff] %v443_v16  ;;  %v533_v17 = vpop.f32.mrb[12].mxu0  ;;  %v557_v18 = vpop.f32.mrb[12].mxu1 }
 0x10e   :  { %v534_v19 = vpop.f32.mrb[13].mxu0  ;;  %v558_v20 = vpop.f32.mrb[13].mxu1 }
 0x10f   :  { %v535_v21 = vadd.f32 %v534_v19, %v533_v17  ;;  %v559_v22 = vadd.f32 %v558_v20, %v557_v18  ;;  %v536_v23 = vpop.f32.mrb[14].mxu0  ;;  %v560_v24 = vpop.f32.mrb[14].mxu1 }
 0x110   :  { %v537_v25 = vpop.f32.mrb[15].mxu0  ;;  %v561_v26 = vpop.f32.mrb[15].mxu1 }
 0x111   :  { %v436_v27 = vadd.f32 %v535_v21, %v738_v35  ;;  %v444_v28 = vadd.f32 %v559_v22, %v738_v35  ;;  %v538_v29 = vadd.f32 %v537_v25, %v536_v23  ;;  %v562_v30 = vadd.f32 %v561_v26, %v560_v24 }
 0x113   :  { %452 = vst [vmem:[%s807_s3 + $0x30] sm:$0xff] %v436_v27  ;;  %460 = vst [vmem:[%s807_s3 + $0x70] sm:$0xff] %v444_v28  ;;  %v437_v31 = vadd.f32 %v538_v29, %v738_v35  ;;  %v445_v32 = vadd.f32 %v562_v30, %v738_v35 }
 0x115   :  { %453 = vst [vmem:[%s807_s3 + $0x38] sm:$0xff] %v437_v31  ;;  %461 = vst [vmem:[%s807_s3 + $0x78] sm:$0xff] %v445_v32 }

// kernel: xralefkdo_forward.100
= control target key start
LH: loop header
LB: loop body
LE: loop exit
PB: predicated region body
PF: predicated region fallthrough
CT: control target
= control target key end

     0   :  { %s586_s1 = inlined_call_operand.vmem [shape: bf16[128,128], index: 1, kind: input, shape index: {}]   ;;  %s587_s0 = inlined_call_operand.vmem [shape: bf16[128,128], index: 0, kind: input, shape index: {}]   ;;  %s588_s2 = inlined_call_operand.vmem [shape: f32[1,128], index: 2, kind: input, shape index: {}]   ;;  %s589_s3 = inlined_call_operand.vmem [shape: f32[128,128], index: 3, kind: output, shape index: {}]  }
   0x1   :  { %v451_v0 = vld [vmem:[%s586_s1] sm:$0xff]   ;;  %v452_v1 = vld [vmem:[%s586_s1 + $0x8] sm:$0xff]   ;;  %v453_v2 = vld [vmem:[%s586_s1 + $0x10] sm:$0xff]  }
   0x2   :  { %403 = vmatprep.subr.bf16.mxu0 %v451_v0  ;;  %435 = vmatprep.subr.bf16.mxu1 %v451_v0  ;;  %v454_v3 = vld [vmem:[%s586_s1 + $0x18] sm:$0xff]   ;;  %v459_v4 = vld [vmem:[%s587_s0] sm:$0xff]   ;;  %v456_v7 = vld [vmem:[%s586_s1 + $0x28] sm:$0xff]  }
   0x3   :  { %404 = vmatpush3.bf16.msra.mxu0 %v451_v0  ;;  %443 = vmatpush3.bf16.msra.mxu1 %v451_v0  ;;  %v460_v5 = vld [vmem:[%s587_s0 + $0x20] sm:$0xff]   ;;  %v457_v8 = vld [vmem:[%s586_s1 + $0x30] sm:$0xff]   ;;  %v458_v9 = vld [vmem:[%s586_s1 + $0x38] sm:$0xff]  }
   0x4   :  { %405 = vmatprep.subr.bf16.mxu0 %v452_v1  ;;  %436 = vmatprep.subr.bf16.mxu1 %v452_v1  ;;  %v455_v6 = vld [vmem:[%s586_s1 + $0x20] sm:$0xff]   ;;  %v461_v10 = vld [vmem:[%s587_s0 + $0x8] sm:$0xff]   ;;  %v463_v12 = vld [vmem:[%s587_s0 + $0x10] sm:$0xff]  }
   0x5   :  { %419 = vmatprep.mubr.bf16.mxu0 %v459_v4  ;;  %427 = vmatprep.mubr.bf16.mxu1 %v460_v5  ;;  %v462_v11 = vld [vmem:[%s587_s0 + $0x28] sm:$0xff]   ;;  %v464_v13 = vld [vmem:[%s587_s0 + $0x30] sm:$0xff]   ;;  %v465_v14 = vld [vmem:[%s587_s0 + $0x18] sm:$0xff]  }
   0x6   :  { %v466_v15 = vld [vmem:[%s587_s0 + $0x38] sm:$0xff]   ;;  %v386_v16 = vld [vmem:[%s588_s2] ss:$0 sm:$0xff] }
   0x7   :  { %406 = vmatpush3.bf16.msra.mxu0 %v452_v1  ;;  %444 = vmatpush3.bf16.msra.mxu1 %v452_v1 }
   0x8   :  { %407 = vmatprep.subr.bf16.mxu0 %v453_v2  ;;  %437 = vmatprep.subr.bf16.mxu1 %v453_v2 }
   0xb   :  { %408 = vmatpush3.bf16.msra.mxu0 %v453_v2  ;;  %445 = vmatpush3.bf16.msra.mxu1 %v453_v2 }
   0xc   :  { %409 = vmatprep.subr.bf16.mxu0 %v454_v3  ;;  %438 = vmatprep.subr.bf16.mxu1 %v454_v3 }
   0xf   :  { %410 = vmatpush3.bf16.msra.mxu0 %v454_v3  ;;  %446 = vmatpush3.bf16.msra.mxu1 %v454_v3 }
  0x10   :  { %411 = vmatprep.subr.bf16.mxu0 %v455_v6  ;;  %439 = vmatprep.subr.bf16.mxu1 %v455_v6 }
  0x13   :  { %412 = vmatpush3.bf16.msra.mxu0 %v455_v6  ;;  %447 = vmatpush3.bf16.msra.mxu1 %v455_v6 }
  0x14   :  { %413 = vmatprep.subr.bf16.mxu0 %v456_v7  ;;  %440 = vmatprep.subr.bf16.mxu1 %v456_v7 }
  0x17   :  { %414 = vmatpush3.bf16.msra.mxu0 %v456_v7  ;;  %448 = vmatpush3.bf16.msra.mxu1 %v456_v7 }
  0x18   :  { %415 = vmatprep.subr.bf16.mxu0 %v457_v8  ;;  %441 = vmatprep.subr.bf16.mxu1 %v457_v8 }
  0x1b   :  { %416 = vmatpush3.bf16.msra.mxu0 %v457_v8  ;;  %449 = vmatpush3.bf16.msra.mxu1 %v457_v8 }
  0x1c   :  { %417 = vmatprep.subr.bf16.mxu0 %v458_v9  ;;  %442 = vmatprep.subr.bf16.mxu1 %v458_v9 }
  0x1f   :  { %418 = vmatpush3.bf16.msra.mxu0 %v458_v9  ;;  %450 = vmatpush3.bf16.msra.mxu1 %v458_v9 }
  0x22   :  { %420 = vmatmul.mubr.bf16.vlgmr.msra.gmra.mrb[0].mxu0 %v461_v10  ;;  %428 = vmatmul.mubr.bf16.vlgmr.msra.gmra.mrb[0].mxu1 %v462_v11 }
  0x23   :  { %423 = vmatprep.mubr.bf16.mxu0 %v463_v12  ;;  %431 = vmatprep.mubr.bf16.mxu1 %v464_v13 }
  0x2a   :  { %424 = vmatmul.mubr.bf16.gmra.mrb[4].mxu0 %v465_v14  ;;  %432 = vmatmul.mubr.bf16.gmra.mrb[4].mxu1 %v466_v15 }
  0xf5   :  { %v421_v17 = vpop.f32.mrb[0].mxu0  ;;  %v429_v18 = vpop.f32.mrb[0].mxu1 }
  0xf6   :  { %v336_v19 = vadd.f32 %v421_v17, %v386_v16  ;;  %v344_v20 = vadd.f32 %v429_v18, %v386_v16  ;;  %v213_v21 = vpop.f32.mrb[1].mxu0  ;;  %v245_v22 = vpop.f32.mrb[1].mxu1 }
  0xf7   :  { %v334_v23 = vadd.f32 %v386_v16, %v213_v21  ;;  %v342_v24 = vadd.f32 %v386_v16, %v245_v22  ;;  %v422_v25 = vpop.f32.mrb[2].mxu0  ;;  %v430_v26 = vpop.f32.mrb[2].mxu1 }
  0xf8   :  { %352 = vst [vmem:[%s589_s3 + $0x10] sm:$0xff] %v336_v19  ;;  %360 = vst [vmem:[%s589_s3 + $0x50] sm:$0xff] %v344_v20  ;;  %v337_v27 = vadd.f32 %v422_v25, %v386_v16  ;;  %v345_v28 = vadd.f32 %v430_v26, %v386_v16  ;;  %v216_v29 = vpop.f32.mrb[3].mxu0  ;;  %v248_v30 = vpop.f32.mrb[3].mxu1 }
  0xf9   :  { %350 = vst [vmem:[%s589_s3] sm:$0xff] %v334_v23  ;;  %358 = vst [vmem:[%s589_s3 + $0x40] sm:$0xff] %v342_v24  ;;  %v335_v31 = vadd.f32 %v386_v16, %v216_v29  ;;  %v343_v32 = vadd.f32 %v386_v16, %v248_v30 }
  0xfa   :  { %353 = vst [vmem:[%s589_s3 + $0x18] sm:$0xff] %v337_v27  ;;  %361 = vst [vmem:[%s589_s3 + $0x58] sm:$0xff] %v345_v28 }
  0xfb   :  { %351 = vst [vmem:[%s589_s3 + $0x8] sm:$0xff] %v335_v31  ;;  %359 = vst [vmem:[%s589_s3 + $0x48] sm:$0xff] %v343_v32 }
  0xfd   :  { %v425_v33 = vpop.f32.mrb[4].mxu0  ;;  %v433_v34 = vpop.f32.mrb[4].mxu1 }
  0xfe   :  { %v340_v35 = vadd.f32 %v425_v33, %v386_v16  ;;  %v348_v36 = vadd.f32 %v433_v34, %v386_v16  ;;  %v229_v37 = vpop.f32.mrb[5].mxu0  ;;  %v261_v38 = vpop.f32.mrb[5].mxu1 }
  0xff   :  { %v338_v39 = vadd.f32 %v386_v16, %v229_v37  ;;  %v346_v40 = vadd.f32 %v386_v16, %v261_v38  ;;  %v426_v41 = vpop.f32.mrb[6].mxu0  ;;  %v434_v42 = vpop.f32.mrb[6].mxu1 }
 0x100   :  { %356 = vst [vmem:[%s589_s3 + $0x30] sm:$0xff] %v340_v35  ;;  %364 = vst [vmem:[%s589_s3 + $0x70] sm:$0xff] %v348_v36  ;;  %v341_v43 = vadd.f32 %v426_v41, %v386_v16  ;;  %v349_v44 = vadd.f32 %v434_v42, %v386_v16  ;;  %v232_v45 = vpop.f32.mrb[7].mxu0  ;;  %v264_v46 = vpop.f32.mrb[7].mxu1 }
 0x101   :  { %354 = vst [vmem:[%s589_s3 + $0x20] sm:$0xff] %v338_v39  ;;  %362 = vst [vmem:[%s589_s3 + $0x60] sm:$0xff] %v346_v40  ;;  %v339_v47 = vadd.f32 %v386_v16, %v232_v45  ;;  %v347_v48 = vadd.f32 %v386_v16, %v264_v46 }
 0x102   :  { %357 = vst [vmem:[%s589_s3 + $0x38] sm:$0xff] %v341_v43  ;;  %365 = vst [vmem:[%s589_s3 + $0x78] sm:$0xff] %v349_v44 }
 0x103   :  { %355 = vst [vmem:[%s589_s3 + $0x28] sm:$0xff] %v339_v47  ;;  %363 = vst [vmem:[%s589_s3 + $0x68] sm:$0xff] %v347_v48 }

// kernel: xralefkdo_forward.103
= control target key start
LH: loop header
LB: loop body
LE: loop exit
PB: predicated region body
PF: predicated region fallthrough
CT: control target
= control target key end

     0   :  { %s1341_s1 = inlined_call_operand.vmem [shape: bf16[512,128], index: 1, kind: input, shape index: {}]   ;;  %s1342_s0 = inlined_call_operand.vmem [shape: bf16[128,512], index: 0, kind: input, shape index: {}]   ;;  %s1343_s2 = inlined_call_operand.vmem [shape: f32[1,128], index: 2, kind: input, shape index: {}]   ;;  %s1344_s3 = inlined_call_operand.vmem [shape: f32[128,128], index: 3, kind: output, shape index: {}]  }
   0x1   :  { %v980_v0 = vld [vmem:[%s1341_s1 + $0x40] sm:$0xff]   ;;  %v984_v4 = vld [vmem:[%s1341_s1 + $0x48] sm:$0xff]   ;;  %v988_v8 = vld [vmem:[%s1341_s1 + $0x50] sm:$0xff]  }
   0x2   :  { %v981_v1 = vld [vmem:[%s1341_s1 + $0xc0] sm:$0xff]   ;;  %852 = vmatprep.subr.bf16.mxu0 %v980_v0  ;;  %v985_v5 = vld [vmem:[%s1341_s1 + $0xc8] sm:$0xff]   ;;  %v989_v9 = vld [vmem:[%s1341_s1 + $0xd0] sm:$0xff]  }
   0x3   :  { %v982_v2 = vld [vmem:[%s1341_s1] sm:$0xff]   ;;  %916 = vmatprep.subr.bf16.mxu1 %v981_v1  ;;  %v986_v6 = vld [vmem:[%s1341_s1 + $0x8] sm:$0xff]   ;;  %v990_v10 = vld [vmem:[%s1341_s1 + $0x10] sm:$0xff]  }
   0x4   :  { %v983_v3 = vld [vmem:[%s1341_s1 + $0x80] sm:$0xff]   ;;  %853 = vmatpush3.bf16.msra.mxu0 %v982_v2  ;;  %v987_v7 = vld [vmem:[%s1341_s1 + $0x88] sm:$0xff]   ;;  %v991_v11 = vld [vmem:[%s1341_s1 + $0x90] sm:$0xff]  }
   0x5   :  { %917 = vmatpush3.bf16.msra.mxu1 %v983_v3  ;;  %854 = vmatprep.subr.bf16.mxu0 %v984_v4  ;;  %v992_v12 = vld [vmem:[%s1341_s1 + $0x58] sm:$0xff]   ;;  %v996_v16 = vld [vmem:[%s1341_s1 + $0x60] sm:$0xff]   ;;  %v1000_v20 = vld [vmem:[%s1341_s1 + $0x68] sm:$0xff]  }
   0x6   :  { %918 = vmatprep.subr.bf16.mxu1 %v985_v5  ;;  %v993_v13 = vld [vmem:[%s1341_s1 + $0xd8] sm:$0xff]   ;;  %v997_v17 = vld [vmem:[%s1341_s1 + $0xe0] sm:$0xff]   ;;  %v1001_v21 = vld [vmem:[%s1341_s1 + $0xe8] sm:$0xff]  }
   0x7   :  { %v994_v14 = vld [vmem:[%s1341_s1 + $0x18] sm:$0xff]   ;;  %v998_v18 = vld [vmem:[%s1341_s1 + $0x20] sm:$0xff]   ;;  %v1002_v22 = vld [vmem:[%s1341_s1 + $0x28] sm:$0xff]  }
   0x8   :  { %855 = vmatpush3.bf16.msra.mxu0 %v986_v6  ;;  %v995_v15 = vld [vmem:[%s1341_s1 + $0x98] sm:$0xff]   ;;  %v999_v19 = vld [vmem:[%s1341_s1 + $0xa0] sm:$0xff]   ;;  %v1003_v23 = vld [vmem:[%s1341_s1 + $0xa8] sm:$0xff]  }
   0x9   :  { %919 = vmatpush3.bf16.msra.mxu1 %v987_v7  ;;  %856 = vmatprep.subr.bf16.mxu0 %v988_v8  ;;  %v1004_v24 = vld [vmem:[%s1341_s1 + $0x70] sm:$0xff]   ;;  %v1008_v28 = vld [vmem:[%s1341_s1 + $0x78] sm:$0xff]  }
   0xa   :  { %920 = vmatprep.subr.bf16.mxu1 %v989_v9  ;;  %v1005_v25 = vld [vmem:[%s1341_s1 + $0xf0] sm:$0xff]   ;;  %v1009_v29 = vld [vmem:[%s1341_s1 + $0xf8] sm:$0xff]   ;;  %v1275_v9 = vld [vmem:[%s1343_s2] ss:$0 sm:$0xff] }
   0xb   :  { %v1006_v26 = vld [vmem:[%s1341_s1 + $0x30] sm:$0xff]   ;;  %v1010_v30 = vld [vmem:[%s1341_s1 + $0x38] sm:$0xff]  }
   0xc   :  { %857 = vmatpush3.bf16.msra.mxu0 %v990_v10  ;;  %v1007_v27 = vld [vmem:[%s1341_s1 + $0xb0] sm:$0xff]   ;;  %v1011_v31 = vld [vmem:[%s1341_s1 + $0xb8] sm:$0xff]  }
   0xd   :  { %921 = vmatpush3.bf16.msra.mxu1 %v991_v11  ;;  %858 = vmatprep.subr.bf16.mxu0 %v992_v12  ;;  %v1012_v32 = vld [vmem:[%s1342_s0] ss:$16 sps:$4 sm:$0xff]   ;;  %v1014_v33 = vld [vmem:[%s1342_s0 + $0x4] ss:$16 sps:$4 sm:$0xff]   ;;  %v1015_v34 = vld [vmem:[%s1342_s0 + $0x8] ss:$16 sps:$4 sm:$0xff]  }
   0xe   :  { %922 = vmatprep.subr.bf16.mxu1 %v993_v13  ;;  %v1017_v35 = vld [vmem:[%s1342_s0 + $0xc] ss:$16 sps:$4 sm:$0xff]   ;;  %531 = vmatprep.mubr.bf16.mxu0 %v1014_v33  ;;  %v1018_v36 = vld [vmem:[%s1342_s0 + $0x24] ss:$16 sps:$4 sm:$0xff]   ;;  %v1022_v38 = vld [vmem:[%s1342_s0 + $0x20] ss:$16 sps:$4 sm:$0xff]  }
   0xf   :  { %628 = vmatprep.mubr.bf16.mxu1 %v1017_v35  ;;  %v1020_v37 = vld [vmem:[%s1342_s0 + $0x2c] ss:$16 sps:$4 sm:$0xff]   ;;  %v1023_v39 = vld [vmem:[%s1342_s0 + $0x28] ss:$16 sps:$4 sm:$0xff]   ;;  %v1024_v40 = vld [vmem:[%s1342_s0 + $0x44] ss:$16 sps:$4 sm:$0xff]  }
  0x10   :  { %859 = vmatpush3.bf16.msra.mxu0 %v994_v14  ;;  %v1026_v41 = vld [vmem:[%s1342_s0 + $0x4c] ss:$16 sps:$4 sm:$0xff]   ;;  %v1028_v42 = vld [vmem:[%s1342_s0 + $0x40] ss:$16 sps:$4 sm:$0xff]   ;;  %v1029_v43 = vld [vmem:[%s1342_s0 + $0x48] ss:$16 sps:$4 sm:$0xff]  }
  0x11   :  { %923 = vmatpush3.bf16.msra.mxu1 %v995_v15  ;;  %860 = vmatprep.subr.bf16.mxu0 %v996_v16  ;;  %v1030_v44 = vld [vmem:[%s1342_s0 + $0x64] ss:$16 sps:$4 sm:$0xff]   ;;  %v1032_v45 = vld [vmem:[%s1342_s0 + $0x6c] ss:$16 sps:$4 sm:$0xff]   ;;  %v1034_v46 = vld [vmem:[%s1342_s0 + $0x60] ss:$16 sps:$4 sm:$0xff]  }
  0x12   :  { %924 = vmatprep.subr.bf16.mxu1 %v997_v17  ;;  %v1035_v47 = vld [vmem:[%s1342_s0 + $0x68] ss:$16 sps:$4 sm:$0xff]   ;;  %v1036_v48 = vld [vmem:[%s1342_s0 + $0x84] ss:$16 sps:$4 sm:$0xff]   ;;  %v1038_v49 = vld [vmem:[%s1342_s0 + $0x8c] ss:$16 sps:$4 sm:$0xff]  }
  0x13   :  { %v1040_v50 = vld [vmem:[%s1342_s0 + $0x80] ss:$16 sps:$4 sm:$0xff]   ;;  %v1041_v51 = vld [vmem:[%s1342_s0 + $0x88] ss:$16 sps:$4 sm:$0xff]   ;;  %v1042_v52 = vld [vmem:[%s1342_s0 + $0xa4] ss:$16 sps:$4 sm:$0xff]  }
  0x14   :  { %861 = vmatpush3.bf16.msra.mxu0 %v998_v18  ;;  %v1044_v53 = vld [vmem:[%s1342_s0 + $0xac] ss:$16 sps:$4 sm:$0xff]   ;;  %v1046_v54 = vld [vmem:[%s1342_s0 + $0xa0] ss:$16 sps:$4 sm:$0xff]   ;;  %v1047_v55 = vld [vmem:[%s1342_s0 + $0xa8] ss:$16 sps:$4 sm:$0xff]  }
  0x15   :  { %925 = vmatpush3.bf16.msra.mxu1 %v999_v19  ;;  %862 = vmatprep.subr.bf16.mxu0 %v1000_v20  ;;  %v1048_v56 = vld [vmem:[%s1342_s0 + $0xc4] ss:$16 sps:$4 sm:$0xff]   ;;  %v1050_v57 = vld [vmem:[%s1342_s0 + $0xcc] ss:$16 sps:$4 sm:$0xff]   ;;  %v1052_v58 = vld [vmem:[%s1342_s0 + $0xc0] ss:$16 sps:$4 sm:$0xff]  }
  0x16   :  { %926 = vmatprep.subr.bf16.mxu1 %v1001_v21  ;;  %v1053_v59 = vld [vmem:[%s1342_s0 + $0xc8] ss:$16 sps:$4 sm:$0xff]   ;;  %v1054_v60 = vld [vmem:[%s1342_s0 + $0xe4] ss:$16 sps:$4 sm:$0xff]   ;;  %v1056_v61 = vld [vmem:[%s1342_s0 + $0xec] ss:$16 sps:$4 sm:$0xff]  }
  0x17   :  { %v1058_v62 = vld [vmem:[%s1342_s0 + $0xe0] ss:$16 sps:$4 sm:$0xff]   ;;  %v1059_v63 = vld [vmem:[%s1342_s0 + $0xe8] ss:$16 sps:$4 sm:$0xff]  }
  0x18   :  { %863 = vmatpush3.bf16.msra.mxu0 %v1002_v22 }
  0x19   :  { %927 = vmatpush3.bf16.msra.mxu1 %v1003_v23  ;;  %864 = vmatprep.subr.bf16.mxu0 %v1004_v24 }
  0x1a   :  { %928 = vmatprep.subr.bf16.mxu1 %v1005_v25 }
  0x1c   :  { %865 = vmatpush3.bf16.msra.mxu0 %v1006_v26 }
  0x1d   :  { %929 = vmatpush3.bf16.msra.mxu1 %v1007_v27  ;;  %866 = vmatprep.subr.bf16.mxu0 %v1008_v28 }
  0x1e   :  { %930 = vmatprep.subr.bf16.mxu1 %v1009_v29 }
  0x20   :  { %867 = vmatpush3.bf16.msra.mxu0 %v1010_v30 }
  0x21   :  { %931 = vmatpush3.bf16.msra.mxu1 %v1011_v31 }
  0x23   :  { %532 = vmatmul.mubr.bf16.vlgmr.msra.gmra.mrb[0].mxu0 %v1012_v32 }
  0x24   :  { %629 = vmatmul.mubr.bf16.vlgmr.msra.gmra.mrb[0].mxu1 %v1015_v34  ;;  %539 = vmatprep.mubr.bf16.mxu0 %v1018_v36 }
  0x25   :  { %636 = vmatprep.mubr.bf16.mxu1 %v1020_v37 }
  0x2b   :  { %540 = vmatmul.mubr.bf16.gmra.mrb[4].mxu0 %v1022_v38 }
  0x2c   :  { %637 = vmatmul.mubr.bf16.gmra.mrb[4].mxu1 %v1023_v39  ;;  %547 = vmatprep.mubr.bf16.mxu0 %v1024_v40 }
  0x2d   :  { %644 = vmatprep.mubr.bf16.mxu1 %v1026_v41 }
  0x33   :  { %548 = vmatmul.mubr.bf16.gmra.mrb[8].mxu0 %v1028_v42 }
  0x34   :  { %645 = vmatmul.mubr.bf16.gmra.mrb[8].mxu1 %v1029_v43  ;;  %555 = vmatprep.mubr.bf16.mxu0 %v1030_v44 }
  0x35   :  { %652 = vmatprep.mubr.bf16.mxu1 %v1032_v45 }
  0x3b   :  { %556 = vmatmul.mubr.bf16.gmra.mrb[12].mxu0 %v1034_v46 }
  0x3c   :  { %653 = vmatmul.mubr.bf16.gmra.mrb[12].mxu1 %v1035_v47  ;;  %563 = vmatprep.mubr.bf16.mxu0 %v1036_v48 }
  0x3d   :  { %660 = vmatprep.mubr.bf16.mxu1 %v1038_v49 }
  0x43   :  { %564 = vmatmul.mubr.bf16.gmra.mrb[16].mxu0 %v1040_v50 }
  0x44   :  { %661 = vmatmul.mubr.bf16.gmra.mrb[16].mxu1 %v1041_v51  ;;  %571 = vmatprep.mubr.bf16.mxu0 %v1042_v52 }
  0x45   :  { %668 = vmatprep.mubr.bf16.mxu1 %v1044_v53 }
  0x4b   :  { %572 = vmatmul.mubr.bf16.gmra.mrb[20].mxu0 %v1046_v54 }
  0x4c   :  { %669 = vmatmul.mubr.bf16.gmra.mrb[20].mxu1 %v1047_v55  ;;  %579 = vmatprep.mubr.bf16.mxu0 %v1048_v56 }
  0x4d   :  { %676 = vmatprep.mubr.bf16.mxu1 %v1050_v57 }
  0x53   :  { %580 = vmatmul.mubr.bf16.gmra.mrb[24].mxu0 %v1052_v58 }
  0x54   :  { %677 = vmatmul.mubr.bf16.gmra.mrb[24].mxu1 %v1053_v59  ;;  %587 = vmatprep.mubr.bf16.mxu0 %v1054_v60 }
  0x55   :  { %684 = vmatprep.mubr.bf16.mxu1 %v1056_v61 }
  0x5b   :  { %588 = vmatmul.mubr.bf16.gmra.mrb[28].mxu0 %v1058_v62 }
  0x5c   :  { %685 = vmatmul.mubr.bf16.gmra.mrb[28].mxu1 %v1059_v63 }
  0xf6   :  { %v868_v0 = vpop.f32.mrb[0].mxu0 }
  0xf7   :  { %v932_v1 = vpop.f32.mrb[0].mxu1  ;;  %v869_v2 = vpop.f32.mrb[1].mxu0 }
  0xf8   :  { %v870_v3 = vadd.f32 %v869_v2, %v868_v0  ;;  %v933_v4 = vpop.f32.mrb[1].mxu1  ;;  %v871_v5 = vpop.f32.mrb[2].mxu0 }
  0xf9   :  { %v934_v6 = vadd.f32 %v933_v4, %v932_v1  ;;  %v935_v7 = vpop.f32.mrb[2].mxu1  ;;  %v872_v8 = vpop.f32.mrb[3].mxu0 }
  0xfa   :  { %v873_v10 = vadd.f32 %v872_v8, %v871_v5  ;;  %v936_v11 = vpop.f32.mrb[3].mxu1 }
  0xfb   :  { %v631_v12 = vadd.f32 %v934_v6, %v870_v3  ;;  %v937_v13 = vadd.f32 %v936_v11, %v935_v7 }
  0xfd   :  { %v751_v14 = vadd.f32 %v1275_v9, %v631_v12  ;;  %v634_v15 = vadd.f32 %v937_v13, %v873_v10 }
  0xfe   :  { %v874_v16 = vpop.f32.mrb[4].mxu0 }
  0xff   :  { %767 = vst [vmem:[%s1344_s3] sm:$0xff] %v751_v14  ;;  %v752_v17 = vadd.f32 %v1275_v9, %v634_v15  ;;  %v938_v18 = vpop.f32.mrb[4].mxu1  ;;  %v875_v19 = vpop.f32.mrb[5].mxu0 }
 0x100   :  { %v876_v20 = vadd.f32 %v875_v19, %v874_v16  ;;  %v939_v21 = vpop.f32.mrb[5].mxu1  ;;  %v877_v22 = vpop.f32.mrb[6].mxu0 }
 0x101   :  { %768 = vst [vmem:[%s1344_s3 + $0x8] sm:$0xff] %v752_v17  ;;  %v940_v23 = vadd.f32 %v939_v21, %v938_v18  ;;  %v941_v24 = vpop.f32.mrb[6].mxu1  ;;  %v878_v25 = vpop.f32.mrb[7].mxu0 }
 0x102   :  { %v879_v26 = vadd.f32 %v878_v25, %v877_v22  ;;  %v942_v27 = vpop.f32.mrb[7].mxu1 }
 0x103   :  { %v639_v28 = vadd.f32 %v940_v23, %v876_v20  ;;  %v943_v29 = vadd.f32 %v942_v27, %v941_v24 }
 0x105   :  { %v753_v30 = vadd.f32 %v1275_v9, %v639_v28  ;;  %v642_v31 = vadd.f32 %v943_v29, %v879_v26 }
 0x106   :  { %v880_v32 = vpop.f32.mrb[8].mxu0 }
 0x107   :  { %769 = vst [vmem:[%s1344_s3 + $0x10] sm:$0xff] %v753_v30  ;;  %v754_v33 = vadd.f32 %v1275_v9, %v642_v31  ;;  %v944_v34 = vpop.f32.mrb[8].mxu1  ;;  %v881_v35 = vpop.f32.mrb[9].mxu0 }
 0x108   :  { %v882_v36 = vadd.f32 %v881_v35, %v880_v32  ;;  %v945_v37 = vpop.f32.mrb[9].mxu1  ;;  %v883_v38 = vpop.f32.mrb[10].mxu0 }
 0x109   :  { %770 = vst [vmem:[%s1344_s3 + $0x18] sm:$0xff] %v754_v33  ;;  %v946_v39 = vadd.f32 %v945_v37, %v944_v34  ;;  %v947_v40 = vpop.f32.mrb[10].mxu1  ;;  %v884_v41 = vpop.f32.mrb[11].mxu0 }
 0x10a   :  { %v885_v42 = vadd.f32 %v884_v41, %v883_v38  ;;  %v948_v43 = vpop.f32.mrb[11].mxu1 }
 0x10b   :  { %v647_v44 = vadd.f32 %v946_v39, %v882_v36  ;;  %v949_v45 = vadd.f32 %v948_v43, %v947_v40 }
 0x10d   :  { %v755_v46 = vadd.f32 %v1275_v9, %v647_v44  ;;  %v650_v47 = vadd.f32 %v949_v45, %v885_v42 }
 0x10e   :  { %v886_v48 = vpop.f32.mrb[12].mxu0 }
 0x10f   :  { %771 = vst [vmem:[%s1344_s3 + $0x20] sm:$0xff] %v755_v46  ;;  %v756_v49 = vadd.f32 %v1275_v9, %v650_v47  ;;  %v950_v50 = vpop.f32.mrb[12].mxu1  ;;  %v887_v51 = vpop.f32.mrb[13].mxu0 }
 0x110   :  { %v888_v52 = vadd.f32 %v887_v51, %v886_v48  ;;  %v951_v53 = vpop.f32.mrb[13].mxu1  ;;  %v889_v54 = vpop.f32.mrb[14].mxu0 }
 0x111   :  { %772 = vst [vmem:[%s1344_s3 + $0x28] sm:$0xff] %v756_v49  ;;  %v952_v55 = vadd.f32 %v951_v53, %v950_v50  ;;  %v953_v56 = vpop.f32.mrb[14].mxu1  ;;  %v890_v57 = vpop.f32.mrb[15].mxu0 }
 0x112   :  { %v891_v58 = vadd.f32 %v890_v57, %v889_v54  ;;  %v954_v59 = vpop.f32.mrb[15].mxu1 }
 0x113   :  { %v655_v60 = vadd.f32 %v952_v55, %v888_v52  ;;  %v955_v61 = vadd.f32 %v954_v59, %v953_v56 }
 0x115   :  { %v757_v62 = vadd.f32 %v1275_v9, %v655_v60  ;;  %v658_v63 = vadd.f32 %v955_v61, %v891_v58 }
 0x116   :  { %v892_v0 = vpop.f32.mrb[16].mxu0 }
 0x117   :  { %773 = vst [vmem:[%s1344_s3 + $0x30] sm:$0xff] %v757_v62  ;;  %v758_v1 = vadd.f32 %v1275_v9, %v658_v63  ;;  %v956_v2 = vpop.f32.mrb[16].mxu1  ;;  %v893_v3 = vpop.f32.mrb[17].mxu0 }
 0x118   :  { %v894_v4 = vadd.f32 %v893_v3, %v892_v0  ;;  %v957_v5 = vpop.f32.mrb[17].mxu1  ;;  %v895_v6 = vpop.f32.mrb[18].mxu0 }
 0x119   :  { %774 = vst [vmem:[%s1344_s3 + $0x38] sm:$0xff] %v758_v1  ;;  %v958_v7 = vadd.f32 %v957_v5, %v956_v2  ;;  %v959_v8 = vpop.f32.mrb[18].mxu1  ;;  %v896_v10 = vpop.f32.mrb[19].mxu0 }
 0x11a   :  { %v897_v11 = vadd.f32 %v896_v10, %v895_v6  ;;  %v960_v12 = vpop.f32.mrb[19].mxu1 }
 0x11b   :  { %v663_v13 = vadd.f32 %v958_v7, %v894_v4  ;;  %v961_v14 = vadd.f32 %v960_v12, %v959_v8 }
 0x11d   :  { %v759_v15 = vadd.f32 %v1275_v9, %v663_v13  ;;  %v666_v16 = vadd.f32 %v961_v14, %v897_v11 }
 0x11e   :  { %v898_v17 = vpop.f32.mrb[20].mxu0 }
 0x11f   :  { %775 = vst [vmem:[%s1344_s3 + $0x40] sm:$0xff] %v759_v15  ;;  %v760_v18 = vadd.f32 %v1275_v9, %v666_v16  ;;  %v962_v19 = vpop.f32.mrb[20].mxu1  ;;  %v899_v20 = vpop.f32.mrb[21].mxu0 }
 0x120   :  { %v900_v21 = vadd.f32 %v899_v20, %v898_v17  ;;  %v963_v22 = vpop.f32.mrb[21].mxu1  ;;  %v901_v23 = vpop.f32.mrb[22].mxu0 }
 0x121   :  { %776 = vst [vmem:[%s1344_s3 + $0x48] sm:$0xff] %v760_v18  ;;  %v964_v24 = vadd.f32 %v963_v22, %v962_v19  ;;  %v965_v25 = vpop.f32.mrb[22].mxu1  ;;  %v902_v26 = vpop.f32.mrb[23].mxu0 }
 0x122   :  { %v903_v27 = vadd.f32 %v902_v26, %v901_v23  ;;  %v966_v28 = vpop.f32.mrb[23].mxu1 }
 0x123   :  { %v671_v29 = vadd.f32 %v964_v24, %v900_v21  ;;  %v967_v30 = vadd.f32 %v966_v28, %v965_v25 }
 0x125   :  { %v761_v31 = vadd.f32 %v1275_v9, %v671_v29  ;;  %v674_v32 = vadd.f32 %v967_v30, %v903_v27 }
 0x126   :  { %v904_v33 = vpop.f32.mrb[24].mxu0 }
 0x127   :  { %777 = vst [vmem:[%s1344_s3 + $0x50] sm:$0xff] %v761_v31  ;;  %v762_v34 = vadd.f32 %v1275_v9, %v674_v32  ;;  %v968_v35 = vpop.f32.mrb[24].mxu1  ;;  %v905_v36 = vpop.f32.mrb[25].mxu0 }
 0x128   :  { %v906_v37 = vadd.f32 %v905_v36, %v904_v33  ;;  %v969_v38 = vpop.f32.mrb[25].mxu1  ;;  %v907_v39 = vpop.f32.mrb[26].mxu0 }
 0x129   :  { %778 = vst [vmem:[%s1344_s3 + $0x58] sm:$0xff] %v762_v34  ;;  %v970_v40 = vadd.f32 %v969_v38, %v968_v35  ;;  %v971_v41 = vpop.f32.mrb[26].mxu1  ;;  %v908_v42 = vpop.f32.mrb[27].mxu0 }
 0x12a   :  { %v909_v43 = vadd.f32 %v908_v42, %v907_v39  ;;  %v972_v44 = vpop.f32.mrb[27].mxu1 }
 0x12b   :  { %v679_v45 = vadd.f32 %v970_v40, %v906_v37  ;;  %v973_v46 = vadd.f32 %v972_v44, %v971_v41 }
 0x12d   :  { %v763_v47 = vadd.f32 %v1275_v9, %v679_v45  ;;  %v682_v48 = vadd.f32 %v973_v46, %v909_v43 }
 0x12e   :  { %v910_v49 = vpop.f32.mrb[28].mxu0 }
 0x12f   :  { %779 = vst [vmem:[%s1344_s3 + $0x60] sm:$0xff] %v763_v47  ;;  %v764_v50 = vadd.f32 %v1275_v9, %v682_v48  ;;  %v974_v51 = vpop.f32.mrb[28].mxu1  ;;  %v911_v52 = vpop.f32.mrb[29].mxu0 }
 0x130   :  { %v912_v53 = vadd.f32 %v911_v52, %v910_v49  ;;  %v975_v54 = vpop.f32.mrb[29].mxu1  ;;  %v913_v55 = vpop.f32.mrb[30].mxu0 }
 0x131   :  { %780 = vst [vmem:[%s1344_s3 + $0x68] sm:$0xff] %v764_v50  ;;  %v976_v56 = vadd.f32 %v975_v54, %v974_v51  ;;  %v977_v57 = vpop.f32.mrb[30].mxu1  ;;  %v914_v58 = vpop.f32.mrb[31].mxu0 }
 0x132   :  { %v915_v59 = vadd.f32 %v914_v58, %v913_v55  ;;  %v978_v60 = vpop.f32.mrb[31].mxu1 }
 0x133   :  { %v687_v61 = vadd.f32 %v976_v56, %v912_v53  ;;  %v979_v62 = vadd.f32 %v978_v60, %v977_v57 }
 0x135   :  { %v765_v63 = vadd.f32 %v1275_v9, %v687_v61  ;;  %v690_v0 = vadd.f32 %v979_v62, %v915_v59 }
 0x137   :  { %781 = vst [vmem:[%s1344_s3 + $0x70] sm:$0xff] %v765_v63  ;;  %v766_v1 = vadd.f32 %v1275_v9, %v690_v0 }
 0x139   :  { %782 = vst [vmem:[%s1344_s3 + $0x78] sm:$0xff] %v766_v1 }

// kernel: xralefkdo_forward.105
= control target key start
LH: loop header
LB: loop body
LE: loop exit
PB: predicated region body
PF: predicated region fallthrough
CT: control target
= control target key end

     0   :  { %s2255_s12 = smov 0   ;;  %s2257_s13 = smov 0   ;;  %s2823_s0 = inlined_call_operand.vmem [shape: bf16[512,3200], index: 0, kind: input, shape index: {}]   ;;  %s2824_s1 = inlined_call_operand.vmem [shape: bf16[3200,128], index: 1, kind: input, shape index: {}]   ;;  %s2825_s2 = inlined_call_operand.vmem [shape: f32[1,128], index: 2, kind: input, shape index: {}]   ;;  %s2826_s3 = inlined_call_operand.vmem [shape: f32[512,128], index: 3, kind: output, shape index: {}]  }
   0x1   :  { %s2259_s14 = smov 0   ;;  %s2261_s15 = smov 0  }
   0x2   :  { %s2263_s16 = smov 0  }
   0x3 LB: > { %s25_s17 = sadd.s32 1, %s2228_s15  ;;  %p48_p1 = scmp.ne.s32.totalorder %s2220_s13, %s2216_s12  ;;  %s2232_s16 = sphi %s2263_s16, %s13_s16   ;;  %s2228_s15 = sphi %s2261_s15, %s2830_s15   ;;  %s2224_s14 = sphi %s2259_s14, %s2829_s14   ;;  %s2220_s13 = sphi %s2257_s13, %s2828_s13   ;;  %s2216_s12 = sphi %s2255_s12, %s2827_s12  }
   0x4   : > { %p26_p0 = scmp.ge.s32.totalorder %s25_s17, 25  ;;  %p49_p2 = scmp.eq.s32.totalorder %s2232_s16, 0 }
   0x5   : > { %s41_s19 = sadd.s32 1, %s2220_s13  ;;  %p1795_p5 = scmp.ge.s32.totalorder %s2232_s16, 25 }
   0x6   : > { %s2832_s17 = smov (%p26_p0, %s25_s17), 0  ;;  %p50_p3 = por %p49_p2, %p48_p1 }
   0x7   : > { %s37_s18 = ssub.s32 %s2228_s15, %s2832_s17  ;;  %162 = sbr.rel (%p1795_p5) target bundleno = 60 (0x3c), region = 20 }
   0x8   : > { %p39_p4 = scmp.eq.s32.totalorder %s37_s18, 0 }
   0xa   : > { %s2290_s20 = scalar_select %p39_p4, %s2220_s13, %s41_s19  }
   0xe   : > { %165 = sbr.rel (!%p50_p3) target bundleno = 60 (0x3c), region = 24  ;;  %s167_s21 = sand.u32 (%p50_p3), 1, %s2220_s13  }
   0xf   : > { %s1797_s22 = sshll.u32 (%p50_p3), %s2228_s15, 2  ;;  %s1796_s23 = sshll.u32 (%p50_p3), %s167_s21, 8 }
  0x10   : > { %s2298_s26 = scalar_lea.vmem (%p50_p3), %s2823_s0, %s1797_s22  ;;  %s2302_s27 = scalar_lea.vmem (%p50_p3), [#allocation3], %s1796_s23 }
  0x11   : > { %v190_v0 = vld [vmem:[%s2298_s26] sm:$0xf] (%p50_p3)  ;;  %v192_v1 = vld [vmem:[%s2298_s26 + $0x64] sm:$0xf] (%p50_p3)  ;;  %v194_v2 = vld [vmem:[%s2298_s26 + $0xc8] sm:$0xf] (%p50_p3) }
  0x12   : > { %191 = vst [vmem:[%s2302_s27] sm:$0xf] (%p50_p3), %v190_v0  ;;  %193 = vst [vmem:[%s2302_s27 + $0x4] sm:$0xf] (%p50_p3), %v192_v1  ;;  %v196_v3 = vld [vmem:[%s2298_s26 + $0x12c] sm:$0xf] (%p50_p3) }
  0x13   : > { %v198_v4 = vld [vmem:[%s2298_s26 + $0x190] sm:$0xf] (%p50_p3)  ;;  %195 = vst [vmem:[%s2302_s27 + $0x8] sm:$0xf] (%p50_p3), %v194_v2  ;;  %197 = vst [vmem:[%s2302_s27 + $0xc] sm:$0xf] (%p50_p3), %v196_v3 }
  0x14   : > { %199 = vst [vmem:[%s2302_s27 + $0x10] sm:$0xf] (%p50_p3), %v198_v4  ;;  %v200_v5 = vld [vmem:[%s2298_s26 + $0x1f4] sm:$0xf] (%p50_p3)  ;;  %v202_v6 = vld [vmem:[%s2298_s26 + $0x258] sm:$0xf] (%p50_p3) }
  0x15   : > { %v204_v7 = vld [vmem:[%s2298_s26 + $0x2bc] sm:$0xf]  ;;  %201 = vst [vmem:[%s2302_s27 + $0x14] sm:$0xf] %v200_v5  ;;  %203 = vst [vmem:[%s2302_s27 + $0x18] sm:$0xf] %v202_v6 }
  0x16   : > { %205 = vst [vmem:[%s2302_s27 + $0x1c] sm:$0xf] %v204_v7  ;;  %v206_v8 = vld [vmem:[%s2298_s26 + $0x320] sm:$0xf]  ;;  %v208_v9 = vld [vmem:[%s2298_s26 + $0x384] sm:$0xf] }
  0x17   : > { %v210_v10 = vld [vmem:[%s2298_s26 + $0x3e8] sm:$0xf]  ;;  %207 = vst [vmem:[%s2302_s27 + $0x20] sm:$0xf] %v206_v8  ;;  %209 = vst [vmem:[%s2302_s27 + $0x24] sm:$0xf] %v208_v9 }
  0x18   : > { %211 = vst [vmem:[%s2302_s27 + $0x28] sm:$0xf] %v210_v10  ;;  %v212_v11 = vld [vmem:[%s2298_s26 + $0x44c] sm:$0xf]  ;;  %v214_v12 = vld [vmem:[%s2298_s26 + $0x4b0] sm:$0xf] }
  0x19   : > { %v216_v13 = vld [vmem:[%s2298_s26 + $0x514] sm:$0xf]  ;;  %213 = vst [vmem:[%s2302_s27 + $0x2c] sm:$0xf] %v212_v11  ;;  %215 = vst [vmem:[%s2302_s27 + $0x30] sm:$0xf] %v214_v12 }
  0x1a   : > { %217 = vst [vmem:[%s2302_s27 + $0x34] sm:$0xf] %v216_v13  ;;  %v218_v14 = vld [vmem:[%s2298_s26 + $0x578] sm:$0xf]  ;;  %v220_v15 = vld [vmem:[%s2298_s26 + $0x5dc] sm:$0xf] }
  0x1b   : > { %v222_v16 = vld [vmem:[%s2298_s26 + $0x640] sm:$0xf]  ;;  %219 = vst [vmem:[%s2302_s27 + $0x38] sm:$0xf] %v218_v14  ;;  %221 = vst [vmem:[%s2302_s27 + $0x3c] sm:$0xf] %v220_v15 }
  0x1c   : > { %223 = vst [vmem:[%s2302_s27 + $0x40] sm:$0xf] %v222_v16  ;;  %v224_v17 = vld [vmem:[%s2298_s26 + $0x6a4] sm:$0xf]  ;;  %v226_v18 = vld [vmem:[%s2298_s26 + $0x708] sm:$0xf] }
  0x1d   : > { %v228_v19 = vld [vmem:[%s2298_s26 + $0x76c] sm:$0xf]  ;;  %225 = vst [vmem:[%s2302_s27 + $0x44] sm:$0xf] %v224_v17  ;;  %227 = vst [vmem:[%s2302_s27 + $0x48] sm:$0xf] %v226_v18 }
  0x1e   : > { %229 = vst [vmem:[%s2302_s27 + $0x4c] sm:$0xf] %v228_v19  ;;  %v230_v20 = vld [vmem:[%s2298_s26 + $0x7d0] sm:$0xf]  ;;  %v232_v21 = vld [vmem:[%s2298_s26 + $0x834] sm:$0xf] }
  0x1f   : > { %v234_v22 = vld [vmem:[%s2298_s26 + $0x898] sm:$0xf]  ;;  %231 = vst [vmem:[%s2302_s27 + $0x50] sm:$0xf] %v230_v20  ;;  %233 = vst [vmem:[%s2302_s27 + $0x54] sm:$0xf] %v232_v21 }
  0x20   : > { %235 = vst [vmem:[%s2302_s27 + $0x58] sm:$0xf] %v234_v22  ;;  %v236_v23 = vld [vmem:[%s2298_s26 + $0x8fc] sm:$0xf]  ;;  %v238_v24 = vld [vmem:[%s2298_s26 + $0x960] sm:$0xf] }
  0x21   : > { %v240_v25 = vld [vmem:[%s2298_s26 + $0x9c4] sm:$0xf]  ;;  %237 = vst [vmem:[%s2302_s27 + $0x5c] sm:$0xf] %v236_v23  ;;  %239 = vst [vmem:[%s2302_s27 + $0x60] sm:$0xf] %v238_v24 }
  0x22   : > { %241 = vst [vmem:[%s2302_s27 + $0x64] sm:$0xf] %v240_v25  ;;  %v242_v26 = vld [vmem:[%s2298_s26 + $0xa28] sm:$0xf]  ;;  %v244_v27 = vld [vmem:[%s2298_s26 + $0xa8c] sm:$0xf] }
  0x23   : > { %v246_v28 = vld [vmem:[%s2298_s26 + $0xaf0] sm:$0xf]  ;;  %243 = vst [vmem:[%s2302_s27 + $0x68] sm:$0xf] %v242_v26  ;;  %245 = vst [vmem:[%s2302_s27 + $0x6c] sm:$0xf] %v244_v27 }
  0x24   : > { %247 = vst [vmem:[%s2302_s27 + $0x70] sm:$0xf] %v246_v28  ;;  %v248_v29 = vld [vmem:[%s2298_s26 + $0xb54] sm:$0xf]  ;;  %v250_v30 = vld [vmem:[%s2298_s26 + $0xbb8] sm:$0xf] }
  0x25   : > { %v252_v31 = vld [vmem:[%s2298_s26 + $0xc1c] sm:$0xf]  ;;  %249 = vst [vmem:[%s2302_s27 + $0x74] sm:$0xf] %v248_v29  ;;  %251 = vst [vmem:[%s2302_s27 + $0x78] sm:$0xf] %v250_v30 }
  0x26   : > { %253 = vst [vmem:[%s2302_s27 + $0x7c] sm:$0xf] %v252_v31  ;;  %v254_v32 = vld [vmem:[%s2298_s26 + $0xc80] sm:$0xf]  ;;  %v256_v33 = vld [vmem:[%s2298_s26 + $0xce4] sm:$0xf] }
  0x27   : > { %v258_v34 = vld [vmem:[%s2298_s26 + $0xd48] sm:$0xf]  ;;  %255 = vst [vmem:[%s2302_s27 + $0x80] sm:$0xf] %v254_v32  ;;  %257 = vst [vmem:[%s2302_s27 + $0x84] sm:$0xf] %v256_v33 }
  0x28   : > { %259 = vst [vmem:[%s2302_s27 + $0x88] sm:$0xf] %v258_v34  ;;  %v260_v35 = vld [vmem:[%s2298_s26 + $0xdac] sm:$0xf]  ;;  %v262_v36 = vld [vmem:[%s2298_s26 + $0xe10] sm:$0xf] }
  0x29   : > { %v264_v37 = vld [vmem:[%s2298_s26 + $0xe74] sm:$0xf]  ;;  %261 = vst [vmem:[%s2302_s27 + $0x8c] sm:$0xf] %v260_v35  ;;  %263 = vst [vmem:[%s2302_s27 + $0x90] sm:$0xf] %v262_v36 }
  0x2a   : > { %265 = vst [vmem:[%s2302_s27 + $0x94] sm:$0xf] %v264_v37  ;;  %v266_v38 = vld [vmem:[%s2298_s26 + $0xed8] sm:$0xf]  ;;  %v268_v39 = vld [vmem:[%s2298_s26 + $0xf3c] sm:$0xf] }
  0x2b   : > { %v270_v40 = vld [vmem:[%s2298_s26 + $0xfa0] sm:$0xf]  ;;  %267 = vst [vmem:[%s2302_s27 + $0x98] sm:$0xf] %v266_v38  ;;  %269 = vst [vmem:[%s2302_s27 + $0x9c] sm:$0xf] %v268_v39 }
  0x2c   : > { %271 = vst [vmem:[%s2302_s27 + $0xa0] sm:$0xf] %v270_v40  ;;  %v272_v41 = vld [vmem:[%s2298_s26 + $0x1004] sm:$0xf]  ;;  %v274_v42 = vld [vmem:[%s2298_s26 + $0x1068] sm:$0xf] }
  0x2d   : > { %v276_v43 = vld [vmem:[%s2298_s26 + $0x10cc] sm:$0xf]  ;;  %273 = vst [vmem:[%s2302_s27 + $0xa4] sm:$0xf] %v272_v41  ;;  %275 = vst [vmem:[%s2302_s27 + $0xa8] sm:$0xf] %v274_v42 }
  0x2e   : > { %277 = vst [vmem:[%s2302_s27 + $0xac] sm:$0xf] %v276_v43  ;;  %v278_v44 = vld [vmem:[%s2298_s26 + $0x1130] sm:$0xf]  ;;  %v280_v45 = vld [vmem:[%s2298_s26 + $0x1194] sm:$0xf] }
  0x2f   : > { %v282_v46 = vld [vmem:[%s2298_s26 + $0x11f8] sm:$0xf]  ;;  %279 = vst [vmem:[%s2302_s27 + $0xb0] sm:$0xf] %v278_v44  ;;  %281 = vst [vmem:[%s2302_s27 + $0xb4] sm:$0xf] %v280_v45 }
  0x30   : > { %283 = vst [vmem:[%s2302_s27 + $0xb8] sm:$0xf] %v282_v46  ;;  %v284_v47 = vld [vmem:[%s2298_s26 + $0x125c] sm:$0xf]  ;;  %v286_v48 = vld [vmem:[%s2298_s26 + $0x12c0] sm:$0xf] }
  0x31   : > { %v288_v49 = vld [vmem:[%s2298_s26 + $0x1324] sm:$0xf]  ;;  %285 = vst [vmem:[%s2302_s27 + $0xbc] sm:$0xf] %v284_v47  ;;  %287 = vst [vmem:[%s2302_s27 + $0xc0] sm:$0xf] %v286_v48 }
  0x32   : > { %289 = vst [vmem:[%s2302_s27 + $0xc4] sm:$0xf] %v288_v49  ;;  %v290_v50 = vld [vmem:[%s2298_s26 + $0x1388] sm:$0xf]  ;;  %v292_v51 = vld [vmem:[%s2298_s26 + $0x13ec] sm:$0xf] }
  0x33   : > { %v294_v52 = vld [vmem:[%s2298_s26 + $0x1450] sm:$0xf]  ;;  %291 = vst [vmem:[%s2302_s27 + $0xc8] sm:$0xf] %v290_v50  ;;  %293 = vst [vmem:[%s2302_s27 + $0xcc] sm:$0xf] %v292_v51 }
  0x34   : > { %295 = vst [vmem:[%s2302_s27 + $0xd0] sm:$0xf] %v294_v52  ;;  %v296_v53 = vld [vmem:[%s2298_s26 + $0x14b4] sm:$0xf]  ;;  %v298_v54 = vld [vmem:[%s2298_s26 + $0x1518] sm:$0xf] }
  0x35   : > { %v300_v55 = vld [vmem:[%s2298_s26 + $0x157c] sm:$0xf]  ;;  %297 = vst [vmem:[%s2302_s27 + $0xd4] sm:$0xf] %v296_v53  ;;  %299 = vst [vmem:[%s2302_s27 + $0xd8] sm:$0xf] %v298_v54 }
  0x36   : > { %301 = vst [vmem:[%s2302_s27 + $0xdc] sm:$0xf] %v300_v55  ;;  %v302_v56 = vld [vmem:[%s2298_s26 + $0x15e0] sm:$0xf]  ;;  %v304_v57 = vld [vmem:[%s2298_s26 + $0x1644] sm:$0xf] }
  0x37   : > { %v306_v58 = vld [vmem:[%s2298_s26 + $0x16a8] sm:$0xf]  ;;  %303 = vst [vmem:[%s2302_s27 + $0xe0] sm:$0xf] %v302_v56  ;;  %305 = vst [vmem:[%s2302_s27 + $0xe4] sm:$0xf] %v304_v57 }
  0x38   : > { %307 = vst [vmem:[%s2302_s27 + $0xe8] sm:$0xf] %v306_v58  ;;  %v308_v59 = vld [vmem:[%s2298_s26 + $0x170c] sm:$0xf]  ;;  %v310_v60 = vld [vmem:[%s2298_s26 + $0x1770] sm:$0xf] }
  0x39   : > { %v312_v61 = vld [vmem:[%s2298_s26 + $0x17d4] sm:$0xf]  ;;  %309 = vst [vmem:[%s2302_s27 + $0xec] sm:$0xf] %v308_v59  ;;  %311 = vst [vmem:[%s2302_s27 + $0xf0] sm:$0xf] %v310_v60 }
  0x3a   : > { %313 = vst [vmem:[%s2302_s27 + $0xf4] sm:$0xf] %v312_v61  ;;  %v314_v62 = vld [vmem:[%s2298_s26 + $0x1838] sm:$0xf]  ;;  %v316_v63 = vld [vmem:[%s2298_s26 + $0x189c] sm:$0xf] }
  0x3b   : > { %315 = vst [vmem:[%s2302_s27 + $0xf8] sm:$0xf] %v314_v62  ;;  %317 = vst [vmem:[%s2302_s27 + $0xfc] sm:$0xf] %v316_v63 }
  0x3c PF: > { %p1798_p6 = scmp.ge.s32.totalorder %s2232_s16, 1  ;;  %p479_p7 = scmp.lt.s32.totalorder %s2232_s16, 26 }
  0x3e   : > { %p480_p8 = pnand %p1798_p6, %p479_p7 }
  0x3f   : > { %s486_s28 = sand.u32 (!%p480_p8), 1, %s2216_s12   ;;  %s1800_s29 = sshll.u32 (!%p480_p8), %s2224_s14, 4 }
  0x40   : > { %483 = sbr.rel (%p480_p8) target bundleno = 474 (0x1da), region = 69  ;;  %s1799_s30 = sshll.u32 (!%p480_p8), %s486_s28, 8 }
  0x41   : > { %p525_p9 = scmp.lt.s32.totalorder (!%p480_p8), %s1800_s29, 399  ;;  %s2439_s8 = scalar_lea.vmem (!%p480_p8), [#allocation3], %s1799_s30 }
  0x42   : > { %p1802_p10 = scmp.ne.s32.totalorder (!%p480_p8), %s2224_s14, 0 }
  0x47   : > { %s2834_s29 = smov (!%p525_p9, %s1800_s29), 399  ;;  %549 = sbr.rel (%p1802_p10) target bundleno = 105 (0x69), region = 77 }
  0x48   : > { %s1801_s4 = sshll.u32 %s2834_s29, 2  ;;  %v2234_v0 = vmov (!%p1802_p10), 0.0  }
  0x49   : > { %s2437_s7 = scalar_lea.vmem %s2824_s1, %s1801_s4  ;;  %550 = vst [vmem:[#allocation2] sm:$0xff] (!%p1802_p10), %v2234_v0  ;;  %551 = vst [vmem:[#allocation2 + $0x8] sm:$0xff] (!%p1802_p10), %v2234_v0 }
  0x4a   : > { %552 = vst [vmem:[#allocation2 + $0x10] sm:$0xff] (!%p1802_p10), %v2234_v0  ;;  %553 = vst [vmem:[#allocation2 + $0x18] sm:$0xff] (!%p1802_p10), %v2234_v0 }
  0x4b   : > { %554 = vst [vmem:[#allocation2 + $0x20] sm:$0xff] (!%p1802_p10), %v2234_v0  ;;  %555 = vst [vmem:[#allocation2 + $0x28] sm:$0xff] (!%p1802_p10), %v2234_v0 }
  0x4c   : > { %556 = vst [vmem:[#allocation2 + $0x30] sm:$0xff] (!%p1802_p10), %v2234_v0  ;;  %557 = vst [vmem:[#allocation2 + $0x38] sm:$0xff] (!%p1802_p10), %v2234_v0 }
  0x4d   : > { %558 = vst [vmem:[#allocation2 + $0x40] sm:$0xff] (!%p1802_p10), %v2234_v0  ;;  %559 = vst [vmem:[#allocation2 + $0x48] sm:$0xff] (!%p1802_p10), %v2234_v0 }
  0x4e   : > { %560 = vst [vmem:[#allocation2 + $0x50] sm:$0xff] %v2234_v0  ;;  %561 = vst [vmem:[#allocation2 + $0x58] sm:$0xff] %v2234_v0 }
  0x4f   : > { %562 = vst [vmem:[#allocation2 + $0x60] sm:$0xff] %v2234_v0  ;;  %563 = vst [vmem:[#allocation2 + $0x68] sm:$0xff] %v2234_v0 }
  0x50   : > { %564 = vst [vmem:[#allocation2 + $0x70] sm:$0xff] %v2234_v0  ;;  %565 = vst [vmem:[#allocation2 + $0x78] sm:$0xff] %v2234_v0 }
  0x51   : > { %566 = vst [vmem:[#allocation2 + $0x80] sm:$0xff] %v2234_v0  ;;  %567 = vst [vmem:[#allocation2 + $0x88] sm:$0xff] %v2234_v0 }
  0x52   : > { %568 = vst [vmem:[#allocation2 + $0x90] sm:$0xff] %v2234_v0  ;;  %569 = vst [vmem:[#allocation2 + $0x98] sm:$0xff] %v2234_v0 }
  0x53   : > { %570 = vst [vmem:[#allocation2 + $0xa0] sm:$0xff] %v2234_v0  ;;  %571 = vst [vmem:[#allocation2 + $0xa8] sm:$0xff] %v2234_v0 }
  0x54   : > { %572 = vst [vmem:[#allocation2 + $0xb0] sm:$0xff] %v2234_v0  ;;  %573 = vst [vmem:[#allocation2 + $0xb8] sm:$0xff] %v2234_v0 }
  0x55   : > { %574 = vst [vmem:[#allocation2 + $0xc0] sm:$0xff] %v2234_v0  ;;  %575 = vst [vmem:[#allocation2 + $0xc8] sm:$0xff] %v2234_v0 }
  0x56   : > { %576 = vst [vmem:[#allocation2 + $0xd0] sm:$0xff] %v2234_v0  ;;  %577 = vst [vmem:[#allocation2 + $0xd8] sm:$0xff] %v2234_v0 }
  0x57   : > { %578 = vst [vmem:[#allocation2 + $0xe0] sm:$0xff] %v2234_v0  ;;  %579 = vst [vmem:[#allocation2 + $0xe8] sm:$0xff] %v2234_v0 }
  0x58   : > { %580 = vst [vmem:[#allocation2 + $0xf0] sm:$0xff] %v2234_v0  ;;  %581 = vst [vmem:[#allocation2 + $0xf8] sm:$0xff] %v2234_v0 }
  0x59   : > { %582 = vst [vmem:[#allocation2 + $0x100] sm:$0xff] %v2234_v0  ;;  %583 = vst [vmem:[#allocation2 + $0x108] sm:$0xff] %v2234_v0 }
  0x5a   : > { %584 = vst [vmem:[#allocation2 + $0x110] sm:$0xff] %v2234_v0  ;;  %585 = vst [vmem:[#allocation2 + $0x118] sm:$0xff] %v2234_v0 }
  0x5b   : > { %586 = vst [vmem:[#allocation2 + $0x120] sm:$0xff] %v2234_v0  ;;  %587 = vst [vmem:[#allocation2 + $0x128] sm:$0xff] %v2234_v0 }
  0x5c   : > { %588 = vst [vmem:[#allocation2 + $0x130] sm:$0xff] %v2234_v0  ;;  %589 = vst [vmem:[#allocation2 + $0x138] sm:$0xff] %v2234_v0 }
  0x5d   : > { %590 = vst [vmem:[#allocation2 + $0x140] sm:$0xff] %v2234_v0  ;;  %591 = vst [vmem:[#allocation2 + $0x148] sm:$0xff] %v2234_v0 }
  0x5e   : > { %592 = vst [vmem:[#allocation2 + $0x150] sm:$0xff] %v2234_v0  ;;  %593 = vst [vmem:[#allocation2 + $0x158] sm:$0xff] %v2234_v0 }
  0x5f   : > { %594 = vst [vmem:[#allocation2 + $0x160] sm:$0xff] %v2234_v0  ;;  %595 = vst [vmem:[#allocation2 + $0x168] sm:$0xff] %v2234_v0 }
  0x60   : > { %596 = vst [vmem:[#allocation2 + $0x170] sm:$0xff] %v2234_v0  ;;  %597 = vst [vmem:[#allocation2 + $0x178] sm:$0xff] %v2234_v0 }
  0x61   : > { %598 = vst [vmem:[#allocation2 + $0x180] sm:$0xff] %v2234_v0  ;;  %599 = vst [vmem:[#allocation2 + $0x188] sm:$0xff] %v2234_v0 }
  0x62   : > { %600 = vst [vmem:[#allocation2 + $0x190] sm:$0xff] %v2234_v0  ;;  %601 = vst [vmem:[#allocation2 + $0x198] sm:$0xff] %v2234_v0 }
  0x63   : > { %602 = vst [vmem:[#allocation2 + $0x1a0] sm:$0xff] %v2234_v0  ;;  %603 = vst [vmem:[#allocation2 + $0x1a8] sm:$0xff] %v2234_v0 }
  0x64   : > { %604 = vst [vmem:[#allocation2 + $0x1b0] sm:$0xff] %v2234_v0  ;;  %605 = vst [vmem:[#allocation2 + $0x1b8] sm:$0xff] %v2234_v0 }
  0x65   : > { %606 = vst [vmem:[#allocation2 + $0x1c0] sm:$0xff] %v2234_v0  ;;  %607 = vst [vmem:[#allocation2 + $0x1c8] sm:$0xff] %v2234_v0 }
  0x66   : > { %608 = vst [vmem:[#allocation2 + $0x1d0] sm:$0xff] %v2234_v0  ;;  %609 = vst [vmem:[#allocation2 + $0x1d8] sm:$0xff] %v2234_v0 }
  0x67   : > { %610 = vst [vmem:[#allocation2 + $0x1e0] sm:$0xff] %v2234_v0  ;;  %611 = vst [vmem:[#allocation2 + $0x1e8] sm:$0xff] %v2234_v0 }
  0x68   : > { %612 = vst [vmem:[#allocation2 + $0x1f0] sm:$0xff] %v2234_v0  ;;  %613 = vst [vmem:[#allocation2 + $0x1f8] sm:$0xff] %v2234_v0 }
  0x69 PF: > { %v2026_v1 = vld [vmem:[%s2437_s7] sm:$0xff]   ;;  %v2027_v2 = vld [vmem:[%s2437_s7 + $0x8] sm:$0xff]   ;;  %v2028_v3 = vld [vmem:[%s2437_s7 + $0x10] sm:$0xff]   ;;  %p1843_p11 = scmp.ne.s32.totalorder %s2224_s14, 24 }
  0x6a   : > { %1889 = vmatprep.subr.bf16.mxu0 %v2026_v1  ;;  %1969 = vmatprep.subr.bf16.mxu1 %v2026_v1  ;;  %v2029_v4 = vld [vmem:[%s2437_s7 + $0x18] sm:$0xff]   ;;  %v2034_v5 = vld [vmem:[%s2439_s8] sm:$0xff]   ;;  %v2031_v8 = vld [vmem:[%s2437_s7 + $0x28] sm:$0xff]  }
  0x6b   : > { %1890 = vmatpush3.bf16.msra.mxu0 %v2026_v1  ;;  %1977 = vmatpush3.bf16.msra.mxu1 %v2026_v1  ;;  %v2035_v6 = vld [vmem:[%s2439_s8 + $0x80] sm:$0xff]   ;;  %v2032_v9 = vld [vmem:[%s2437_s7 + $0x30] sm:$0xff]   ;;  %v2033_v10 = vld [vmem:[%s2437_s7 + $0x38] sm:$0xff]  }
  0x6c   : > { %1891 = vmatprep.subr.bf16.mxu0 %v2027_v2  ;;  %1970 = vmatprep.subr.bf16.mxu1 %v2027_v2  ;;  %v2030_v7 = vld [vmem:[%s2437_s7 + $0x20] sm:$0xff]   ;;  %v2036_v11 = vld [vmem:[%s2439_s8 + $0x8] sm:$0xff]   ;;  %v2038_v13 = vld [vmem:[%s2439_s8 + $0x10] sm:$0xff]  }
  0x6d   : > { %1905 = vmatprep.mubr.bf16.mxu0 %v2034_v5  ;;  %1937 = vmatprep.mubr.bf16.mxu1 %v2035_v6  ;;  %v2037_v12 = vld [vmem:[%s2439_s8 + $0x88] sm:$0xff]   ;;  %v2039_v14 = vld [vmem:[%s2439_s8 + $0x90] sm:$0xff]   ;;  %v2040_v15 = vld [vmem:[%s2439_s8 + $0x18] sm:$0xff]  }
  0x6e   : > { %v2041_v16 = vld [vmem:[%s2439_s8 + $0x98] sm:$0xff]   ;;  %v2042_v17 = vld [vmem:[%s2439_s8 + $0x20] sm:$0xff]   ;;  %v2044_v19 = vld [vmem:[%s2439_s8 + $0x28] sm:$0xff]  }
  0x6f   : > { %1892 = vmatpush3.bf16.msra.mxu0 %v2027_v2  ;;  %1978 = vmatpush3.bf16.msra.mxu1 %v2027_v2  ;;  %v2043_v18 = vld [vmem:[%s2439_s8 + $0xa0] sm:$0xff]   ;;  %v2045_v20 = vld [vmem:[%s2439_s8 + $0xa8] sm:$0xff]   ;;  %v2046_v21 = vld [vmem:[%s2439_s8 + $0x30] sm:$0xff]  }
  0x70   : > { %1893 = vmatprep.subr.bf16.mxu0 %v2028_v3  ;;  %1971 = vmatprep.subr.bf16.mxu1 %v2028_v3  ;;  %v2047_v22 = vld [vmem:[%s2439_s8 + $0xb0] sm:$0xff]   ;;  %v2048_v23 = vld [vmem:[%s2439_s8 + $0x38] sm:$0xff]   ;;  %v2050_v25 = vld [vmem:[%s2439_s8 + $0x40] sm:$0xff]  }
  0x71   : > { %v2049_v24 = vld [vmem:[%s2439_s8 + $0xb8] sm:$0xff]   ;;  %v2051_v26 = vld [vmem:[%s2439_s8 + $0xc0] sm:$0xff]   ;;  %v2052_v27 = vld [vmem:[%s2439_s8 + $0x48] sm:$0xff]  }
  0x72   : > { %v2053_v28 = vld [vmem:[%s2439_s8 + $0xc8] sm:$0xff]   ;;  %v2054_v29 = vld [vmem:[%s2439_s8 + $0x50] sm:$0xff]   ;;  %v2056_v31 = vld [vmem:[%s2439_s8 + $0x58] sm:$0xff]  }
  0x73   : > { %1894 = vmatpush3.bf16.msra.mxu0 %v2028_v3  ;;  %1979 = vmatpush3.bf16.msra.mxu1 %v2028_v3  ;;  %v2055_v30 = vld [vmem:[%s2439_s8 + $0xd0] sm:$0xff]   ;;  %v2057_v32 = vld [vmem:[%s2439_s8 + $0xd8] sm:$0xff]   ;;  %v2058_v33 = vld [vmem:[%s2439_s8 + $0x60] sm:$0xff]  }
  0x74   : > { %1895 = vmatprep.subr.bf16.mxu0 %v2029_v4  ;;  %1972 = vmatprep.subr.bf16.mxu1 %v2029_v4  ;;  %v2059_v34 = vld [vmem:[%s2439_s8 + $0xe0] sm:$0xff]   ;;  %v2060_v35 = vld [vmem:[%s2439_s8 + $0x68] sm:$0xff]   ;;  %v2062_v37 = vld [vmem:[%s2439_s8 + $0x70] sm:$0xff]  }
  0x75   : > { %v2061_v36 = vld [vmem:[%s2439_s8 + $0xe8] sm:$0xff]   ;;  %v2063_v38 = vld [vmem:[%s2439_s8 + $0xf0] sm:$0xff]   ;;  %v2064_v39 = vld [vmem:[%s2439_s8 + $0x78] sm:$0xff]  }
  0x76   : > { %v2065_v40 = vld [vmem:[%s2439_s8 + $0xf8] sm:$0xff]   ;;  %v616_v41 = vld [vmem:[#allocation2 + $0x10] sm:$0xff]  ;;  %v614_v43 = vld [vmem:[#allocation2] sm:$0xff] }
  0x77   : > { %1896 = vmatpush3.bf16.msra.mxu0 %v2029_v4  ;;  %1980 = vmatpush3.bf16.msra.mxu1 %v2029_v4  ;;  %v648_v42 = vld [vmem:[#allocation2 + $0x110] sm:$0xff]  ;;  %v646_v44 = vld [vmem:[#allocation2 + $0x100] sm:$0xff]  ;;  %v617_v47 = vld [vmem:[#allocation2 + $0x18] sm:$0xff] }
  0x78   : > { %1897 = vmatprep.subr.bf16.mxu0 %v2030_v7  ;;  %1973 = vmatprep.subr.bf16.mxu1 %v2030_v7  ;;  %v649_v48 = vld [vmem:[#allocation2 + $0x118] sm:$0xff]  ;;  %v615_v53 = vld [vmem:[#allocation2 + $0x8] sm:$0xff]  ;;  %v620_v1 = vld [vmem:[#allocation2 + $0x30] sm:$0xff] }
  0x79   : > { %v647_v54 = vld [vmem:[#allocation2 + $0x108] sm:$0xff]  ;;  %v652_v2 = vld [vmem:[#allocation2 + $0x130] sm:$0xff]  ;;  %v618_v3 = vld [vmem:[#allocation2 + $0x20] sm:$0xff] }
  0x7a   : > { %v650_v4 = vld [vmem:[#allocation2 + $0x120] sm:$0xff] }
  0x7b   : > { %1898 = vmatpush3.bf16.msra.mxu0 %v2030_v7  ;;  %1981 = vmatpush3.bf16.msra.mxu1 %v2030_v7  ;;  %v621_v7 = vld [vmem:[#allocation2 + $0x38] sm:$0xff] }
  0x7c   : > { %1899 = vmatprep.subr.bf16.mxu0 %v2031_v8  ;;  %1974 = vmatprep.subr.bf16.mxu1 %v2031_v8 }
  0x7f   : > { %1900 = vmatpush3.bf16.msra.mxu0 %v2031_v8  ;;  %1982 = vmatpush3.bf16.msra.mxu1 %v2031_v8  ;;  %v653_v8 = vld [vmem:[#allocation2 + $0x138] sm:$0xff] }
  0x80   : > { %1901 = vmatprep.subr.bf16.mxu0 %v2032_v9  ;;  %1975 = vmatprep.subr.bf16.mxu1 %v2032_v9 }
  0x83   : > { %1902 = vmatpush3.bf16.msra.mxu0 %v2032_v9  ;;  %1983 = vmatpush3.bf16.msra.mxu1 %v2032_v9 }
  0x84   : > { %1903 = vmatprep.subr.bf16.mxu0 %v2033_v10  ;;  %1976 = vmatprep.subr.bf16.mxu1 %v2033_v10 }
  0x87   : > { %1904 = vmatpush3.bf16.msra.mxu0 %v2033_v10  ;;  %1984 = vmatpush3.bf16.msra.mxu1 %v2033_v10 }
  0x8a   : > { %1906 = vmatmul.mubr.bf16.vlgmr.msra.gmra.mrb[0].mxu0 %v2036_v11  ;;  %1938 = vmatmul.mubr.bf16.vlgmr.msra.gmra.mrb[0].mxu1 %v2037_v12 }
  0x8b   : > { %1909 = vmatprep.mubr.bf16.mxu0 %v2038_v13  ;;  %1941 = vmatprep.mubr.bf16.mxu1 %v2039_v14  ;;  %v619_v13 = vld [vmem:[#allocation2 + $0x28] sm:$0xff] }
  0x8c   : > { %v651_v14 = vld [vmem:[#allocation2 + $0x128] sm:$0xff] }
  0x92   : > { %1910 = vmatmul.mubr.bf16.gmra.mrb[4].mxu0 %v2040_v15  ;;  %1942 = vmatmul.mubr.bf16.gmra.mrb[4].mxu1 %v2041_v16 }
  0x93   : > { %1913 = vmatprep.mubr.bf16.mxu0 %v2042_v17  ;;  %1945 = vmatprep.mubr.bf16.mxu1 %v2043_v18 }
  0x9a   : > { %1914 = vmatmul.mubr.bf16.gmra.mrb[8].mxu0 %v2044_v19  ;;  %1946 = vmatmul.mubr.bf16.gmra.mrb[8].mxu1 %v2045_v20 }
  0x9b   : > { %1917 = vmatprep.mubr.bf16.mxu0 %v2046_v21  ;;  %1949 = vmatprep.mubr.bf16.mxu1 %v2047_v22 }
  0xa2   : > { %1918 = vmatmul.mubr.bf16.gmra.mrb[12].mxu0 %v2048_v23  ;;  %1950 = vmatmul.mubr.bf16.gmra.mrb[12].mxu1 %v2049_v24 }
  0xa3   : > { %1921 = vmatprep.mubr.bf16.mxu0 %v2050_v25  ;;  %1953 = vmatprep.mubr.bf16.mxu1 %v2051_v26  ;;  %v624_v25 = vld [vmem:[#allocation2 + $0x50] sm:$0xff] }
  0xa4   : > { %v656_v26 = vld [vmem:[#allocation2 + $0x150] sm:$0xff] }
  0xaa   : > { %1922 = vmatmul.mubr.bf16.gmra.mrb[16].mxu0 %v2052_v27  ;;  %1954 = vmatmul.mubr.bf16.gmra.mrb[16].mxu1 %v2053_v28  ;;  %v622_v27 = vld [vmem:[#allocation2 + $0x40] sm:$0xff] }
  0xab   : > { %1925 = vmatprep.mubr.bf16.mxu0 %v2054_v29  ;;  %1957 = vmatprep.mubr.bf16.mxu1 %v2055_v30  ;;  %v654_v28 = vld [vmem:[#allocation2 + $0x140] sm:$0xff] }
  0xb2   : > { %1926 = vmatmul.mubr.bf16.gmra.mrb[20].mxu0 %v2056_v31  ;;  %1958 = vmatmul.mubr.bf16.gmra.mrb[20].mxu1 %v2057_v32  ;;  %v625_v31 = vld [vmem:[#allocation2 + $0x58] sm:$0xff] }
  0xb3   : > { %1929 = vmatprep.mubr.bf16.mxu0 %v2058_v33  ;;  %1961 = vmatprep.mubr.bf16.mxu1 %v2059_v34  ;;  %v657_v32 = vld [vmem:[#allocation2 + $0x158] sm:$0xff] }
  0xba   : > { %1930 = vmatmul.mubr.bf16.gmra.mrb[24].mxu0 %v2060_v35  ;;  %1962 = vmatmul.mubr.bf16.gmra.mrb[24].mxu1 %v2061_v36 }
  0xbb   : > { %1933 = vmatprep.mubr.bf16.mxu0 %v2062_v37  ;;  %1965 = vmatprep.mubr.bf16.mxu1 %v2063_v38  ;;  %v623_v37 = vld [vmem:[#allocation2 + $0x48] sm:$0xff] }
  0xbc   : > { %v655_v38 = vld [vmem:[#allocation2 + $0x148] sm:$0xff] }
  0xc2   : > { %1934 = vmatmul.mubr.bf16.gmra.mrb[28].mxu0 %v2064_v39  ;;  %1966 = vmatmul.mubr.bf16.gmra.mrb[28].mxu1 %v2065_v40 }
 0x15d   : > { %v1907_v45 = vpop.f32.mrb[0].mxu0  ;;  %v1939_v46 = vpop.f32.mrb[0].mxu1 }
 0x15e   : > { %v1289_v49 = vadd.f32 %v1907_v45, %v616_v41  ;;  %v1321_v50 = vadd.f32 %v1939_v46, %v648_v42  ;;  %v1032_v51 = vpop.f32.mrb[1].mxu0  ;;  %v1160_v52 = vpop.f32.mrb[1].mxu1 }
 0x15f   : > { %v1287_v55 = vadd.f32 %v1032_v51, %v614_v43  ;;  %v1319_v56 = vadd.f32 %v1160_v52, %v646_v44  ;;  %v1908_v57 = vpop.f32.mrb[2].mxu0  ;;  %v1940_v58 = vpop.f32.mrb[2].mxu1  ;;  %v626_v51 = vld [vmem:[#allocation2 + $0x60] sm:$0xff] }
 0x160   : > { %1353 = vst [vmem:[#allocation2 + $0x10] sm:$0xff] %v1289_v49  ;;  %1385 = vst [vmem:[#allocation2 + $0x110] sm:$0xff] %v1321_v50  ;;  %v1290_v59 = vadd.f32 %v1908_v57, %v617_v47  ;;  %v1322_v60 = vadd.f32 %v1940_v58, %v649_v48  ;;  %v1035_v61 = vpop.f32.mrb[3].mxu0  ;;  %v1163_v62 = vpop.f32.mrb[3].mxu1  ;;  %v628_v49 = vld [vmem:[#allocation2 + $0x70] sm:$0xff]  ;;  %v658_v52 = vld [vmem:[#allocation2 + $0x160] sm:$0xff] }
 0x161   : > { %1351 = vst [vmem:[#allocation2] sm:$0xff] %v1287_v55  ;;  %1383 = vst [vmem:[#allocation2 + $0x100] sm:$0xff] %v1319_v56  ;;  %v1288_v63 = vadd.f32 %v1035_v61, %v615_v53  ;;  %v1320_v0 = vadd.f32 %v1163_v62, %v647_v54  ;;  %v660_v50 = vld [vmem:[#allocation2 + $0x170] sm:$0xff]  ;;  %v629_v55 = vld [vmem:[#allocation2 + $0x78] sm:$0xff] }
 0x162   : > { %1354 = vst [vmem:[#allocation2 + $0x18] sm:$0xff] %v1290_v59  ;;  %1386 = vst [vmem:[#allocation2 + $0x118] sm:$0xff] %v1322_v60  ;;  %v661_v56 = vld [vmem:[#allocation2 + $0x178] sm:$0xff]  ;;  %v627_v61 = vld [vmem:[#allocation2 + $0x68] sm:$0xff] }
 0x163   : > { %1352 = vst [vmem:[#allocation2 + $0x8] sm:$0xff] %v1288_v63  ;;  %1384 = vst [vmem:[#allocation2 + $0x108] sm:$0xff] %v1320_v0  ;;  %v659_v62 = vld [vmem:[#allocation2 + $0x168] sm:$0xff] }
 0x165   : > { %v1911_v5 = vpop.f32.mrb[4].mxu0  ;;  %v1943_v6 = vpop.f32.mrb[4].mxu1 }
 0x166   : > { %v1293_v9 = vadd.f32 %v1911_v5, %v620_v1  ;;  %v1325_v10 = vadd.f32 %v1943_v6, %v652_v2  ;;  %v1048_v11 = vpop.f32.mrb[5].mxu0  ;;  %v1176_v12 = vpop.f32.mrb[5].mxu1 }
 0x167   : > { %v1291_v15 = vadd.f32 %v1048_v11, %v618_v3  ;;  %v1323_v16 = vadd.f32 %v1176_v12, %v650_v4  ;;  %v1912_v17 = vpop.f32.mrb[6].mxu0  ;;  %v1944_v18 = vpop.f32.mrb[6].mxu1  ;;  %v630_v11 = vld [vmem:[#allocation2 + $0x80] sm:$0xff] }
 0x168   : > { %1357 = vst [vmem:[#allocation2 + $0x30] sm:$0xff] %v1293_v9  ;;  %1389 = vst [vmem:[#allocation2 + $0x130] sm:$0xff] %v1325_v10  ;;  %v1294_v19 = vadd.f32 %v1912_v17, %v621_v7  ;;  %v1326_v20 = vadd.f32 %v1944_v18, %v653_v8  ;;  %v1051_v21 = vpop.f32.mrb[7].mxu0  ;;  %v1179_v22 = vpop.f32.mrb[7].mxu1  ;;  %v632_v9 = vld [vmem:[#allocation2 + $0x90] sm:$0xff]  ;;  %v662_v12 = vld [vmem:[#allocation2 + $0x180] sm:$0xff] }
 0x169   : > { %1355 = vst [vmem:[#allocation2 + $0x20] sm:$0xff] %v1291_v15  ;;  %1387 = vst [vmem:[#allocation2 + $0x120] sm:$0xff] %v1323_v16  ;;  %v1292_v23 = vadd.f32 %v1051_v21, %v619_v13  ;;  %v1324_v24 = vadd.f32 %v1179_v22, %v651_v14  ;;  %v664_v10 = vld [vmem:[#allocation2 + $0x190] sm:$0xff]  ;;  %v633_v15 = vld [vmem:[#allocation2 + $0x98] sm:$0xff] }
 0x16a   : > { %1358 = vst [vmem:[#allocation2 + $0x38] sm:$0xff] %v1294_v19  ;;  %1390 = vst [vmem:[#allocation2 + $0x138] sm:$0xff] %v1326_v20  ;;  %v665_v16 = vld [vmem:[#allocation2 + $0x198] sm:$0xff]  ;;  %v631_v21 = vld [vmem:[#allocation2 + $0x88] sm:$0xff] }
 0x16b   : > { %1356 = vst [vmem:[#allocation2 + $0x28] sm:$0xff] %v1292_v23  ;;  %1388 = vst [vmem:[#allocation2 + $0x128] sm:$0xff] %v1324_v24  ;;  %v663_v22 = vld [vmem:[#allocation2 + $0x188] sm:$0xff] }
 0x16d   : > { %v1915_v29 = vpop.f32.mrb[8].mxu0  ;;  %v1947_v30 = vpop.f32.mrb[8].mxu1 }
 0x16e   : > { %v1297_v33 = vadd.f32 %v1915_v29, %v624_v25  ;;  %v1329_v34 = vadd.f32 %v1947_v30, %v656_v26  ;;  %v1064_v35 = vpop.f32.mrb[9].mxu0  ;;  %v1192_v36 = vpop.f32.mrb[9].mxu1 }
 0x16f   : > { %v1295_v39 = vadd.f32 %v1064_v35, %v622_v27  ;;  %v1327_v40 = vadd.f32 %v1192_v36, %v654_v28  ;;  %v1916_v41 = vpop.f32.mrb[10].mxu0  ;;  %v1948_v42 = vpop.f32.mrb[10].mxu1  ;;  %v634_v35 = vld [vmem:[#allocation2 + $0xa0] sm:$0xff] }
 0x170   : > { %1361 = vst [vmem:[#allocation2 + $0x50] sm:$0xff] %v1297_v33  ;;  %1393 = vst [vmem:[#allocation2 + $0x150] sm:$0xff] %v1329_v34  ;;  %v1298_v43 = vadd.f32 %v1916_v41, %v625_v31  ;;  %v1330_v44 = vadd.f32 %v1948_v42, %v657_v32  ;;  %v1067_v45 = vpop.f32.mrb[11].mxu0  ;;  %v1195_v46 = vpop.f32.mrb[11].mxu1  ;;  %v636_v33 = vld [vmem:[#allocation2 + $0xb0] sm:$0xff]  ;;  %v666_v36 = vld [vmem:[#allocation2 + $0x1a0] sm:$0xff] }
 0x171   : > { %1359 = vst [vmem:[#allocation2 + $0x40] sm:$0xff] %v1295_v39  ;;  %1391 = vst [vmem:[#allocation2 + $0x140] sm:$0xff] %v1327_v40  ;;  %v1296_v47 = vadd.f32 %v1067_v45, %v623_v37  ;;  %v1328_v48 = vadd.f32 %v1195_v46, %v655_v38  ;;  %v668_v34 = vld [vmem:[#allocation2 + $0x1b0] sm:$0xff]  ;;  %v637_v39 = vld [vmem:[#allocation2 + $0xb8] sm:$0xff] }
 0x172   : > { %1362 = vst [vmem:[#allocation2 + $0x58] sm:$0xff] %v1298_v43  ;;  %1394 = vst [vmem:[#allocation2 + $0x158] sm:$0xff] %v1330_v44  ;;  %v669_v40 = vld [vmem:[#allocation2 + $0x1b8] sm:$0xff]  ;;  %v635_v45 = vld [vmem:[#allocation2 + $0xa8] sm:$0xff] }
 0x173   : > { %1360 = vst [vmem:[#allocation2 + $0x48] sm:$0xff] %v1296_v47  ;;  %1392 = vst [vmem:[#allocation2 + $0x148] sm:$0xff] %v1328_v48  ;;  %v667_v46 = vld [vmem:[#allocation2 + $0x1a8] sm:$0xff] }
 0x175   : > { %v1919_v53 = vpop.f32.mrb[12].mxu0  ;;  %v1951_v54 = vpop.f32.mrb[12].mxu1 }
 0x176   : > { %v1301_v57 = vadd.f32 %v1919_v53, %v628_v49  ;;  %v1333_v58 = vadd.f32 %v1951_v54, %v660_v50  ;;  %v1080_v59 = vpop.f32.mrb[13].mxu0  ;;  %v1208_v60 = vpop.f32.mrb[13].mxu1 }
 0x177   : > { %v1299_v63 = vadd.f32 %v1080_v59, %v626_v51  ;;  %v1331_v0 = vadd.f32 %v1208_v60, %v658_v52  ;;  %v1920_v1 = vpop.f32.mrb[14].mxu0  ;;  %v1952_v2 = vpop.f32.mrb[14].mxu1  ;;  %v638_v59 = vld [vmem:[#allocation2 + $0xc0] sm:$0xff] }
 0x178   : > { %1365 = vst [vmem:[#allocation2 + $0x70] sm:$0xff] %v1301_v57  ;;  %1397 = vst [vmem:[#allocation2 + $0x170] sm:$0xff] %v1333_v58  ;;  %v1302_v3 = vadd.f32 %v1920_v1, %v629_v55  ;;  %v1334_v4 = vadd.f32 %v1952_v2, %v661_v56  ;;  %v1083_v5 = vpop.f32.mrb[15].mxu0  ;;  %v1211_v6 = vpop.f32.mrb[15].mxu1  ;;  %v640_v57 = vld [vmem:[#allocation2 + $0xd0] sm:$0xff]  ;;  %v670_v60 = vld [vmem:[#allocation2 + $0x1c0] sm:$0xff] }
 0x179   : > { %1363 = vst [vmem:[#allocation2 + $0x60] sm:$0xff] %v1299_v63  ;;  %1395 = vst [vmem:[#allocation2 + $0x160] sm:$0xff] %v1331_v0  ;;  %v1300_v7 = vadd.f32 %v1083_v5, %v627_v61  ;;  %v1332_v8 = vadd.f32 %v1211_v6, %v659_v62  ;;  %v672_v58 = vld [vmem:[#allocation2 + $0x1d0] sm:$0xff]  ;;  %v641_v63 = vld [vmem:[#allocation2 + $0xd8] sm:$0xff] }
 0x17a   : > { %1366 = vst [vmem:[#allocation2 + $0x78] sm:$0xff] %v1302_v3  ;;  %1398 = vst [vmem:[#allocation2 + $0x178] sm:$0xff] %v1334_v4  ;;  %v673_v0 = vld [vmem:[#allocation2 + $0x1d8] sm:$0xff]  ;;  %v639_v5 = vld [vmem:[#allocation2 + $0xc8] sm:$0xff] }
 0x17b   : > { %1364 = vst [vmem:[#allocation2 + $0x68] sm:$0xff] %v1300_v7  ;;  %1396 = vst [vmem:[#allocation2 + $0x168] sm:$0xff] %v1332_v8  ;;  %v671_v6 = vld [vmem:[#allocation2 + $0x1c8] sm:$0xff] }
 0x17d   : > { %v1923_v13 = vpop.f32.mrb[16].mxu0  ;;  %v1955_v14 = vpop.f32.mrb[16].mxu1 }
 0x17e   : > { %v1305_v17 = vadd.f32 %v1923_v13, %v632_v9  ;;  %v1337_v18 = vadd.f32 %v1955_v14, %v664_v10  ;;  %v1096_v19 = vpop.f32.mrb[17].mxu0  ;;  %v1224_v20 = vpop.f32.mrb[17].mxu1 }
 0x17f   : > { %v1303_v23 = vadd.f32 %v1096_v19, %v630_v11  ;;  %v1335_v24 = vadd.f32 %v1224_v20, %v662_v12  ;;  %v1924_v25 = vpop.f32.mrb[18].mxu0  ;;  %v1956_v26 = vpop.f32.mrb[18].mxu1  ;;  %v642_v19 = vld [vmem:[#allocation2 + $0xe0] sm:$0xff] }
 0x180   : > { %1369 = vst [vmem:[#allocation2 + $0x90] sm:$0xff] %v1305_v17  ;;  %1401 = vst [vmem:[#allocation2 + $0x190] sm:$0xff] %v1337_v18  ;;  %v1306_v27 = vadd.f32 %v1924_v25, %v633_v15  ;;  %v1338_v28 = vadd.f32 %v1956_v26, %v665_v16  ;;  %v1099_v29 = vpop.f32.mrb[19].mxu0  ;;  %v1227_v30 = vpop.f32.mrb[19].mxu1  ;;  %v644_v17 = vld [vmem:[#allocation2 + $0xf0] sm:$0xff]  ;;  %v674_v20 = vld [vmem:[#allocation2 + $0x1e0] sm:$0xff] }
 0x181   : > { %1367 = vst [vmem:[#allocation2 + $0x80] sm:$0xff] %v1303_v23  ;;  %1399 = vst [vmem:[#allocation2 + $0x180] sm:$0xff] %v1335_v24  ;;  %v1304_v31 = vadd.f32 %v1099_v29, %v631_v21  ;;  %v1336_v32 = vadd.f32 %v1227_v30, %v663_v22  ;;  %v676_v18 = vld [vmem:[#allocation2 + $0x1f0] sm:$0xff]  ;;  %v645_v23 = vld [vmem:[#allocation2 + $0xf8] sm:$0xff] }
 0x182   : > { %1370 = vst [vmem:[#allocation2 + $0x98] sm:$0xff] %v1306_v27  ;;  %1402 = vst [vmem:[#allocation2 + $0x198] sm:$0xff] %v1338_v28  ;;  %v677_v24 = vld [vmem:[#allocation2 + $0x1f8] sm:$0xff]  ;;  %v643_v29 = vld [vmem:[#allocation2 + $0xe8] sm:$0xff] }
 0x183   : > { %1368 = vst [vmem:[#allocation2 + $0x88] sm:$0xff] %v1304_v31  ;;  %1400 = vst [vmem:[#allocation2 + $0x188] sm:$0xff] %v1336_v32  ;;  %v675_v30 = vld [vmem:[#allocation2 + $0x1e8] sm:$0xff] }
 0x185   : > { %v1927_v37 = vpop.f32.mrb[20].mxu0  ;;  %v1959_v38 = vpop.f32.mrb[20].mxu1 }
 0x186   : > { %v1309_v41 = vadd.f32 %v1927_v37, %v636_v33  ;;  %v1341_v42 = vadd.f32 %v1959_v38, %v668_v34  ;;  %v1112_v43 = vpop.f32.mrb[21].mxu0  ;;  %v1240_v44 = vpop.f32.mrb[21].mxu1 }
 0x187   : > { %v1307_v47 = vadd.f32 %v1112_v43, %v634_v35  ;;  %v1339_v48 = vadd.f32 %v1240_v44, %v666_v36  ;;  %v1928_v49 = vpop.f32.mrb[22].mxu0  ;;  %v1960_v50 = vpop.f32.mrb[22].mxu1  ;;  %v1420_v43 = vld [vmem:[#allocation2 + $0x8] sm:$0xff] (!%p1843_p11) }
 0x188   : > { %1373 = vst [vmem:[#allocation2 + $0xb0] sm:$0xff] %v1309_v41  ;;  %1405 = vst [vmem:[#allocation2 + $0x1b0] sm:$0xff] %v1341_v42  ;;  %v1310_v51 = vadd.f32 %v1928_v49, %v637_v39  ;;  %v1342_v52 = vadd.f32 %v1960_v50, %v669_v40  ;;  %v1115_v53 = vpop.f32.mrb[23].mxu0  ;;  %v1243_v54 = vpop.f32.mrb[23].mxu1  ;;  %v1419_v41 = vld [vmem:[#allocation2] sm:$0xff] (!%p1843_p11) }
 0x189   : > { %1371 = vst [vmem:[#allocation2 + $0xa0] sm:$0xff] %v1307_v47  ;;  %1403 = vst [vmem:[#allocation2 + $0x1a0] sm:$0xff] %v1339_v48  ;;  %v1308_v55 = vadd.f32 %v1115_v53, %v635_v45  ;;  %v1340_v56 = vadd.f32 %v1243_v54, %v667_v46  ;;  %v2550_v42 = vld [vmem:[%s2825_s2] ss:$0 sm:$0xff] (!%p1843_p11)  ;;  %v1421_v46 = vld [vmem:[#allocation2 + $0x10] sm:$0xff] (!%p1843_p11) }
 0x18a   : > { %1374 = vst [vmem:[#allocation2 + $0xb8] sm:$0xff] %v1310_v51  ;;  %1406 = vst [vmem:[#allocation2 + $0x1b8] sm:$0xff] %v1342_v52  ;;  %v1490_v44 = vadd.f32 (!%p1843_p11), %v2550_v42, %v1419_v41  ;;  %v1491_v45 = vadd.f32 (!%p1843_p11), %v2550_v42, %v1420_v43  ;;  %v1422_v47 = vld [vmem:[#allocation2 + $0x18] sm:$0xff] (!%p1843_p11)  ;;  %v1423_v48 = vld [vmem:[#allocation2 + $0x20] sm:$0xff] (!%p1843_p11)  ;;  %v1492_v49 = vadd.f32 (!%p1843_p11), %v2550_v42, %v1421_v46 }
 0x18b   : > { %1372 = vst [vmem:[#allocation2 + $0xa8] sm:$0xff] %v1308_v55  ;;  %1404 = vst [vmem:[#allocation2 + $0x1a8] sm:$0xff] %v1340_v56  ;;  %v1493_v50 = vadd.f32 (!%p1843_p11), %v2550_v42, %v1422_v47  ;;  %v1424_v51 = vld [vmem:[#allocation2 + $0x28] sm:$0xff] (!%p1843_p11)  ;;  %v1425_v52 = vld [vmem:[#allocation2 + $0x30] sm:$0xff] (!%p1843_p11)  ;;  %v1494_v53 = vadd.f32 (!%p1843_p11), %v2550_v42, %v1423_v48 }
 0x18c   : > { %2066 = vtanh.f32 (!%p1843_p11), %v1490_v44  ;;  %v1426_v54 = vld [vmem:[#allocation2 + $0x38] sm:$0xff] (!%p1843_p11)  ;;  %v1495_v55 = vadd.f32 (!%p1843_p11), %v2550_v42, %v1424_v51  ;;  %v1427_v56 = vld [vmem:[#allocation2 + $0x40] sm:$0xff] (!%p1843_p11) }
 0x18d   : > { %v1931_v61 = vpop.f32.mrb[24].mxu0  ;;  %v1963_v62 = vpop.f32.mrb[24].mxu1  ;;  %2068 = vtanh.f32 (!%p1843_p11), %v1491_v45 }
 0x18e   : > { %v1313_v1 = vadd.f32 %v1931_v61, %v640_v57  ;;  %v1345_v2 = vadd.f32 %v1963_v62, %v672_v58  ;;  %v1128_v3 = vpop.f32.mrb[25].mxu0  ;;  %v1256_v4 = vpop.f32.mrb[25].mxu1  ;;  %2070 = vtanh.f32 (!%p1843_p11), %v1492_v49  ;;  %v1496_v57 = vadd.f32 (!%p1843_p11), %v2550_v42, %v1425_v52  ;;  %v1428_v58 = vld [vmem:[#allocation2 + $0x48] sm:$0xff] (!%p1843_p11)  ;;  %v1430_v62 = vld [vmem:[#allocation2 + $0x58] sm:$0xff] (!%p1843_p11) }
 0x18f   : > { %v1311_v7 = vadd.f32 %v1128_v3, %v638_v59  ;;  %v1343_v8 = vadd.f32 %v1256_v4, %v670_v60  ;;  %v1932_v9 = vpop.f32.mrb[26].mxu0  ;;  %v1964_v10 = vpop.f32.mrb[26].mxu1  ;;  %2072 = vtanh.f32 (!%p1843_p11), %v1493_v50  ;;  %v1497_v59 = vadd.f32 (!%p1843_p11), %v2550_v42, %v1426_v54  ;;  %v1429_v60 = vld [vmem:[#allocation2 + $0x50] sm:$0xff] (!%p1843_p11) }
 0x190   : > { %1377 = vst [vmem:[#allocation2 + $0xd0] sm:$0xff] %v1313_v1  ;;  %1409 = vst [vmem:[#allocation2 + $0x1d0] sm:$0xff] %v1345_v2  ;;  %v1314_v11 = vadd.f32 %v1932_v9, %v641_v63  ;;  %v1346_v12 = vadd.f32 %v1964_v10, %v673_v0  ;;  %v1131_v13 = vpop.f32.mrb[27].mxu0  ;;  %v1259_v14 = vpop.f32.mrb[27].mxu1  ;;  %2074 = vtanh.f32 (!%p1843_p11), %v1494_v53  ;;  %v1498_v61 = vadd.f32 (!%p1843_p11), %v2550_v42, %v1427_v56  ;;  %v1431_v0 = vld [vmem:[#allocation2 + $0x60] sm:$0xff] (!%p1843_p11)  ;;  %v1432_v2 = vld [vmem:[#allocation2 + $0x68] sm:$0xff] (!%p1843_p11) }
 0x191   : > { %1375 = vst [vmem:[#allocation2 + $0xc0] sm:$0xff] %v1311_v7  ;;  %1407 = vst [vmem:[#allocation2 + $0x1c0] sm:$0xff] %v1343_v8  ;;  %v1312_v15 = vadd.f32 %v1131_v13, %v639_v5  ;;  %v1344_v16 = vadd.f32 %v1259_v14, %v671_v6  ;;  %2076 = vtanh.f32 (!%p1843_p11), %v1495_v55  ;;  %v1499_v63 = vadd.f32 (!%p1843_p11), %v2550_v42, %v1428_v58  ;;  %v1433_v4 = vld [vmem:[#allocation2 + $0x70] sm:$0xff] (!%p1843_p11)  ;;  %v1434_v6 = vld [vmem:[#allocation2 + $0x78] sm:$0xff] (!%p1843_p11) }
 0x192   : > { %1378 = vst [vmem:[#allocation2 + $0xd8] sm:$0xff] %v1314_v11  ;;  %1410 = vst [vmem:[#allocation2 + $0x1d8] sm:$0xff] %v1346_v12  ;;  %2078 = vtanh.f32 (!%p1843_p11), %v1496_v57  ;;  %v1500_v1 = vadd.f32 (!%p1843_p11), %v2550_v42, %v1429_v60  ;;  %v1501_v3 = vadd.f32 (!%p1843_p11), %v2550_v42, %v1430_v62  ;;  %v1502_v5 = vadd.f32 (!%p1843_p11), %v2550_v42, %v1431_v0  ;;  %v1435_v8 = vld [vmem:[#allocation2 + $0x80] sm:$0xff] (!%p1843_p11)  ;;  %v1436_v11 = vld [vmem:[#allocation2 + $0x88] sm:$0xff] (!%p1843_p11) }
 0x193   : > { %1376 = vst [vmem:[#allocation2 + $0xc8] sm:$0xff] %v1312_v15  ;;  %1408 = vst [vmem:[#allocation2 + $0x1c8] sm:$0xff] %v1344_v16  ;;  %2080 = vtanh.f32 (!%p1843_p11), %v1497_v59  ;;  %v1503_v7 = vadd.f32 (!%p1843_p11), %v2550_v42, %v1432_v2  ;;  %v1504_v10 = vadd.f32 (!%p1843_p11), %v2550_v42, %v1433_v4  ;;  %v1505_v13 = vadd.f32 (!%p1843_p11), %v2550_v42, %v1434_v6  ;;  %v1437_v14 = vld [vmem:[#allocation2 + $0x90] sm:$0xff] (!%p1843_p11)  ;;  %v1451_v57 = vld [vmem:[#allocation2 + $0x100] sm:$0xff] (!%p1843_p11) }
 0x194   : > { %2082 = vtanh.f32 (!%p1843_p11), %v1498_v61  ;;  %v1506_v16 = vadd.f32 (!%p1843_p11), %v2550_v42, %v1435_v8  ;;  %v1452_v60 = vld [vmem:[#allocation2 + $0x108] sm:$0xff] (!%p1843_p11)  ;;  %v1454_v2 = vld [vmem:[#allocation2 + $0x118] sm:$0xff] (!%p1843_p11) }
 0x195   : > { %v1935_v21 = vpop.f32.mrb[28].mxu0  ;;  %v1967_v22 = vpop.f32.mrb[28].mxu1  ;;  %1418 = sbr.rel (%p1843_p11) target bundleno = 474 (0x1da), region = 81  ;;  %2084 = vtanh.f32 (!%p1843_p11), %v1499_v63  ;;  %v1453_v63 = vld [vmem:[#allocation2 + $0x110] sm:$0xff] (!%p1843_p11)  ;;  %v1523_v4 = vadd.f32 (!%p1843_p11), %v2550_v42, %v1452_v60  ;;  %v1456_v8 = vld [vmem:[#allocation2 + $0x128] sm:$0xff] (!%p1843_p11) }
 0x196   : > { %v1317_v25 = vadd.f32 %v1935_v21, %v644_v17  ;;  %v1349_v26 = vadd.f32 %v1967_v22, %v676_v18  ;;  %v1144_v27 = vpop.f32.mrb[29].mxu0  ;;  %v1272_v28 = vpop.f32.mrb[29].mxu1  ;;  %2086 = vtanh.f32 (!%p1843_p11), %v1500_v1  ;;  %v1438_v17 = vld [vmem:[#allocation2 + $0x98] sm:$0xff] (!%p1843_p11)  ;;  %v1508_v22 = vadd.f32 (!%p1843_p11), %v2550_v42, %v1437_v14  ;;  %v1473_v60 = vld [vmem:[#allocation2 + $0x1b0] sm:$0xff] (!%p1843_p11) }
 0x197   : > { %v1315_v31 = vadd.f32 %v1144_v27, %v642_v19  ;;  %v1347_v32 = vadd.f32 %v1272_v28, %v674_v20  ;;  %v1936_v33 = vpop.f32.mrb[30].mxu0  ;;  %v1968_v34 = vpop.f32.mrb[30].mxu1  ;;  %2088 = vtanh.f32 (!%p1843_p11), %v1501_v3  ;;  %v1507_v19 = vadd.f32 (!%p1843_p11), %v2550_v42, %v1436_v11  ;;  %v1439_v20 = vld [vmem:[#allocation2 + $0xa0] sm:$0xff] (!%p1843_p11)  ;;  %v1457_v11 = vld [vmem:[#allocation2 + $0x130] sm:$0xff] (!%p1843_p11)  ;;  %v1458_v14 = vld [vmem:[#allocation2 + $0x138] sm:$0xff] (!%p1843_p11) }
 0x198   : > { %1381 = vst [vmem:[#allocation2 + $0xf0] sm:$0xff] %v1317_v25  ;;  %1413 = vst [vmem:[#allocation2 + $0x1f0] sm:$0xff] %v1349_v26  ;;  %v1318_v35 = vadd.f32 %v1936_v33, %v645_v23  ;;  %v1350_v36 = vadd.f32 %v1968_v34, %v677_v24  ;;  %v1147_v37 = vpop.f32.mrb[31].mxu0  ;;  %v1275_v38 = vpop.f32.mrb[31].mxu1  ;;  %2090 = vtanh.f32 (!%p1843_p11), %v1502_v5  ;;  %v1440_v23 = vld [vmem:[#allocation2 + $0xa8] sm:$0xff] (!%p1843_p11)  ;;  %v1509_v25 = vadd.f32 (!%p1843_p11), %v2550_v42, %v1438_v17  ;;  %v1441_v26 = vld [vmem:[#allocation2 + $0xb0] sm:$0xff] (!%p1843_p11) }
 0x199   : > { %1379 = vst [vmem:[#allocation2 + $0xe0] sm:$0xff] %v1315_v31  ;;  %1411 = vst [vmem:[#allocation2 + $0x1e0] sm:$0xff] %v1347_v32  ;;  %v1316_v39 = vadd.f32 %v1147_v37, %v643_v29  ;;  %v1348_v40 = vadd.f32 %v1275_v38, %v675_v30  ;;  %v2067_v9 = vpop.eup (!%p1843_p11), %2066  ;;  %2092 = vtanh.f32 (!%p1843_p11), %v1503_v7  ;;  %v1510_v28 = vadd.f32 (!%p1843_p11), %v2550_v42, %v1439_v20  ;;  %v1442_v29 = vld [vmem:[#allocation2 + $0xb8] sm:$0xff] (!%p1843_p11)  ;;  %v1443_v32 = vld [vmem:[#allocation2 + $0xc0] sm:$0xff] (!%p1843_p11) }
 0x19a   : > { %1382 = vst [vmem:[#allocation2 + $0xf8] sm:$0xff] %v1318_v35  ;;  %1414 = vst [vmem:[#allocation2 + $0x1f8] sm:$0xff] %v1350_v36  ;;  %v2069_v12 = vpop.eup (!%p1843_p11), %2068  ;;  %2094 = vtanh.f32 (!%p1843_p11), %v1504_v10  ;;  %v1511_v31 = vadd.f32 (!%p1843_p11), %v2550_v42, %v1440_v23  ;;  %v1512_v34 = vadd.f32 (!%p1843_p11), %v2550_v42, %v1441_v26  ;;  %v1444_v35 = vld [vmem:[#allocation2 + $0xc8] sm:$0xff] (!%p1843_p11)  ;;  %v1513_v37 = vadd.f32 (!%p1843_p11), %v2550_v42, %v1442_v29  ;;  %v1445_v38 = vld [vmem:[#allocation2 + $0xd0] sm:$0xff] (!%p1843_p11) }
 0x19b   : > { %1380 = vst [vmem:[#allocation2 + $0xe8] sm:$0xff] %v1316_v39  ;;  %1412 = vst [vmem:[#allocation2 + $0x1e8] sm:$0xff] %v1348_v40  ;;  %v2071_v15 = vpop.eup (!%p1843_p11), %2070  ;;  %2096 = vtanh.f32 (!%p1843_p11), %v1505_v13  ;;  %v1514_v40 = vadd.f32 (!%p1843_p11), %v2550_v42, %v1443_v32  ;;  %v1446_v41 = vld [vmem:[#allocation2 + $0xd8] sm:$0xff] (!%p1843_p11)  ;;  %v1515_v44 = vadd.f32 (!%p1843_p11), %v2550_v42, %v1444_v35  ;;  %v1516_v47 = vadd.f32 (!%p1843_p11), %v2550_v42, %v1445_v38  ;;  %v1455_v5 = vld [vmem:[#allocation2 + $0x120] sm:$0xff] (!%p1843_p11) }
 0x19c   : > { %1618 = vst [vmem:[%s2826_s3] sm:$0xff] %v2067_v9  ;;  %1619 = vst [vmem:[%s2826_s3 + $0x8] sm:$0xff] %v2069_v12  ;;  %v2073_v18 = vpop.eup %2072  ;;  %2098 = vtanh.f32 %v1506_v16  ;;  %v1517_v50 = vadd.f32 %v2550_v42, %v1446_v41  ;;  %v1522_v1 = vadd.f32 %v2550_v42, %v1451_v57  ;;  %v1524_v7 = vadd.f32 %v2550_v42, %v1453_v63  ;;  %v1459_v17 = vld [vmem:[#allocation2 + $0x140] sm:$0xff]  ;;  %v1460_v20 = vld [vmem:[#allocation2 + $0x148] sm:$0xff] }
 0x19d   : > { %1620 = vst [vmem:[%s2826_s3 + $0x10] sm:$0xff] %v2071_v15  ;;  %v2075_v21 = vpop.eup %2074  ;;  %1621 = vst [vmem:[%s2826_s3 + $0x18] sm:$0xff] %v2073_v18  ;;  %2100 = vtanh.f32 %v1507_v19  ;;  %v1525_v10 = vadd.f32 %v2550_v42, %v1454_v2  ;;  %v1526_v13 = vadd.f32 %v2550_v42, %v1455_v5  ;;  %v1527_v16 = vadd.f32 %v2550_v42, %v1456_v8  ;;  %v1461_v23 = vld [vmem:[#allocation2 + $0x150] sm:$0xff]  ;;  %v1462_v26 = vld [vmem:[#allocation2 + $0x158] sm:$0xff] }
 0x19e   : > { %v2077_v24 = vpop.eup %2076  ;;  %1622 = vst [vmem:[%s2826_s3 + $0x20] sm:$0xff] %v2075_v21  ;;  %2102 = vtanh.f32 %v1508_v22  ;;  %v1528_v19 = vadd.f32 %v2550_v42, %v1457_v11  ;;  %v1529_v22 = vadd.f32 %v2550_v42, %v1458_v14  ;;  %v1463_v29 = vld [vmem:[#allocation2 + $0x160] sm:$0xff]  ;;  %v1464_v32 = vld [vmem:[#allocation2 + $0x168] sm:$0xff]  ;;  %v1465_v35 = vld [vmem:[#allocation2 + $0x170] sm:$0xff] }
 0x19f   : > { %v2079_v27 = vpop.eup %2078  ;;  %1623 = vst [vmem:[%s2826_s3 + $0x28] sm:$0xff] %v2077_v24  ;;  %2104 = vtanh.f32 %v1509_v25  ;;  %v1449_v51 = vld [vmem:[#allocation2 + $0xf0] sm:$0xff]  ;;  %v1530_v25 = vadd.f32 %v2550_v42, %v1459_v17  ;;  %v1466_v38 = vld [vmem:[#allocation2 + $0x178] sm:$0xff]  ;;  %v1467_v41 = vld [vmem:[#allocation2 + $0x180] sm:$0xff] }
 0x1a0   : > { %v2081_v30 = vpop.eup %2080  ;;  %1624 = vst [vmem:[%s2826_s3 + $0x30] sm:$0xff] %v2079_v27  ;;  %2106 = vtanh.f32 %v1510_v28  ;;  %v1447_v45 = vld [vmem:[#allocation2 + $0xe0] sm:$0xff]  ;;  %v1520_v59 = vadd.f32 %v2550_v42, %v1449_v51  ;;  %v1531_v28 = vadd.f32 %v2550_v42, %v1460_v20  ;;  %v1470_v51 = vld [vmem:[#allocation2 + $0x198] sm:$0xff]  ;;  %v1472_v57 = vld [vmem:[#allocation2 + $0x1a8] sm:$0xff] }
 0x1a1   : > { %v2083_v33 = vpop.eup %2082  ;;  %1625 = vst [vmem:[%s2826_s3 + $0x38] sm:$0xff] %v2081_v30  ;;  %2108 = vtanh.f32 %v1511_v31  ;;  %v1518_v53 = vadd.f32 %v2550_v42, %v1447_v45  ;;  %v1450_v54 = vld [vmem:[#allocation2 + $0xf8] sm:$0xff]  ;;  %v1532_v31 = vadd.f32 %v2550_v42, %v1461_v23  ;;  %v1468_v45 = vld [vmem:[#allocation2 + $0x188] sm:$0xff]  ;;  %v1475_v2 = vld [vmem:[#allocation2 + $0x1c0] sm:$0xff] }
 0x1a2   : > { %v2085_v36 = vpop.eup %2084  ;;  %1626 = vst [vmem:[%s2826_s3 + $0x40] sm:$0xff] %v2083_v33  ;;  %2110 = vtanh.f32 %v1512_v34  ;;  %v1448_v48 = vld [vmem:[#allocation2 + $0xe8] sm:$0xff]  ;;  %v1521_v62 = vadd.f32 %v2550_v42, %v1450_v54  ;;  %v1533_v34 = vadd.f32 %v2550_v42, %v1462_v26  ;;  %v1471_v54 = vld [vmem:[#allocation2 + $0x1a0] sm:$0xff]  ;;  %v1474_v63 = vld [vmem:[#allocation2 + $0x1b8] sm:$0xff] }
 0x1a3   : > { %v2087_v39 = vpop.eup %2086  ;;  %1627 = vst [vmem:[%s2826_s3 + $0x48] sm:$0xff] %v2085_v36  ;;  %2112 = vtanh.f32 %v1513_v37  ;;  %v1519_v56 = vadd.f32 %v2550_v42, %v1448_v48  ;;  %v1534_v37 = vadd.f32 %v2550_v42, %v1463_v29  ;;  %v1469_v48 = vld [vmem:[#allocation2 + $0x190] sm:$0xff]  ;;  %v1476_v5 = vld [vmem:[#allocation2 + $0x1c8] sm:$0xff]  ;;  %v1478_v11 = vld [vmem:[#allocation2 + $0x1d8] sm:$0xff] }
 0x1a4   : > { %v2089_v43 = vpop.eup %2088  ;;  %1628 = vst [vmem:[%s2826_s3 + $0x50] sm:$0xff] %v2087_v39  ;;  %2114 = vtanh.f32 %v1514_v40  ;;  %v1535_v40 = vadd.f32 %v2550_v42, %v1464_v32  ;;  %v1477_v8 = vld [vmem:[#allocation2 + $0x1d0] sm:$0xff]  ;;  %v1479_v14 = vld [vmem:[#allocation2 + $0x1e0] sm:$0xff]  ;;  %v1480_v17 = vld [vmem:[#allocation2 + $0x1e8] sm:$0xff] }
 0x1a5   : > { %v2091_v46 = vpop.eup %2090  ;;  %1629 = vst [vmem:[%s2826_s3 + $0x58] sm:$0xff] %v2089_v43  ;;  %2116 = vtanh.f32 %v1515_v44  ;;  %v1536_v44 = vadd.f32 %v2550_v42, %v1465_v35  ;;  %v1481_v20 = vld [vmem:[#allocation2 + $0x1f0] sm:$0xff]  ;;  %v1482_v23 = vld [vmem:[#allocation2 + $0x1f8] sm:$0xff] }
 0x1a6   : > { %v2093_v49 = vpop.eup %2092  ;;  %1630 = vst [vmem:[%s2826_s3 + $0x60] sm:$0xff] %v2091_v46  ;;  %2118 = vtanh.f32 %v1516_v47  ;;  %v1537_v47 = vadd.f32 %v2550_v42, %v1466_v38  ;;  %v1553_v29 = vadd.f32 %v2550_v42, %v1482_v23 }
 0x1a7   : > { %v2095_v52 = vpop.eup %2094  ;;  %1631 = vst [vmem:[%s2826_s3 + $0x68] sm:$0xff] %v2093_v49  ;;  %2120 = vtanh.f32 %v1517_v50  ;;  %v1538_v50 = vadd.f32 %v2550_v42, %v1467_v41 }
 0x1a8   : > { %v2097_v55 = vpop.eup %2096  ;;  %1632 = vst [vmem:[%s2826_s3 + $0x70] sm:$0xff] %v2095_v52  ;;  %2122 = vtanh.f32 %v1518_v53  ;;  %v1539_v53 = vadd.f32 %v2550_v42, %v1468_v45 }
 0x1a9   : > { %v2099_v58 = vpop.eup %2098  ;;  %1633 = vst [vmem:[%s2826_s3 + $0x78] sm:$0xff] %v2097_v55  ;;  %2124 = vtanh.f32 %v1519_v56  ;;  %v1540_v56 = vadd.f32 %v2550_v42, %v1469_v48 }
 0x1aa   : > { %v2101_v61 = vpop.eup %2100  ;;  %1634 = vst [vmem:[%s2826_s3 + $0x80] sm:$0xff] %v2099_v58  ;;  %2126 = vtanh.f32 %v1520_v59  ;;  %v1541_v59 = vadd.f32 %v2550_v42, %v1470_v51 }
 0x1ab   : > { %v2103_v0 = vpop.eup %2102  ;;  %1635 = vst [vmem:[%s2826_s3 + $0x88] sm:$0xff] %v2101_v61  ;;  %2128 = vtanh.f32 %v1521_v62  ;;  %v1542_v62 = vadd.f32 %v2550_v42, %v1471_v54 }
 0x1ac   : > { %v2105_v3 = vpop.eup %2104  ;;  %1636 = vst [vmem:[%s2826_s3 + $0x90] sm:$0xff] %v2103_v0  ;;  %2130 = vtanh.f32 %v1522_v1  ;;  %v1543_v1 = vadd.f32 %v2550_v42, %v1472_v57 }
 0x1ad   : > { %v2107_v6 = vpop.eup %2106  ;;  %1637 = vst [vmem:[%s2826_s3 + $0x98] sm:$0xff] %v2105_v3  ;;  %2132 = vtanh.f32 %v1523_v4  ;;  %v1544_v4 = vadd.f32 %v2550_v42, %v1473_v60 }
 0x1ae   : > { %v2109_v9 = vpop.eup %2108  ;;  %1638 = vst [vmem:[%s2826_s3 + $0xa0] sm:$0xff] %v2107_v6  ;;  %2134 = vtanh.f32 %v1524_v7  ;;  %v1545_v7 = vadd.f32 %v2550_v42, %v1474_v63 }
 0x1af   : > { %v2111_v12 = vpop.eup %2110  ;;  %1639 = vst [vmem:[%s2826_s3 + $0xa8] sm:$0xff] %v2109_v9  ;;  %2136 = vtanh.f32 %v1525_v10  ;;  %v1546_v10 = vadd.f32 %v2550_v42, %v1475_v2 }
 0x1b0   : > { %v2113_v15 = vpop.eup %2112  ;;  %1640 = vst [vmem:[%s2826_s3 + $0xb0] sm:$0xff] %v2111_v12  ;;  %2138 = vtanh.f32 %v1526_v13  ;;  %v1547_v13 = vadd.f32 %v2550_v42, %v1476_v5 }
 0x1b1   : > { %v2115_v18 = vpop.eup %2114  ;;  %1641 = vst [vmem:[%s2826_s3 + $0xb8] sm:$0xff] %v2113_v15  ;;  %2140 = vtanh.f32 %v1527_v16  ;;  %v1548_v16 = vadd.f32 %v2550_v42, %v1477_v8 }
 0x1b2   : > { %v2117_v21 = vpop.eup %2116  ;;  %1642 = vst [vmem:[%s2826_s3 + $0xc0] sm:$0xff] %v2115_v18  ;;  %2142 = vtanh.f32 %v1528_v19  ;;  %v1549_v19 = vadd.f32 %v2550_v42, %v1478_v11 }
 0x1b3   : > { %v2119_v24 = vpop.eup %2118  ;;  %1643 = vst [vmem:[%s2826_s3 + $0xc8] sm:$0xff] %v2117_v21  ;;  %2144 = vtanh.f32 %v1529_v22  ;;  %v1550_v22 = vadd.f32 %v2550_v42, %v1479_v14 }
 0x1b4   : > { %v2121_v27 = vpop.eup %2120  ;;  %1644 = vst [vmem:[%s2826_s3 + $0xd0] sm:$0xff] %v2119_v24  ;;  %2146 = vtanh.f32 %v1530_v25  ;;  %v1551_v25 = vadd.f32 %v2550_v42, %v1480_v17 }
 0x1b5   : > { %v2123_v30 = vpop.eup %2122  ;;  %1645 = vst [vmem:[%s2826_s3 + $0xd8] sm:$0xff] %v2121_v27  ;;  %2148 = vtanh.f32 %v1531_v28  ;;  %v1552_v27 = vadd.f32 %v2550_v42, %v1481_v20 }
 0x1b6   : > { %v2125_v33 = vpop.eup %2124  ;;  %1646 = vst [vmem:[%s2826_s3 + $0xe0] sm:$0xff] %v2123_v30  ;;  %2150 = vtanh.f32 %v1532_v31 }
 0x1b7   : > { %v2127_v36 = vpop.eup %2126  ;;  %1647 = vst [vmem:[%s2826_s3 + $0xe8] sm:$0xff] %v2125_v33  ;;  %2152 = vtanh.f32 %v1533_v34 }
 0x1b8   : > { %v2129_v39 = vpop.eup %2128  ;;  %1648 = vst [vmem:[%s2826_s3 + $0xf0] sm:$0xff] %v2127_v36  ;;  %2154 = vtanh.f32 %v1534_v37 }
 0x1b9   : > { %v2131_v43 = vpop.eup %2130  ;;  %1649 = vst [vmem:[%s2826_s3 + $0xf8] sm:$0xff] %v2129_v39  ;;  %2156 = vtanh.f32 %v1535_v40 }
 0x1ba   : > { %v2133_v46 = vpop.eup %2132  ;;  %1650 = vst [vmem:[%s2826_s3 + $0x100] sm:$0xff] %v2131_v43  ;;  %2158 = vtanh.f32 %v1536_v44 }
 0x1bb   : > { %v2135_v49 = vpop.eup %2134  ;;  %1651 = vst [vmem:[%s2826_s3 + $0x108] sm:$0xff] %v2133_v46  ;;  %2160 = vtanh.f32 %v1537_v47 }
 0x1bc   : > { %v2137_v52 = vpop.eup %2136  ;;  %1652 = vst [vmem:[%s2826_s3 + $0x110] sm:$0xff] %v2135_v49  ;;  %2162 = vtanh.f32 %v1538_v50 }
 0x1bd   : > { %v2139_v55 = vpop.eup %2138  ;;  %1653 = vst [vmem:[%s2826_s3 + $0x118] sm:$0xff] %v2137_v52  ;;  %2164 = vtanh.f32 %v1539_v53 }
 0x1be   : > { %v2141_v58 = vpop.eup %2140  ;;  %1654 = vst [vmem:[%s2826_s3 + $0x120] sm:$0xff] %v2139_v55  ;;  %2166 = vtanh.f32 %v1540_v56 }
 0x1bf   : > { %v2143_v61 = vpop.eup %2142  ;;  %1655 = vst [vmem:[%s2826_s3 + $0x128] sm:$0xff] %v2141_v58  ;;  %2168 = vtanh.f32 %v1541_v59 }
 0x1c0   : > { %v2145_v0 = vpop.eup %2144  ;;  %1656 = vst [vmem:[%s2826_s3 + $0x130] sm:$0xff] %v2143_v61  ;;  %2170 = vtanh.f32 %v1542_v62 }
 0x1c1   : > { %v2147_v3 = vpop.eup %2146  ;;  %1657 = vst [vmem:[%s2826_s3 + $0x138] sm:$0xff] %v2145_v0  ;;  %2172 = vtanh.f32 %v1543_v1 }
 0x1c2   : > { %v2149_v6 = vpop.eup %2148  ;;  %1658 = vst [vmem:[%s2826_s3 + $0x140] sm:$0xff] %v2147_v3  ;;  %2174 = vtanh.f32 %v1544_v4 }
 0x1c3   : > { %v2151_v9 = vpop.eup %2150  ;;  %1659 = vst [vmem:[%s2826_s3 + $0x148] sm:$0xff] %v2149_v6  ;;  %2176 = vtanh.f32 %v1545_v7 }
 0x1c4   : > { %v2153_v12 = vpop.eup %2152  ;;  %1660 = vst [vmem:[%s2826_s3 + $0x150] sm:$0xff] %v2151_v9  ;;  %2178 = vtanh.f32 %v1546_v10 }
 0x1c5   : > { %v2155_v15 = vpop.eup %2154  ;;  %1661 = vst [vmem:[%s2826_s3 + $0x158] sm:$0xff] %v2153_v12  ;;  %2180 = vtanh.f32 %v1547_v13 }
 0x1c6   : > { %v2157_v18 = vpop.eup %2156  ;;  %1662 = vst [vmem:[%s2826_s3 + $0x160] sm:$0xff] %v2155_v15  ;;  %2182 = vtanh.f32 %v1548_v16 }
 0x1c7   : > { %v2159_v21 = vpop.eup %2158  ;;  %1663 = vst [vmem:[%s2826_s3 + $0x168] sm:$0xff] %v2157_v18  ;;  %2184 = vtanh.f32 %v1549_v19 }
 0x1c8   : > { %v2161_v24 = vpop.eup %2160  ;;  %1664 = vst [vmem:[%s2826_s3 + $0x170] sm:$0xff] %v2159_v21  ;;  %2186 = vtanh.f32 %v1550_v22 }
 0x1c9   : > { %v2163_v26 = vpop.eup %2162  ;;  %1665 = vst [vmem:[%s2826_s3 + $0x178] sm:$0xff] %v2161_v24  ;;  %2188 = vtanh.f32 %v1551_v25 }
 0x1ca   : > { %v2165_v28 = vpop.eup %2164  ;;  %1666 = vst [vmem:[%s2826_s3 + $0x180] sm:$0xff] %v2163_v26  ;;  %2190 = vtanh.f32 %v1552_v27 }
 0x1cb   : > { %v2167_v30 = vpop.eup %2166  ;;  %1667 = vst [vmem:[%s2826_s3 + $0x188] sm:$0xff] %v2165_v28  ;;  %2192 = vtanh.f32 %v1553_v29 }
 0x1cc   : > { %v2169_v31 = vpop.eup %2168  ;;  %1668 = vst [vmem:[%s2826_s3 + $0x190] sm:$0xff] %v2167_v30 }
 0x1cd   : > { %v2171_v32 = vpop.eup %2170  ;;  %1669 = vst [vmem:[%s2826_s3 + $0x198] sm:$0xff] %v2169_v31 }
 0x1ce   : > { %v2173_v33 = vpop.eup %2172  ;;  %1670 = vst [vmem:[%s2826_s3 + $0x1a0] sm:$0xff] %v2171_v32 }
 0x1cf   : > { %v2175_v42 = vpop.eup %2174  ;;  %1671 = vst [vmem:[%s2826_s3 + $0x1a8] sm:$0xff] %v2173_v33 }
 0x1d0   : > { %v2177_v34 = vpop.eup %2176  ;;  %1672 = vst [vmem:[%s2826_s3 + $0x1b0] sm:$0xff] %v2175_v42 }
 0x1d1   : > { %v2179_v35 = vpop.eup %2178  ;;  %1673 = vst [vmem:[%s2826_s3 + $0x1b8] sm:$0xff] %v2177_v34 }
 0x1d2   : > { %v2181_v36 = vpop.eup %2180  ;;  %1674 = vst [vmem:[%s2826_s3 + $0x1c0] sm:$0xff] %v2179_v35 }
 0x1d3   : > { %v2183_v37 = vpop.eup %2182  ;;  %1675 = vst [vmem:[%s2826_s3 + $0x1c8] sm:$0xff] %v2181_v36 }
 0x1d4   : > { %v2185_v38 = vpop.eup %2184  ;;  %1676 = vst [vmem:[%s2826_s3 + $0x1d0] sm:$0xff] %v2183_v37 }
 0x1d5   : > { %v2187_v39 = vpop.eup %2186  ;;  %1677 = vst [vmem:[%s2826_s3 + $0x1d8] sm:$0xff] %v2185_v38 }
 0x1d6   : > { %v2189_v40 = vpop.eup %2188  ;;  %1678 = vst [vmem:[%s2826_s3 + $0x1e0] sm:$0xff] %v2187_v39 }
 0x1d7   : > { %v2191_v41 = vpop.eup %2190  ;;  %1679 = vst [vmem:[%s2826_s3 + $0x1e8] sm:$0xff] %v2189_v40 }
 0x1d8   : > { %v2193_v43 = vpop.eup %2192  ;;  %1680 = vst [vmem:[%s2826_s3 + $0x1f0] sm:$0xff] %v2191_v41 }
 0x1d9   : > { %1681 = vst [vmem:[%s2826_s3 + $0x1f8] sm:$0xff] %v2193_v43 }
 0x1da PF: > { %s13_s16 = sadd.s32 1, %s2232_s16   ;;  %s2827_s12 = smov %s2220_s13 }
 0x1db   : > { %p10_p12 = scmp.ge.s32.totalorder %s13_s16, 27   ;;  %s2828_s13 = smov %s2290_s20 }
 0x1dc   : > { %s2829_s14 = smov %s2228_s15  ;;  %s2830_s15 = smov %s2832_s17 }
 0x1dd   :  { %12 = sbr.rel (!%p10_p12) target bundleno = 3 (0x3), region = 122 }

</bundles_post_ra>
